<compile_context>
chip_gen: v7x
topology: tpu7x:2x2x1
jax: 0.10.0
libtpu: 0.0.40
codegen_flags: <defaults>
</compile_context>

<pallas_src>
import math

import jax
import jax.numpy as jnp
from jax.experimental import pallas as pl
from jax.experimental.pallas import tpu as pltpu

# ---------------------------- model hyper-params ----------------------------
INPUT_SIZE = 16
NUM_CLASSES = 5
D_MODEL = 64
NHEAD = 8
D_HEAD = D_MODEL // NHEAD
NUM_ENC_LAYERS = 3
NUM_DEC_LAYERS = 3
DIM_FF = 128
N_AHEAD = 1
LN_EPS = 1e-5
MAX_LEN = 128
ATTN_SCALE = 1.0 / math.sqrt(D_HEAD)
OUT_PAD = 128          # lane-padded output width (dense store, sliced outside)

# order of the parameter slabs passed to the kernel (after src, pe)
_PARAM_ORDER = (
    "in_w", "in_b", "out_w", "out_b",
    "enc_qkv_w", "enc_o_w", "enc_ff1_w", "enc_ff2_w", "enc_pb",
    "dec_sw", "dec_cq_w", "dec_ckv_w", "dec_co_w", "dec_ff1_w", "dec_ff2_w",
    "dec_pb",
)


# ------------------------------ fused kernel --------------------------------
def _make_kernel(bb, seq_len):
    """Build the kernel for a batch-block of `bb` and sequence length `seq_len`."""
    n_rows = bb * seq_len

    def kernel(src_ref, pe_ref,
               in_w_ref, in_b_ref, out_w_ref, out_b_ref,
               enc_qkv_w_ref, enc_o_w_ref, enc_ff1_w_ref, enc_ff2_w_ref,
               enc_pb_ref,
               dec_sw_ref, dec_cq_w_ref, dec_ckv_w_ref, dec_co_w_ref,
               dec_ff1_w_ref, dec_ff2_w_ref, dec_pb_ref,
               out_ref):
        f32 = jnp.float32

        def mm(a, b):
            return jnp.dot(a, b, preferred_element_type=f32)

        def layernorm(x, g, b):
            mu = jnp.mean(x, axis=-1, keepdims=True)
            xc = x - mu
            var = jnp.mean(xc * xc, axis=-1, keepdims=True)
            return xc * jax.lax.rsqrt(var + LN_EPS) * g + b

        def split_heads(x2d, groups, length):
            # [length, groups*Dh] -> [groups, length, Dh] via a 2-D transpose
            # (XLU), a sublane-aligned leading split (free) and a batched swap
            # of the two minor dims -- no 8-lane slicing of the lane dim.
            xt = x2d.T.reshape(groups, D_HEAD, length)
            return jnp.transpose(xt, (0, 2, 1))

        def merge_heads(ctx, length):
            # [NHEAD, length, Dh] -> [length, D_MODEL] (inverse of the above).
            xt = jnp.transpose(ctx, (0, 2, 1)).reshape(D_MODEL, length)
            return xt.T

        def mha(qh, kh, vh, w_o, b_o, lq):
            # Heads batched in the einsum; one K=D_MODEL output projection.
            s = jnp.einsum("hqd,hkd->hqk", qh, kh,
                           preferred_element_type=f32) * ATTN_SCALE
            m = jnp.max(s, axis=-1, keepdims=True)
            p = jnp.exp(s - m)
            p = p * pl.reciprocal(jnp.sum(p, axis=-1, keepdims=True),
                                  approx=True)
            ctx = jnp.einsum("hqk,hkd->hqd", p, vh,
                             preferred_element_type=f32)
            return mm(merge_heads(ctx, lq), w_o) + b_o

        def rep_rows(x):
            return jnp.concatenate([x] * bb, axis=0) if bb > 1 else x

        def cat_rows(parts):
            return jnp.concatenate(parts, axis=0) if bb > 1 else parts[0]

        pe = pe_ref[...]                                   # [L, D]
        pe_rows = rep_rows(pe)                             # [bb*L, D]

        # -------- input projection + positional encoding (dropout = id) -----
        x = mm(src_ref[...].reshape(n_rows, INPUT_SIZE), in_w_ref[...])
        x = x + in_b_ref[...] + pe_rows                    # [bb*L, D]

        # ------------------------------ encoder -----------------------------
        for i in range(NUM_ENC_LAYERS):
            pb = enc_pb_ref[i]                             # [8, 192] bias/LN slab
            qkv_b = pb[0:1, :]
            o_b = pb[1:2, :D_MODEL]
            ff1_b = pb[2:3, :DIM_FF]
            ff2_b = pb[3:4, :D_MODEL]
            ln1_g, ln1_b = pb[4:5, :D_MODEL], pb[5:6, :D_MODEL]
            ln2_g, ln2_b = pb[6:7, :D_MODEL], pb[7:8, :D_MODEL]

            qkv = mm(x, enc_qkv_w_ref[i]) + qkv_b          # [bb*L, 3D]
            sa_parts = []
            for b in range(bb):                            # attention per batch
                blk = qkv[b * seq_len:(b + 1) * seq_len, :]
                hs = split_heads(blk, 3 * NHEAD, seq_len)  # [3H, L, Dh]
                sa_parts.append(
                    mha(hs[:NHEAD], hs[NHEAD:2 * NHEAD], hs[2 * NHEAD:],
                        enc_o_w_ref[i], o_b, seq_len))
            x = layernorm(x + cat_rows(sa_parts), ln1_g, ln1_b)

            h = jnp.maximum(mm(x, enc_ff1_w_ref[i]) + ff1_b, 0.0)
            ff = mm(h, enc_ff2_w_ref[i]) + ff2_b
            x = layernorm(x + ff, ln2_g, ln2_b)

        memory = x                                         # [bb*L, D]

        # ------------------------------ decoder -----------------------------
        # tgt = PositionalEncoding(zeros)[:, :1] == pe[0:1] for every batch row
        t = rep_rows(pe[0:1, :])                           # [bb, D]
        for i in range(NUM_DEC_LAYERS):
            pb = dec_pb_ref[i]                             # [12, 128] bias/LN slab
            s_b = pb[0:1, :D_MODEL]
            cq_b = pb[1:2, :D_MODEL]
            ckv_b = pb[2:3, :]
            co_b = pb[3:4, :D_MODEL]
            ff1_b = pb[4:5, :]
            ff2_b = pb[5:6, :D_MODEL]
            ln1_g, ln1_b = pb[6:7, :D_MODEL], pb[7:8, :D_MODEL]
            ln2_g, ln2_b = pb[8:9, :D_MODEL], pb[9:10, :D_MODEL]
            ln3_g, ln3_b = pb[10:11, :D_MODEL], pb[11:12, :D_MODEL]

            # self-attention over the single target position: softmax of a 1x1
            # score is exactly 1, so it reduces to (t @ Wv + bv) @ Wo + bo;
            # Wv@Wo and the bias are pre-folded on the host into dec_sw / s_b.
            t = layernorm(t + mm(t, dec_sw_ref[i]) + s_b, ln1_g, ln1_b)

            # cross-attention over the encoder memory
            cq = mm(t, dec_cq_w_ref[i]) + cq_b             # [bb, D]
            ckv = mm(memory, dec_ckv_w_ref[i]) + ckv_b     # [bb*L, 2D]
            ca_parts = []
            for b in range(bb):
                qh = split_heads(cq[b:b + 1, :], NHEAD, 1)
                kv = split_heads(ckv[b * seq_len:(b + 1) * seq_len, :],
                                 2 * NHEAD, seq_len)
                ca_parts.append(mha(qh, kv[:NHEAD], kv[NHEAD:],
                                    dec_co_w_ref[i], co_b, 1))
            t = layernorm(t + cat_rows(ca_parts), ln2_g, ln2_b)

            h = jnp.maximum(mm(t, dec_ff1_w_ref[i]) + ff1_b, 0.0)
            ff = mm(h, dec_ff2_w_ref[i]) + ff2_b
            t = layernorm(t + ff, ln3_g, ln3_b)

        # ------------------ output projection (lane-dense store) ------------
        out_ref[0] = mm(t, out_w_ref[...]) + out_b_ref[...]   # [bb, OUT_PAD]

    return kernel


# ------------------------------ host wrapper ---------------------------------
def _pick_bb(batch, seq_len):
    """Batch-block size: amortize per-step overhead, keep >=2 grid steps when
    possible (v7x has two TensorCores), require batch % bb == 0."""
    if seq_len % 8 != 0:
        return 1
    bb = min(max(batch // 2, 1), 8)
    while bb > 1 and batch % bb != 0:
        bb -= 1
    return bb


def _const_spec(shape):
    """Whole-array block, identical for every grid step (weights)."""
    nd = len(shape)
    return pl.BlockSpec(shape, lambda g: (0,) * nd)


def informer_forward(src, params):
    """src: [B, L, input_size] -> [B, n_ahead, num_classes]."""
    B, L, F = src.shape
    assert F == INPUT_SIZE
    assert N_AHEAD == 1            # decoder self-attention fold relies on this
    bb = _pick_bb(B, L)
    assert B % bb == 0
    grid = (B // bb,)
    pe = params["pe"][:L]                                  # [L, D]

    args = [src, pe] + [params[k] for k in _PARAM_ORDER]
    in_specs = ([pl.BlockSpec((bb, L, INPUT_SIZE), lambda g: (g, 0, 0)),
                 _const_spec(pe.shape)]
                + [_const_spec(params[k].shape) for k in _PARAM_ORDER])

    out = pl.pallas_call(
        _make_kernel(bb, L),
        grid=grid,
        in_specs=in_specs,
        out_specs=pl.BlockSpec((1, bb, OUT_PAD), lambda g: (g, 0, 0)),
        out_shape=jax.ShapeDtypeStruct((B // bb, bb, OUT_PAD), jnp.float32),
        compiler_params=pltpu.CompilerParams(
            dimension_semantics=("parallel",),   # 2 steps -> one per TC on v7x
            vmem_limit_bytes=32 * 1024 * 1024,
        ),
    )(*args)

    out = out.reshape(B, OUT_PAD)[:, :NUM_CLASSES]
    return out.reshape(B, N_AHEAD, NUM_CLASSES)


# ------------------------------ param creation ------------------------------
def sinusoidal_pe(max_len, d_model):
    position = jnp.arange(max_len, dtype=jnp.float32)[:, None]
    div_term = jnp.exp(jnp.arange(0, d_model, 2, dtype=jnp.float32)
                       * (-math.log(10000.0) / d_model))
    pe = jnp.zeros((max_len, d_model), jnp.float32)
    pe = pe.at[:, 0::2].set(jnp.sin(position * div_term))
    pe = pe.at[:, 1::2].set(jnp.cos(position * div_term))
    return pe


def _init_linear(key, in_dim, out_dim):
    k1, k2 = jax.random.split(key)
    w = jax.random.normal(k1, (in_dim, out_dim), jnp.float32) / math.sqrt(in_dim)
    b = jax.random.normal(k2, (out_dim,), jnp.float32) * 0.01
    return w, b.reshape(1, out_dim)


def _pack_rows(rows, width):
    """Row-pack [1, w_i] vectors into one [n_rows, width] slab (lane start 0)."""
    rows = [jnp.pad(r, ((0, 0), (0, width - r.shape[1]))) for r in rows]
    return jnp.concatenate(rows, axis=0)


def _init_enc_layer(key):
    kq, kk, kv, ko, k1, k2 = jax.random.split(key, 6)
    wq, bq = _init_linear(kq, D_MODEL, D_MODEL)
    wk, bk = _init_linear(kk, D_MODEL, D_MODEL)
    wv, bv = _init_linear(kv, D_MODEL, D_MODEL)
    wo, bo = _init_linear(ko, D_MODEL, D_MODEL)
    w1, b1 = _init_linear(k1, D_MODEL, DIM_FF)
    w2, b2 = _init_linear(k2, DIM_FF, D_MODEL)
    ones = jnp.ones((1, D_MODEL), jnp.float32)
    zeros = jnp.zeros((1, D_MODEL), jnp.float32)
    pb = _pack_rows([jnp.concatenate([bq, bk, bv], axis=1),     # row 0: qkv_b
                     bo, b1, b2,                                # rows 1-3
                     ones, zeros,                               # ln1 g / b
                     ones, zeros],                              # ln2 g / b
                    3 * D_MODEL)
    return dict(qkv_w=jnp.concatenate([wq, wk, wv], axis=1),
                o_w=wo, ff1_w=w1, ff2_w=w2, pb=pb)


def _init_dec_layer(key):
    ks = jax.random.split(key, 9)
    # self-attention: only the V / out-proj path matters for n_ahead == 1
    # (softmax of a 1x1 score is 1 regardless of q/k), so fold Wv@Wo on host.
    wv_s, bv_s = _init_linear(ks[0], D_MODEL, D_MODEL)
    wo_s, bo_s = _init_linear(ks[1], D_MODEL, D_MODEL)
    sw = wv_s @ wo_s
    sb = bv_s @ wo_s + bo_s
    # cross-attention
    wq_c, bq_c = _init_linear(ks[2], D_MODEL, D_MODEL)
    wk_c, bk_c = _init_linear(ks[3], D_MODEL, D_MODEL)
    wv_c, bv_c = _init_linear(ks[4], D_MODEL, D_MODEL)
    wo_c, bo_c = _init_linear(ks[5], D_MODEL, D_MODEL)
    # feed-forward
    w1, b1 = _init_linear(ks[6], D_MODEL, DIM_FF)
    w2, b2 = _init_linear(ks[7], DIM_FF, D_MODEL)
    ones = jnp.ones((1, D_MODEL), jnp.float32)
    zeros = jnp.zeros((1, D_MODEL), jnp.float32)
    pb = _pack_rows([sb, bq_c,
                     jnp.concatenate([bk_c, bv_c], axis=1),     # ckv_b (128)
                     bo_c, b1, b2,
                     ones, zeros, ones, zeros, ones, zeros],    # ln1/2/3 g,b
                    2 * D_MODEL)
    return dict(sw=sw, cq_w=wq_c,
                ckv_w=jnp.concatenate([wk_c, wv_c], axis=1),
                co_w=wo_c, ff1_w=w1, ff2_w=w2, pb=pb)


def init_params(key):
    keys = jax.random.split(key, 2 + NUM_ENC_LAYERS + NUM_DEC_LAYERS)
    in_w, in_b = _init_linear(keys[0], INPUT_SIZE, D_MODEL)
    ow, ob = _init_linear(keys[1], D_MODEL, NUM_CLASSES)
    out_w = jnp.pad(ow, ((0, 0), (0, OUT_PAD - NUM_CLASSES)))   # lane-pad to 128
    out_b = jnp.pad(ob, ((0, 0), (0, OUT_PAD - NUM_CLASSES)))

    enc = [_init_enc_layer(keys[2 + i]) for i in range(NUM_ENC_LAYERS)]
    dec = [_init_dec_layer(keys[2 + NUM_ENC_LAYERS + i])
           for i in range(NUM_DEC_LAYERS)]

    def stack(layers, name):
        return jnp.stack([l[name] for l in layers], axis=0)

    params = dict(pe=sinusoidal_pe(MAX_LEN, D_MODEL),
                  in_w=in_w, in_b=in_b, out_w=out_w, out_b=out_b)
    for name in ("qkv_w", "o_w", "ff1_w", "ff2_w", "pb"):
        params["enc_" + name] = stack(enc, name)
    for name in ("sw", "cq_w", "ckv_w", "co_w", "ff1_w", "ff2_w", "pb"):
        params["dec_" + name] = stack(dec, name)
    return params


# ----------------------------------- main ------------------------------------
if __name__ == "__main__":
    key = jax.random.PRNGKey(0)
    k_param, k_data = jax.random.split(key)

    params = init_params(k_param)
    # batch=4, seq=8 -> batch-block of 2 per grid step, grid=(2,)
    src = jax.random.normal(k_data, (4, 8, INPUT_SIZE), jnp.float32)

    out = jax.jit(informer_forward)(src, params)
    out = jax.block_until_ready(out)

    assert out.shape == (4, N_AHEAD, NUM_CLASSES), out.shape
    assert bool(jnp.all(jnp.isfinite(out)))
    print("KERNEL_OK")
</pallas_src>

<mosaic_0001>
module attributes {stable_mosaic.version = 11 : i64} {
  func.func @kernel(%arg0: i32, %arg1: memref<2x8x16xf32, #tpu.memory_space<vmem>>, %arg2: memref<8x64xf32, #tpu.memory_space<vmem>>, %arg3: memref<16x64xf32, #tpu.memory_space<vmem>>, %arg4: memref<1x64xf32, #tpu.memory_space<vmem>>, %arg5: memref<64x128xf32, #tpu.memory_space<vmem>>, %arg6: memref<1x128xf32, #tpu.memory_space<vmem>>, %arg7: memref<3x64x192xf32, #tpu.memory_space<vmem>>, %arg8: memref<3x64x64xf32, #tpu.memory_space<vmem>>, %arg9: memref<3x64x128xf32, #tpu.memory_space<vmem>>, %arg10: memref<3x128x64xf32, #tpu.memory_space<vmem>>, %arg11: memref<3x8x192xf32, #tpu.memory_space<vmem>>, %arg12: memref<3x64x64xf32, #tpu.memory_space<vmem>>, %arg13: memref<3x64x64xf32, #tpu.memory_space<vmem>>, %arg14: memref<3x64x128xf32, #tpu.memory_space<vmem>>, %arg15: memref<3x64x64xf32, #tpu.memory_space<vmem>>, %arg16: memref<3x64x128xf32, #tpu.memory_space<vmem>>, %arg17: memref<3x128x64xf32, #tpu.memory_space<vmem>>, %arg18: memref<3x12x128xf32, #tpu.memory_space<vmem>>, %arg19: memref<1x2x128xf32, #tpu.memory_space<vmem>>) attributes {dimension_semantics = [#tpu.dimension_semantics<parallel>], iteration_bounds = array<i64: 2>, scalar_prefetch = 0 : i64, scratch_operands = 0 : i64, tpu.core_type = #tpu.core_type<tc>, window_params = [{transform_indices = @transform_0, window_bounds = array<i64: 2, 8, 16>}, {pipeline_mode = #tpu.pipeline_mode<synchronous>, transform_indices = @transform_1, window_bounds = array<i64: 8, 64>}, {pipeline_mode = #tpu.pipeline_mode<synchronous>, transform_indices = @transform_2, window_bounds = array<i64: 16, 64>}, {pipeline_mode = #tpu.pipeline_mode<synchronous>, transform_indices = @transform_3, window_bounds = array<i64: 1, 64>}, {pipeline_mode = #tpu.pipeline_mode<synchronous>, transform_indices = @transform_4, window_bounds = array<i64: 64, 128>}, {pipeline_mode = #tpu.pipeline_mode<synchronous>, transform_indices = @transform_5, window_bounds = array<i64: 1, 128>}, {pipeline_mode = #tpu.pipeline_mode<synchronous>, transform_indices = @transform_6, window_bounds = array<i64: 3, 64, 192>}, {pipeline_mode = #tpu.pipeline_mode<synchronous>, transform_indices = @transform_7, window_bounds = array<i64: 3, 64, 64>}, {pipeline_mode = #tpu.pipeline_mode<synchronous>, transform_indices = @transform_8, window_bounds = array<i64: 3, 64, 128>}, {pipeline_mode = #tpu.pipeline_mode<synchronous>, transform_indices = @transform_9, window_bounds = array<i64: 3, 128, 64>}, {pipeline_mode = #tpu.pipeline_mode<synchronous>, transform_indices = @transform_10, window_bounds = array<i64: 3, 8, 192>}, {pipeline_mode = #tpu.pipeline_mode<synchronous>, transform_indices = @transform_11, window_bounds = array<i64: 3, 64, 64>}, {pipeline_mode = #tpu.pipeline_mode<synchronous>, transform_indices = @transform_12, window_bounds = array<i64: 3, 64, 64>}, {pipeline_mode = #tpu.pipeline_mode<synchronous>, transform_indices = @transform_13, window_bounds = array<i64: 3, 64, 128>}, {pipeline_mode = #tpu.pipeline_mode<synchronous>, transform_indices = @transform_14, window_bounds = array<i64: 3, 64, 64>}, {pipeline_mode = #tpu.pipeline_mode<synchronous>, transform_indices = @transform_15, window_bounds = array<i64: 3, 64, 128>}, {pipeline_mode = #tpu.pipeline_mode<synchronous>, transform_indices = @transform_16, window_bounds = array<i64: 3, 128, 64>}, {pipeline_mode = #tpu.pipeline_mode<synchronous>, transform_indices = @transform_17, window_bounds = array<i64: 3, 12, 128>}, {transform_indices = @transform_18, window_bounds = array<i64: 1, 2, 128>}]} {
    %c0 = arith.constant 0 : index
    %c0_0 = arith.constant 0 : index
    %0 = vector.load %arg2[%c0, %c0_0] : memref<8x64xf32, #tpu.memory_space<vmem>>, vector<8x64xf32>
    %1 = tpu.concatenate %0, %0 in 0 : vector<8x64xf32>, vector<8x64xf32> -> vector<16x64xf32>
    %c0_1 = arith.constant 0 : index
    %c0_2 = arith.constant 0 : index
    %c0_3 = arith.constant 0 : index
    %2 = vector.load %arg1[%c0_1, %c0_2, %c0_3] : memref<2x8x16xf32, #tpu.memory_space<vmem>>, vector<2x8x16xf32>
    %3 = vector.shape_cast %2 : vector<2x8x16xf32> to vector<16x16xf32>
    %c0_4 = arith.constant 0 : index
    %c0_5 = arith.constant 0 : index
    %4 = vector.load %arg3[%c0_4, %c0_5] : memref<16x64xf32, #tpu.memory_space<vmem>>, vector<16x64xf32>
    %cst = arith.constant dense<0.000000e+00> : vector<16x64xf32>
    %5 = tpu.matmul %3, %4, %cst {dimension_numbers = #tpu.dot_dimension_numbers<[1], [0], [0], [1], [0, 0, 1, 1], [], []>} : vector<16x16xf32>, vector<16x64xf32>, vector<16x64xf32> -> vector<16x64xf32>
    %c0_6 = arith.constant 0 : index
    %c0_7 = arith.constant 0 : index
    %6 = vector.load %arg4[%c0_6, %c0_7] : memref<1x64xf32, #tpu.memory_space<vmem>>, vector<1x64xf32>
    %7 = vector.broadcast %6 : vector<1x64xf32> to vector<16x64xf32>
    %8 = arith.addf %5, %7 : vector<16x64xf32>
    %9 = arith.addf %8, %1 : vector<16x64xf32>
    %c0_8 = arith.constant 0 : index
    %c0_9 = arith.constant 0 : index
    %c0_10 = arith.constant 0 : index
    %10 = vector.load %arg11[%c0_8, %c0_9, %c0_10] : memref<3x8x192xf32, #tpu.memory_space<vmem>>, vector<1x8x192xf32>
    %11 = vector.shape_cast %10 : vector<1x8x192xf32> to vector<8x192xf32>
    %12 = vector.extract_strided_slice %11 {offsets = [0, 0], sizes = [1, 192], strides = [1, 1]} : vector<8x192xf32> to vector<1x192xf32>
    %13 = vector.extract_strided_slice %11 {offsets = [1, 0], sizes = [1, 64], strides = [1, 1]} : vector<8x192xf32> to vector<1x64xf32>
    %14 = vector.extract_strided_slice %11 {offsets = [2, 0], sizes = [1, 128], strides = [1, 1]} : vector<8x192xf32> to vector<1x128xf32>
    %15 = vector.extract_strided_slice %11 {offsets = [3, 0], sizes = [1, 64], strides = [1, 1]} : vector<8x192xf32> to vector<1x64xf32>
    %16 = vector.extract_strided_slice %11 {offsets = [4, 0], sizes = [1, 64], strides = [1, 1]} : vector<8x192xf32> to vector<1x64xf32>
    %17 = vector.extract_strided_slice %11 {offsets = [5, 0], sizes = [1, 64], strides = [1, 1]} : vector<8x192xf32> to vector<1x64xf32>
    %18 = vector.extract_strided_slice %11 {offsets = [6, 0], sizes = [1, 64], strides = [1, 1]} : vector<8x192xf32> to vector<1x64xf32>
    %19 = vector.extract_strided_slice %11 {offsets = [7, 0], sizes = [1, 64], strides = [1, 1]} : vector<8x192xf32> to vector<1x64xf32>
    %c0_11 = arith.constant 0 : index
    %c0_12 = arith.constant 0 : index
    %c0_13 = arith.constant 0 : index
    %20 = vector.load %arg7[%c0_11, %c0_12, %c0_13] : memref<3x64x192xf32, #tpu.memory_space<vmem>>, vector<1x64x192xf32>
    %21 = vector.shape_cast %20 : vector<1x64x192xf32> to vector<64x192xf32>
    %cst_14 = arith.constant dense<0.000000e+00> : vector<16x192xf32>
    %22 = tpu.matmul %9, %21, %cst_14 {dimension_numbers = #tpu.dot_dimension_numbers<[1], [0], [0], [1], [0, 0, 1, 1], [], []>} : vector<16x64xf32>, vector<64x192xf32>, vector<16x192xf32> -> vector<16x192xf32>
    %23 = vector.broadcast %12 : vector<1x192xf32> to vector<16x192xf32>
    %24 = arith.addf %22, %23 : vector<16x192xf32>
    %25 = vector.extract_strided_slice %24 {offsets = [0, 0], sizes = [8, 192], strides = [1, 1]} : vector<16x192xf32> to vector<8x192xf32>
    %26 = tpu.transpose %25, [1, 0] : vector<8x192xf32> -> vector<192x8xf32>
    %27 = vector.shape_cast %26 : vector<192x8xf32> to vector<24x8x8xf32>
    %28 = tpu.transpose %27, [0, 2, 1] : vector<24x8x8xf32> -> vector<24x8x8xf32>
    %29 = vector.extract_strided_slice %28 {offsets = [0, 0, 0], sizes = [8, 8, 8], strides = [1, 1, 1]} : vector<24x8x8xf32> to vector<8x8x8xf32>
    %30 = vector.extract_strided_slice %28 {offsets = [8, 0, 0], sizes = [8, 8, 8], strides = [1, 1, 1]} : vector<24x8x8xf32> to vector<8x8x8xf32>
    %31 = vector.extract_strided_slice %28 {offsets = [16, 0, 0], sizes = [8, 8, 8], strides = [1, 1, 1]} : vector<24x8x8xf32> to vector<8x8x8xf32>
    %c0_15 = arith.constant 0 : index
    %c0_16 = arith.constant 0 : index
    %c0_17 = arith.constant 0 : index
    %32 = vector.load %arg8[%c0_15, %c0_16, %c0_17] : memref<3x64x64xf32, #tpu.memory_space<vmem>>, vector<1x64x64xf32>
    %33 = vector.shape_cast %32 : vector<1x64x64xf32> to vector<64x64xf32>
    "tpu.trace_start"() <{level = 10 : i32, message = "hqd,hkd->hqk"}> : () -> ()
    %cst_18 = arith.constant dense<0.000000e+00> : vector<8x8x8xf32>
    %34 = tpu.matmul %29, %30, %cst_18 {dimension_numbers = #tpu.dot_dimension_numbers<[2], [2], [1], [1], [0, 0, 0, 1, 1, 1], [0], [0]>} : vector<8x8x8xf32>, vector<8x8x8xf32>, vector<8x8x8xf32> -> vector<8x8x8xf32>
    "tpu.trace_stop"() : () -> ()
    %cst_19 = arith.constant 0.353553385 : f32
    %35 = vector.broadcast %cst_19 : f32 to vector<8x8x8xf32>
    %36 = arith.mulf %34, %35 : vector<8x8x8xf32>
    %cst_20 = arith.constant dense<0xFF800000> : vector<8x8xf32>
    %37 = vector.multi_reduction <maximumf>, %36, %cst_20 [2] : vector<8x8x8xf32> to vector<8x8xf32>
    %38 = vector.shape_cast %37 : vector<8x8xf32> to vector<8x8x1xf32>
    %39 = vector.broadcast %38 : vector<8x8x1xf32> to vector<8x8x8xf32>
    %40 = arith.subf %36, %39 : vector<8x8x8xf32>
    %41 = math.exp %40 : vector<8x8x8xf32>
    %cst_21 = arith.constant dense<0.000000e+00> : vector<8x8xf32>
    %42 = vector.multi_reduction <add>, %41, %cst_21 [2] : vector<8x8x8xf32> to vector<8x8xf32>
    %43 = vector.shape_cast %42 : vector<8x8xf32> to vector<8x8x1xf32>
    %44 = tpu.reciprocal %43 {approx = true} : vector<8x8x1xf32> -> vector<8x8x1xf32>
    %45 = vector.broadcast %44 : vector<8x8x1xf32> to vector<8x8x8xf32>
    %46 = arith.mulf %41, %45 : vector<8x8x8xf32>
    "tpu.trace_start"() <{level = 10 : i32, message = "hqk,hkd->hqd"}> : () -> ()
    %cst_22 = arith.constant dense<0.000000e+00> : vector<8x8x8xf32>
    %47 = tpu.matmul %46, %31, %cst_22 {dimension_numbers = #tpu.dot_dimension_numbers<[2], [1], [1], [2], [0, 0, 0, 1, 1, 2], [0], [0]>} : vector<8x8x8xf32>, vector<8x8x8xf32>, vector<8x8x8xf32> -> vector<8x8x8xf32>
    "tpu.trace_stop"() : () -> ()
    %48 = tpu.transpose %47, [0, 2, 1] : vector<8x8x8xf32> -> vector<8x8x8xf32>
    %49 = vector.shape_cast %48 : vector<8x8x8xf32> to vector<64x8xf32>
    %50 = tpu.transpose %49, [1, 0] : vector<64x8xf32> -> vector<8x64xf32>
    %cst_23 = arith.constant dense<0.000000e+00> : vector<8x64xf32>
    %51 = tpu.matmul %50, %33, %cst_23 {dimension_numbers = #tpu.dot_dimension_numbers<[1], [0], [0], [1], [0, 0, 1, 1], [], []>} : vector<8x64xf32>, vector<64x64xf32>, vector<8x64xf32> -> vector<8x64xf32>
    %52 = vector.broadcast %13 : vector<1x64xf32> to vector<8x64xf32>
    %53 = arith.addf %51, %52 : vector<8x64xf32>
    %54 = vector.extract_strided_slice %24 {offsets = [8, 0], sizes = [8, 192], strides = [1, 1]} : vector<16x192xf32> to vector<8x192xf32>
    %55 = tpu.transpose %54, [1, 0] : vector<8x192xf32> -> vector<192x8xf32>
    %56 = vector.shape_cast %55 : vector<192x8xf32> to vector<24x8x8xf32>
    %57 = tpu.transpose %56, [0, 2, 1] : vector<24x8x8xf32> -> vector<24x8x8xf32>
    %58 = vector.extract_strided_slice %57 {offsets = [0, 0, 0], sizes = [8, 8, 8], strides = [1, 1, 1]} : vector<24x8x8xf32> to vector<8x8x8xf32>
    %59 = vector.extract_strided_slice %57 {offsets = [8, 0, 0], sizes = [8, 8, 8], strides = [1, 1, 1]} : vector<24x8x8xf32> to vector<8x8x8xf32>
    %60 = vector.extract_strided_slice %57 {offsets = [16, 0, 0], sizes = [8, 8, 8], strides = [1, 1, 1]} : vector<24x8x8xf32> to vector<8x8x8xf32>
    %c0_24 = arith.constant 0 : index
    %c0_25 = arith.constant 0 : index
    %c0_26 = arith.constant 0 : index
    %61 = vector.load %arg8[%c0_24, %c0_25, %c0_26] : memref<3x64x64xf32, #tpu.memory_space<vmem>>, vector<1x64x64xf32>
    %62 = vector.shape_cast %61 : vector<1x64x64xf32> to vector<64x64xf32>
    "tpu.trace_start"() <{level = 10 : i32, message = "hqd,hkd->hqk"}> : () -> ()
    %cst_27 = arith.constant dense<0.000000e+00> : vector<8x8x8xf32>
    %63 = tpu.matmul %58, %59, %cst_27 {dimension_numbers = #tpu.dot_dimension_numbers<[2], [2], [1], [1], [0, 0, 0, 1, 1, 1], [0], [0]>} : vector<8x8x8xf32>, vector<8x8x8xf32>, vector<8x8x8xf32> -> vector<8x8x8xf32>
    "tpu.trace_stop"() : () -> ()
    %cst_28 = arith.constant 0.353553385 : f32
    %64 = vector.broadcast %cst_28 : f32 to vector<8x8x8xf32>
    %65 = arith.mulf %63, %64 : vector<8x8x8xf32>
    %cst_29 = arith.constant dense<0xFF800000> : vector<8x8xf32>
    %66 = vector.multi_reduction <maximumf>, %65, %cst_29 [2] : vector<8x8x8xf32> to vector<8x8xf32>
    %67 = vector.shape_cast %66 : vector<8x8xf32> to vector<8x8x1xf32>
    %68 = vector.broadcast %67 : vector<8x8x1xf32> to vector<8x8x8xf32>
    %69 = arith.subf %65, %68 : vector<8x8x8xf32>
    %70 = math.exp %69 : vector<8x8x8xf32>
    %cst_30 = arith.constant dense<0.000000e+00> : vector<8x8xf32>
    %71 = vector.multi_reduction <add>, %70, %cst_30 [2] : vector<8x8x8xf32> to vector<8x8xf32>
    %72 = vector.shape_cast %71 : vector<8x8xf32> to vector<8x8x1xf32>
    %73 = tpu.reciprocal %72 {approx = true} : vector<8x8x1xf32> -> vector<8x8x1xf32>
    %74 = vector.broadcast %73 : vector<8x8x1xf32> to vector<8x8x8xf32>
    %75 = arith.mulf %70, %74 : vector<8x8x8xf32>
    "tpu.trace_start"() <{level = 10 : i32, message = "hqk,hkd->hqd"}> : () -> ()
    %cst_31 = arith.constant dense<0.000000e+00> : vector<8x8x8xf32>
    %76 = tpu.matmul %75, %60, %cst_31 {dimension_numbers = #tpu.dot_dimension_numbers<[2], [1], [1], [2], [0, 0, 0, 1, 1, 2], [0], [0]>} : vector<8x8x8xf32>, vector<8x8x8xf32>, vector<8x8x8xf32> -> vector<8x8x8xf32>
    "tpu.trace_stop"() : () -> ()
    %77 = tpu.transpose %76, [0, 2, 1] : vector<8x8x8xf32> -> vector<8x8x8xf32>
    %78 = vector.shape_cast %77 : vector<8x8x8xf32> to vector<64x8xf32>
    %79 = tpu.transpose %78, [1, 0] : vector<64x8xf32> -> vector<8x64xf32>
    %cst_32 = arith.constant dense<0.000000e+00> : vector<8x64xf32>
    %80 = tpu.matmul %79, %62, %cst_32 {dimension_numbers = #tpu.dot_dimension_numbers<[1], [0], [0], [1], [0, 0, 1, 1], [], []>} : vector<8x64xf32>, vector<64x64xf32>, vector<8x64xf32> -> vector<8x64xf32>
    %81 = vector.broadcast %13 : vector<1x64xf32> to vector<8x64xf32>
    %82 = arith.addf %80, %81 : vector<8x64xf32>
    %83 = tpu.concatenate %53, %82 in 0 : vector<8x64xf32>, vector<8x64xf32> -> vector<16x64xf32>
    %84 = arith.addf %9, %83 : vector<16x64xf32>
    %cst_33 = arith.constant dense<0.000000e+00> : vector<16xf32>
    %85 = vector.multi_reduction <add>, %84, %cst_33 [1] : vector<16x64xf32> to vector<16xf32>
    %86 = vector.shape_cast %85 : vector<16xf32> to vector<16x1xf32>
    %cst_34 = arith.constant 6.400000e+01 : f32
    %87 = vector.broadcast %cst_34 : f32 to vector<16x1xf32>
    %88 = arith.divf %86, %87 : vector<16x1xf32>
    %89 = vector.broadcast %88 : vector<16x1xf32> to vector<16x64xf32>
    %90 = arith.subf %84, %89 : vector<16x64xf32>
    %91 = arith.mulf %90, %90 : vector<16x64xf32>
    %cst_35 = arith.constant dense<0.000000e+00> : vector<16xf32>
    %92 = vector.multi_reduction <add>, %91, %cst_35 [1] : vector<16x64xf32> to vector<16xf32>
    %93 = vector.shape_cast %92 : vector<16xf32> to vector<16x1xf32>
    %cst_36 = arith.constant 6.400000e+01 : f32
    %94 = vector.broadcast %cst_36 : f32 to vector<16x1xf32>
    %95 = arith.divf %93, %94 : vector<16x1xf32>
    %cst_37 = arith.constant 9.99999974E-6 : f32
    %96 = vector.broadcast %cst_37 : f32 to vector<16x1xf32>
    %97 = arith.addf %95, %96 : vector<16x1xf32>
    %98 = math.rsqrt %97 : vector<16x1xf32>
    %99 = vector.broadcast %98 : vector<16x1xf32> to vector<16x64xf32>
    %100 = arith.mulf %90, %99 : vector<16x64xf32>
    %101 = vector.broadcast %16 : vector<1x64xf32> to vector<16x64xf32>
    %102 = arith.mulf %100, %101 : vector<16x64xf32>
    %103 = vector.broadcast %17 : vector<1x64xf32> to vector<16x64xf32>
    %104 = arith.addf %102, %103 : vector<16x64xf32>
    %c0_38 = arith.constant 0 : index
    %c0_39 = arith.constant 0 : index
    %c0_40 = arith.constant 0 : index
    %105 = vector.load %arg9[%c0_38, %c0_39, %c0_40] : memref<3x64x128xf32, #tpu.memory_space<vmem>>, vector<1x64x128xf32>
    %106 = vector.shape_cast %105 : vector<1x64x128xf32> to vector<64x128xf32>
    %cst_41 = arith.constant dense<0.000000e+00> : vector<16x128xf32>
    %107 = tpu.matmul %104, %106, %cst_41 {dimension_numbers = #tpu.dot_dimension_numbers<[1], [0], [0], [1], [0, 0, 1, 1], [], []>} : vector<16x64xf32>, vector<64x128xf32>, vector<16x128xf32> -> vector<16x128xf32>
    %108 = vector.broadcast %14 : vector<1x128xf32> to vector<16x128xf32>
    %109 = arith.addf %107, %108 : vector<16x128xf32>
    %cst_42 = arith.constant 0.000000e+00 : f32
    %110 = vector.broadcast %cst_42 : f32 to vector<16x128xf32>
    %111 = arith.maximumf %109, %110 : vector<16x128xf32>
    %c0_43 = arith.constant 0 : index
    %c0_44 = arith.constant 0 : index
    %c0_45 = arith.constant 0 : index
    %112 = vector.load %arg10[%c0_43, %c0_44, %c0_45] : memref<3x128x64xf32, #tpu.memory_space<vmem>>, vector<1x128x64xf32>
    %113 = vector.shape_cast %112 : vector<1x128x64xf32> to vector<128x64xf32>
    %cst_46 = arith.constant dense<0.000000e+00> : vector<16x64xf32>
    %114 = tpu.matmul %111, %113, %cst_46 {dimension_numbers = #tpu.dot_dimension_numbers<[1], [0], [0], [1], [0, 0, 1, 1], [], []>} : vector<16x128xf32>, vector<128x64xf32>, vector<16x64xf32> -> vector<16x64xf32>
    %115 = vector.broadcast %15 : vector<1x64xf32> to vector<16x64xf32>
    %116 = arith.addf %114, %115 : vector<16x64xf32>
    %117 = arith.addf %104, %116 : vector<16x64xf32>
    %cst_47 = arith.constant dense<0.000000e+00> : vector<16xf32>
    %118 = vector.multi_reduction <add>, %117, %cst_47 [1] : vector<16x64xf32> to vector<16xf32>
    %119 = vector.shape_cast %118 : vector<16xf32> to vector<16x1xf32>
    %cst_48 = arith.constant 6.400000e+01 : f32
    %120 = vector.broadcast %cst_48 : f32 to vector<16x1xf32>
    %121 = arith.divf %119, %120 : vector<16x1xf32>
    %122 = vector.broadcast %121 : vector<16x1xf32> to vector<16x64xf32>
    %123 = arith.subf %117, %122 : vector<16x64xf32>
    %124 = arith.mulf %123, %123 : vector<16x64xf32>
    %cst_49 = arith.constant dense<0.000000e+00> : vector<16xf32>
    %125 = vector.multi_reduction <add>, %124, %cst_49 [1] : vector<16x64xf32> to vector<16xf32>
    %126 = vector.shape_cast %125 : vector<16xf32> to vector<16x1xf32>
    %cst_50 = arith.constant 6.400000e+01 : f32
    %127 = vector.broadcast %cst_50 : f32 to vector<16x1xf32>
    %128 = arith.divf %126, %127 : vector<16x1xf32>
    %cst_51 = arith.constant 9.99999974E-6 : f32
    %129 = vector.broadcast %cst_51 : f32 to vector<16x1xf32>
    %130 = arith.addf %128, %129 : vector<16x1xf32>
    %131 = math.rsqrt %130 : vector<16x1xf32>
    %132 = vector.broadcast %131 : vector<16x1xf32> to vector<16x64xf32>
    %133 = arith.mulf %123, %132 : vector<16x64xf32>
    %134 = vector.broadcast %18 : vector<1x64xf32> to vector<16x64xf32>
    %135 = arith.mulf %133, %134 : vector<16x64xf32>
    %136 = vector.broadcast %19 : vector<1x64xf32> to vector<16x64xf32>
    %137 = arith.addf %135, %136 : vector<16x64xf32>
    %c1 = arith.constant 1 : index
    %c0_52 = arith.constant 0 : index
    %c0_53 = arith.constant 0 : index
    %138 = vector.load %arg11[%c1, %c0_52, %c0_53] : memref<3x8x192xf32, #tpu.memory_space<vmem>>, vector<1x8x192xf32>
    %139 = vector.shape_cast %138 : vector<1x8x192xf32> to vector<8x192xf32>
    %140 = vector.extract_strided_slice %139 {offsets = [0, 0], sizes = [1, 192], strides = [1, 1]} : vector<8x192xf32> to vector<1x192xf32>
    %141 = vector.extract_strided_slice %139 {offsets = [1, 0], sizes = [1, 64], strides = [1, 1]} : vector<8x192xf32> to vector<1x64xf32>
    %142 = vector.extract_strided_slice %139 {offsets = [2, 0], sizes = [1, 128], strides = [1, 1]} : vector<8x192xf32> to vector<1x128xf32>
    %143 = vector.extract_strided_slice %139 {offsets = [3, 0], sizes = [1, 64], strides = [1, 1]} : vector<8x192xf32> to vector<1x64xf32>
    %144 = vector.extract_strided_slice %139 {offsets = [4, 0], sizes = [1, 64], strides = [1, 1]} : vector<8x192xf32> to vector<1x64xf32>
    %145 = vector.extract_strided_slice %139 {offsets = [5, 0], sizes = [1, 64], strides = [1, 1]} : vector<8x192xf32> to vector<1x64xf32>
    %146 = vector.extract_strided_slice %139 {offsets = [6, 0], sizes = [1, 64], strides = [1, 1]} : vector<8x192xf32> to vector<1x64xf32>
    %147 = vector.extract_strided_slice %139 {offsets = [7, 0], sizes = [1, 64], strides = [1, 1]} : vector<8x192xf32> to vector<1x64xf32>
    %c1_54 = arith.constant 1 : index
    %c0_55 = arith.constant 0 : index
    %c0_56 = arith.constant 0 : index
    %148 = vector.load %arg7[%c1_54, %c0_55, %c0_56] : memref<3x64x192xf32, #tpu.memory_space<vmem>>, vector<1x64x192xf32>
    %149 = vector.shape_cast %148 : vector<1x64x192xf32> to vector<64x192xf32>
    %cst_57 = arith.constant dense<0.000000e+00> : vector<16x192xf32>
    %150 = tpu.matmul %137, %149, %cst_57 {dimension_numbers = #tpu.dot_dimension_numbers<[1], [0], [0], [1], [0, 0, 1, 1], [], []>} : vector<16x64xf32>, vector<64x192xf32>, vector<16x192xf32> -> vector<16x192xf32>
    %151 = vector.broadcast %140 : vector<1x192xf32> to vector<16x192xf32>
    %152 = arith.addf %150, %151 : vector<16x192xf32>
    %153 = vector.extract_strided_slice %152 {offsets = [0, 0], sizes = [8, 192], strides = [1, 1]} : vector<16x192xf32> to vector<8x192xf32>
    %154 = tpu.transpose %153, [1, 0] : vector<8x192xf32> -> vector<192x8xf32>
    %155 = vector.shape_cast %154 : vector<192x8xf32> to vector<24x8x8xf32>
    %156 = tpu.transpose %155, [0, 2, 1] : vector<24x8x8xf32> -> vector<24x8x8xf32>
    %157 = vector.extract_strided_slice %156 {offsets = [0, 0, 0], sizes = [8, 8, 8], strides = [1, 1, 1]} : vector<24x8x8xf32> to vector<8x8x8xf32>
    %158 = vector.extract_strided_slice %156 {offsets = [8, 0, 0], sizes = [8, 8, 8], strides = [1, 1, 1]} : vector<24x8x8xf32> to vector<8x8x8xf32>
    %159 = vector.extract_strided_slice %156 {offsets = [16, 0, 0], sizes = [8, 8, 8], strides = [1, 1, 1]} : vector<24x8x8xf32> to vector<8x8x8xf32>
    %c1_58 = arith.constant 1 : index
    %c0_59 = arith.constant 0 : index
    %c0_60 = arith.constant 0 : index
    %160 = vector.load %arg8[%c1_58, %c0_59, %c0_60] : memref<3x64x64xf32, #tpu.memory_space<vmem>>, vector<1x64x64xf32>
    %161 = vector.shape_cast %160 : vector<1x64x64xf32> to vector<64x64xf32>
    "tpu.trace_start"() <{level = 10 : i32, message = "hqd,hkd->hqk"}> : () -> ()
    %cst_61 = arith.constant dense<0.000000e+00> : vector<8x8x8xf32>
    %162 = tpu.matmul %157, %158, %cst_61 {dimension_numbers = #tpu.dot_dimension_numbers<[2], [2], [1], [1], [0, 0, 0, 1, 1, 1], [0], [0]>} : vector<8x8x8xf32>, vector<8x8x8xf32>, vector<8x8x8xf32> -> vector<8x8x8xf32>
    "tpu.trace_stop"() : () -> ()
    %cst_62 = arith.constant 0.353553385 : f32
    %163 = vector.broadcast %cst_62 : f32 to vector<8x8x8xf32>
    %164 = arith.mulf %162, %163 : vector<8x8x8xf32>
    %cst_63 = arith.constant dense<0xFF800000> : vector<8x8xf32>
    %165 = vector.multi_reduction <maximumf>, %164, %cst_63 [2] : vector<8x8x8xf32> to vector<8x8xf32>
    %166 = vector.shape_cast %165 : vector<8x8xf32> to vector<8x8x1xf32>
    %167 = vector.broadcast %166 : vector<8x8x1xf32> to vector<8x8x8xf32>
    %168 = arith.subf %164, %167 : vector<8x8x8xf32>
    %169 = math.exp %168 : vector<8x8x8xf32>
    %cst_64 = arith.constant dense<0.000000e+00> : vector<8x8xf32>
    %170 = vector.multi_reduction <add>, %169, %cst_64 [2] : vector<8x8x8xf32> to vector<8x8xf32>
    %171 = vector.shape_cast %170 : vector<8x8xf32> to vector<8x8x1xf32>
    %172 = tpu.reciprocal %171 {approx = true} : vector<8x8x1xf32> -> vector<8x8x1xf32>
    %173 = vector.broadcast %172 : vector<8x8x1xf32> to vector<8x8x8xf32>
    %174 = arith.mulf %169, %173 : vector<8x8x8xf32>
    "tpu.trace_start"() <{level = 10 : i32, message = "hqk,hkd->hqd"}> : () -> ()
    %cst_65 = arith.constant dense<0.000000e+00> : vector<8x8x8xf32>
    %175 = tpu.matmul %174, %159, %cst_65 {dimension_numbers = #tpu.dot_dimension_numbers<[2], [1], [1], [2], [0, 0, 0, 1, 1, 2], [0], [0]>} : vector<8x8x8xf32>, vector<8x8x8xf32>, vector<8x8x8xf32> -> vector<8x8x8xf32>
    "tpu.trace_stop"() : () -> ()
    %176 = tpu.transpose %175, [0, 2, 1] : vector<8x8x8xf32> -> vector<8x8x8xf32>
    %177 = vector.shape_cast %176 : vector<8x8x8xf32> to vector<64x8xf32>
    %178 = tpu.transpose %177, [1, 0] : vector<64x8xf32> -> vector<8x64xf32>
    %cst_66 = arith.constant dense<0.000000e+00> : vector<8x64xf32>
    %179 = tpu.matmul %178, %161, %cst_66 {dimension_numbers = #tpu.dot_dimension_numbers<[1], [0], [0], [1], [0, 0, 1, 1], [], []>} : vector<8x64xf32>, vector<64x64xf32>, vector<8x64xf32> -> vector<8x64xf32>
    %180 = vector.broadcast %141 : vector<1x64xf32> to vector<8x64xf32>
    %181 = arith.addf %179, %180 : vector<8x64xf32>
    %182 = vector.extract_strided_slice %152 {offsets = [8, 0], sizes = [8, 192], strides = [1, 1]} : vector<16x192xf32> to vector<8x192xf32>
    %183 = tpu.transpose %182, [1, 0] : vector<8x192xf32> -> vector<192x8xf32>
    %184 = vector.shape_cast %183 : vector<192x8xf32> to vector<24x8x8xf32>
    %185 = tpu.transpose %184, [0, 2, 1] : vector<24x8x8xf32> -> vector<24x8x8xf32>
    %186 = vector.extract_strided_slice %185 {offsets = [0, 0, 0], sizes = [8, 8, 8], strides = [1, 1, 1]} : vector<24x8x8xf32> to vector<8x8x8xf32>
    %187 = vector.extract_strided_slice %185 {offsets = [8, 0, 0], sizes = [8, 8, 8], strides = [1, 1, 1]} : vector<24x8x8xf32> to vector<8x8x8xf32>
    %188 = vector.extract_strided_slice %185 {offsets = [16, 0, 0], sizes = [8, 8, 8], strides = [1, 1, 1]} : vector<24x8x8xf32> to vector<8x8x8xf32>
    %c1_67 = arith.constant 1 : index
    %c0_68 = arith.constant 0 : index
    %c0_69 = arith.constant 0 : index
    %189 = vector.load %arg8[%c1_67, %c0_68, %c0_69] : memref<3x64x64xf32, #tpu.memory_space<vmem>>, vector<1x64x64xf32>
    %190 = vector.shape_cast %189 : vector<1x64x64xf32> to vector<64x64xf32>
    "tpu.trace_start"() <{level = 10 : i32, message = "hqd,hkd->hqk"}> : () -> ()
    %cst_70 = arith.constant dense<0.000000e+00> : vector<8x8x8xf32>
    %191 = tpu.matmul %186, %187, %cst_70 {dimension_numbers = #tpu.dot_dimension_numbers<[2], [2], [1], [1], [0, 0, 0, 1, 1, 1], [0], [0]>} : vector<8x8x8xf32>, vector<8x8x8xf32>, vector<8x8x8xf32> -> vector<8x8x8xf32>
    "tpu.trace_stop"() : () -> ()
    %cst_71 = arith.constant 0.353553385 : f32
    %192 = vector.broadcast %cst_71 : f32 to vector<8x8x8xf32>
    %193 = arith.mulf %191, %192 : vector<8x8x8xf32>
    %cst_72 = arith.constant dense<0xFF800000> : vector<8x8xf32>
    %194 = vector.multi_reduction <maximumf>, %193, %cst_72 [2] : vector<8x8x8xf32> to vector<8x8xf32>
    %195 = vector.shape_cast %194 : vector<8x8xf32> to vector<8x8x1xf32>
    %196 = vector.broadcast %195 : vector<8x8x1xf32> to vector<8x8x8xf32>
    %197 = arith.subf %193, %196 : vector<8x8x8xf32>
    %198 = math.exp %197 : vector<8x8x8xf32>
    %cst_73 = arith.constant dense<0.000000e+00> : vector<8x8xf32>
    %199 = vector.multi_reduction <add>, %198, %cst_73 [2] : vector<8x8x8xf32> to vector<8x8xf32>
    %200 = vector.shape_cast %199 : vector<8x8xf32> to vector<8x8x1xf32>
    %201 = tpu.reciprocal %200 {approx = true} : vector<8x8x1xf32> -> vector<8x8x1xf32>
    %202 = vector.broadcast %201 : vector<8x8x1xf32> to vector<8x8x8xf32>
    %203 = arith.mulf %198, %202 : vector<8x8x8xf32>
    "tpu.trace_start"() <{level = 10 : i32, message = "hqk,hkd->hqd"}> : () -> ()
    %cst_74 = arith.constant dense<0.000000e+00> : vector<8x8x8xf32>
    %204 = tpu.matmul %203, %188, %cst_74 {dimension_numbers = #tpu.dot_dimension_numbers<[2], [1], [1], [2], [0, 0, 0, 1, 1, 2], [0], [0]>} : vector<8x8x8xf32>, vector<8x8x8xf32>, vector<8x8x8xf32> -> vector<8x8x8xf32>
    "tpu.trace_stop"() : () -> ()
    %205 = tpu.transpose %204, [0, 2, 1] : vector<8x8x8xf32> -> vector<8x8x8xf32>
    %206 = vector.shape_cast %205 : vector<8x8x8xf32> to vector<64x8xf32>
    %207 = tpu.transpose %206, [1, 0] : vector<64x8xf32> -> vector<8x64xf32>
    %cst_75 = arith.constant dense<0.000000e+00> : vector<8x64xf32>
    %208 = tpu.matmul %207, %190, %cst_75 {dimension_numbers = #tpu.dot_dimension_numbers<[1], [0], [0], [1], [0, 0, 1, 1], [], []>} : vector<8x64xf32>, vector<64x64xf32>, vector<8x64xf32> -> vector<8x64xf32>
    %209 = vector.broadcast %141 : vector<1x64xf32> to vector<8x64xf32>
    %210 = arith.addf %208, %209 : vector<8x64xf32>
    %211 = tpu.concatenate %181, %210 in 0 : vector<8x64xf32>, vector<8x64xf32> -> vector<16x64xf32>
    %212 = arith.addf %137, %211 : vector<16x64xf32>
    %cst_76 = arith.constant dense<0.000000e+00> : vector<16xf32>
    %213 = vector.multi_reduction <add>, %212, %cst_76 [1] : vector<16x64xf32> to vector<16xf32>
    %214 = vector.shape_cast %213 : vector<16xf32> to vector<16x1xf32>
    %cst_77 = arith.constant 6.400000e+01 : f32
    %215 = vector.broadcast %cst_77 : f32 to vector<16x1xf32>
    %216 = arith.divf %214, %215 : vector<16x1xf32>
    %217 = vector.broadcast %216 : vector<16x1xf32> to vector<16x64xf32>
    %218 = arith.subf %212, %217 : vector<16x64xf32>
    %219 = arith.mulf %218, %218 : vector<16x64xf32>
    %cst_78 = arith.constant dense<0.000000e+00> : vector<16xf32>
    %220 = vector.multi_reduction <add>, %219, %cst_78 [1] : vector<16x64xf32> to vector<16xf32>
    %221 = vector.shape_cast %220 : vector<16xf32> to vector<16x1xf32>
    %cst_79 = arith.constant 6.400000e+01 : f32
    %222 = vector.broadcast %cst_79 : f32 to vector<16x1xf32>
    %223 = arith.divf %221, %222 : vector<16x1xf32>
    %cst_80 = arith.constant 9.99999974E-6 : f32
    %224 = vector.broadcast %cst_80 : f32 to vector<16x1xf32>
    %225 = arith.addf %223, %224 : vector<16x1xf32>
    %226 = math.rsqrt %225 : vector<16x1xf32>
    %227 = vector.broadcast %226 : vector<16x1xf32> to vector<16x64xf32>
    %228 = arith.mulf %218, %227 : vector<16x64xf32>
    %229 = vector.broadcast %144 : vector<1x64xf32> to vector<16x64xf32>
    %230 = arith.mulf %228, %229 : vector<16x64xf32>
    %231 = vector.broadcast %145 : vector<1x64xf32> to vector<16x64xf32>
    %232 = arith.addf %230, %231 : vector<16x64xf32>
    %c1_81 = arith.constant 1 : index
    %c0_82 = arith.constant 0 : index
    %c0_83 = arith.constant 0 : index
    %233 = vector.load %arg9[%c1_81, %c0_82, %c0_83] : memref<3x64x128xf32, #tpu.memory_space<vmem>>, vector<1x64x128xf32>
    %234 = vector.shape_cast %233 : vector<1x64x128xf32> to vector<64x128xf32>
    %cst_84 = arith.constant dense<0.000000e+00> : vector<16x128xf32>
    %235 = tpu.matmul %232, %234, %cst_84 {dimension_numbers = #tpu.dot_dimension_numbers<[1], [0], [0], [1], [0, 0, 1, 1], [], []>} : vector<16x64xf32>, vector<64x128xf32>, vector<16x128xf32> -> vector<16x128xf32>
    %236 = vector.broadcast %142 : vector<1x128xf32> to vector<16x128xf32>
    %237 = arith.addf %235, %236 : vector<16x128xf32>
    %cst_85 = arith.constant 0.000000e+00 : f32
    %238 = vector.broadcast %cst_85 : f32 to vector<16x128xf32>
    %239 = arith.maximumf %237, %238 : vector<16x128xf32>
    %c1_86 = arith.constant 1 : index
    %c0_87 = arith.constant 0 : index
    %c0_88 = arith.constant 0 : index
    %240 = vector.load %arg10[%c1_86, %c0_87, %c0_88] : memref<3x128x64xf32, #tpu.memory_space<vmem>>, vector<1x128x64xf32>
    %241 = vector.shape_cast %240 : vector<1x128x64xf32> to vector<128x64xf32>
    %cst_89 = arith.constant dense<0.000000e+00> : vector<16x64xf32>
    %242 = tpu.matmul %239, %241, %cst_89 {dimension_numbers = #tpu.dot_dimension_numbers<[1], [0], [0], [1], [0, 0, 1, 1], [], []>} : vector<16x128xf32>, vector<128x64xf32>, vector<16x64xf32> -> vector<16x64xf32>
    %243 = vector.broadcast %143 : vector<1x64xf32> to vector<16x64xf32>
    %244 = arith.addf %242, %243 : vector<16x64xf32>
    %245 = arith.addf %232, %244 : vector<16x64xf32>
    %cst_90 = arith.constant dense<0.000000e+00> : vector<16xf32>
    %246 = vector.multi_reduction <add>, %245, %cst_90 [1] : vector<16x64xf32> to vector<16xf32>
    %247 = vector.shape_cast %246 : vector<16xf32> to vector<16x1xf32>
    %cst_91 = arith.constant 6.400000e+01 : f32
    %248 = vector.broadcast %cst_91 : f32 to vector<16x1xf32>
    %249 = arith.divf %247, %248 : vector<16x1xf32>
    %250 = vector.broadcast %249 : vector<16x1xf32> to vector<16x64xf32>
    %251 = arith.subf %245, %250 : vector<16x64xf32>
    %252 = arith.mulf %251, %251 : vector<16x64xf32>
    %cst_92 = arith.constant dense<0.000000e+00> : vector<16xf32>
    %253 = vector.multi_reduction <add>, %252, %cst_92 [1] : vector<16x64xf32> to vector<16xf32>
    %254 = vector.shape_cast %253 : vector<16xf32> to vector<16x1xf32>
    %cst_93 = arith.constant 6.400000e+01 : f32
    %255 = vector.broadcast %cst_93 : f32 to vector<16x1xf32>
    %256 = arith.divf %254, %255 : vector<16x1xf32>
    %cst_94 = arith.constant 9.99999974E-6 : f32
    %257 = vector.broadcast %cst_94 : f32 to vector<16x1xf32>
    %258 = arith.addf %256, %257 : vector<16x1xf32>
    %259 = math.rsqrt %258 : vector<16x1xf32>
    %260 = vector.broadcast %259 : vector<16x1xf32> to vector<16x64xf32>
    %261 = arith.mulf %251, %260 : vector<16x64xf32>
    %262 = vector.broadcast %146 : vector<1x64xf32> to vector<16x64xf32>
    %263 = arith.mulf %261, %262 : vector<16x64xf32>
    %264 = vector.broadcast %147 : vector<1x64xf32> to vector<16x64xf32>
    %265 = arith.addf %263, %264 : vector<16x64xf32>
    %c2 = arith.constant 2 : index
    %c0_95 = arith.constant 0 : index
    %c0_96 = arith.constant 0 : index
    %266 = vector.load %arg11[%c2, %c0_95, %c0_96] : memref<3x8x192xf32, #tpu.memory_space<vmem>>, vector<1x8x192xf32>
    %267 = vector.shape_cast %266 : vector<1x8x192xf32> to vector<8x192xf32>
    %268 = vector.extract_strided_slice %267 {offsets = [0, 0], sizes = [1, 192], strides = [1, 1]} : vector<8x192xf32> to vector<1x192xf32>
    %269 = vector.extract_strided_slice %267 {offsets = [1, 0], sizes = [1, 64], strides = [1, 1]} : vector<8x192xf32> to vector<1x64xf32>
    %270 = vector.extract_strided_slice %267 {offsets = [2, 0], sizes = [1, 128], strides = [1, 1]} : vector<8x192xf32> to vector<1x128xf32>
    %271 = vector.extract_strided_slice %267 {offsets = [3, 0], sizes = [1, 64], strides = [1, 1]} : vector<8x192xf32> to vector<1x64xf32>
    %272 = vector.extract_strided_slice %267 {offsets = [4, 0], sizes = [1, 64], strides = [1, 1]} : vector<8x192xf32> to vector<1x64xf32>
    %273 = vector.extract_strided_slice %267 {offsets = [5, 0], sizes = [1, 64], strides = [1, 1]} : vector<8x192xf32> to vector<1x64xf32>
    %274 = vector.extract_strided_slice %267 {offsets = [6, 0], sizes = [1, 64], strides = [1, 1]} : vector<8x192xf32> to vector<1x64xf32>
    %275 = vector.extract_strided_slice %267 {offsets = [7, 0], sizes = [1, 64], strides = [1, 1]} : vector<8x192xf32> to vector<1x64xf32>
    %c2_97 = arith.constant 2 : index
    %c0_98 = arith.constant 0 : index
    %c0_99 = arith.constant 0 : index
    %276 = vector.load %arg7[%c2_97, %c0_98, %c0_99] : memref<3x64x192xf32, #tpu.memory_space<vmem>>, vector<1x64x192xf32>
    %277 = vector.shape_cast %276 : vector<1x64x192xf32> to vector<64x192xf32>
    %cst_100 = arith.constant dense<0.000000e+00> : vector<16x192xf32>
    %278 = tpu.matmul %265, %277, %cst_100 {dimension_numbers = #tpu.dot_dimension_numbers<[1], [0], [0], [1], [0, 0, 1, 1], [], []>} : vector<16x64xf32>, vector<64x192xf32>, vector<16x192xf32> -> vector<16x192xf32>
    %279 = vector.broadcast %268 : vector<1x192xf32> to vector<16x192xf32>
    %280 = arith.addf %278, %279 : vector<16x192xf32>
    %281 = vector.extract_strided_slice %280 {offsets = [0, 0], sizes = [8, 192], strides = [1, 1]} : vector<16x192xf32> to vector<8x192xf32>
    %282 = tpu.transpose %281, [1, 0] : vector<8x192xf32> -> vector<192x8xf32>
    %283 = vector.shape_cast %282 : vector<192x8xf32> to vector<24x8x8xf32>
    %284 = tpu.transpose %283, [0, 2, 1] : vector<24x8x8xf32> -> vector<24x8x8xf32>
    %285 = vector.extract_strided_slice %284 {offsets = [0, 0, 0], sizes = [8, 8, 8], strides = [1, 1, 1]} : vector<24x8x8xf32> to vector<8x8x8xf32>
    %286 = vector.extract_strided_slice %284 {offsets = [8, 0, 0], sizes = [8, 8, 8], strides = [1, 1, 1]} : vector<24x8x8xf32> to vector<8x8x8xf32>
    %287 = vector.extract_strided_slice %284 {offsets = [16, 0, 0], sizes = [8, 8, 8], strides = [1, 1, 1]} : vector<24x8x8xf32> to vector<8x8x8xf32>
    %c2_101 = arith.constant 2 : index
    %c0_102 = arith.constant 0 : index
    %c0_103 = arith.constant 0 : index
    %288 = vector.load %arg8[%c2_101, %c0_102, %c0_103] : memref<3x64x64xf32, #tpu.memory_space<vmem>>, vector<1x64x64xf32>
    %289 = vector.shape_cast %288 : vector<1x64x64xf32> to vector<64x64xf32>
    "tpu.trace_start"() <{level = 10 : i32, message = "hqd,hkd->hqk"}> : () -> ()
    %cst_104 = arith.constant dense<0.000000e+00> : vector<8x8x8xf32>
    %290 = tpu.matmul %285, %286, %cst_104 {dimension_numbers = #tpu.dot_dimension_numbers<[2], [2], [1], [1], [0, 0, 0, 1, 1, 1], [0], [0]>} : vector<8x8x8xf32>, vector<8x8x8xf32>, vector<8x8x8xf32> -> vector<8x8x8xf32>
    "tpu.trace_stop"() : () -> ()
    %cst_105 = arith.constant 0.353553385 : f32
    %291 = vector.broadcast %cst_105 : f32 to vector<8x8x8xf32>
    %292 = arith.mulf %290, %291 : vector<8x8x8xf32>
    %cst_106 = arith.constant dense<0xFF800000> : vector<8x8xf32>
    %293 = vector.multi_reduction <maximumf>, %292, %cst_106 [2] : vector<8x8x8xf32> to vector<8x8xf32>
    %294 = vector.shape_cast %293 : vector<8x8xf32> to vector<8x8x1xf32>
    %295 = vector.broadcast %294 : vector<8x8x1xf32> to vector<8x8x8xf32>
    %296 = arith.subf %292, %295 : vector<8x8x8xf32>
    %297 = math.exp %296 : vector<8x8x8xf32>
    %cst_107 = arith.constant dense<0.000000e+00> : vector<8x8xf32>
    %298 = vector.multi_reduction <add>, %297, %cst_107 [2] : vector<8x8x8xf32> to vector<8x8xf32>
    %299 = vector.shape_cast %298 : vector<8x8xf32> to vector<8x8x1xf32>
    %300 = tpu.reciprocal %299 {approx = true} : vector<8x8x1xf32> -> vector<8x8x1xf32>
    %301 = vector.broadcast %300 : vector<8x8x1xf32> to vector<8x8x8xf32>
    %302 = arith.mulf %297, %301 : vector<8x8x8xf32>
    "tpu.trace_start"() <{level = 10 : i32, message = "hqk,hkd->hqd"}> : () -> ()
    %cst_108 = arith.constant dense<0.000000e+00> : vector<8x8x8xf32>
    %303 = tpu.matmul %302, %287, %cst_108 {dimension_numbers = #tpu.dot_dimension_numbers<[2], [1], [1], [2], [0, 0, 0, 1, 1, 2], [0], [0]>} : vector<8x8x8xf32>, vector<8x8x8xf32>, vector<8x8x8xf32> -> vector<8x8x8xf32>
    "tpu.trace_stop"() : () -> ()
    %304 = tpu.transpose %303, [0, 2, 1] : vector<8x8x8xf32> -> vector<8x8x8xf32>
    %305 = vector.shape_cast %304 : vector<8x8x8xf32> to vector<64x8xf32>
    %306 = tpu.transpose %305, [1, 0] : vector<64x8xf32> -> vector<8x64xf32>
    %cst_109 = arith.constant dense<0.000000e+00> : vector<8x64xf32>
    %307 = tpu.matmul %306, %289, %cst_109 {dimension_numbers = #tpu.dot_dimension_numbers<[1], [0], [0], [1], [0, 0, 1, 1], [], []>} : vector<8x64xf32>, vector<64x64xf32>, vector<8x64xf32> -> vector<8x64xf32>
    %308 = vector.broadcast %269 : vector<1x64xf32> to vector<8x64xf32>
    %309 = arith.addf %307, %308 : vector<8x64xf32>
    %310 = vector.extract_strided_slice %280 {offsets = [8, 0], sizes = [8, 192], strides = [1, 1]} : vector<16x192xf32> to vector<8x192xf32>
    %311 = tpu.transpose %310, [1, 0] : vector<8x192xf32> -> vector<192x8xf32>
    %312 = vector.shape_cast %311 : vector<192x8xf32> to vector<24x8x8xf32>
    %313 = tpu.transpose %312, [0, 2, 1] : vector<24x8x8xf32> -> vector<24x8x8xf32>
    %314 = vector.extract_strided_slice %313 {offsets = [0, 0, 0], sizes = [8, 8, 8], strides = [1, 1, 1]} : vector<24x8x8xf32> to vector<8x8x8xf32>
    %315 = vector.extract_strided_slice %313 {offsets = [8, 0, 0], sizes = [8, 8, 8], strides = [1, 1, 1]} : vector<24x8x8xf32> to vector<8x8x8xf32>
    %316 = vector.extract_strided_slice %313 {offsets = [16, 0, 0], sizes = [8, 8, 8], strides = [1, 1, 1]} : vector<24x8x8xf32> to vector<8x8x8xf32>
    %c2_110 = arith.constant 2 : index
    %c0_111 = arith.constant 0 : index
    %c0_112 = arith.constant 0 : index
    %317 = vector.load %arg8[%c2_110, %c0_111, %c0_112] : memref<3x64x64xf32, #tpu.memory_space<vmem>>, vector<1x64x64xf32>
    %318 = vector.shape_cast %317 : vector<1x64x64xf32> to vector<64x64xf32>
    "tpu.trace_start"() <{level = 10 : i32, message = "hqd,hkd->hqk"}> : () -> ()
    %cst_113 = arith.constant dense<0.000000e+00> : vector<8x8x8xf32>
    %319 = tpu.matmul %314, %315, %cst_113 {dimension_numbers = #tpu.dot_dimension_numbers<[2], [2], [1], [1], [0, 0, 0, 1, 1, 1], [0], [0]>} : vector<8x8x8xf32>, vector<8x8x8xf32>, vector<8x8x8xf32> -> vector<8x8x8xf32>
    "tpu.trace_stop"() : () -> ()
    %cst_114 = arith.constant 0.353553385 : f32
    %320 = vector.broadcast %cst_114 : f32 to vector<8x8x8xf32>
    %321 = arith.mulf %319, %320 : vector<8x8x8xf32>
    %cst_115 = arith.constant dense<0xFF800000> : vector<8x8xf32>
    %322 = vector.multi_reduction <maximumf>, %321, %cst_115 [2] : vector<8x8x8xf32> to vector<8x8xf32>
    %323 = vector.shape_cast %322 : vector<8x8xf32> to vector<8x8x1xf32>
    %324 = vector.broadcast %323 : vector<8x8x1xf32> to vector<8x8x8xf32>
    %325 = arith.subf %321, %324 : vector<8x8x8xf32>
    %326 = math.exp %325 : vector<8x8x8xf32>
    %cst_116 = arith.constant dense<0.000000e+00> : vector<8x8xf32>
    %327 = vector.multi_reduction <add>, %326, %cst_116 [2] : vector<8x8x8xf32> to vector<8x8xf32>
    %328 = vector.shape_cast %327 : vector<8x8xf32> to vector<8x8x1xf32>
    %329 = tpu.reciprocal %328 {approx = true} : vector<8x8x1xf32> -> vector<8x8x1xf32>
    %330 = vector.broadcast %329 : vector<8x8x1xf32> to vector<8x8x8xf32>
    %331 = arith.mulf %326, %330 : vector<8x8x8xf32>
    "tpu.trace_start"() <{level = 10 : i32, message = "hqk,hkd->hqd"}> : () -> ()
    %cst_117 = arith.constant dense<0.000000e+00> : vector<8x8x8xf32>
    %332 = tpu.matmul %331, %316, %cst_117 {dimension_numbers = #tpu.dot_dimension_numbers<[2], [1], [1], [2], [0, 0, 0, 1, 1, 2], [0], [0]>} : vector<8x8x8xf32>, vector<8x8x8xf32>, vector<8x8x8xf32> -> vector<8x8x8xf32>
    "tpu.trace_stop"() : () -> ()
    %333 = tpu.transpose %332, [0, 2, 1] : vector<8x8x8xf32> -> vector<8x8x8xf32>
    %334 = vector.shape_cast %333 : vector<8x8x8xf32> to vector<64x8xf32>
    %335 = tpu.transpose %334, [1, 0] : vector<64x8xf32> -> vector<8x64xf32>
    %cst_118 = arith.constant dense<0.000000e+00> : vector<8x64xf32>
    %336 = tpu.matmul %335, %318, %cst_118 {dimension_numbers = #tpu.dot_dimension_numbers<[1], [0], [0], [1], [0, 0, 1, 1], [], []>} : vector<8x64xf32>, vector<64x64xf32>, vector<8x64xf32> -> vector<8x64xf32>
    %337 = vector.broadcast %269 : vector<1x64xf32> to vector<8x64xf32>
    %338 = arith.addf %336, %337 : vector<8x64xf32>
    %339 = tpu.concatenate %309, %338 in 0 : vector<8x64xf32>, vector<8x64xf32> -> vector<16x64xf32>
    %340 = arith.addf %265, %339 : vector<16x64xf32>
    %cst_119 = arith.constant dense<0.000000e+00> : vector<16xf32>
    %341 = vector.multi_reduction <add>, %340, %cst_119 [1] : vector<16x64xf32> to vector<16xf32>
    %342 = vector.shape_cast %341 : vector<16xf32> to vector<16x1xf32>
    %cst_120 = arith.constant 6.400000e+01 : f32
    %343 = vector.broadcast %cst_120 : f32 to vector<16x1xf32>
    %344 = arith.divf %342, %343 : vector<16x1xf32>
    %345 = vector.broadcast %344 : vector<16x1xf32> to vector<16x64xf32>
    %346 = arith.subf %340, %345 : vector<16x64xf32>
    %347 = arith.mulf %346, %346 : vector<16x64xf32>
    %cst_121 = arith.constant dense<0.000000e+00> : vector<16xf32>
    %348 = vector.multi_reduction <add>, %347, %cst_121 [1] : vector<16x64xf32> to vector<16xf32>
    %349 = vector.shape_cast %348 : vector<16xf32> to vector<16x1xf32>
    %cst_122 = arith.constant 6.400000e+01 : f32
    %350 = vector.broadcast %cst_122 : f32 to vector<16x1xf32>
    %351 = arith.divf %349, %350 : vector<16x1xf32>
    %cst_123 = arith.constant 9.99999974E-6 : f32
    %352 = vector.broadcast %cst_123 : f32 to vector<16x1xf32>
    %353 = arith.addf %351, %352 : vector<16x1xf32>
    %354 = math.rsqrt %353 : vector<16x1xf32>
    %355 = vector.broadcast %354 : vector<16x1xf32> to vector<16x64xf32>
    %356 = arith.mulf %346, %355 : vector<16x64xf32>
    %357 = vector.broadcast %272 : vector<1x64xf32> to vector<16x64xf32>
    %358 = arith.mulf %356, %357 : vector<16x64xf32>
    %359 = vector.broadcast %273 : vector<1x64xf32> to vector<16x64xf32>
    %360 = arith.addf %358, %359 : vector<16x64xf32>
    %c2_124 = arith.constant 2 : index
    %c0_125 = arith.constant 0 : index
    %c0_126 = arith.constant 0 : index
    %361 = vector.load %arg9[%c2_124, %c0_125, %c0_126] : memref<3x64x128xf32, #tpu.memory_space<vmem>>, vector<1x64x128xf32>
    %362 = vector.shape_cast %361 : vector<1x64x128xf32> to vector<64x128xf32>
    %cst_127 = arith.constant dense<0.000000e+00> : vector<16x128xf32>
    %363 = tpu.matmul %360, %362, %cst_127 {dimension_numbers = #tpu.dot_dimension_numbers<[1], [0], [0], [1], [0, 0, 1, 1], [], []>} : vector<16x64xf32>, vector<64x128xf32>, vector<16x128xf32> -> vector<16x128xf32>
    %364 = vector.broadcast %270 : vector<1x128xf32> to vector<16x128xf32>
    %365 = arith.addf %363, %364 : vector<16x128xf32>
    %cst_128 = arith.constant 0.000000e+00 : f32
    %366 = vector.broadcast %cst_128 : f32 to vector<16x128xf32>
    %367 = arith.maximumf %365, %366 : vector<16x128xf32>
    %c2_129 = arith.constant 2 : index
    %c0_130 = arith.constant 0 : index
    %c0_131 = arith.constant 0 : index
    %368 = vector.load %arg10[%c2_129, %c0_130, %c0_131] : memref<3x128x64xf32, #tpu.memory_space<vmem>>, vector<1x128x64xf32>
    %369 = vector.shape_cast %368 : vector<1x128x64xf32> to vector<128x64xf32>
    %cst_132 = arith.constant dense<0.000000e+00> : vector<16x64xf32>
    %370 = tpu.matmul %367, %369, %cst_132 {dimension_numbers = #tpu.dot_dimension_numbers<[1], [0], [0], [1], [0, 0, 1, 1], [], []>} : vector<16x128xf32>, vector<128x64xf32>, vector<16x64xf32> -> vector<16x64xf32>
    %371 = vector.broadcast %271 : vector<1x64xf32> to vector<16x64xf32>
    %372 = arith.addf %370, %371 : vector<16x64xf32>
    %373 = arith.addf %360, %372 : vector<16x64xf32>
    %cst_133 = arith.constant dense<0.000000e+00> : vector<16xf32>
    %374 = vector.multi_reduction <add>, %373, %cst_133 [1] : vector<16x64xf32> to vector<16xf32>
    %375 = vector.shape_cast %374 : vector<16xf32> to vector<16x1xf32>
    %cst_134 = arith.constant 6.400000e+01 : f32
    %376 = vector.broadcast %cst_134 : f32 to vector<16x1xf32>
    %377 = arith.divf %375, %376 : vector<16x1xf32>
    %378 = vector.broadcast %377 : vector<16x1xf32> to vector<16x64xf32>
    %379 = arith.subf %373, %378 : vector<16x64xf32>
    %380 = arith.mulf %379, %379 : vector<16x64xf32>
    %cst_135 = arith.constant dense<0.000000e+00> : vector<16xf32>
    %381 = vector.multi_reduction <add>, %380, %cst_135 [1] : vector<16x64xf32> to vector<16xf32>
    %382 = vector.shape_cast %381 : vector<16xf32> to vector<16x1xf32>
    %cst_136 = arith.constant 6.400000e+01 : f32
    %383 = vector.broadcast %cst_136 : f32 to vector<16x1xf32>
    %384 = arith.divf %382, %383 : vector<16x1xf32>
    %cst_137 = arith.constant 9.99999974E-6 : f32
    %385 = vector.broadcast %cst_137 : f32 to vector<16x1xf32>
    %386 = arith.addf %384, %385 : vector<16x1xf32>
    %387 = math.rsqrt %386 : vector<16x1xf32>
    %388 = vector.broadcast %387 : vector<16x1xf32> to vector<16x64xf32>
    %389 = arith.mulf %379, %388 : vector<16x64xf32>
    %390 = vector.broadcast %274 : vector<1x64xf32> to vector<16x64xf32>
    %391 = arith.mulf %389, %390 : vector<16x64xf32>
    %392 = vector.broadcast %275 : vector<1x64xf32> to vector<16x64xf32>
    %393 = arith.addf %391, %392 : vector<16x64xf32>
    %394 = vector.extract_strided_slice %0 {offsets = [0, 0], sizes = [1, 64], strides = [1, 1]} : vector<8x64xf32> to vector<1x64xf32>
    %395 = tpu.concatenate %394, %394 in 0 : vector<1x64xf32>, vector<1x64xf32> -> vector<2x64xf32>
    %c0_138 = arith.constant 0 : index
    %c0_139 = arith.constant 0 : index
    %c0_140 = arith.constant 0 : index
    %396 = vector.load %arg18[%c0_138, %c0_139, %c0_140] : memref<3x12x128xf32, #tpu.memory_space<vmem>>, vector<1x12x128xf32>
    %397 = vector.shape_cast %396 : vector<1x12x128xf32> to vector<12x128xf32>
    %398 = vector.extract_strided_slice %397 {offsets = [0, 0], sizes = [1, 64], strides = [1, 1]} : vector<12x128xf32> to vector<1x64xf32>
    %399 = vector.extract_strided_slice %397 {offsets = [1, 0], sizes = [1, 64], strides = [1, 1]} : vector<12x128xf32> to vector<1x64xf32>
    %400 = vector.extract_strided_slice %397 {offsets = [2, 0], sizes = [1, 128], strides = [1, 1]} : vector<12x128xf32> to vector<1x128xf32>
    %401 = vector.extract_strided_slice %397 {offsets = [3, 0], sizes = [1, 64], strides = [1, 1]} : vector<12x128xf32> to vector<1x64xf32>
    %402 = vector.extract_strided_slice %397 {offsets = [4, 0], sizes = [1, 128], strides = [1, 1]} : vector<12x128xf32> to vector<1x128xf32>
    %403 = vector.extract_strided_slice %397 {offsets = [5, 0], sizes = [1, 64], strides = [1, 1]} : vector<12x128xf32> to vector<1x64xf32>
    %404 = vector.extract_strided_slice %397 {offsets = [6, 0], sizes = [1, 64], strides = [1, 1]} : vector<12x128xf32> to vector<1x64xf32>
    %405 = vector.extract_strided_slice %397 {offsets = [7, 0], sizes = [1, 64], strides = [1, 1]} : vector<12x128xf32> to vector<1x64xf32>
    %406 = vector.extract_strided_slice %397 {offsets = [8, 0], sizes = [1, 64], strides = [1, 1]} : vector<12x128xf32> to vector<1x64xf32>
    %407 = vector.extract_strided_slice %397 {offsets = [9, 0], sizes = [1, 64], strides = [1, 1]} : vector<12x128xf32> to vector<1x64xf32>
    %408 = vector.extract_strided_slice %397 {offsets = [10, 0], sizes = [1, 64], strides = [1, 1]} : vector<12x128xf32> to vector<1x64xf32>
    %409 = vector.extract_strided_slice %397 {offsets = [11, 0], sizes = [1, 64], strides = [1, 1]} : vector<12x128xf32> to vector<1x64xf32>
    %c0_141 = arith.constant 0 : index
    %c0_142 = arith.constant 0 : index
    %c0_143 = arith.constant 0 : index
    %410 = vector.load %arg12[%c0_141, %c0_142, %c0_143] : memref<3x64x64xf32, #tpu.memory_space<vmem>>, vector<1x64x64xf32>
    %411 = vector.shape_cast %410 : vector<1x64x64xf32> to vector<64x64xf32>
    %cst_144 = arith.constant dense<0.000000e+00> : vector<2x64xf32>
    %412 = tpu.matmul %395, %411, %cst_144 {dimension_numbers = #tpu.dot_dimension_numbers<[1], [0], [0], [1], [0, 0, 1, 1], [], []>} : vector<2x64xf32>, vector<64x64xf32>, vector<2x64xf32> -> vector<2x64xf32>
    %413 = arith.addf %395, %412 : vector<2x64xf32>
    %414 = vector.broadcast %398 : vector<1x64xf32> to vector<2x64xf32>
    %415 = arith.addf %413, %414 : vector<2x64xf32>
    %cst_145 = arith.constant dense<0.000000e+00> : vector<2xf32>
    %416 = vector.multi_reduction <add>, %415, %cst_145 [1] : vector<2x64xf32> to vector<2xf32>
    %417 = vector.shape_cast %416 : vector<2xf32> to vector<2x1xf32>
    %cst_146 = arith.constant 6.400000e+01 : f32
    %418 = vector.broadcast %cst_146 : f32 to vector<2x1xf32>
    %419 = arith.divf %417, %418 : vector<2x1xf32>
    %420 = vector.broadcast %419 : vector<2x1xf32> to vector<2x64xf32>
    %421 = arith.subf %415, %420 : vector<2x64xf32>
    %422 = arith.mulf %421, %421 : vector<2x64xf32>
    %cst_147 = arith.constant dense<0.000000e+00> : vector<2xf32>
    %423 = vector.multi_reduction <add>, %422, %cst_147 [1] : vector<2x64xf32> to vector<2xf32>
    %424 = vector.shape_cast %423 : vector<2xf32> to vector<2x1xf32>
    %cst_148 = arith.constant 6.400000e+01 : f32
    %425 = vector.broadcast %cst_148 : f32 to vector<2x1xf32>
    %426 = arith.divf %424, %425 : vector<2x1xf32>
    %cst_149 = arith.constant 9.99999974E-6 : f32
    %427 = vector.broadcast %cst_149 : f32 to vector<2x1xf32>
    %428 = arith.addf %426, %427 : vector<2x1xf32>
    %429 = math.rsqrt %428 : vector<2x1xf32>
    %430 = vector.broadcast %429 : vector<2x1xf32> to vector<2x64xf32>
    %431 = arith.mulf %421, %430 : vector<2x64xf32>
    %432 = vector.broadcast %404 : vector<1x64xf32> to vector<2x64xf32>
    %433 = arith.mulf %431, %432 : vector<2x64xf32>
    %434 = vector.broadcast %405 : vector<1x64xf32> to vector<2x64xf32>
    %435 = arith.addf %433, %434 : vector<2x64xf32>
    %c0_150 = arith.constant 0 : index
    %c0_151 = arith.constant 0 : index
    %c0_152 = arith.constant 0 : index
    %436 = vector.load %arg13[%c0_150, %c0_151, %c0_152] : memref<3x64x64xf32, #tpu.memory_space<vmem>>, vector<1x64x64xf32>
    %437 = vector.shape_cast %436 : vector<1x64x64xf32> to vector<64x64xf32>
    %cst_153 = arith.constant dense<0.000000e+00> : vector<2x64xf32>
    %438 = tpu.matmul %435, %437, %cst_153 {dimension_numbers = #tpu.dot_dimension_numbers<[1], [0], [0], [1], [0, 0, 1, 1], [], []>} : vector<2x64xf32>, vector<64x64xf32>, vector<2x64xf32> -> vector<2x64xf32>
    %439 = vector.broadcast %399 : vector<1x64xf32> to vector<2x64xf32>
    %440 = arith.addf %438, %439 : vector<2x64xf32>
    %c0_154 = arith.constant 0 : index
    %c0_155 = arith.constant 0 : index
    %c0_156 = arith.constant 0 : index
    %441 = vector.load %arg14[%c0_154, %c0_155, %c0_156] : memref<3x64x128xf32, #tpu.memory_space<vmem>>, vector<1x64x128xf32>
    %442 = vector.shape_cast %441 : vector<1x64x128xf32> to vector<64x128xf32>
    %cst_157 = arith.constant dense<0.000000e+00> : vector<16x128xf32>
    %443 = tpu.matmul %393, %442, %cst_157 {dimension_numbers = #tpu.dot_dimension_numbers<[1], [0], [0], [1], [0, 0, 1, 1], [], []>} : vector<16x64xf32>, vector<64x128xf32>, vector<16x128xf32> -> vector<16x128xf32>
    %444 = vector.broadcast %400 : vector<1x128xf32> to vector<16x128xf32>
    %445 = arith.addf %443, %444 : vector<16x128xf32>
    %446 = vector.extract_strided_slice %440 {offsets = [0, 0], sizes = [1, 64], strides = [1, 1]} : vector<2x64xf32> to vector<1x64xf32>
    %447 = tpu.transpose %446, [1, 0] : vector<1x64xf32> -> vector<64x1xf32>
    %448 = vector.shape_cast %447 : vector<64x1xf32> to vector<8x8x1xf32>
    %449 = tpu.transpose %448, [0, 2, 1] : vector<8x8x1xf32> -> vector<8x1x8xf32>
    %450 = vector.extract_strided_slice %445 {offsets = [0, 0], sizes = [8, 128], strides = [1, 1]} : vector<16x128xf32> to vector<8x128xf32>
    %451 = tpu.transpose %450, [1, 0] : vector<8x128xf32> -> vector<128x8xf32>
    %452 = vector.shape_cast %451 : vector<128x8xf32> to vector<16x8x8xf32>
    %453 = tpu.transpose %452, [0, 2, 1] : vector<16x8x8xf32> -> vector<16x8x8xf32>
    %454 = vector.extract_strided_slice %453 {offsets = [0, 0, 0], sizes = [8, 8, 8], strides = [1, 1, 1]} : vector<16x8x8xf32> to vector<8x8x8xf32>
    %455 = vector.extract_strided_slice %453 {offsets = [8, 0, 0], sizes = [8, 8, 8], strides = [1, 1, 1]} : vector<16x8x8xf32> to vector<8x8x8xf32>
    %c0_158 = arith.constant 0 : index
    %c0_159 = arith.constant 0 : index
    %c0_160 = arith.constant 0 : index
    %456 = vector.load %arg15[%c0_158, %c0_159, %c0_160] : memref<3x64x64xf32, #tpu.memory_space<vmem>>, vector<1x64x64xf32>
    %457 = vector.shape_cast %456 : vector<1x64x64xf32> to vector<64x64xf32>
    "tpu.trace_start"() <{level = 10 : i32, message = "hqd,hkd->hqk"}> : () -> ()
    %cst_161 = arith.constant dense<0.000000e+00> : vector<8x1x8xf32>
    %458 = tpu.matmul %449, %454, %cst_161 {dimension_numbers = #tpu.dot_dimension_numbers<[2], [2], [1], [1], [0, 0, 0, 1, 1, 1], [0], [0]>} : vector<8x1x8xf32>, vector<8x8x8xf32>, vector<8x1x8xf32> -> vector<8x1x8xf32>
    "tpu.trace_stop"() : () -> ()
    %cst_162 = arith.constant 0.353553385 : f32
    %459 = vector.broadcast %cst_162 : f32 to vector<8x1x8xf32>
    %460 = arith.mulf %458, %459 : vector<8x1x8xf32>
    %cst_163 = arith.constant dense<0xFF800000> : vector<8x1xf32>
    %461 = vector.multi_reduction <maximumf>, %460, %cst_163 [2] : vector<8x1x8xf32> to vector<8x1xf32>
    %462 = vector.shape_cast %461 : vector<8x1xf32> to vector<8x1x1xf32>
    %463 = vector.broadcast %462 : vector<8x1x1xf32> to vector<8x1x8xf32>
    %464 = arith.subf %460, %463 : vector<8x1x8xf32>
    %465 = math.exp %464 : vector<8x1x8xf32>
    %cst_164 = arith.constant dense<0.000000e+00> : vector<8x1xf32>
    %466 = vector.multi_reduction <add>, %465, %cst_164 [2] : vector<8x1x8xf32> to vector<8x1xf32>
    %467 = vector.shape_cast %466 : vector<8x1xf32> to vector<8x1x1xf32>
    %468 = tpu.reciprocal %467 {approx = true} : vector<8x1x1xf32> -> vector<8x1x1xf32>
    %469 = vector.broadcast %468 : vector<8x1x1xf32> to vector<8x1x8xf32>
    %470 = arith.mulf %465, %469 : vector<8x1x8xf32>
    "tpu.trace_start"() <{level = 10 : i32, message = "hqk,hkd->hqd"}> : () -> ()
    %cst_165 = arith.constant dense<0.000000e+00> : vector<8x1x8xf32>
    %471 = tpu.matmul %470, %455, %cst_165 {dimension_numbers = #tpu.dot_dimension_numbers<[2], [1], [1], [2], [0, 0, 0, 1, 1, 2], [0], [0]>} : vector<8x1x8xf32>, vector<8x8x8xf32>, vector<8x1x8xf32> -> vector<8x1x8xf32>
    "tpu.trace_stop"() : () -> ()
    %472 = tpu.transpose %471, [0, 2, 1] : vector<8x1x8xf32> -> vector<8x8x1xf32>
    %473 = vector.shape_cast %472 : vector<8x8x1xf32> to vector<64x1xf32>
    %474 = tpu.transpose %473, [1, 0] : vector<64x1xf32> -> vector<1x64xf32>
    %cst_166 = arith.constant dense<0.000000e+00> : vector<1x64xf32>
    %475 = tpu.matmul %474, %457, %cst_166 {dimension_numbers = #tpu.dot_dimension_numbers<[1], [0], [0], [1], [0, 0, 1, 1], [], []>} : vector<1x64xf32>, vector<64x64xf32>, vector<1x64xf32> -> vector<1x64xf32>
    %476 = arith.addf %475, %401 : vector<1x64xf32>
    %477 = vector.extract_strided_slice %440 {offsets = [1, 0], sizes = [1, 64], strides = [1, 1]} : vector<2x64xf32> to vector<1x64xf32>
    %478 = tpu.transpose %477, [1, 0] : vector<1x64xf32> -> vector<64x1xf32>
    %479 = vector.shape_cast %478 : vector<64x1xf32> to vector<8x8x1xf32>
    %480 = tpu.transpose %479, [0, 2, 1] : vector<8x8x1xf32> -> vector<8x1x8xf32>
    %481 = vector.extract_strided_slice %445 {offsets = [8, 0], sizes = [8, 128], strides = [1, 1]} : vector<16x128xf32> to vector<8x128xf32>
    %482 = tpu.transpose %481, [1, 0] : vector<8x128xf32> -> vector<128x8xf32>
    %483 = vector.shape_cast %482 : vector<128x8xf32> to vector<16x8x8xf32>
    %484 = tpu.transpose %483, [0, 2, 1] : vector<16x8x8xf32> -> vector<16x8x8xf32>
    %485 = vector.extract_strided_slice %484 {offsets = [0, 0, 0], sizes = [8, 8, 8], strides = [1, 1, 1]} : vector<16x8x8xf32> to vector<8x8x8xf32>
    %486 = vector.extract_strided_slice %484 {offsets = [8, 0, 0], sizes = [8, 8, 8], strides = [1, 1, 1]} : vector<16x8x8xf32> to vector<8x8x8xf32>
    %c0_167 = arith.constant 0 : index
    %c0_168 = arith.constant 0 : index
    %c0_169 = arith.constant 0 : index
    %487 = vector.load %arg15[%c0_167, %c0_168, %c0_169] : memref<3x64x64xf32, #tpu.memory_space<vmem>>, vector<1x64x64xf32>
    %488 = vector.shape_cast %487 : vector<1x64x64xf32> to vector<64x64xf32>
    "tpu.trace_start"() <{level = 10 : i32, message = "hqd,hkd->hqk"}> : () -> ()
    %cst_170 = arith.constant dense<0.000000e+00> : vector<8x1x8xf32>
    %489 = tpu.matmul %480, %485, %cst_170 {dimension_numbers = #tpu.dot_dimension_numbers<[2], [2], [1], [1], [0, 0, 0, 1, 1, 1], [0], [0]>} : vector<8x1x8xf32>, vector<8x8x8xf32>, vector<8x1x8xf32> -> vector<8x1x8xf32>
    "tpu.trace_stop"() : () -> ()
    %cst_171 = arith.constant 0.353553385 : f32
    %490 = vector.broadcast %cst_171 : f32 to vector<8x1x8xf32>
    %491 = arith.mulf %489, %490 : vector<8x1x8xf32>
    %cst_172 = arith.constant dense<0xFF800000> : vector<8x1xf32>
    %492 = vector.multi_reduction <maximumf>, %491, %cst_172 [2] : vector<8x1x8xf32> to vector<8x1xf32>
    %493 = vector.shape_cast %492 : vector<8x1xf32> to vector<8x1x1xf32>
    %494 = vector.broadcast %493 : vector<8x1x1xf32> to vector<8x1x8xf32>
    %495 = arith.subf %491, %494 : vector<8x1x8xf32>
    %496 = math.exp %495 : vector<8x1x8xf32>
    %cst_173 = arith.constant dense<0.000000e+00> : vector<8x1xf32>
    %497 = vector.multi_reduction <add>, %496, %cst_173 [2] : vector<8x1x8xf32> to vector<8x1xf32>
    %498 = vector.shape_cast %497 : vector<8x1xf32> to vector<8x1x1xf32>
    %499 = tpu.reciprocal %498 {approx = true} : vector<8x1x1xf32> -> vector<8x1x1xf32>
    %500 = vector.broadcast %499 : vector<8x1x1xf32> to vector<8x1x8xf32>
    %501 = arith.mulf %496, %500 : vector<8x1x8xf32>
    "tpu.trace_start"() <{level = 10 : i32, message = "hqk,hkd->hqd"}> : () -> ()
    %cst_174 = arith.constant dense<0.000000e+00> : vector<8x1x8xf32>
    %502 = tpu.matmul %501, %486, %cst_174 {dimension_numbers = #tpu.dot_dimension_numbers<[2], [1], [1], [2], [0, 0, 0, 1, 1, 2], [0], [0]>} : vector<8x1x8xf32>, vector<8x8x8xf32>, vector<8x1x8xf32> -> vector<8x1x8xf32>
    "tpu.trace_stop"() : () -> ()
    %503 = tpu.transpose %502, [0, 2, 1] : vector<8x1x8xf32> -> vector<8x8x1xf32>
    %504 = vector.shape_cast %503 : vector<8x8x1xf32> to vector<64x1xf32>
    %505 = tpu.transpose %504, [1, 0] : vector<64x1xf32> -> vector<1x64xf32>
    %cst_175 = arith.constant dense<0.000000e+00> : vector<1x64xf32>
    %506 = tpu.matmul %505, %488, %cst_175 {dimension_numbers = #tpu.dot_dimension_numbers<[1], [0], [0], [1], [0, 0, 1, 1], [], []>} : vector<1x64xf32>, vector<64x64xf32>, vector<1x64xf32> -> vector<1x64xf32>
    %507 = arith.addf %506, %401 : vector<1x64xf32>
    %508 = tpu.concatenate %476, %507 in 0 : vector<1x64xf32>, vector<1x64xf32> -> vector<2x64xf32>
    %509 = arith.addf %435, %508 : vector<2x64xf32>
    %cst_176 = arith.constant dense<0.000000e+00> : vector<2xf32>
    %510 = vector.multi_reduction <add>, %509, %cst_176 [1] : vector<2x64xf32> to vector<2xf32>
    %511 = vector.shape_cast %510 : vector<2xf32> to vector<2x1xf32>
    %cst_177 = arith.constant 6.400000e+01 : f32
    %512 = vector.broadcast %cst_177 : f32 to vector<2x1xf32>
    %513 = arith.divf %511, %512 : vector<2x1xf32>
    %514 = vector.broadcast %513 : vector<2x1xf32> to vector<2x64xf32>
    %515 = arith.subf %509, %514 : vector<2x64xf32>
    %516 = arith.mulf %515, %515 : vector<2x64xf32>
    %cst_178 = arith.constant dense<0.000000e+00> : vector<2xf32>
    %517 = vector.multi_reduction <add>, %516, %cst_178 [1] : vector<2x64xf32> to vector<2xf32>
    %518 = vector.shape_cast %517 : vector<2xf32> to vector<2x1xf32>
    %cst_179 = arith.constant 6.400000e+01 : f32
    %519 = vector.broadcast %cst_179 : f32 to vector<2x1xf32>
    %520 = arith.divf %518, %519 : vector<2x1xf32>
    %cst_180 = arith.constant 9.99999974E-6 : f32
    %521 = vector.broadcast %cst_180 : f32 to vector<2x1xf32>
    %522 = arith.addf %520, %521 : vector<2x1xf32>
    %523 = math.rsqrt %522 : vector<2x1xf32>
    %524 = vector.broadcast %523 : vector<2x1xf32> to vector<2x64xf32>
    %525 = arith.mulf %515, %524 : vector<2x64xf32>
    %526 = vector.broadcast %406 : vector<1x64xf32> to vector<2x64xf32>
    %527 = arith.mulf %525, %526 : vector<2x64xf32>
    %528 = vector.broadcast %407 : vector<1x64xf32> to vector<2x64xf32>
    %529 = arith.addf %527, %528 : vector<2x64xf32>
    %c0_181 = arith.constant 0 : index
    %c0_182 = arith.constant 0 : index
    %c0_183 = arith.constant 0 : index
    %530 = vector.load %arg16[%c0_181, %c0_182, %c0_183] : memref<3x64x128xf32, #tpu.memory_space<vmem>>, vector<1x64x128xf32>
    %531 = vector.shape_cast %530 : vector<1x64x128xf32> to vector<64x128xf32>
    %cst_184 = arith.constant dense<0.000000e+00> : vector<2x128xf32>
    %532 = tpu.matmul %529, %531, %cst_184 {dimension_numbers = #tpu.dot_dimension_numbers<[1], [0], [0], [1], [0, 0, 1, 1], [], []>} : vector<2x64xf32>, vector<64x128xf32>, vector<2x128xf32> -> vector<2x128xf32>
    %533 = vector.broadcast %402 : vector<1x128xf32> to vector<2x128xf32>
    %534 = arith.addf %532, %533 : vector<2x128xf32>
    %cst_185 = arith.constant 0.000000e+00 : f32
    %535 = vector.broadcast %cst_185 : f32 to vector<2x128xf32>
    %536 = arith.maximumf %534, %535 : vector<2x128xf32>
    %c0_186 = arith.constant 0 : index
    %c0_187 = arith.constant 0 : index
    %c0_188 = arith.constant 0 : index
    %537 = vector.load %arg17[%c0_186, %c0_187, %c0_188] : memref<3x128x64xf32, #tpu.memory_space<vmem>>, vector<1x128x64xf32>
    %538 = vector.shape_cast %537 : vector<1x128x64xf32> to vector<128x64xf32>
    %cst_189 = arith.constant dense<0.000000e+00> : vector<2x64xf32>
    %539 = tpu.matmul %536, %538, %cst_189 {dimension_numbers = #tpu.dot_dimension_numbers<[1], [0], [0], [1], [0, 0, 1, 1], [], []>} : vector<2x128xf32>, vector<128x64xf32>, vector<2x64xf32> -> vector<2x64xf32>
    %540 = vector.broadcast %403 : vector<1x64xf32> to vector<2x64xf32>
    %541 = arith.addf %539, %540 : vector<2x64xf32>
    %542 = arith.addf %529, %541 : vector<2x64xf32>
    %cst_190 = arith.constant dense<0.000000e+00> : vector<2xf32>
    %543 = vector.multi_reduction <add>, %542, %cst_190 [1] : vector<2x64xf32> to vector<2xf32>
    %544 = vector.shape_cast %543 : vector<2xf32> to vector<2x1xf32>
    %cst_191 = arith.constant 6.400000e+01 : f32
    %545 = vector.broadcast %cst_191 : f32 to vector<2x1xf32>
    %546 = arith.divf %544, %545 : vector<2x1xf32>
    %547 = vector.broadcast %546 : vector<2x1xf32> to vector<2x64xf32>
    %548 = arith.subf %542, %547 : vector<2x64xf32>
    %549 = arith.mulf %548, %548 : vector<2x64xf32>
    %cst_192 = arith.constant dense<0.000000e+00> : vector<2xf32>
    %550 = vector.multi_reduction <add>, %549, %cst_192 [1] : vector<2x64xf32> to vector<2xf32>
    %551 = vector.shape_cast %550 : vector<2xf32> to vector<2x1xf32>
    %cst_193 = arith.constant 6.400000e+01 : f32
    %552 = vector.broadcast %cst_193 : f32 to vector<2x1xf32>
    %553 = arith.divf %551, %552 : vector<2x1xf32>
    %cst_194 = arith.constant 9.99999974E-6 : f32
    %554 = vector.broadcast %cst_194 : f32 to vector<2x1xf32>
    %555 = arith.addf %553, %554 : vector<2x1xf32>
    %556 = math.rsqrt %555 : vector<2x1xf32>
    %557 = vector.broadcast %556 : vector<2x1xf32> to vector<2x64xf32>
    %558 = arith.mulf %548, %557 : vector<2x64xf32>
    %559 = vector.broadcast %408 : vector<1x64xf32> to vector<2x64xf32>
    %560 = arith.mulf %558, %559 : vector<2x64xf32>
    %561 = vector.broadcast %409 : vector<1x64xf32> to vector<2x64xf32>
    %562 = arith.addf %560, %561 : vector<2x64xf32>
    %c1_195 = arith.constant 1 : index
    %c0_196 = arith.constant 0 : index
    %c0_197 = arith.constant 0 : index
    %563 = vector.load %arg18[%c1_195, %c0_196, %c0_197] : memref<3x12x128xf32, #tpu.memory_space<vmem>>, vector<1x12x128xf32>
    %564 = vector.shape_cast %563 : vector<1x12x128xf32> to vector<12x128xf32>
    %565 = vector.extract_strided_slice %564 {offsets = [0, 0], sizes = [1, 64], strides = [1, 1]} : vector<12x128xf32> to vector<1x64xf32>
    %566 = vector.extract_strided_slice %564 {offsets = [1, 0], sizes = [1, 64], strides = [1, 1]} : vector<12x128xf32> to vector<1x64xf32>
    %567 = vector.extract_strided_slice %564 {offsets = [2, 0], sizes = [1, 128], strides = [1, 1]} : vector<12x128xf32> to vector<1x128xf32>
    %568 = vector.extract_strided_slice %564 {offsets = [3, 0], sizes = [1, 64], strides = [1, 1]} : vector<12x128xf32> to vector<1x64xf32>
    %569 = vector.extract_strided_slice %564 {offsets = [4, 0], sizes = [1, 128], strides = [1, 1]} : vector<12x128xf32> to vector<1x128xf32>
    %570 = vector.extract_strided_slice %564 {offsets = [5, 0], sizes = [1, 64], strides = [1, 1]} : vector<12x128xf32> to vector<1x64xf32>
    %571 = vector.extract_strided_slice %564 {offsets = [6, 0], sizes = [1, 64], strides = [1, 1]} : vector<12x128xf32> to vector<1x64xf32>
    %572 = vector.extract_strided_slice %564 {offsets = [7, 0], sizes = [1, 64], strides = [1, 1]} : vector<12x128xf32> to vector<1x64xf32>
    %573 = vector.extract_strided_slice %564 {offsets = [8, 0], sizes = [1, 64], strides = [1, 1]} : vector<12x128xf32> to vector<1x64xf32>
    %574 = vector.extract_strided_slice %564 {offsets = [9, 0], sizes = [1, 64], strides = [1, 1]} : vector<12x128xf32> to vector<1x64xf32>
    %575 = vector.extract_strided_slice %564 {offsets = [10, 0], sizes = [1, 64], strides = [1, 1]} : vector<12x128xf32> to vector<1x64xf32>
    %576 = vector.extract_strided_slice %564 {offsets = [11, 0], sizes = [1, 64], strides = [1, 1]} : vector<12x128xf32> to vector<1x64xf32>
    %c1_198 = arith.constant 1 : index
    %c0_199 = arith.constant 0 : index
    %c0_200 = arith.constant 0 : index
    %577 = vector.load %arg12[%c1_198, %c0_199, %c0_200] : memref<3x64x64xf32, #tpu.memory_space<vmem>>, vector<1x64x64xf32>
    %578 = vector.shape_cast %577 : vector<1x64x64xf32> to vector<64x64xf32>
    %cst_201 = arith.constant dense<0.000000e+00> : vector<2x64xf32>
    %579 = tpu.matmul %562, %578, %cst_201 {dimension_numbers = #tpu.dot_dimension_numbers<[1], [0], [0], [1], [0, 0, 1, 1], [], []>} : vector<2x64xf32>, vector<64x64xf32>, vector<2x64xf32> -> vector<2x64xf32>
    %580 = arith.addf %562, %579 : vector<2x64xf32>
    %581 = vector.broadcast %565 : vector<1x64xf32> to vector<2x64xf32>
    %582 = arith.addf %580, %581 : vector<2x64xf32>
    %cst_202 = arith.constant dense<0.000000e+00> : vector<2xf32>
    %583 = vector.multi_reduction <add>, %582, %cst_202 [1] : vector<2x64xf32> to vector<2xf32>
    %584 = vector.shape_cast %583 : vector<2xf32> to vector<2x1xf32>
    %cst_203 = arith.constant 6.400000e+01 : f32
    %585 = vector.broadcast %cst_203 : f32 to vector<2x1xf32>
    %586 = arith.divf %584, %585 : vector<2x1xf32>
    %587 = vector.broadcast %586 : vector<2x1xf32> to vector<2x64xf32>
    %588 = arith.subf %582, %587 : vector<2x64xf32>
    %589 = arith.mulf %588, %588 : vector<2x64xf32>
    %cst_204 = arith.constant dense<0.000000e+00> : vector<2xf32>
    %590 = vector.multi_reduction <add>, %589, %cst_204 [1] : vector<2x64xf32> to vector<2xf32>
    %591 = vector.shape_cast %590 : vector<2xf32> to vector<2x1xf32>
    %cst_205 = arith.constant 6.400000e+01 : f32
    %592 = vector.broadcast %cst_205 : f32 to vector<2x1xf32>
    %593 = arith.divf %591, %592 : vector<2x1xf32>
    %cst_206 = arith.constant 9.99999974E-6 : f32
    %594 = vector.broadcast %cst_206 : f32 to vector<2x1xf32>
    %595 = arith.addf %593, %594 : vector<2x1xf32>
    %596 = math.rsqrt %595 : vector<2x1xf32>
    %597 = vector.broadcast %596 : vector<2x1xf32> to vector<2x64xf32>
    %598 = arith.mulf %588, %597 : vector<2x64xf32>
    %599 = vector.broadcast %571 : vector<1x64xf32> to vector<2x64xf32>
    %600 = arith.mulf %598, %599 : vector<2x64xf32>
    %601 = vector.broadcast %572 : vector<1x64xf32> to vector<2x64xf32>
    %602 = arith.addf %600, %601 : vector<2x64xf32>
    %c1_207 = arith.constant 1 : index
    %c0_208 = arith.constant 0 : index
    %c0_209 = arith.constant 0 : index
    %603 = vector.load %arg13[%c1_207, %c0_208, %c0_209] : memref<3x64x64xf32, #tpu.memory_space<vmem>>, vector<1x64x64xf32>
    %604 = vector.shape_cast %603 : vector<1x64x64xf32> to vector<64x64xf32>
    %cst_210 = arith.constant dense<0.000000e+00> : vector<2x64xf32>
    %605 = tpu.matmul %602, %604, %cst_210 {dimension_numbers = #tpu.dot_dimension_numbers<[1], [0], [0], [1], [0, 0, 1, 1], [], []>} : vector<2x64xf32>, vector<64x64xf32>, vector<2x64xf32> -> vector<2x64xf32>
    %606 = vector.broadcast %566 : vector<1x64xf32> to vector<2x64xf32>
    %607 = arith.addf %605, %606 : vector<2x64xf32>
    %c1_211 = arith.constant 1 : index
    %c0_212 = arith.constant 0 : index
    %c0_213 = arith.constant 0 : index
    %608 = vector.load %arg14[%c1_211, %c0_212, %c0_213] : memref<3x64x128xf32, #tpu.memory_space<vmem>>, vector<1x64x128xf32>
    %609 = vector.shape_cast %608 : vector<1x64x128xf32> to vector<64x128xf32>
    %cst_214 = arith.constant dense<0.000000e+00> : vector<16x128xf32>
    %610 = tpu.matmul %393, %609, %cst_214 {dimension_numbers = #tpu.dot_dimension_numbers<[1], [0], [0], [1], [0, 0, 1, 1], [], []>} : vector<16x64xf32>, vector<64x128xf32>, vector<16x128xf32> -> vector<16x128xf32>
    %611 = vector.broadcast %567 : vector<1x128xf32> to vector<16x128xf32>
    %612 = arith.addf %610, %611 : vector<16x128xf32>
    %613 = vector.extract_strided_slice %607 {offsets = [0, 0], sizes = [1, 64], strides = [1, 1]} : vector<2x64xf32> to vector<1x64xf32>
    %614 = tpu.transpose %613, [1, 0] : vector<1x64xf32> -> vector<64x1xf32>
    %615 = vector.shape_cast %614 : vector<64x1xf32> to vector<8x8x1xf32>
    %616 = tpu.transpose %615, [0, 2, 1] : vector<8x8x1xf32> -> vector<8x1x8xf32>
    %617 = vector.extract_strided_slice %612 {offsets = [0, 0], sizes = [8, 128], strides = [1, 1]} : vector<16x128xf32> to vector<8x128xf32>
    %618 = tpu.transpose %617, [1, 0] : vector<8x128xf32> -> vector<128x8xf32>
    %619 = vector.shape_cast %618 : vector<128x8xf32> to vector<16x8x8xf32>
    %620 = tpu.transpose %619, [0, 2, 1] : vector<16x8x8xf32> -> vector<16x8x8xf32>
    %621 = vector.extract_strided_slice %620 {offsets = [0, 0, 0], sizes = [8, 8, 8], strides = [1, 1, 1]} : vector<16x8x8xf32> to vector<8x8x8xf32>
    %622 = vector.extract_strided_slice %620 {offsets = [8, 0, 0], sizes = [8, 8, 8], strides = [1, 1, 1]} : vector<16x8x8xf32> to vector<8x8x8xf32>
    %c1_215 = arith.constant 1 : index
    %c0_216 = arith.constant 0 : index
    %c0_217 = arith.constant 0 : index
    %623 = vector.load %arg15[%c1_215, %c0_216, %c0_217] : memref<3x64x64xf32, #tpu.memory_space<vmem>>, vector<1x64x64xf32>
    %624 = vector.shape_cast %623 : vector<1x64x64xf32> to vector<64x64xf32>
    "tpu.trace_start"() <{level = 10 : i32, message = "hqd,hkd->hqk"}> : () -> ()
    %cst_218 = arith.constant dense<0.000000e+00> : vector<8x1x8xf32>
    %625 = tpu.matmul %616, %621, %cst_218 {dimension_numbers = #tpu.dot_dimension_numbers<[2], [2], [1], [1], [0, 0, 0, 1, 1, 1], [0], [0]>} : vector<8x1x8xf32>, vector<8x8x8xf32>, vector<8x1x8xf32> -> vector<8x1x8xf32>
    "tpu.trace_stop"() : () -> ()
    %cst_219 = arith.constant 0.353553385 : f32
    %626 = vector.broadcast %cst_219 : f32 to vector<8x1x8xf32>
    %627 = arith.mulf %625, %626 : vector<8x1x8xf32>
    %cst_220 = arith.constant dense<0xFF800000> : vector<8x1xf32>
    %628 = vector.multi_reduction <maximumf>, %627, %cst_220 [2] : vector<8x1x8xf32> to vector<8x1xf32>
    %629 = vector.shape_cast %628 : vector<8x1xf32> to vector<8x1x1xf32>
    %630 = vector.broadcast %629 : vector<8x1x1xf32> to vector<8x1x8xf32>
    %631 = arith.subf %627, %630 : vector<8x1x8xf32>
    %632 = math.exp %631 : vector<8x1x8xf32>
    %cst_221 = arith.constant dense<0.000000e+00> : vector<8x1xf32>
    %633 = vector.multi_reduction <add>, %632, %cst_221 [2] : vector<8x1x8xf32> to vector<8x1xf32>
    %634 = vector.shape_cast %633 : vector<8x1xf32> to vector<8x1x1xf32>
    %635 = tpu.reciprocal %634 {approx = true} : vector<8x1x1xf32> -> vector<8x1x1xf32>
    %636 = vector.broadcast %635 : vector<8x1x1xf32> to vector<8x1x8xf32>
    %637 = arith.mulf %632, %636 : vector<8x1x8xf32>
    "tpu.trace_start"() <{level = 10 : i32, message = "hqk,hkd->hqd"}> : () -> ()
    %cst_222 = arith.constant dense<0.000000e+00> : vector<8x1x8xf32>
    %638 = tpu.matmul %637, %622, %cst_222 {dimension_numbers = #tpu.dot_dimension_numbers<[2], [1], [1], [2], [0, 0, 0, 1, 1, 2], [0], [0]>} : vector<8x1x8xf32>, vector<8x8x8xf32>, vector<8x1x8xf32> -> vector<8x1x8xf32>
    "tpu.trace_stop"() : () -> ()
    %639 = tpu.transpose %638, [0, 2, 1] : vector<8x1x8xf32> -> vector<8x8x1xf32>
    %640 = vector.shape_cast %639 : vector<8x8x1xf32> to vector<64x1xf32>
    %641 = tpu.transpose %640, [1, 0] : vector<64x1xf32> -> vector<1x64xf32>
    %cst_223 = arith.constant dense<0.000000e+00> : vector<1x64xf32>
    %642 = tpu.matmul %641, %624, %cst_223 {dimension_numbers = #tpu.dot_dimension_numbers<[1], [0], [0], [1], [0, 0, 1, 1], [], []>} : vector<1x64xf32>, vector<64x64xf32>, vector<1x64xf32> -> vector<1x64xf32>
    %643 = arith.addf %642, %568 : vector<1x64xf32>
    %644 = vector.extract_strided_slice %607 {offsets = [1, 0], sizes = [1, 64], strides = [1, 1]} : vector<2x64xf32> to vector<1x64xf32>
    %645 = tpu.transpose %644, [1, 0] : vector<1x64xf32> -> vector<64x1xf32>
    %646 = vector.shape_cast %645 : vector<64x1xf32> to vector<8x8x1xf32>
    %647 = tpu.transpose %646, [0, 2, 1] : vector<8x8x1xf32> -> vector<8x1x8xf32>
    %648 = vector.extract_strided_slice %612 {offsets = [8, 0], sizes = [8, 128], strides = [1, 1]} : vector<16x128xf32> to vector<8x128xf32>
    %649 = tpu.transpose %648, [1, 0] : vector<8x128xf32> -> vector<128x8xf32>
    %650 = vector.shape_cast %649 : vector<128x8xf32> to vector<16x8x8xf32>
    %651 = tpu.transpose %650, [0, 2, 1] : vector<16x8x8xf32> -> vector<16x8x8xf32>
    %652 = vector.extract_strided_slice %651 {offsets = [0, 0, 0], sizes = [8, 8, 8], strides = [1, 1, 1]} : vector<16x8x8xf32> to vector<8x8x8xf32>
    %653 = vector.extract_strided_slice %651 {offsets = [8, 0, 0], sizes = [8, 8, 8], strides = [1, 1, 1]} : vector<16x8x8xf32> to vector<8x8x8xf32>
    %c1_224 = arith.constant 1 : index
    %c0_225 = arith.constant 0 : index
    %c0_226 = arith.constant 0 : index
    %654 = vector.load %arg15[%c1_224, %c0_225, %c0_226] : memref<3x64x64xf32, #tpu.memory_space<vmem>>, vector<1x64x64xf32>
    %655 = vector.shape_cast %654 : vector<1x64x64xf32> to vector<64x64xf32>
    "tpu.trace_start"() <{level = 10 : i32, message = "hqd,hkd->hqk"}> : () -> ()
    %cst_227 = arith.constant dense<0.000000e+00> : vector<8x1x8xf32>
    %656 = tpu.matmul %647, %652, %cst_227 {dimension_numbers = #tpu.dot_dimension_numbers<[2], [2], [1], [1], [0, 0, 0, 1, 1, 1], [0], [0]>} : vector<8x1x8xf32>, vector<8x8x8xf32>, vector<8x1x8xf32> -> vector<8x1x8xf32>
    "tpu.trace_stop"() : () -> ()
    %cst_228 = arith.constant 0.353553385 : f32
    %657 = vector.broadcast %cst_228 : f32 to vector<8x1x8xf32>
    %658 = arith.mulf %656, %657 : vector<8x1x8xf32>
    %cst_229 = arith.constant dense<0xFF800000> : vector<8x1xf32>
    %659 = vector.multi_reduction <maximumf>, %658, %cst_229 [2] : vector<8x1x8xf32> to vector<8x1xf32>
    %660 = vector.shape_cast %659 : vector<8x1xf32> to vector<8x1x1xf32>
    %661 = vector.broadcast %660 : vector<8x1x1xf32> to vector<8x1x8xf32>
    %662 = arith.subf %658, %661 : vector<8x1x8xf32>
    %663 = math.exp %662 : vector<8x1x8xf32>
    %cst_230 = arith.constant dense<0.000000e+00> : vector<8x1xf32>
    %664 = vector.multi_reduction <add>, %663, %cst_230 [2] : vector<8x1x8xf32> to vector<8x1xf32>
    %665 = vector.shape_cast %664 : vector<8x1xf32> to vector<8x1x1xf32>
    %666 = tpu.reciprocal %665 {approx = true} : vector<8x1x1xf32> -> vector<8x1x1xf32>
    %667 = vector.broadcast %666 : vector<8x1x1xf32> to vector<8x1x8xf32>
    %668 = arith.mulf %663, %667 : vector<8x1x8xf32>
    "tpu.trace_start"() <{level = 10 : i32, message = "hqk,hkd->hqd"}> : () -> ()
    %cst_231 = arith.constant dense<0.000000e+00> : vector<8x1x8xf32>
    %669 = tpu.matmul %668, %653, %cst_231 {dimension_numbers = #tpu.dot_dimension_numbers<[2], [1], [1], [2], [0, 0, 0, 1, 1, 2], [0], [0]>} : vector<8x1x8xf32>, vector<8x8x8xf32>, vector<8x1x8xf32> -> vector<8x1x8xf32>
    "tpu.trace_stop"() : () -> ()
    %670 = tpu.transpose %669, [0, 2, 1] : vector<8x1x8xf32> -> vector<8x8x1xf32>
    %671 = vector.shape_cast %670 : vector<8x8x1xf32> to vector<64x1xf32>
    %672 = tpu.transpose %671, [1, 0] : vector<64x1xf32> -> vector<1x64xf32>
    %cst_232 = arith.constant dense<0.000000e+00> : vector<1x64xf32>
    %673 = tpu.matmul %672, %655, %cst_232 {dimension_numbers = #tpu.dot_dimension_numbers<[1], [0], [0], [1], [0, 0, 1, 1], [], []>} : vector<1x64xf32>, vector<64x64xf32>, vector<1x64xf32> -> vector<1x64xf32>
    %674 = arith.addf %673, %568 : vector<1x64xf32>
    %675 = tpu.concatenate %643, %674 in 0 : vector<1x64xf32>, vector<1x64xf32> -> vector<2x64xf32>
    %676 = arith.addf %602, %675 : vector<2x64xf32>
    %cst_233 = arith.constant dense<0.000000e+00> : vector<2xf32>
    %677 = vector.multi_reduction <add>, %676, %cst_233 [1] : vector<2x64xf32> to vector<2xf32>
    %678 = vector.shape_cast %677 : vector<2xf32> to vector<2x1xf32>
    %cst_234 = arith.constant 6.400000e+01 : f32
    %679 = vector.broadcast %cst_234 : f32 to vector<2x1xf32>
    %680 = arith.divf %678, %679 : vector<2x1xf32>
    %681 = vector.broadcast %680 : vector<2x1xf32> to vector<2x64xf32>
    %682 = arith.subf %676, %681 : vector<2x64xf32>
    %683 = arith.mulf %682, %682 : vector<2x64xf32>
    %cst_235 = arith.constant dense<0.000000e+00> : vector<2xf32>
    %684 = vector.multi_reduction <add>, %683, %cst_235 [1] : vector<2x64xf32> to vector<2xf32>
    %685 = vector.shape_cast %684 : vector<2xf32> to vector<2x1xf32>
    %cst_236 = arith.constant 6.400000e+01 : f32
    %686 = vector.broadcast %cst_236 : f32 to vector<2x1xf32>
    %687 = arith.divf %685, %686 : vector<2x1xf32>
    %cst_237 = arith.constant 9.99999974E-6 : f32
    %688 = vector.broadcast %cst_237 : f32 to vector<2x1xf32>
    %689 = arith.addf %687, %688 : vector<2x1xf32>
    %690 = math.rsqrt %689 : vector<2x1xf32>
    %691 = vector.broadcast %690 : vector<2x1xf32> to vector<2x64xf32>
    %692 = arith.mulf %682, %691 : vector<2x64xf32>
    %693 = vector.broadcast %573 : vector<1x64xf32> to vector<2x64xf32>
    %694 = arith.mulf %692, %693 : vector<2x64xf32>
    %695 = vector.broadcast %574 : vector<1x64xf32> to vector<2x64xf32>
    %696 = arith.addf %694, %695 : vector<2x64xf32>
    %c1_238 = arith.constant 1 : index
    %c0_239 = arith.constant 0 : index
    %c0_240 = arith.constant 0 : index
    %697 = vector.load %arg16[%c1_238, %c0_239, %c0_240] : memref<3x64x128xf32, #tpu.memory_space<vmem>>, vector<1x64x128xf32>
    %698 = vector.shape_cast %697 : vector<1x64x128xf32> to vector<64x128xf32>
    %cst_241 = arith.constant dense<0.000000e+00> : vector<2x128xf32>
    %699 = tpu.matmul %696, %698, %cst_241 {dimension_numbers = #tpu.dot_dimension_numbers<[1], [0], [0], [1], [0, 0, 1, 1], [], []>} : vector<2x64xf32>, vector<64x128xf32>, vector<2x128xf32> -> vector<2x128xf32>
    %700 = vector.broadcast %569 : vector<1x128xf32> to vector<2x128xf32>
    %701 = arith.addf %699, %700 : vector<2x128xf32>
    %cst_242 = arith.constant 0.000000e+00 : f32
    %702 = vector.broadcast %cst_242 : f32 to vector<2x128xf32>
    %703 = arith.maximumf %701, %702 : vector<2x128xf32>
    %c1_243 = arith.constant 1 : index
    %c0_244 = arith.constant 0 : index
    %c0_245 = arith.constant 0 : index
    %704 = vector.load %arg17[%c1_243, %c0_244, %c0_245] : memref<3x128x64xf32, #tpu.memory_space<vmem>>, vector<1x128x64xf32>
    %705 = vector.shape_cast %704 : vector<1x128x64xf32> to vector<128x64xf32>
    %cst_246 = arith.constant dense<0.000000e+00> : vector<2x64xf32>
    %706 = tpu.matmul %703, %705, %cst_246 {dimension_numbers = #tpu.dot_dimension_numbers<[1], [0], [0], [1], [0, 0, 1, 1], [], []>} : vector<2x128xf32>, vector<128x64xf32>, vector<2x64xf32> -> vector<2x64xf32>
    %707 = vector.broadcast %570 : vector<1x64xf32> to vector<2x64xf32>
    %708 = arith.addf %706, %707 : vector<2x64xf32>
    %709 = arith.addf %696, %708 : vector<2x64xf32>
    %cst_247 = arith.constant dense<0.000000e+00> : vector<2xf32>
    %710 = vector.multi_reduction <add>, %709, %cst_247 [1] : vector<2x64xf32> to vector<2xf32>
    %711 = vector.shape_cast %710 : vector<2xf32> to vector<2x1xf32>
    %cst_248 = arith.constant 6.400000e+01 : f32
    %712 = vector.broadcast %cst_248 : f32 to vector<2x1xf32>
    %713 = arith.divf %711, %712 : vector<2x1xf32>
    %714 = vector.broadcast %713 : vector<2x1xf32> to vector<2x64xf32>
    %715 = arith.subf %709, %714 : vector<2x64xf32>
    %716 = arith.mulf %715, %715 : vector<2x64xf32>
    %cst_249 = arith.constant dense<0.000000e+00> : vector<2xf32>
    %717 = vector.multi_reduction <add>, %716, %cst_249 [1] : vector<2x64xf32> to vector<2xf32>
    %718 = vector.shape_cast %717 : vector<2xf32> to vector<2x1xf32>
    %cst_250 = arith.constant 6.400000e+01 : f32
    %719 = vector.broadcast %cst_250 : f32 to vector<2x1xf32>
    %720 = arith.divf %718, %719 : vector<2x1xf32>
    %cst_251 = arith.constant 9.99999974E-6 : f32
    %721 = vector.broadcast %cst_251 : f32 to vector<2x1xf32>
    %722 = arith.addf %720, %721 : vector<2x1xf32>
    %723 = math.rsqrt %722 : vector<2x1xf32>
    %724 = vector.broadcast %723 : vector<2x1xf32> to vector<2x64xf32>
    %725 = arith.mulf %715, %724 : vector<2x64xf32>
    %726 = vector.broadcast %575 : vector<1x64xf32> to vector<2x64xf32>
    %727 = arith.mulf %725, %726 : vector<2x64xf32>
    %728 = vector.broadcast %576 : vector<1x64xf32> to vector<2x64xf32>
    %729 = arith.addf %727, %728 : vector<2x64xf32>
    %c2_252 = arith.constant 2 : index
    %c0_253 = arith.constant 0 : index
    %c0_254 = arith.constant 0 : index
    %730 = vector.load %arg18[%c2_252, %c0_253, %c0_254] : memref<3x12x128xf32, #tpu.memory_space<vmem>>, vector<1x12x128xf32>
    %731 = vector.shape_cast %730 : vector<1x12x128xf32> to vector<12x128xf32>
    %732 = vector.extract_strided_slice %731 {offsets = [0, 0], sizes = [1, 64], strides = [1, 1]} : vector<12x128xf32> to vector<1x64xf32>
    %733 = vector.extract_strided_slice %731 {offsets = [1, 0], sizes = [1, 64], strides = [1, 1]} : vector<12x128xf32> to vector<1x64xf32>
    %734 = vector.extract_strided_slice %731 {offsets = [2, 0], sizes = [1, 128], strides = [1, 1]} : vector<12x128xf32> to vector<1x128xf32>
    %735 = vector.extract_strided_slice %731 {offsets = [3, 0], sizes = [1, 64], strides = [1, 1]} : vector<12x128xf32> to vector<1x64xf32>
    %736 = vector.extract_strided_slice %731 {offsets = [4, 0], sizes = [1, 128], strides = [1, 1]} : vector<12x128xf32> to vector<1x128xf32>
    %737 = vector.extract_strided_slice %731 {offsets = [5, 0], sizes = [1, 64], strides = [1, 1]} : vector<12x128xf32> to vector<1x64xf32>
    %738 = vector.extract_strided_slice %731 {offsets = [6, 0], sizes = [1, 64], strides = [1, 1]} : vector<12x128xf32> to vector<1x64xf32>
    %739 = vector.extract_strided_slice %731 {offsets = [7, 0], sizes = [1, 64], strides = [1, 1]} : vector<12x128xf32> to vector<1x64xf32>
    %740 = vector.extract_strided_slice %731 {offsets = [8, 0], sizes = [1, 64], strides = [1, 1]} : vector<12x128xf32> to vector<1x64xf32>
    %741 = vector.extract_strided_slice %731 {offsets = [9, 0], sizes = [1, 64], strides = [1, 1]} : vector<12x128xf32> to vector<1x64xf32>
    %742 = vector.extract_strided_slice %731 {offsets = [10, 0], sizes = [1, 64], strides = [1, 1]} : vector<12x128xf32> to vector<1x64xf32>
    %743 = vector.extract_strided_slice %731 {offsets = [11, 0], sizes = [1, 64], strides = [1, 1]} : vector<12x128xf32> to vector<1x64xf32>
    %c2_255 = arith.constant 2 : index
    %c0_256 = arith.constant 0 : index
    %c0_257 = arith.constant 0 : index
    %744 = vector.load %arg12[%c2_255, %c0_256, %c0_257] : memref<3x64x64xf32, #tpu.memory_space<vmem>>, vector<1x64x64xf32>
    %745 = vector.shape_cast %744 : vector<1x64x64xf32> to vector<64x64xf32>
    %cst_258 = arith.constant dense<0.000000e+00> : vector<2x64xf32>
    %746 = tpu.matmul %729, %745, %cst_258 {dimension_numbers = #tpu.dot_dimension_numbers<[1], [0], [0], [1], [0, 0, 1, 1], [], []>} : vector<2x64xf32>, vector<64x64xf32>, vector<2x64xf32> -> vector<2x64xf32>
    %747 = arith.addf %729, %746 : vector<2x64xf32>
    %748 = vector.broadcast %732 : vector<1x64xf32> to vector<2x64xf32>
    %749 = arith.addf %747, %748 : vector<2x64xf32>
    %cst_259 = arith.constant dense<0.000000e+00> : vector<2xf32>
    %750 = vector.multi_reduction <add>, %749, %cst_259 [1] : vector<2x64xf32> to vector<2xf32>
    %751 = vector.shape_cast %750 : vector<2xf32> to vector<2x1xf32>
    %cst_260 = arith.constant 6.400000e+01 : f32
    %752 = vector.broadcast %cst_260 : f32 to vector<2x1xf32>
    %753 = arith.divf %751, %752 : vector<2x1xf32>
    %754 = vector.broadcast %753 : vector<2x1xf32> to vector<2x64xf32>
    %755 = arith.subf %749, %754 : vector<2x64xf32>
    %756 = arith.mulf %755, %755 : vector<2x64xf32>
    %cst_261 = arith.constant dense<0.000000e+00> : vector<2xf32>
    %757 = vector.multi_reduction <add>, %756, %cst_261 [1] : vector<2x64xf32> to vector<2xf32>
    %758 = vector.shape_cast %757 : vector<2xf32> to vector<2x1xf32>
    %cst_262 = arith.constant 6.400000e+01 : f32
    %759 = vector.broadcast %cst_262 : f32 to vector<2x1xf32>
    %760 = arith.divf %758, %759 : vector<2x1xf32>
    %cst_263 = arith.constant 9.99999974E-6 : f32
    %761 = vector.broadcast %cst_263 : f32 to vector<2x1xf32>
    %762 = arith.addf %760, %761 : vector<2x1xf32>
    %763 = math.rsqrt %762 : vector<2x1xf32>
    %764 = vector.broadcast %763 : vector<2x1xf32> to vector<2x64xf32>
    %765 = arith.mulf %755, %764 : vector<2x64xf32>
    %766 = vector.broadcast %738 : vector<1x64xf32> to vector<2x64xf32>
    %767 = arith.mulf %765, %766 : vector<2x64xf32>
    %768 = vector.broadcast %739 : vector<1x64xf32> to vector<2x64xf32>
    %769 = arith.addf %767, %768 : vector<2x64xf32>
    %c2_264 = arith.constant 2 : index
    %c0_265 = arith.constant 0 : index
    %c0_266 = arith.constant 0 : index
    %770 = vector.load %arg13[%c2_264, %c0_265, %c0_266] : memref<3x64x64xf32, #tpu.memory_space<vmem>>, vector<1x64x64xf32>
    %771 = vector.shape_cast %770 : vector<1x64x64xf32> to vector<64x64xf32>
    %cst_267 = arith.constant dense<0.000000e+00> : vector<2x64xf32>
    %772 = tpu.matmul %769, %771, %cst_267 {dimension_numbers = #tpu.dot_dimension_numbers<[1], [0], [0], [1], [0, 0, 1, 1], [], []>} : vector<2x64xf32>, vector<64x64xf32>, vector<2x64xf32> -> vector<2x64xf32>
    %773 = vector.broadcast %733 : vector<1x64xf32> to vector<2x64xf32>
    %774 = arith.addf %772, %773 : vector<2x64xf32>
    %c2_268 = arith.constant 2 : index
    %c0_269 = arith.constant 0 : index
    %c0_270 = arith.constant 0 : index
    %775 = vector.load %arg14[%c2_268, %c0_269, %c0_270] : memref<3x64x128xf32, #tpu.memory_space<vmem>>, vector<1x64x128xf32>
    %776 = vector.shape_cast %775 : vector<1x64x128xf32> to vector<64x128xf32>
    %cst_271 = arith.constant dense<0.000000e+00> : vector<16x128xf32>
    %777 = tpu.matmul %393, %776, %cst_271 {dimension_numbers = #tpu.dot_dimension_numbers<[1], [0], [0], [1], [0, 0, 1, 1], [], []>} : vector<16x64xf32>, vector<64x128xf32>, vector<16x128xf32> -> vector<16x128xf32>
    %778 = vector.broadcast %734 : vector<1x128xf32> to vector<16x128xf32>
    %779 = arith.addf %777, %778 : vector<16x128xf32>
    %780 = vector.extract_strided_slice %774 {offsets = [0, 0], sizes = [1, 64], strides = [1, 1]} : vector<2x64xf32> to vector<1x64xf32>
    %781 = tpu.transpose %780, [1, 0] : vector<1x64xf32> -> vector<64x1xf32>
    %782 = vector.shape_cast %781 : vector<64x1xf32> to vector<8x8x1xf32>
    %783 = tpu.transpose %782, [0, 2, 1] : vector<8x8x1xf32> -> vector<8x1x8xf32>
    %784 = vector.extract_strided_slice %779 {offsets = [0, 0], sizes = [8, 128], strides = [1, 1]} : vector<16x128xf32> to vector<8x128xf32>
    %785 = tpu.transpose %784, [1, 0] : vector<8x128xf32> -> vector<128x8xf32>
    %786 = vector.shape_cast %785 : vector<128x8xf32> to vector<16x8x8xf32>
    %787 = tpu.transpose %786, [0, 2, 1] : vector<16x8x8xf32> -> vector<16x8x8xf32>
    %788 = vector.extract_strided_slice %787 {offsets = [0, 0, 0], sizes = [8, 8, 8], strides = [1, 1, 1]} : vector<16x8x8xf32> to vector<8x8x8xf32>
    %789 = vector.extract_strided_slice %787 {offsets = [8, 0, 0], sizes = [8, 8, 8], strides = [1, 1, 1]} : vector<16x8x8xf32> to vector<8x8x8xf32>
    %c2_272 = arith.constant 2 : index
    %c0_273 = arith.constant 0 : index
    %c0_274 = arith.constant 0 : index
    %790 = vector.load %arg15[%c2_272, %c0_273, %c0_274] : memref<3x64x64xf32, #tpu.memory_space<vmem>>, vector<1x64x64xf32>
    %791 = vector.shape_cast %790 : vector<1x64x64xf32> to vector<64x64xf32>
    "tpu.trace_start"() <{level = 10 : i32, message = "hqd,hkd->hqk"}> : () -> ()
    %cst_275 = arith.constant dense<0.000000e+00> : vector<8x1x8xf32>
    %792 = tpu.matmul %783, %788, %cst_275 {dimension_numbers = #tpu.dot_dimension_numbers<[2], [2], [1], [1], [0, 0, 0, 1, 1, 1], [0], [0]>} : vector<8x1x8xf32>, vector<8x8x8xf32>, vector<8x1x8xf32> -> vector<8x1x8xf32>
    "tpu.trace_stop"() : () -> ()
    %cst_276 = arith.constant 0.353553385 : f32
    %793 = vector.broadcast %cst_276 : f32 to vector<8x1x8xf32>
    %794 = arith.mulf %792, %793 : vector<8x1x8xf32>
    %cst_277 = arith.constant dense<0xFF800000> : vector<8x1xf32>
    %795 = vector.multi_reduction <maximumf>, %794, %cst_277 [2] : vector<8x1x8xf32> to vector<8x1xf32>
    %796 = vector.shape_cast %795 : vector<8x1xf32> to vector<8x1x1xf32>
    %797 = vector.broadcast %796 : vector<8x1x1xf32> to vector<8x1x8xf32>
    %798 = arith.subf %794, %797 : vector<8x1x8xf32>
    %799 = math.exp %798 : vector<8x1x8xf32>
    %cst_278 = arith.constant dense<0.000000e+00> : vector<8x1xf32>
    %800 = vector.multi_reduction <add>, %799, %cst_278 [2] : vector<8x1x8xf32> to vector<8x1xf32>
    %801 = vector.shape_cast %800 : vector<8x1xf32> to vector<8x1x1xf32>
    %802 = tpu.reciprocal %801 {approx = true} : vector<8x1x1xf32> -> vector<8x1x1xf32>
    %803 = vector.broadcast %802 : vector<8x1x1xf32> to vector<8x1x8xf32>
    %804 = arith.mulf %799, %803 : vector<8x1x8xf32>
    "tpu.trace_start"() <{level = 10 : i32, message = "hqk,hkd->hqd"}> : () -> ()
    %cst_279 = arith.constant dense<0.000000e+00> : vector<8x1x8xf32>
    %805 = tpu.matmul %804, %789, %cst_279 {dimension_numbers = #tpu.dot_dimension_numbers<[2], [1], [1], [2], [0, 0, 0, 1, 1, 2], [0], [0]>} : vector<8x1x8xf32>, vector<8x8x8xf32>, vector<8x1x8xf32> -> vector<8x1x8xf32>
    "tpu.trace_stop"() : () -> ()
    %806 = tpu.transpose %805, [0, 2, 1] : vector<8x1x8xf32> -> vector<8x8x1xf32>
    %807 = vector.shape_cast %806 : vector<8x8x1xf32> to vector<64x1xf32>
    %808 = tpu.transpose %807, [1, 0] : vector<64x1xf32> -> vector<1x64xf32>
    %cst_280 = arith.constant dense<0.000000e+00> : vector<1x64xf32>
    %809 = tpu.matmul %808, %791, %cst_280 {dimension_numbers = #tpu.dot_dimension_numbers<[1], [0], [0], [1], [0, 0, 1, 1], [], []>} : vector<1x64xf32>, vector<64x64xf32>, vector<1x64xf32> -> vector<1x64xf32>
    %810 = arith.addf %809, %735 : vector<1x64xf32>
    %811 = vector.extract_strided_slice %774 {offsets = [1, 0], sizes = [1, 64], strides = [1, 1]} : vector<2x64xf32> to vector<1x64xf32>
    %812 = tpu.transpose %811, [1, 0] : vector<1x64xf32> -> vector<64x1xf32>
    %813 = vector.shape_cast %812 : vector<64x1xf32> to vector<8x8x1xf32>
    %814 = tpu.transpose %813, [0, 2, 1] : vector<8x8x1xf32> -> vector<8x1x8xf32>
    %815 = vector.extract_strided_slice %779 {offsets = [8, 0], sizes = [8, 128], strides = [1, 1]} : vector<16x128xf32> to vector<8x128xf32>
    %816 = tpu.transpose %815, [1, 0] : vector<8x128xf32> -> vector<128x8xf32>
    %817 = vector.shape_cast %816 : vector<128x8xf32> to vector<16x8x8xf32>
    %818 = tpu.transpose %817, [0, 2, 1] : vector<16x8x8xf32> -> vector<16x8x8xf32>
    %819 = vector.extract_strided_slice %818 {offsets = [0, 0, 0], sizes = [8, 8, 8], strides = [1, 1, 1]} : vector<16x8x8xf32> to vector<8x8x8xf32>
    %820 = vector.extract_strided_slice %818 {offsets = [8, 0, 0], sizes = [8, 8, 8], strides = [1, 1, 1]} : vector<16x8x8xf32> to vector<8x8x8xf32>
    %c2_281 = arith.constant 2 : index
    %c0_282 = arith.constant 0 : index
    %c0_283 = arith.constant 0 : index
    %821 = vector.load %arg15[%c2_281, %c0_282, %c0_283] : memref<3x64x64xf32, #tpu.memory_space<vmem>>, vector<1x64x64xf32>
    %822 = vector.shape_cast %821 : vector<1x64x64xf32> to vector<64x64xf32>
    "tpu.trace_start"() <{level = 10 : i32, message = "hqd,hkd->hqk"}> : () -> ()
    %cst_284 = arith.constant dense<0.000000e+00> : vector<8x1x8xf32>
    %823 = tpu.matmul %814, %819, %cst_284 {dimension_numbers = #tpu.dot_dimension_numbers<[2], [2], [1], [1], [0, 0, 0, 1, 1, 1], [0], [0]>} : vector<8x1x8xf32>, vector<8x8x8xf32>, vector<8x1x8xf32> -> vector<8x1x8xf32>
    "tpu.trace_stop"() : () -> ()
    %cst_285 = arith.constant 0.353553385 : f32
    %824 = vector.broadcast %cst_285 : f32 to vector<8x1x8xf32>
    %825 = arith.mulf %823, %824 : vector<8x1x8xf32>
    %cst_286 = arith.constant dense<0xFF800000> : vector<8x1xf32>
    %826 = vector.multi_reduction <maximumf>, %825, %cst_286 [2] : vector<8x1x8xf32> to vector<8x1xf32>
    %827 = vector.shape_cast %826 : vector<8x1xf32> to vector<8x1x1xf32>
    %828 = vector.broadcast %827 : vector<8x1x1xf32> to vector<8x1x8xf32>
    %829 = arith.subf %825, %828 : vector<8x1x8xf32>
    %830 = math.exp %829 : vector<8x1x8xf32>
    %cst_287 = arith.constant dense<0.000000e+00> : vector<8x1xf32>
    %831 = vector.multi_reduction <add>, %830, %cst_287 [2] : vector<8x1x8xf32> to vector<8x1xf32>
    %832 = vector.shape_cast %831 : vector<8x1xf32> to vector<8x1x1xf32>
    %833 = tpu.reciprocal %832 {approx = true} : vector<8x1x1xf32> -> vector<8x1x1xf32>
    %834 = vector.broadcast %833 : vector<8x1x1xf32> to vector<8x1x8xf32>
    %835 = arith.mulf %830, %834 : vector<8x1x8xf32>
    "tpu.trace_start"() <{level = 10 : i32, message = "hqk,hkd->hqd"}> : () -> ()
    %cst_288 = arith.constant dense<0.000000e+00> : vector<8x1x8xf32>
    %836 = tpu.matmul %835, %820, %cst_288 {dimension_numbers = #tpu.dot_dimension_numbers<[2], [1], [1], [2], [0, 0, 0, 1, 1, 2], [0], [0]>} : vector<8x1x8xf32>, vector<8x8x8xf32>, vector<8x1x8xf32> -> vector<8x1x8xf32>
    "tpu.trace_stop"() : () -> ()
    %837 = tpu.transpose %836, [0, 2, 1] : vector<8x1x8xf32> -> vector<8x8x1xf32>
    %838 = vector.shape_cast %837 : vector<8x8x1xf32> to vector<64x1xf32>
    %839 = tpu.transpose %838, [1, 0] : vector<64x1xf32> -> vector<1x64xf32>
    %cst_289 = arith.constant dense<0.000000e+00> : vector<1x64xf32>
    %840 = tpu.matmul %839, %822, %cst_289 {dimension_numbers = #tpu.dot_dimension_numbers<[1], [0], [0], [1], [0, 0, 1, 1], [], []>} : vector<1x64xf32>, vector<64x64xf32>, vector<1x64xf32> -> vector<1x64xf32>
    %841 = arith.addf %840, %735 : vector<1x64xf32>
    %842 = tpu.concatenate %810, %841 in 0 : vector<1x64xf32>, vector<1x64xf32> -> vector<2x64xf32>
    %843 = arith.addf %769, %842 : vector<2x64xf32>
    %cst_290 = arith.constant dense<0.000000e+00> : vector<2xf32>
    %844 = vector.multi_reduction <add>, %843, %cst_290 [1] : vector<2x64xf32> to vector<2xf32>
    %845 = vector.shape_cast %844 : vector<2xf32> to vector<2x1xf32>
    %cst_291 = arith.constant 6.400000e+01 : f32
    %846 = vector.broadcast %cst_291 : f32 to vector<2x1xf32>
    %847 = arith.divf %845, %846 : vector<2x1xf32>
    %848 = vector.broadcast %847 : vector<2x1xf32> to vector<2x64xf32>
    %849 = arith.subf %843, %848 : vector<2x64xf32>
    %850 = arith.mulf %849, %849 : vector<2x64xf32>
    %cst_292 = arith.constant dense<0.000000e+00> : vector<2xf32>
    %851 = vector.multi_reduction <add>, %850, %cst_292 [1] : vector<2x64xf32> to vector<2xf32>
    %852 = vector.shape_cast %851 : vector<2xf32> to vector<2x1xf32>
    %cst_293 = arith.constant 6.400000e+01 : f32
    %853 = vector.broadcast %cst_293 : f32 to vector<2x1xf32>
    %854 = arith.divf %852, %853 : vector<2x1xf32>
    %cst_294 = arith.constant 9.99999974E-6 : f32
    %855 = vector.broadcast %cst_294 : f32 to vector<2x1xf32>
    %856 = arith.addf %854, %855 : vector<2x1xf32>
    %857 = math.rsqrt %856 : vector<2x1xf32>
    %858 = vector.broadcast %857 : vector<2x1xf32> to vector<2x64xf32>
    %859 = arith.mulf %849, %858 : vector<2x64xf32>
    %860 = vector.broadcast %740 : vector<1x64xf32> to vector<2x64xf32>
    %861 = arith.mulf %859, %860 : vector<2x64xf32>
    %862 = vector.broadcast %741 : vector<1x64xf32> to vector<2x64xf32>
    %863 = arith.addf %861, %862 : vector<2x64xf32>
    %c2_295 = arith.constant 2 : index
    %c0_296 = arith.constant 0 : index
    %c0_297 = arith.constant 0 : index
    %864 = vector.load %arg16[%c2_295, %c0_296, %c0_297] : memref<3x64x128xf32, #tpu.memory_space<vmem>>, vector<1x64x128xf32>
    %865 = vector.shape_cast %864 : vector<1x64x128xf32> to vector<64x128xf32>
    %cst_298 = arith.constant dense<0.000000e+00> : vector<2x128xf32>
    %866 = tpu.matmul %863, %865, %cst_298 {dimension_numbers = #tpu.dot_dimension_numbers<[1], [0], [0], [1], [0, 0, 1, 1], [], []>} : vector<2x64xf32>, vector<64x128xf32>, vector<2x128xf32> -> vector<2x128xf32>
    %867 = vector.broadcast %736 : vector<1x128xf32> to vector<2x128xf32>
    %868 = arith.addf %866, %867 : vector<2x128xf32>
    %cst_299 = arith.constant 0.000000e+00 : f32
    %869 = vector.broadcast %cst_299 : f32 to vector<2x128xf32>
    %870 = arith.maximumf %868, %869 : vector<2x128xf32>
    %c2_300 = arith.constant 2 : index
    %c0_301 = arith.constant 0 : index
    %c0_302 = arith.constant 0 : index
    %871 = vector.load %arg17[%c2_300, %c0_301, %c0_302] : memref<3x128x64xf32, #tpu.memory_space<vmem>>, vector<1x128x64xf32>
    %872 = vector.shape_cast %871 : vector<1x128x64xf32> to vector<128x64xf32>
    %cst_303 = arith.constant dense<0.000000e+00> : vector<2x64xf32>
    %873 = tpu.matmul %870, %872, %cst_303 {dimension_numbers = #tpu.dot_dimension_numbers<[1], [0], [0], [1], [0, 0, 1, 1], [], []>} : vector<2x128xf32>, vector<128x64xf32>, vector<2x64xf32> -> vector<2x64xf32>
    %874 = vector.broadcast %737 : vector<1x64xf32> to vector<2x64xf32>
    %875 = arith.addf %873, %874 : vector<2x64xf32>
    %876 = arith.addf %863, %875 : vector<2x64xf32>
    %cst_304 = arith.constant dense<0.000000e+00> : vector<2xf32>
    %877 = vector.multi_reduction <add>, %876, %cst_304 [1] : vector<2x64xf32> to vector<2xf32>
    %878 = vector.shape_cast %877 : vector<2xf32> to vector<2x1xf32>
    %cst_305 = arith.constant 6.400000e+01 : f32
    %879 = vector.broadcast %cst_305 : f32 to vector<2x1xf32>
    %880 = arith.divf %878, %879 : vector<2x1xf32>
    %881 = vector.broadcast %880 : vector<2x1xf32> to vector<2x64xf32>
    %882 = arith.subf %876, %881 : vector<2x64xf32>
    %883 = arith.mulf %882, %882 : vector<2x64xf32>
    %cst_306 = arith.constant dense<0.000000e+00> : vector<2xf32>
    %884 = vector.multi_reduction <add>, %883, %cst_306 [1] : vector<2x64xf32> to vector<2xf32>
    %885 = vector.shape_cast %884 : vector<2xf32> to vector<2x1xf32>
    %cst_307 = arith.constant 6.400000e+01 : f32
    %886 = vector.broadcast %cst_307 : f32 to vector<2x1xf32>
    %887 = arith.divf %885, %886 : vector<2x1xf32>
    %cst_308 = arith.constant 9.99999974E-6 : f32
    %888 = vector.broadcast %cst_308 : f32 to vector<2x1xf32>
    %889 = arith.addf %887, %888 : vector<2x1xf32>
    %890 = math.rsqrt %889 : vector<2x1xf32>
    %891 = vector.broadcast %890 : vector<2x1xf32> to vector<2x64xf32>
    %892 = arith.mulf %882, %891 : vector<2x64xf32>
    %893 = vector.broadcast %742 : vector<1x64xf32> to vector<2x64xf32>
    %894 = arith.mulf %892, %893 : vector<2x64xf32>
    %895 = vector.broadcast %743 : vector<1x64xf32> to vector<2x64xf32>
    %896 = arith.addf %894, %895 : vector<2x64xf32>
    %c0_309 = arith.constant 0 : index
    %c0_310 = arith.constant 0 : index
    %897 = vector.load %arg5[%c0_309, %c0_310] : memref<64x128xf32, #tpu.memory_space<vmem>>, vector<64x128xf32>
    %cst_311 = arith.constant dense<0.000000e+00> : vector<2x128xf32>
    %898 = tpu.matmul %896, %897, %cst_311 {dimension_numbers = #tpu.dot_dimension_numbers<[1], [0], [0], [1], [0, 0, 1, 1], [], []>} : vector<2x64xf32>, vector<64x128xf32>, vector<2x128xf32> -> vector<2x128xf32>
    %c0_312 = arith.constant 0 : index
    %c0_313 = arith.constant 0 : index
    %899 = vector.load %arg6[%c0_312, %c0_313] : memref<1x128xf32, #tpu.memory_space<vmem>>, vector<1x128xf32>
    %900 = vector.broadcast %899 : vector<1x128xf32> to vector<2x128xf32>
    %901 = arith.addf %898, %900 : vector<2x128xf32>
    %c0_314 = arith.constant 0 : index
    %c0_315 = arith.constant 0 : index
    %c0_316 = arith.constant 0 : index
    %902 = vector.load %arg19[%c0_314, %c0_315, %c0_316] : memref<1x2x128xf32, #tpu.memory_space<vmem>>, vector<1x2x128xf32>
    %903 = vector.shape_cast %902 : vector<1x2x128xf32> to vector<2x128xf32>
    %904 = vector.shape_cast %901 : vector<2x128xf32> to vector<1x2x128xf32>
    tpu.vector_store %arg19[%c0_314, %c0_315, %c0_316], %904 {strides = array<i32>} : memref<1x2x128xf32, #tpu.memory_space<vmem>>, vector<1x2x128xf32>,
    return
  }
  func.func @transform_0(%arg0: i32) -> (i32, i32, i32) {
    %c0_i32 = arith.constant 0 : i32
    %c0_i32_0 = arith.constant 0 : i32
    %c0_i32_1 = arith.constant 0 : i32
    return %arg0, %c0_i32, %c0_i32_0 : i32, i32, i32
  }
  func.func @transform_1(%arg0: i32) -> (i32, i32) {
    %c0_i32 = arith.constant 0 : i32
    %c0_i32_0 = arith.constant 0 : i32
    %c0_i32_1 = arith.constant 0 : i32
    return %c0_i32, %c0_i32_0 : i32, i32
  }
  func.func @transform_2(%arg0: i32) -> (i32, i32) {
    %c0_i32 = arith.constant 0 : i32
    %c0_i32_0 = arith.constant 0 : i32
    %c0_i32_1 = arith.constant 0 : i32
    return %c0_i32, %c0_i32_0 : i32, i32
  }
  func.func @transform_3(%arg0: i32) -> (i32, i32) {
    %c0_i32 = arith.constant 0 : i32
    %c0_i32_0 = arith.constant 0 : i32
    %c0_i32_1 = arith.constant 0 : i32
    return %c0_i32, %c0_i32_0 : i32, i32
  }
  func.func @transform_4(%arg0: i32) -> (i32, i32) {
    %c0_i32 = arith.constant 0 : i32
    %c0_i32_0 = arith.constant 0 : i32
    %c0_i32_1 = arith.constant 0 : i32
    return %c0_i32, %c0_i32_0 : i32, i32
  }
  func.func @transform_5(%arg0: i32) -> (i32, i32) {
    %c0_i32 = arith.constant 0 : i32
    %c0_i32_0 = arith.constant 0 : i32
    %c0_i32_1 = arith.constant 0 : i32
    return %c0_i32, %c0_i32_0 : i32, i32
  }
  func.func @transform_6(%arg0: i32) -> (i32, i32, i32) {
    %c0_i32 = arith.constant 0 : i32
    %c0_i32_0 = arith.constant 0 : i32
    %c0_i32_1 = arith.constant 0 : i32
    %c0_i32_2 = arith.constant 0 : i32
    return %c0_i32, %c0_i32_0, %c0_i32_1 : i32, i32, i32
  }
  func.func @transform_7(%arg0: i32) -> (i32, i32, i32) {
    %c0_i32 = arith.constant 0 : i32
    %c0_i32_0 = arith.constant 0 : i32
    %c0_i32_1 = arith.constant 0 : i32
    %c0_i32_2 = arith.constant 0 : i32
    return %c0_i32, %c0_i32_0, %c0_i32_1 : i32, i32, i32
  }
  func.func @transform_8(%arg0: i32) -> (i32, i32, i32) {
    %c0_i32 = arith.constant 0 : i32
    %c0_i32_0 = arith.constant 0 : i32
    %c0_i32_1 = arith.constant 0 : i32
    %c0_i32_2 = arith.constant 0 : i32
    return %c0_i32, %c0_i32_0, %c0_i32_1 : i32, i32, i32
  }
  func.func @transform_9(%arg0: i32) -> (i32, i32, i32) {
    %c0_i32 = arith.constant 0 : i32
    %c0_i32_0 = arith.constant 0 : i32
    %c0_i32_1 = arith.constant 0 : i32
    %c0_i32_2 = arith.constant 0 : i32
    return %c0_i32, %c0_i32_0, %c0_i32_1 : i32, i32, i32
  }
  func.func @transform_10(%arg0: i32) -> (i32, i32, i32) {
    %c0_i32 = arith.constant 0 : i32
    %c0_i32_0 = arith.constant 0 : i32
    %c0_i32_1 = arith.constant 0 : i32
    %c0_i32_2 = arith.constant 0 : i32
    return %c0_i32, %c0_i32_0, %c0_i32_1 : i32, i32, i32
  }
  func.func @transform_11(%arg0: i32) -> (i32, i32, i32) {
    %c0_i32 = arith.constant 0 : i32
    %c0_i32_0 = arith.constant 0 : i32
    %c0_i32_1 = arith.constant 0 : i32
    %c0_i32_2 = arith.constant 0 : i32
    return %c0_i32, %c0_i32_0, %c0_i32_1 : i32, i32, i32
  }
  func.func @transform_12(%arg0: i32) -> (i32, i32, i32) {
    %c0_i32 = arith.constant 0 : i32
    %c0_i32_0 = arith.constant 0 : i32
    %c0_i32_1 = arith.constant 0 : i32
    %c0_i32_2 = arith.constant 0 : i32
    return %c0_i32, %c0_i32_0, %c0_i32_1 : i32, i32, i32
  }
  func.func @transform_13(%arg0: i32) -> (i32, i32, i32) {
    %c0_i32 = arith.constant 0 : i32
    %c0_i32_0 = arith.constant 0 : i32
    %c0_i32_1 = arith.constant 0 : i32
    %c0_i32_2 = arith.constant 0 : i32
    return %c0_i32, %c0_i32_0, %c0_i32_1 : i32, i32, i32
  }
  func.func @transform_14(%arg0: i32) -> (i32, i32, i32) {
    %c0_i32 = arith.constant 0 : i32
    %c0_i32_0 = arith.constant 0 : i32
    %c0_i32_1 = arith.constant 0 : i32
    %c0_i32_2 = arith.constant 0 : i32
    return %c0_i32, %c0_i32_0, %c0_i32_1 : i32, i32, i32
  }
  func.func @transform_15(%arg0: i32) -> (i32, i32, i32) {
    %c0_i32 = arith.constant 0 : i32
    %c0_i32_0 = arith.constant 0 : i32
    %c0_i32_1 = arith.constant 0 : i32
    %c0_i32_2 = arith.constant 0 : i32
    return %c0_i32, %c0_i32_0, %c0_i32_1 : i32, i32, i32
  }
  func.func @transform_16(%arg0: i32) -> (i32, i32, i32) {
    %c0_i32 = arith.constant 0 : i32
    %c0_i32_0 = arith.constant 0 : i32
    %c0_i32_1 = arith.constant 0 : i32
    %c0_i32_2 = arith.constant 0 : i32
    return %c0_i32, %c0_i32_0, %c0_i32_1 : i32, i32, i32
  }
  func.func @transform_17(%arg0: i32) -> (i32, i32, i32) {
    %c0_i32 = arith.constant 0 : i32
    %c0_i32_0 = arith.constant 0 : i32
    %c0_i32_1 = arith.constant 0 : i32
    %c0_i32_2 = arith.constant 0 : i32
    return %c0_i32, %c0_i32_0, %c0_i32_1 : i32, i32, i32
  }
  func.func @transform_18(%arg0: i32) -> (i32, i32, i32) {
    %c0_i32 = arith.constant 0 : i32
    %c0_i32_0 = arith.constant 0 : i32
    %c0_i32_1 = arith.constant 0 : i32
    return %arg0, %c0_i32, %c0_i32_0 : i32, i32, i32
  }
}

</mosaic_0001>

<bundles_post_ra>
// kernel: informer_forward.1
= control target key start
LH: loop header
LB: loop body
LE: loop exit
PB: predicated region body
PF: predicated region fallthrough
CT: control target
= control target key end

     0   :  { %s38243_s0 = inlined_call_operand.hbm [shape: f32[4,8,16], index: 0, kind: input, shape index: {}]   ;;  %s38244_s1 = inlined_call_operand.vmem [shape: f32[8,64], index: 1, kind: input, shape index: {}]   ;;  %s38245_s2 = inlined_call_operand.hbm [shape: f32[16,64], index: 2, kind: input, shape index: {}]   ;;  %s38246_s3 = inlined_call_operand.vmem [shape: f32[1,64], index: 3, kind: input, shape index: {}]   ;;  %s38247_s4 = inlined_call_operand.vmem [shape: f32[64,128], index: 4, kind: input, shape index: {}]   ;;  %s38248_s5 = inlined_call_operand.vmem [shape: f32[1,128], index: 5, kind: input, shape index: {}]   ;;  %s38249_s6 = inlined_call_operand.vmem [shape: f32[3,64,192], index: 6, kind: input, shape index: {}]   ;;  %s38250_s7 = inlined_call_operand.vmem [shape: f32[3,64,64], index: 7, kind: input, shape index: {}]   ;;  %s38251_s8 = inlined_call_operand.vmem [shape: f32[3,64,128], index: 8, kind: input, shape index: {}]   ;;  %s38252_s9 = inlined_call_operand.vmem [shape: f32[3,128,64], index: 9, kind: input, shape index: {}]   ;;  %s38253_s10 = inlined_call_operand.hbm [shape: f32[3,8,192], index: 10, kind: input, shape index: {}]   ;;  %s38254_s11 = inlined_call_operand.vmem [shape: f32[3,64,64], index: 11, kind: input, shape index: {}]   ;;  %s38255_s12 = inlined_call_operand.vmem [shape: f32[3,64,64], index: 12, kind: input, shape index: {}]   ;;  %s38256_s13 = inlined_call_operand.hbm [shape: f32[3,64,128], index: 13, kind: input, shape index: {}]   ;;  %s38257_s14 = inlined_call_operand.hbm [shape: f32[3,64,64], index: 14, kind: input, shape index: {}]   ;;  %s38258_s15 = inlined_call_operand.hbm [shape: f32[3,64,128], index: 15, kind: input, shape index: {}]   ;;  %s38259_s16 = inlined_call_operand.vmem [shape: f32[3,128,64], index: 16, kind: input, shape index: {}]   ;;  %s38260_s17 = inlined_call_operand.hbm [shape: f32[3,12,128], index: 17, kind: input, shape index: {}]   ;;  %s38261_s18 = inlined_call_operand.hbm [shape: f32[2,2,128], index: 18, kind: output, shape index: {}]  }
   0x1   :  { %38282 = sst [smem:[#allocation20_spill]] %s38243_s0 }
   0x2   :  { %38283 = sst [smem:[#allocation21_spill]] %s38244_s1 }
   0x3   :  { %38284 = sst [smem:[#allocation22_spill]] %s38245_s2 }
   0x4   :  { %38285 = sst [smem:[#allocation23_spill]] %s38246_s3 }
   0x5   :  { %38286 = sst [smem:[#allocation24_spill]] %s38247_s4 }
   0x6   :  { %38287 = sst [smem:[#allocation25_spill]] %s38248_s5 }
   0x7   :  { %38288 = sst [smem:[#allocation26_spill]] %s38249_s6 }
   0x8   :  { %38289 = sst [smem:[#allocation27_spill]] %s38250_s7 }
   0x9   :  { %38290 = sst [smem:[#allocation28_spill]] %s38251_s8 }
   0xa   :  { %38291 = sst [smem:[#allocation29_spill]] %s38252_s9 }
   0xb   :  { %38292 = sst [smem:[#allocation30_spill]] %s38253_s10 }
   0xc   :  { %38293 = sst [smem:[#allocation31_spill]] %s38254_s11 }
   0xd   :  { %38294 = sst [smem:[#allocation32_spill]] %s38255_s12 }
   0xe   :  { %38295 = sst [smem:[#allocation33_spill]] %s38256_s13 }
   0xf   :  { %38296 = sst [smem:[#allocation34_spill]] %s38259_s16 }
  0x10   :  { %38297 = sst [smem:[#allocation35_spill]] %s38261_s18 }
  0x11   :  { %23 = vsyncpa [#allocation3], 0 }
  0x12   :  { %25 = vsyncpa [#allocation3 + $0x1], 0 }
  0x13   :  { %26 = vsyncpa [#allocation6], 0 }
  0x14   :  { %27 = vsyncpa [#allocation9], 0 }
  0x15   :  { %28 = vsyncpa [#allocation12], 0 }
  0x16   :  { %29 = vsyncpa [#allocation4], 0 }
  0x17   :  { %31 = vsyncpa [#allocation4 + $0x1], 0  ;;  %s35056_s27 = smov 0   ;;  %s35058_s28 = smov 0  }
  0x18   :  { %s35060_s29 = smov 0   ;;  %s35062_s30 = smov 0  }
  0x19 LB: > { %s34946_s0 = smov [#allocation5]   ;;  %s35077_s1 = sadd.s32 4294967295, %s34944_s30   ;;  %s34944_s30 = sphi %s35062_s30, %s38338_s30   ;;  %s34940_s29 = sphi %s35060_s29, %s38337_s29   ;;  %s34936_s28 = sphi %s35058_s28, %s38336_s28   ;;  %s34932_s27 = sphi %s35056_s27, %s38335_s27  }
  0x1a   : > { %s466_s19 = sshll.u32 %s34946_s0, 4  ;;  %p30548_p0 = scmp.ge.s32.totalorder %s34944_s30, 1  ;;  %s35082_s19 = int_to_ptr.vmem [resolvable:$true] %s466_s19 }
  0x1b   : > { %p38272_p1 = scmp.eq.s32.totalorder %s35077_s1, 0  ;;  %p451_p2 = scmp.lt.s32.totalorder %s34944_s30, 3 }
  0x1c   : > { %s34947_s21 = smov [#allocation8]   ;;  %s34948_s23 = smov [#allocation11]  }
  0x1d   : > { %p35084_p3 = pnand %p30548_p0, %p451_p2  ;;  %s519_s22 = sshll.u32 %s34947_s21, 4  ;;  %s35097_s22 = int_to_ptr.vmem [resolvable:$true] %s519_s22 }
  0x1e   : > { %s545_s24 = sshll.u32 %s34948_s23, 4  ;;  %s38300_s0 = sld [smem:[#allocation22_spill]]  ;;  %s35099_s24 = int_to_ptr.vmem [resolvable:$true] %s545_s24 }
  0x1f   : > { %s38298_s20 = scalar_select %p35084_p3, 1, 0 }
  0x20   : > { %p34149_p5 = pneg %p35084_p3 }
  0x22   : > { %p35093_p6 = pnand %p34149_p5, %p38272_p1 }
  0x24   : > { %s34668_s18 = scalar_lea.hbm %s38300_s0, 256  ;;  %p35109_p8 = pneg %p35093_p6 }
  0x25   : > { %p34669_p7 = scmp.ne.s32.totalorder %s38300_s0, %s34668_s18  ;;  %p34675_p11 = scmp.lt.u32.totalorder %s34668_s18, %s38300_s0 }
  0x27   : > { %p34671_p9 = pnand %p35109_p8, %p34669_p7 }
  0x29   : > { %p34672_p10 = pneg %p34671_p9 }
  0x2b   : > { %p34677_p12 = pnand %p34675_p11, %p34672_p10 }
  0x2d   : > { %34680 = shalt.err (!%p34677_p12)
}
  0x2e   : > { %s34681_s4 = scalar_lea.vmem %s35082_s19, 256  ;;  %p34689_p5 = scmp.lt.s32.totalorder %s35082_s19, %s35082_s19 }
  0x2f   : > { %p34682_p13 = scmp.ne.s32.totalorder %s35082_s19, %s34681_s4  ;;  %p34690_p4 = scmp.lt.s32.totalorder %s34681_s4, %s34681_s4 }
  0x31   : > { %p34684_p0 = pnand %p34682_p13, %p35109_p8  ;;  %p34691_p7 = por %p34690_p4, %p34689_p5 }
  0x33   : > { %p34685_p2 = pneg %p34684_p0 }
  0x35   : > { %p34692_p9 = pnand %p34691_p7, %p34685_p2 }
  0x37   : > { %34695 = shalt.err (!%p34692_p9)
}
  0x38   : > { %s38274_s5 = smov 128   ;;  %s38276_s16 = smov 8  }
  0x39   : > { %34152 = dma.hbm_to_vmem [thread:$0]  (!%p35093_p6), %s38300_s0, 256, %s35082_s19, [#allocation6], %s38274_s5, %s38274_s5, %s38276_s16  }
  0x3a   : > { %s38302_s13 = sld [smem:[#allocation33_spill]] }
  0x40   : > { %s34696_s4 = scalar_lea.hbm %s38302_s13, 3072 }
  0x41   : > { %p34697_p4 = scmp.ne.s32.totalorder %s38302_s13, %s34696_s4  ;;  %p34703_p12 = scmp.lt.u32.totalorder %s34696_s4, %s38302_s13 }
  0x43   : > { %p34699_p10 = pnand %p34697_p4, %p35109_p8 }
  0x45   : > { %p34700_p11 = pneg %p34699_p10 }
  0x47   : > { %p34705_p13 = pnand %p34703_p12, %p34700_p11 }
  0x49   : > { %34708 = shalt.err (!%p34705_p13)
}
  0x4a   : > { %s34709_s19 = scalar_lea.vmem %s35097_s22, 3072  ;;  %p34717_p7 = scmp.lt.s32.totalorder %s35097_s22, %s35097_s22 }
  0x4b   : > { %p34710_p0 = scmp.ne.s32.totalorder %s35097_s22, %s34709_s19  ;;  %p34718_p9 = scmp.lt.s32.totalorder %s34709_s19, %s34709_s19 }
  0x4d   : > { %p34712_p2 = pnand %p34710_p0, %p35109_p8  ;;  %p34719_p4 = por %p34718_p9, %p34717_p7 }
  0x4f   : > { %p34713_p5 = pneg %p34712_p2 }
  0x51   : > { %p34720_p10 = pnand %p34719_p4, %p34713_p5 }
  0x53   : > { %34723 = shalt.err (!%p34720_p10)
}
  0x54   : > { %34158 = dma.hbm_to_vmem [thread:$0]  (!%p35093_p6), %s38302_s13, 3072, %s35097_s22, [#allocation9], %s38274_s5, %s38274_s5, %s38276_s16  }
  0x55   : > { %s34724_s18 = scalar_lea.hbm %s38258_s15, 3072 }
  0x56   : > { %p34725_p11 = scmp.ne.s32.totalorder %s38258_s15, %s34724_s18  ;;  %p34731_p0 = scmp.lt.u32.totalorder %s34724_s18, %s38258_s15 }
  0x58   : > { %p34727_p12 = pnand %p34725_p11, %p35109_p8 }
  0x5a   : > { %p34728_p13 = pneg %p34727_p12 }
  0x5c   : > { %p34733_p2 = pnand %p34731_p0, %p34728_p13 }
  0x5e   : > { %34736 = shalt.err (!%p34733_p2)
}
  0x5f   : > { %s34737_s22 = scalar_lea.vmem %s35099_s24, 3072  ;;  %p34745_p4 = scmp.lt.s32.totalorder %s35099_s24, %s35099_s24 }
  0x60   : > { %p34738_p5 = scmp.ne.s32.totalorder %s35099_s24, %s34737_s22  ;;  %p34746_p10 = scmp.lt.s32.totalorder %s34737_s22, %s34737_s22 }
  0x62   : > { %p34740_p7 = pnand %p34738_p5, %p35109_p8  ;;  %p34747_p11 = por %p34746_p10, %p34745_p4 }
  0x64   : > { %p34741_p9 = pneg %p34740_p7 }
  0x66   : > { %p34748_p12 = pnand %p34747_p11, %p34741_p9 }
  0x68   : > { %34751 = shalt.err (!%p34748_p12)
}
  0x69   : > { %34164 = dma.hbm_to_vmem [thread:$0]  (!%p35093_p6), %s38258_s15, 3072, %s35099_s24, [#allocation12], %s38274_s5, %s38274_s5, %s38276_s16  }
  0x6a   : > { %s34951_s9 = smov [#allocation7]   ;;  %s38303_s10 = sld [smem:[#allocation30_spill]] }
  0x6b   : > { %s500_s11 = sshll.u32 %s34951_s9, 4  ;;  %s501_s11 = int_to_ptr.vmem [resolvable:$true] %s500_s11 }
  0x70   : > { %s34752_s25 = scalar_lea.hbm %s38303_s10, 768 }
  0x71   : > { %p34753_p13 = scmp.ne.s32.totalorder %s38303_s10, %s34752_s25  ;;  %p34759_p5 = scmp.lt.u32.totalorder %s34752_s25, %s38303_s10 }
  0x73   : > { %p34755_p0 = pnand %p34753_p13, %p35109_p8 }
  0x75   : > { %p34756_p2 = pneg %p34755_p0 }
  0x77   : > { %p34761_p7 = pnand %p34759_p5, %p34756_p2 }
  0x79   : > { %34764 = shalt.err (!%p34761_p7)
}
  0x7a   : > { %s34765_s24 = scalar_lea.vmem %s501_s11, 768  ;;  %p34773_p11 = scmp.lt.s32.totalorder %s501_s11, %s501_s11 }
  0x7b   : > { %p34766_p9 = scmp.ne.s32.totalorder %s501_s11, %s34765_s24  ;;  %p34774_p12 = scmp.lt.s32.totalorder %s34765_s24, %s34765_s24 }
  0x7d   : > { %p34768_p4 = pnand %p34766_p9, %p35109_p8  ;;  %p34775_p1 = por %p34774_p12, %p34773_p11 }
  0x7f   : > { %p34769_p10 = pneg %p34768_p4 }
  0x81   : > { %p34776_p3 = pnand %p34775_p1, %p34769_p10 }
  0x83   : > { %34779 = shalt.err (!%p34776_p3)
}
  0x84   : > { %s34952_s19 = smov 256   ;;  %s34953_s8 = smov 16  }
  0x85   : > { %34155 = dma.hbm_to_vmem [thread:$0]  (!%p35093_p6), %s38303_s10, 768, %s501_s11, [#allocation6], %s34952_s19, %s34952_s19, %s34953_s8  }
  0x86   : > { %s34954_s18 = smov [#allocation10]   ;;  %s34955_s26 = smov [#allocation13]  }
  0x87   : > { %s532_s25 = sshll.u32 %s34954_s18, 4  ;;  %s561_s23 = sshll.u32 %s34955_s26, 4  ;;  %s533_s25 = int_to_ptr.vmem [resolvable:$true] %s532_s25  ;;  %s35203_s23 = int_to_ptr.vmem [resolvable:$true] %s561_s23 }
  0x88   : > { %s34780_s24 = scalar_lea.hbm %s38257_s14, 3072 }
  0x89   : > { %p34781_p1 = scmp.ne.s32.totalorder %s38257_s14, %s34780_s24  ;;  %p34787_p0 = scmp.lt.u32.totalorder %s34780_s24, %s38257_s14 }
  0x8b   : > { %p34783_p3 = pnand %p34781_p1, %p35109_p8 }
  0x8d   : > { %p34784_p13 = pneg %p34783_p3 }
  0x8f   : > { %p34789_p2 = pnand %p34787_p0, %p34784_p13 }
  0x91   : > { %34792 = shalt.err (!%p34789_p2)
}
  0x92   : > { %s34793_s19 = scalar_lea.vmem %s533_s25, 3072  ;;  %p34801_p4 = scmp.lt.s32.totalorder %s533_s25, %s533_s25 }
  0x93   : > { %p34794_p5 = scmp.ne.s32.totalorder %s533_s25, %s34793_s19  ;;  %p34802_p10 = scmp.lt.s32.totalorder %s34793_s19, %s34793_s19 }
  0x95   : > { %p34796_p7 = pnand %p34794_p5, %p35109_p8  ;;  %p34803_p11 = por %p34802_p10, %p34801_p4 }
  0x97   : > { %p34797_p9 = pneg %p34796_p7 }
  0x99   : > { %p34804_p12 = pnand %p34803_p11, %p34797_p9 }
  0x9b   : > { %34807 = shalt.err (!%p34804_p12)
}
  0x9c   : > { %s38304_s5 = smov 8   ;;  %s38305_s16 = smov 128  }
  0x9d   : > { %34161 = dma.hbm_to_vmem [thread:$0]  (!%p35093_p6), %s38257_s14, 3072, %s533_s25, [#allocation9], %s38305_s16, %s38305_s16, %s38304_s5  }
  0x9e   : > { %s34808_s4 = scalar_lea.hbm %s38260_s17, 768 }
  0x9f   : > { %p34809_p1 = scmp.ne.s32.totalorder %s38260_s17, %s34808_s4  ;;  %p34815_p0 = scmp.lt.u32.totalorder %s34808_s4, %s38260_s17 }
  0xa1   : > { %p34811_p3 = pnand %p34809_p1, %p35109_p8 }
  0xa3   : > { %p34812_p13 = pneg %p34811_p3 }
  0xa5   : > { %p34817_p2 = pnand %p34815_p0, %p34812_p13 }
  0xa7   : > { %34820 = shalt.err (!%p34817_p2)
}
  0xa8   : > { %s34821_s25 = scalar_lea.vmem %s35203_s23, 768  ;;  %p34829_p4 = scmp.lt.s32.totalorder %s35203_s23, %s35203_s23 }
  0xa9   : > { %p34822_p5 = scmp.ne.s32.totalorder %s35203_s23, %s34821_s25  ;;  %p34830_p10 = scmp.lt.s32.totalorder %s34821_s25, %s34821_s25 }
  0xab   : > { %p34824_p7 = pnand %p34822_p5, %p35109_p8  ;;  %p34831_p11 = por %p34830_p10, %p34829_p4 }
  0xad   : > { %p34825_p9 = pneg %p34824_p7 }
  0xaf   : > { %p34832_p12 = pnand %p34831_p11, %p34825_p9 }
  0xb1   : > { %34835 = shalt.err (!%p34832_p12)
}
  0xb2   : > { %34167 = dma.hbm_to_vmem [thread:$0]  (!%p35093_p6), %s38260_s17, 768, %s35203_s23, [#allocation12], %s38305_s16, %s38305_s16, %s38304_s5  }
  0xb3   : > { %s30547_s2 = sadd.s32 4294967294, %s34944_s30   ;;  %s35254_s21 = sadd.s32 1, %s34944_s30  }
  0xb4   : > { %s41_s12 = ssub.s32 %s34944_s30, %s35254_s21  ;;  %s44_s18 = sadd.s32 1, %s34940_s29 }
  0xb5   : > { %p42_p8 = scmp.eq.s32.totalorder %s41_s12, 0  ;;  %p51_p1 = scmp.ne.s32.totalorder %s34940_s29, %s34936_s28 }
  0xb6   : > { %p52_p3 = scmp.eq.s32.totalorder %s34944_s30, 0  ;;  %p57_p13 = scmp.ne.s32.totalorder %s34936_s28, %s34932_s27 }
  0xb7   : > { %s35265_s26 = scalar_select %p42_p8, %s34940_s29, %s44_s18  }
  0xb8   : > { %p35267_p0 = por %p52_p3, %p51_p1  ;;  %p38307_p2 = scmp.eq.s32.totalorder %s35077_s1, 0 }
  0xb9   : > { %p438_p5 = scmp.eq.s32.totalorder %s35077_s1, 1  ;;  %p444_p7 = scmp.eq.s32.totalorder %s30547_s2, 1 }
  0xba   : > { %p35273_p6 = por %p38307_p2, %p57_p13  ;;  %p34182_p9 = scmp.lt.s32.totalorder %s34944_s30, 2 }
  0xbb   : > { %s575_s22 = sand.u32 1, %s34940_s29   ;;  %p35280_p4 = por %p438_p5, %p51_p1 }
  0xbc   : > { %p35284_p10 = por %p444_p7, %p57_p13  ;;  %s30556_s11 = sshll.u32 %s575_s22, 4 }
  0xbd   : > { %s38309_s24 = scalar_select %p35280_p4, 1, 0 }
  0xbe   : > { %s38310_s9 = scalar_select %p35284_p10, 1, 0 }
  0xbf   : > { %s31080_s25 = sshll.u32 %s34944_s30, 8  ;;  %s38311_s12 = sld [smem:[#allocation20_spill]] }
  0xc0   : > { %s579_s2 = scalar_lea.vmem [#allocation2], %s30556_s11  ;;  %p35298_p11 = pnand %p34182_p9, %p35267_p0 }
  0xc1   : > { %s586_s0 = sshll.u32 %s579_s2, 4  ;;  %s35302_s13 = scalar_lea.sflag [#allocation3], %s575_s22  ;;  %s35294_s0 = int_to_ptr.vmem [resolvable:$true] %s586_s0 }
  0xc2   : > { %p34838_p8 = pneg %p35298_p11 }
  0xc5   : > { %s35292_s18 = scalar_lea.hbm %s38311_s12, %s31080_s25  ;;  %s34841_s4 = scalar_lea.hbm %s38311_s12, 512 }
  0xc6   : > { %s34836_s19 = scalar_lea.hbm %s35292_s18, 256  ;;  %p34842_p13 = scmp.lt.u32.totalorder %s35292_s18, %s38311_s12 }
  0xc7   : > { %p34837_p12 = scmp.ne.s32.totalorder %s35292_s18, %s34836_s19  ;;  %p34843_p0 = scmp.lt.u32.totalorder %s34841_s4, %s34836_s19 }
  0xc8   : > { %p34845_p5 = scmp.lt.u32.totalorder %s34836_s19, %s35292_s18 }
  0xc9   : > { %p34839_p1 = pnand %p34838_p8, %p34837_p12  ;;  %p34844_p2 = por %p34843_p0, %p34842_p13 }
  0xcb   : > { %p34840_p3 = pneg %p34839_p1  ;;  %p34846_p7 = por %p34845_p5, %p34844_p2 }
  0xcd   : > { %p34847_p9 = pnand %p34846_p7, %p34840_p3 }
  0xcf   : > { %34850 = shalt.err (!%p34847_p9)
}
  0xd0   : > { %s34851_s22 = scalar_lea.vmem %s35294_s0, 256  ;;  %s34956_s11 = smov [#allocation2]  }
  0xd1   : > { %p34852_p12 = scmp.ne.s32.totalorder %s35294_s0, %s34851_s22  ;;  %s34856_s25 = sshll.u32 %s34956_s11, 4  ;;  %s34857_s25 = int_to_ptr.vmem [resolvable:$false] %s34856_s25 }
  0xd2   : > { %s34858_s8 = scalar_lea.vmem %s34857_s25, 512  ;;  %p34859_p4 = scmp.lt.s32.totalorder %s35294_s0, %s34857_s25 }
  0xd3   : > { %p34854_p1 = pnand %p34852_p12, %p34838_p8  ;;  %p34860_p13 = scmp.lt.s32.totalorder %s34858_s8, %s34851_s22 }
  0xd5   : > { %p34855_p10 = pneg %p34854_p1  ;;  %p34861_p0 = por %p34860_p13, %p34859_p4 }
  0xd7   : > { %p34862_p2 = pnand %p34861_p0, %p34855_p10 }
  0xd9   : > { %34865 = shalt.err (!%p34862_p2)
}
  0xda   : > { %34171 = dma.hbm_to_vmem [thread:$0]  (!%p35298_p11), %s35292_s18, 256, %s35294_s0, %s35302_s13, %s38305_s16, %s38305_s16, %s38304_s5  }
  0xdb   : > { %p38313_p8 = scmp.ne.s32.totalorder %s38298_s20, 0 }
  0xdc   : > { %s35336_s19 = sand.u32 (!%p38313_p8), 1, %s34936_s28  }
  0xdd   : > { %598 = sbr.rel (%p38313_p8) target bundleno = 25438 (0x635e), region = 92  ;;  %s30560_s4 = sshll.u32 (!%p38313_p8), %s35336_s19, 4 }
  0xde   : > { %s601_s2 = scalar_lea.sflag (!%p38313_p8), [#allocation3], %s35336_s19  ;;  %s604_s22 = scalar_lea.vmem (!%p38313_p8), [#allocation2], %s30560_s4 }
  0xe4   : > { %34911 = dma.done.wait (%p35273_p6), %s601_s2, 256  }
  0xe5   : > { %34913 = vsyncadd (%p35273_p6), %s601_s2, 4294967040  ;;  %p38314_p4 = scmp.eq.s32.totalorder %s35077_s1, 0 }
  0xe7   : > { %34915 = dma.done.wait (%p38314_p4), [#allocation6], 1024   ;;  %p38315_p10 = pmov %p38314_p4 }
  0xe8   : > { %p38316_p11 = pmov %p38314_p4 }
  0xe9   : > { %34917 = vsyncadd (%p38315_p10), [#allocation6], 4294966272 }
  0xea   : > { %34919 = dma.done.wait (%p38316_p11), [#allocation9], 6144   ;;  %p38317_p3 = pmov %p38314_p4 }
  0xec   : > { %34921 = vsyncadd (%p38317_p3), [#allocation9], 4294961152  ;;  %p38318_p5 = pmov %p38317_p3 }
  0xed   : > { %p38319_p7 = pmov %p38317_p3 }
  0xee   : > { %34923 = dma.done.wait (%p38318_p5), [#allocation12], 3840  }
  0xef   : > { %34925 = vsyncadd (%p38319_p7), [#allocation12], 4294963456  ;;  %vm694_vm0 = vcmask 130048   ;;  %v685_v0 = vld [vmem:[#allocation5] sm:$0xff]  ;;  %v686_v1 = vld [vmem:[#allocation5 + $0x8] sm:$0xff]  ;;  %s38320_s6 = sld [smem:[#allocation26_spill]]  ;;  %v796_v38 = vlaneseq }
  0xf0   : > { %v683_v2 = vld [vmem:[%s604_s22] sm:$0xff]  ;;  %v33541_v3 = vpack.c.bf16 %v686_v1, %v685_v0  ;;  %v684_v11 = vld [vmem:[%s604_s22 + $0x8] sm:$0xff]  ;;  %v34957_v29 = vmov 0.0   ;;  %s38321_s3 = sld [smem:[#allocation23_spill]]  ;;  %s38322_s11 = sld [smem:[#allocation21_spill]]  ;;  %vm804_vm1 = vcmask 523264  }
  0xf1   : > { %31836 = vmatprep.mubr.msk.f32.mxu1 %vm694_vm0, %v683_v2  ;;  %31844 = vmatprep.subr.mxu0 %v34957_v29  ;;  %v35424_v39 = vshrl.u32 %v796_v38, 7  ;;  %v778_v41 = vld [vmem:[#allocation7] sm:$0xff]  ;;  %v779_v44 = vld [vmem:[#allocation7 + $0x8] sm:$0xff]  ;;  %vm34958_vm2 = vmmov 0   ;;  %vm1728_vm3 = vcmask 64512   ;;  %s38323_s7 = sld [smem:[#allocation27_spill]] }
  0xf2   : > { %33542 = vmatprep.subr.bf16.mxu1 %v33541_v3  ;;  %31846 = vmatprep.mubr.msk.f32.mxu0 %vm34958_vm2, %v34957_v29  ;;  %s38324_s13 = sld [smem:[#allocation28_spill]]  ;;  %s38325_s23 = sld [smem:[#allocation29_spill]]  ;;  %vm16877_vm4 = vcmask 1040384   ;;  %vm16968_vm5 = vcmask 517120   ;;  %vm18090_vm6 = vcmask 57344  }
  0xf3   : > { %33544 = vmatpush3.bf16.msra.mxu1 %v33541_v3  ;;  %v35427_v40 = vsub.s32 0, %v35424_v39  ;;  %s38326_s22 = sld [smem:[#allocation31_spill]]  ;;  %s38327_s8 = sld [smem:[#allocation32_spill]] }
  0xf4   : > { %s38328_s18 = sld [smem:[#allocation34_spill]]  ;;  %s38329_s5 = sld [smem:[#allocation24_spill]] }
  0xf5   : > { %v781_v4 = vld [vmem:[%s38320_s6 + $0x8] sm:$0xff]  ;;  %v783_v5 = vld [vmem:[%s38320_s6 + $0x18] sm:$0xff]  ;;  %v780_v7 = vld [vmem:[%s38320_s6] sm:$0xff]  ;;  %v799_v42 = vrot.slane %v778_v41, %v35427_v40  ;;  %v35433_v47 = vrot.slane %v779_v44, %v35427_v40  ;;  %s38330_s25 = sld [smem:[#allocation25_spill]]  ;;  %s31077_s4 = sshll.u32 %s35077_s1, 5 }
  0xf6   : > { %v33545_v6 = vpack.c.bf16 %v783_v5, %v781_v4  ;;  %v782_v8 = vld [vmem:[%s38320_s6 + $0x10] sm:$0xff]  ;;  %v785_v9 = vld [vmem:[%s38320_s6 + $0x28] sm:$0xff]  ;;  %v787_v10 = vld [vmem:[%s38320_s6 + $0x38] sm:$0xff]  ;;  %31837 = vmatmul.mubr.msk.f32.vlgmr.msra.gmra.mrb[0].mxu1 %vm694_vm0, %v684_v11  ;;  %p38332_p9 = scmp.ne.s32.totalorder %s38309_s24, 0  ;;  %s34960_s1 = smov [#allocation14]  }
  0xf7   : > { %v33547_v12 = vpack.c.bf16 %v782_v8, %v780_v7  ;;  %v33549_v13 = vpack.c.bf16 %v787_v10, %v785_v9  ;;  %v784_v14 = vld [vmem:[%s38320_s6 + $0x20] sm:$0xff]  ;;  %v786_v15 = vld [vmem:[%s38320_s6 + $0x30] sm:$0xff]  ;;  %v789_v16 = vld [vmem:[%s38320_s6 + $0x48] sm:$0xff]  ;;  %875 = vmatprep.mubr.f32.mxu1 %v34957_v29 }
  0xf8   : > { %33546 = vmatprep.subr.bf16.mxu1 %v33545_v6  ;;  %v791_v17 = vld [vmem:[%s38320_s6 + $0x58] sm:$0xff]  ;;  %v33551_v18 = vpack.c.bf16 %v786_v15, %v784_v14  ;;  %v788_v20 = vld [vmem:[%s38320_s6 + $0x40] sm:$0xff]  ;;  %v790_v21 = vld [vmem:[%s38320_s6 + $0x50] sm:$0xff] }
  0xf9   : > { %33548 = vmatpush1.bf16.msra.mxu1 %v33547_v12  ;;  %v33553_v19 = vpack.c.bf16 %v791_v17, %v789_v16  ;;  %v33555_v22 = vpack.c.bf16 %v790_v21, %v788_v20  ;;  %v793_v23 = vld [vmem:[%s38320_s6 + $0x68] sm:$0xff]  ;;  %v795_v24 = vld [vmem:[%s38320_s6 + $0x78] sm:$0xff]  ;;  %v792_v26 = vld [vmem:[%s38320_s6 + $0x60] sm:$0xff] }
  0xfa   : > { %33550 = vmatprep.subr.bf16.mxu1 %v33549_v13  ;;  %v33557_v25 = vpack.c.bf16 %v795_v24, %v793_v23  ;;  %v794_v27 = vld [vmem:[%s38320_s6 + $0x70] sm:$0xff]  ;;  %v30568_v30 = vld [vmem:[%s38321_s3] ss:$0 sm:$0xff]  ;;  %s30567_s3 = sshll.u32 %s35336_s19, 1 }
  0xfb   : > { %v33559_v28 = vpack.c.bf16 %v794_v27, %v792_v26  ;;  %v682_v32 = vld [vmem:[%s38322_s11] sm:$0xff]  ;;  %s680_s2 = scalar_lea.vmem [#allocation14], %s30567_s3  ;;  %s34870_s3 = sshll.u32 %s34960_s1, 4  ;;  %s34871_s3 = int_to_ptr.vmem [resolvable:$false] %s34870_s3 }
  0xfc   : > { %s30420_s10 = sshll.u32 %s680_s2, 4  ;;  %s34872_s16 = scalar_lea.vmem %s34871_s3, 64  ;;  %s38201_s10 = int_to_ptr.vmem [resolvable:$true] %s30420_s10 }
  0xfd   : > { %33552 = vmatpush1.bf16.msra.mxu1 %v33551_v18  ;;  %s34866_s0 = scalar_lea.vmem %s38201_s10, 32  ;;  %p34873_p13 = scmp.lt.s32.totalorder %s38201_s10, %s34871_s3 }
  0xfe   : > { %33554 = vmatprep.subr.bf16.mxu1 %v33553_v19  ;;  %p34867_p6 = scmp.ne.s32.totalorder %s38201_s10, %s34866_s0  ;;  %p34874_p0 = scmp.lt.s32.totalorder %s34872_s16, %s34866_s0 }
 0x100   : > { %p34868_p12 = pnand %p34867_p6, %p38332_p9  ;;  %p34875_p2 = por %p34874_p0, %p34873_p13 }
 0x101   : > { %33556 = vmatpush1.bf16.msra.mxu1 %v33555_v22 }
 0x102   : > { %33558 = vmatprep.subr.bf16.mxu1 %v33557_v25  ;;  %p34869_p1 = pneg %p34868_p12 }
 0x104   : > { %p34876_p8 = pnand %p34875_p2, %p34869_p1 }
 0x105   : > { %33560 = vmatpush1.bf16.msra.mxu1 %v33559_v28 }
 0x106   : > { %31839 = vmatprep.subr.mxu1 %v34957_v29 }
 0x1c9   : > { %v31838_v31 = vpop.f32.mrb[0].mxu1 }
 0x1ca   : > { %v767_v33 = vpop.f32.mrb[1].mxu1  ;;  %v773_v35 = vadd.f32 %v31838_v31, %v30568_v30 }
 0x1cb   : > { %v768_v34 = vadd.f32 %v30568_v30, %v767_v33 }
 0x1cc   : > { %v35420_v37 = vadd.f32 %v773_v35, %v682_v32 }
 0x1cd   : > { %v35415_v36 = vadd.f32 %v768_v34, %v682_v32 }
 0x1cf   : > { %30571 = vmatmul.mubr.msk.f32.vlgmr.msra.gmra.mrb[2].mxu1 %vm804_vm1, %v35415_v36 }
 0x1d0   : > { %881 = vmatprep.mubr.f32.mxu1 %v34957_v29 }
 0x1d3   : > { %30572 = vmatmul.mubr.msk.f32.gmra.mrb[4].mxu1 %vm804_vm1, %v35420_v37 }
 0x1d4   : > { %31841 = vmatprep.mubr.msk.f32.mxu1 %vm34958_vm2, %v34957_v29 }
 0x2a2   : > { %v877_v43 = vpop.f32.mrb[2].mxu1 }
 0x2a3   : > { %v35430_v45 = vpop.f32.mrb[3].mxu1  ;;  %v878_v46 = vadd.f32 %v877_v43, %v799_v42 }
 0x2a5   : > { %888 = vxpose.xlu0.b32.start.end [1/1] (short) %v878_v46, 128 }
 0x2a6   : > { %v883_v48 = vpop.f32.mrb[4].mxu1 }
 0x2a7   : > { %v35435_v49 = vadd.f32 %v883_v48, %v799_v42  ;;  %v885_v50 = vpop.f32.mrb[5].mxu1 }
 0x2a8   : > { %v35438_v51 = vadd.f32 %v885_v50, %v35433_v47 }
 0x325   : > { %v904_v52 = vpop.trf.xlu0 }
 0x329   : > { %v905_v53 = vpop.trf.xlu0 }
 0x32a   : > { %984 = vxpose.xlu1.b32.start.end [1/1] (short) (narrow) %v905_v53, 8 }
 0x32d   : > { %v906_v54 = vpop.trf.xlu0 }
 0x331   : > { %v907_v55 = vpop.trf.xlu0 }
 0x335   : > { %v908_v56 = vpop.trf.xlu0 }
 0x339   : > { %v909_v57 = vpop.trf.xlu0 }
 0x33d   : > { %v910_v58 = vpop.trf.xlu0 }
 0x341   : > { %v911_v59 = vpop.trf.xlu0 }
 0x345   : > { %v912_v60 = vpop.trf.xlu0 }
 0x346   : > { %1208 = vxpose.xlu1.b32.start.end [1/1] (short) (narrow) %v912_v60, 8 }
 0x349   : > { %v913_v61 = vpop.trf.xlu0 }
 0x34a   : > { %952 = vxpose.xlu1.b32.start.end [1/1] (short) (narrow) %v904_v52, 8  ;;  %1240 = vxpose.xlu0.b32.start.end [1/1] (short) (narrow) %v913_v61, 8  ;;  %v880_v61 = vadd.f32 %v35430_v45, %v35433_v47 }
 0x34d   : > { %v914_v62 = vpop.trf.xlu0 }
 0x34e   : > { %1016 = vxpose.xlu1.b32.start.end [1/1] (short) (narrow) %v906_v54, 8 }
 0x351   : > { %v915_v63 = vpop.trf.xlu0 }
 0x352   : > { %1048 = vxpose.xlu1.b32.start.end [1/1] (short) (narrow) %v907_v55, 8 }
 0x355   : > { %v916_v0 = vpop.trf.xlu0 }
 0x356   : > { %1080 = vxpose.xlu1.b32.start.end [1/1] (short) (narrow) %v908_v56, 8 }
 0x359   : > { %v917_v1 = vpop.trf.xlu0 }
 0x35a   : > { %1112 = vxpose.xlu1.b32.start.end [1/1] (short) (narrow) %v909_v57, 8 }
 0x35d   : > { %v918_v2 = vpop.trf.xlu0 }
 0x35e   : > { %1144 = vxpose.xlu1.b32.start.end [1/1] (short) (narrow) %v910_v58, 8 }
 0x361   : > { %v919_v3 = vpop.trf.xlu0 }
 0x362   : > { %1272 = vxpose.xlu1.b32.start.end [1/1] (short) (narrow) %v914_v62, 8 }
 0x366   : > { %1304 = vxpose.xlu1.b32.start.end [1/1] (short) (narrow) %v915_v63, 8 }
 0x36a   : > { %1336 = vxpose.xlu1.b32.start.end [1/1] (short) (narrow) %v916_v0, 8 }
 0x36e   : > { %1368 = vxpose.xlu1.b32.start.end [1/1] (short) (narrow) %v917_v1, 8 }
 0x372   : > { %1400 = vxpose.xlu1.b32.start.end [1/1] (short) (narrow) %v918_v2, 8 }
 0x376   : > { %1432 = vxpose.xlu1.b32.start.end [1/1] (short) (narrow) %v919_v3, 8 }
 0x37a   : > { %1176 = vxpose.xlu1.b32.start.end [1/1] (short) (narrow) %v911_v59, 8 }
 0x3aa   : > { %v1000_v4 = vpop.trf.xlu1 }
 0x3c6   : > { %v1224_v5 = vpop.trf.xlu1 }
 0x3c7   : > { %31840 = vmatpush3.xpose.msk.msra.mxu1 %vm1728_vm3, %v1224_v5 }
 0x3c8   : > { %31864 = vmatprep.subr.mxu1 %v34957_v29 }
 0x3ca   : > { %v968_v6 = vpop.trf.xlu1  ;;  %v1256_v7 = vpop.trf.xlu0 }
 0x3cb   : > { %31842 = vmatmul.mubr.msk.f32.vlgmr.msra.gmra.mrb[6].mxu1 %vm1728_vm3, %v968_v6  ;;  %31845 = vmatpush3.xpose.msk.msra.mxu0 %vm1728_vm3, %v1256_v7 }
 0x3cc   : > { %31849 = vmatprep.subr.mxu0 %v34957_v29  ;;  %31866 = vmatprep.mubr.msk.f32.mxu1 %vm34958_vm2, %v34957_v29 }
 0x3ce   : > { %v1032_v8 = vpop.trf.xlu1  ;;  %31847 = vmatmul.mubr.msk.f32.vlgmr.msra.gmra.mrb[0].mxu0 %vm1728_vm3, %v1000_v4 }
 0x3cf   : > { %31851 = vmatprep.mubr.msk.f32.mxu0 %vm34958_vm2, %v34957_v29 }
 0x3d2   : > { %v1064_v9 = vpop.trf.xlu1 }
 0x3d6   : > { %v1096_v10 = vpop.trf.xlu1 }
 0x3da   : > { %v1128_v11 = vpop.trf.xlu1 }
 0x3de   : > { %v1160_v12 = vpop.trf.xlu1 }
 0x3e2   : > { %v1288_v13 = vpop.trf.xlu1 }
 0x3e3   : > { %31850 = vmatpush3.xpose.msk.msra.mxu0 %vm1728_vm3, %v1288_v13 }
 0x3e4   : > { %31854 = vmatprep.subr.mxu0 %v34957_v29 }
 0x3e6   : > { %v1320_v14 = vpop.trf.xlu1  ;;  %31852 = vmatmul.mubr.msk.f32.vlgmr.msra.gmra.mrb[2].mxu0 %vm1728_vm3, %v1032_v8 }
 0x3e7   : > { %31855 = vmatpush3.xpose.msk.msra.mxu0 %vm1728_vm3, %v1320_v14  ;;  %31856 = vmatprep.mubr.msk.f32.mxu0 %vm34958_vm2, %v34957_v29 }
 0x3e8   : > { %31859 = vmatprep.subr.mxu0 %v34957_v29 }
 0x3ea   : > { %v1352_v15 = vpop.trf.xlu1  ;;  %31857 = vmatmul.mubr.msk.f32.vlgmr.msra.gmra.mrb[4].mxu0 %vm1728_vm3, %v1064_v9 }
 0x3eb   : > { %31860 = vmatpush3.xpose.msk.msra.mxu0 %vm1728_vm3, %v1352_v15  ;;  %31861 = vmatprep.mubr.msk.f32.mxu0 %vm34958_vm2, %v34957_v29 }
 0x3ec   : > { %31869 = vmatprep.subr.mxu0 %v34957_v29 }
 0x3ee   : > { %v1384_v16 = vpop.trf.xlu1  ;;  %31862 = vmatmul.mubr.msk.f32.vlgmr.msra.gmra.mrb[6].mxu0 %vm1728_vm3, %v1096_v10 }
 0x3ef   : > { %31865 = vmatpush3.xpose.msk.msra.mxu1 %vm1728_vm3, %v1384_v16  ;;  %31871 = vmatprep.mubr.msk.f32.mxu0 %vm34958_vm2, %v34957_v29 }
 0x3f0   : > { %31874 = vmatprep.subr.mxu1 %v34957_v29 }
 0x3f2   : > { %31867 = vmatmul.mubr.msk.f32.vlgmr.msra.gmra.mrb[8].mxu1 %vm1728_vm3, %v1128_v11  ;;  %v1416_v17 = vpop.trf.xlu1 }
 0x3f3   : > { %31870 = vmatpush3.xpose.msk.msra.mxu0 %vm1728_vm3, %v1416_v17  ;;  %31876 = vmatprep.mubr.msk.f32.mxu1 %vm34958_vm2, %v34957_v29 }
 0x3f4   : > { %31879 = vmatprep.subr.mxu0 %v34957_v29 }
 0x3f6   : > { %v1448_v18 = vpop.trf.xlu1  ;;  %31872 = vmatmul.mubr.msk.f32.vlgmr.msra.gmra.mrb[8].mxu0 %vm1728_vm3, %v1160_v12 }
 0x3f7   : > { %31875 = vmatpush3.xpose.msk.msra.mxu1 %vm1728_vm3, %v1448_v18  ;;  %31881 = vmatprep.mubr.msk.f32.mxu0 %vm34958_vm2, %v34957_v29 }
 0x3f8   : > { %31884 = vmatprep.subr.mxu1 %v34957_v29 }
 0x3fa   : > { %v1192_v19 = vpop.trf.xlu1 }
 0x3fb   : > { %31877 = vmatmul.mubr.msk.f32.vlgmr.msra.gmra.mrb[10].mxu1 %vm1728_vm3, %v1192_v19 }
 0x3fc   : > { %31886 = vmatprep.mubr.msk.f32.mxu1 %vm34958_vm2, %v34957_v29 }
 0x49e   : > { %v1801_v20 = vpop.f32.mrb[6].mxu1 }
 0x49f   : > { %v35484_v21 = vmul.f32 0.35355338, %v1801_v20  ;;  %v31843_v22 = vpop.f32.mrb[7].mxu1 }
 0x4a1   : > { %v1877_v23 = vpop.f32.mrb[0].mxu0  ;;  %v2345_v24 = vsel %vm1728_vm3, %v35484_v21, -inf }
 0x4a2   : > { %v2338_v25 = vmul.f32 0.35355338, %v1877_v23  ;;  %2346 = vmax.xlane.f32.xlu1 %v2345_v24  ;;  %v31848_v26 = vpop.f32.mrb[1].mxu0 }
 0x4a4   : > { %v2348_v27 = vsel %vm1728_vm3, %v2338_v25, -inf }
 0x4a5   : > { %2349 = vmax.xlane.f32.xlu0 %v2348_v27 }
 0x4b9   : > { %v1953_v28 = vpop.f32.mrb[2].mxu0 }
 0x4ba   : > { %v35489_v30 = vmul.f32 0.35355338, %v1953_v28  ;;  %v31853_v31 = vpop.f32.mrb[3].mxu0 }
 0x4bc   : > { %v2351_v32 = vsel %vm1728_vm3, %v35489_v30, -inf }
 0x4bd   : > { %2352 = vmax.xlane.f32.xlu1 %v2351_v32  ;;  %v2029_v33 = vpop.f32.mrb[4].mxu0 }
 0x4be   : > { %v2340_v34 = vmul.f32 0.35355338, %v2029_v33  ;;  %v31858_v35 = vpop.f32.mrb[5].mxu0 }
 0x4c0   : > { %v2354_v38 = vsel %vm1728_vm3, %v2340_v34, -inf }
 0x4c1   : > { %2355 = vmax.xlane.f32.xlu1 %v2354_v38  ;;  %v2105_v41 = vpop.f32.mrb[6].mxu0 }
 0x4c2   : > { %v35494_v42 = vmul.f32 0.35355338, %v2105_v41  ;;  %v31863_v43 = vpop.f32.mrb[7].mxu0 }
 0x4c4   : > { %v2357_v44 = vsel %vm1728_vm3, %v35494_v42, -inf }
 0x4c5   : > { %v2181_v46 = vpop.f32.mrb[8].mxu1  ;;  %2358 = vmax.xlane.f32.xlu1 %v2357_v44 }
 0x4c6   : > { %v2342_v48 = vmul.f32 0.35355338, %v2181_v46  ;;  %v31868_v50 = vpop.f32.mrb[9].mxu1 }
 0x4c8   : > { %v2360_v52 = vsel %vm1728_vm3, %v2342_v48, -inf }
 0x4c9   : > { %2361 = vmax.xlane.f32.xlu0 %v2360_v52  ;;  %v2257_v53 = vpop.f32.mrb[8].mxu0 }
 0x4ca   : > { %v2343_v54 = vmul.f32 0.35355338, %v2257_v53  ;;  %v31873_v55 = vpop.f32.mrb[9].mxu0 }
 0x4cc   : > { %v2363_v56 = vsel %vm1728_vm3, %v2343_v54, -inf }
 0x4cd   : > { %2364 = vmax.xlane.f32.xlu1 %v2363_v56 }
 0x4ce   : > { %v2333_v57 = vpop.f32.mrb[10].mxu1 }
 0x4cf   : > { %v2344_v58 = vmul.f32 0.35355338, %v2333_v57  ;;  %v31878_v59 = vpop.f32.mrb[11].mxu1 }
 0x4d1   : > { %v2366_v60 = vsel %vm1728_vm3, %v2344_v58, -inf }
 0x4d2   : > { %2367 = vmax.xlane.f32.xlu0 %v2366_v60 }
 0x4ff   : > { %920 = vxpose.xlu0.b32.start.end [1/1] (short) (narrow) %v880_v61, 64 }
 0x52f   : > { %v2347_v2 = vpop.xlane.xlu1 %2346 }
 0x530   : > { %v2369_v23 = vsub.f32 %v35484_v21, %v2347_v2 }
 0x532   : > { %v2350_v62 = vpop.xlane.xlu0 %2349  ;;  %v2377_v24 = vmul.f32 1.442695, %v2369_v23 }
 0x533   : > { %v2370_v63 = vsub.f32 %v2338_v25, %v2350_v62 }
 0x535   : > { %v2379_v0 = vmul.f32 1.442695, %v2370_v63 }
 0x537   : > { %34235 = vpow2.f32 %v2379_v0 }
 0x541   : > { %v35503_v1 = vpop.eup %34235 }
 0x542   : > { %v2396_v3 = vsel %vm1728_vm3, %v35503_v1, 0.0 }
 0x548   : > { %2397 = vadd.xlane.f32.xlu0 %v2396_v3 }
 0x54a   : > { %v2353_v4 = vpop.xlane.xlu1 %2352 }
 0x54b   : > { %v2371_v25 = vsub.f32 %v35489_v30, %v2353_v4 }
 0x54d   : > { %v2381_v27 = vmul.f32 1.442695, %v2371_v25 }
 0x54e   : > { %v2356_v5 = vpop.xlane.xlu1 %2355 }
 0x54f   : > { %v2372_v6 = vsub.f32 %v2340_v34, %v2356_v5 }
 0x551   : > { %v2383_v7 = vmul.f32 1.442695, %v2372_v6 }
 0x552   : > { %v2359_v26 = vpop.xlane.xlu1 %2358 }
 0x553   : > { %34237 = vpow2.f32 %v2383_v7  ;;  %v2373_v28 = vsub.f32 %v35494_v42, %v2359_v26 }
 0x555   : > { %v2385_v32 = vmul.f32 1.442695, %v2373_v28 }
 0x556   : > { %v2362_v8 = vpop.xlane.xlu0 %2361 }
 0x557   : > { %v2374_v9 = vsub.f32 %v2342_v48, %v2362_v8 }
 0x559   : > { %v2387_v45 = vmul.f32 1.442695, %v2374_v9 }
 0x55a   : > { %v2365_v31 = vpop.xlane.xlu1 %2364 }
 0x55b   : > { %34239 = vpow2.f32 %v2387_v45  ;;  %v2375_v33 = vsub.f32 %v2343_v54, %v2365_v31 }
 0x55c   : > { %34241 = vpow2.f32 %v2377_v24 }
 0x55d   : > { %v35507_v47 = vpop.eup %34237  ;;  %34243 = vpow2.f32 %v2381_v27  ;;  %v2389_v34 = vmul.f32 1.442695, %v2375_v33 }
 0x55e   : > { %v2402_v10 = vsel %vm1728_vm3, %v35507_v47, 0.0  ;;  %34245 = vpow2.f32 %v2385_v32 }
 0x55f   : > { %2403 = vadd.xlane.f32.xlu0 %v2402_v10  ;;  %v2368_v13 = vpop.xlane.xlu0 %2367  ;;  %34247 = vpow2.f32 %v2389_v34 }
 0x560   : > { %v2376_v35 = vsub.f32 %v2344_v58, %v2368_v13 }
 0x562   : > { %v2391_v41 = vmul.f32 1.442695, %v2376_v35 }
 0x564   : > { %34249 = vpow2.f32 %v2391_v41 }
 0x565   : > { %v35511_v11 = vpop.eup %34239 }
 0x566   : > { %v2408_v12 = vsel %vm1728_vm3, %v35511_v11, 0.0  ;;  %v35518_v38 = vpop.eup %34241 }
 0x567   : > { %2409 = vadd.xlane.f32.xlu0 %v2408_v12  ;;  %v2393_v21 = vsel %vm1728_vm3, %v35518_v38, 0.0  ;;  %v35522_v30 = vpop.eup %34243 }
 0x568   : > { %v2399_v42 = vsel %vm1728_vm3, %v35522_v30, 0.0  ;;  %v35526_v43 = vpop.eup %34245 }
 0x569   : > { %v2405_v44 = vsel %vm1728_vm3, %v35526_v43, 0.0  ;;  %v35530_v46 = vpop.eup %34247 }
 0x56a   : > { %v2411_v48 = vsel %vm1728_vm3, %v35530_v46, 0.0 }
 0x56e   : > { %v35534_v50 = vpop.eup %34249 }
 0x56f   : > { %v2414_v52 = vsel %vm1728_vm3, %v35534_v50, 0.0 }
 0x57f   : > { %v936_v14 = vpop.trf.xlu0 }
 0x580   : > { %1464 = vxpose.xlu1.b32.start.end [1/1] (short) (narrow) %v936_v14, 8 }
 0x583   : > { %v937_v15 = vpop.trf.xlu0 }
 0x587   : > { %v938_v16 = vpop.trf.xlu0 }
 0x588   : > { %1528 = vxpose.xlu1.b32.start.end [1/1] (short) (narrow) %v938_v16, 8 }
 0x58b   : > { %v939_v17 = vpop.trf.xlu0 }
 0x58c   : > { %1560 = vxpose.xlu1.b32.start.end [1/1] (short) (narrow) %v939_v17, 8 }
 0x58f   : > { %v940_v18 = vpop.trf.xlu0 }
 0x590   : > { %1592 = vxpose.xlu1.b32.start.end [1/1] (short) (narrow) %v940_v18, 8 }
 0x593   : > { %v941_v19 = vpop.trf.xlu0 }
 0x594   : > { %1496 = vxpose.xlu0.b32.start.end [1/1] (short) (narrow) %v937_v15, 8  ;;  %1624 = vxpose.xlu1.b32.start.end [1/1] (short) (narrow) %v941_v19, 8 }
 0x597   : > { %v942_v20 = vpop.trf.xlu0 }
 0x59b   : > { %v943_v22 = vpop.trf.xlu0 }
 0x59c   : > { %1688 = vxpose.xlu0.b32.start.end [1/1] (short) (narrow) %v943_v22, 8 }
 0x5bb   : > { %2394 = vadd.xlane.f32.xlu1 %v2393_v21 }
 0x5bf   : > { %2400 = vadd.xlane.f32.xlu1 %v2399_v42 }
 0x5c3   : > { %2406 = vadd.xlane.f32.xlu1 %v2405_v44 }
 0x5c7   : > { %2412 = vadd.xlane.f32.xlu1 %v2411_v48 }
 0x5cb   : > { %2415 = vadd.xlane.f32.xlu1 %v2414_v52 }
 0x5d5   : > { %v2398_v54 = vpop.xlane.xlu0 %2397 }
 0x5d6   : > { %34251 = vrcp.f32 %v2398_v54 }
 0x5e0   : > { %v34252_v59 = vpop.eup %34251 }
 0x5e1   : > { %v2426_v61 = vmul.f32 %v34252_v59, %v35503_v1  ;;  %v1720_v59 = vld [vmem:[%s38323_s7] sm:$0xff] }
 0x5ec   : > { %v2404_v55 = vpop.xlane.xlu0 %2403 }
 0x5ed   : > { %34253 = vrcp.f32 %v2404_v55 }
 0x5f4   : > { %v2410_v57 = vpop.xlane.xlu0 %2409 }
 0x5f5   : > { %34255 = vrcp.f32 %v2410_v57 }
 0x5f7   : > { %v34254_v63 = vpop.eup %34253 }
 0x5fe   : > { %1656 = vxpose.xlu1.b32.start.end [1/1] (short) (narrow) %v942_v20, 8 }
 0x5ff   : > { %v34256_v2 = vpop.eup %34255 }
 0x600   : > { %v1480_v53 = vpop.trf.xlu1  ;;  %v2430_v1 = vmul.f32 %v34256_v2, %v35511_v11  ;;  %v1724_v2 = vld [vmem:[%s38323_s7 + $0x20] sm:$0xff] }
 0x601   : > { %31880 = vmatpush3.msra.mxu0 %v1480_v53 }
 0x602   : > { %3382 = vxpose.xlu1.b32.start.end [1/1] (short) %v35435_v49, 128  ;;  %31889 = vmatprep.subr.mxu0 %v34957_v29  ;;  %v2428_v49 = vmul.f32 %v34254_v63, %v35507_v47 }
 0x608   : > { %v1544_v56 = vpop.trf.xlu1 }
 0x60c   : > { %v1576_v58 = vpop.trf.xlu1 }
 0x610   : > { %v1608_v60 = vpop.trf.xlu1 }
 0x614   : > { %v1512_v62 = vpop.trf.xlu0  ;;  %v1640_v0 = vpop.trf.xlu1 }
 0x615   : > { %31885 = vmatpush3.msra.mxu1 %v1512_v62  ;;  %v34959_v62 = vmov 0.0|0.0  }
 0x616   : > { %31887 = vmatmul.mubr.msk.f32.vlgmr.msra.gmra.mrb[12].mxu1 %vm1728_vm3, %v2426_v61  ;;  %31894 = vmatprep.subr.mxu1 %v34957_v29  ;;  %v1722_v61 = vld [vmem:[%s38323_s7 + $0x10] sm:$0xff] }
 0x617   : > { %31895 = vmatpush3.msra.mxu1 %v1576_v58  ;;  %31896 = vmatprep.mubr.msk.f32.mxu1 %vm34958_vm2, %v34957_v29 }
 0x618   : > { %31904 = vmatprep.subr.mxu1 %v34957_v29 }
 0x61a   : > { %31897 = vmatmul.mubr.msk.f32.vlgmr.msra.gmra.mrb[14].mxu1 %vm1728_vm3, %v2428_v49  ;;  %v1723_v49 = vld [vmem:[%s38323_s7 + $0x18] sm:$0xff] }
 0x61b   : > { %31905 = vmatpush3.msra.mxu1 %v1640_v0  ;;  %31906 = vmatprep.mubr.msk.f32.mxu1 %vm34958_vm2, %v34957_v29  ;;  %v35596_v0 = vpack.c.bf16 %v1723_v49, %v1722_v61 }
 0x61c   : > { %v1704_v3 = vpop.trf.xlu0  ;;  %31914 = vmatprep.subr.mxu1 %v34957_v29 }
 0x61e   : > { %31907 = vmatmul.mubr.msk.f32.vlgmr.msra.gmra.mrb[16].mxu1 %vm1728_vm3, %v2430_v1  ;;  %v1725_v1 = vld [vmem:[%s38323_s7 + $0x28] sm:$0xff] }
 0x61f   : > { %31915 = vmatpush3.msra.mxu1 %v1704_v3  ;;  %31916 = vmatprep.mubr.msk.f32.mxu1 %vm34958_vm2, %v34957_v29  ;;  %v35606_v3 = vpack.c.bf16 %v1725_v1, %v1724_v2 }
 0x620   : > { %31938 = vmatprep.subr.mxu1 %v34957_v29 }
 0x648   : > { %v2395_v4 = vpop.xlane.xlu1 %2394 }
 0x649   : > { %34257 = vrcp.f32 %v2395_v4  ;;  %v1726_v4 = vld [vmem:[%s38323_s7 + $0x30] sm:$0xff] }
 0x64c   : > { %v2401_v5 = vpop.xlane.xlu1 %2400 }
 0x64d   : > { %34259 = vrcp.f32 %v2401_v5  ;;  %v1727_v5 = vld [vmem:[%s38323_s7 + $0x38] sm:$0xff] }
 0x650   : > { %v2407_v6 = vpop.xlane.xlu1 %2406 }
 0x651   : > { %34261 = vrcp.f32 %v2407_v6  ;;  %v35616_v6 = vpack.c.bf16 %v1727_v5, %v1726_v4 }
 0x653   : > { %v34258_v7 = vpop.eup %34257 }
 0x654   : > { %v2413_v8 = vpop.xlane.xlu1 %2412  ;;  %v2425_v9 = vmul.f32 %v34258_v7, %v35518_v38 }
 0x656   : > { %31882 = vmatmul.mubr.msk.f32.vlgmr.msra.gmra.mrb[10].mxu0 %vm1728_vm3, %v2425_v9 }
 0x657   : > { %v34260_v45 = vpop.eup %34259  ;;  %31890 = vmatpush3.msra.mxu0 %v1544_v56  ;;  %31891 = vmatprep.mubr.msk.f32.mxu0 %vm34958_vm2, %v34957_v29 }
 0x658   : > { %v2416_v47 = vpop.xlane.xlu1 %2415  ;;  %31899 = vmatprep.subr.mxu0 %v34957_v29  ;;  %v2427_v10 = vmul.f32 %v34260_v45, %v35522_v30 }
 0x659   : > { %34263 = vrcp.f32 %v2416_v47 }
 0x65a   : > { %31892 = vmatmul.mubr.msk.f32.vlgmr.msra.gmra.mrb[12].mxu0 %vm1728_vm3, %v2427_v10  ;;  %34265 = vrcp.f32 %v2413_v8 }
 0x65b   : > { %v34262_v11 = vpop.eup %34261  ;;  %31900 = vmatpush3.msra.mxu0 %v1608_v60  ;;  %31901 = vmatprep.mubr.msk.f32.mxu0 %vm34958_vm2, %v34957_v29  ;;  %v1721_v60 = vld [vmem:[%s38323_s7 + $0x8] sm:$0xff] }
 0x65c   : > { %v2429_v12 = vmul.f32 %v34262_v11, %v35526_v43  ;;  %31909 = vmatprep.subr.mxu0 %v34957_v29  ;;  %v35590_v63 = vpack.c.bf16 %v1721_v60, %v1720_v59 }
 0x65e   : > { %31902 = vmatmul.mubr.msk.f32.vlgmr.msra.gmra.mrb[14].mxu0 %vm1728_vm3, %v2429_v12 }
 0x65f   : > { %31911 = vmatprep.mubr.msk.f32.mxu0 %vm34958_vm2, %v34957_v29 }
 0x663   : > { %v34264_v13 = vpop.eup %34263 }
 0x664   : > { %v2432_v14 = vmul.f32 %v34264_v13, %v35534_v50  ;;  %v34266_v15 = vpop.eup %34265 }
 0x665   : > { %v2431_v17 = vmul.f32 %v34266_v15, %v35530_v46 }
 0x666   : > { %31917 = vmatmul.mubr.msk.f32.vlgmr.msra.gmra.mrb[18].mxu1 %vm1728_vm3, %v2432_v14 }
 0x667   : > { %31940 = vmatprep.mubr.msk.f32.mxu1 %vm34958_vm2, %v34957_v29 }
 0x67e   : > { %v1672_v16 = vpop.trf.xlu1 }
 0x67f   : > { %31910 = vmatpush3.msra.mxu0 %v1672_v16 }
 0x680   : > { %31912 = vmatmul.mubr.msk.f32.vlgmr.msra.gmra.mrb[16].mxu0 %vm1728_vm3, %v2431_v17  ;;  %33561 = vmatprep.subr.bf16.mxu0 %v34959_v62 }
 0x681   : > { %31935 = vmatprep.mubr.msk.f32.mxu0 %vm34958_vm2, %v34957_v29  ;;  %33563 = vmatpush3.bf16.msra.mxu0 %v35590_v63 }
 0x682   : > { %v3398_v18 = vpop.trf.xlu1  ;;  %33564 = vmatprep.subr.bf16.mxu0 %v34959_v62 }
 0x685   : > { %33566 = vmatpush3.bf16.msra.mxu0 %v35596_v0 }
 0x686   : > { %v3399_v19 = vpop.trf.xlu1  ;;  %33567 = vmatprep.subr.bf16.mxu0 %v34959_v62 }
 0x689   : > { %33569 = vmatpush3.bf16.msra.mxu0 %v35606_v3 }
 0x68a   : > { %v3400_v20 = vpop.trf.xlu1  ;;  %33570 = vmatprep.subr.bf16.mxu0 %v34959_v62 }
 0x68d   : > { %33572 = vmatpush3.bf16.msra.mxu0 %v35616_v6 }
 0x68e   : > { %v3401_v22 = vpop.trf.xlu1  ;;  %31958 = vmatprep.subr.mxu0 %v34957_v29 }
 0x692   : > { %v3402_v23 = vpop.trf.xlu1 }
 0x696   : > { %v3403_v24 = vpop.trf.xlu1 }
 0x69a   : > { %v35578_v25 = vpop.trf.xlu1 }
 0x69e   : > { %v3405_v26 = vpop.trf.xlu1 }
 0x6a2   : > { %v3406_v27 = vpop.trf.xlu1 }
 0x6a6   : > { %v3407_v28 = vpop.trf.xlu1 }
 0x6aa   : > { %v3408_v31 = vpop.trf.xlu1 }
 0x6ae   : > { %v3409_v32 = vpop.trf.xlu1 }
 0x6b2   : > { %v3410_v35 = vpop.trf.xlu1 }
 0x6b6   : > { %v3411_v42 = vpop.trf.xlu1 }
 0x6ba   : > { %v3412_v43 = vpop.trf.xlu1 }
 0x6be   : > { %v3413_v44 = vpop.trf.xlu1 }
 0x6e9   : > { %v2575_v33 = vpop.f32.mrb[12].mxu1 }
 0x6ea   : > { %v31888_v34 = vpop.f32.mrb[13].mxu1  ;;  %3049 = vxpose.xlu1.b32.start.end [1/1] (short) (narrow) %v2575_v33, 8 }
 0x6ed   : > { %v2721_v38 = vpop.f32.mrb[14].mxu1 }
 0x6ee   : > { %v31898_v41 = vpop.f32.mrb[15].mxu1  ;;  %3830 = vxpose.xlu1.b32.start.end [1/1] (short) (narrow) %v3410_v35, 8 }
 0x6f1   : > { %v2867_v21 = vpop.f32.mrb[16].mxu1 }
 0x6f2   : > { %v31908_v30 = vpop.f32.mrb[17].mxu1  ;;  %3542 = vxpose.xlu1.b32.start.end [1/1] (short) (narrow) %v3401_v22, 8 }
 0x6f6   : > { %3862 = vxpose.xlu1.b32.start.end [1/1] (short) (narrow) %v3411_v42, 8 }
 0x6fa   : > { %3574 = vxpose.xlu1.b32.start.end [1/1] (short) (narrow) %v3402_v23, 8 }
 0x6fe   : > { %3894 = vxpose.xlu1.b32.start.end [1/1] (short) (narrow) %v3412_v43, 8 }
 0x702   : > { %3606 = vxpose.xlu1.b32.start.end [1/1] (short) (narrow) %v3403_v24, 8 }
 0x706   : > { %3926 = vxpose.xlu1.b32.start.end [1/1] (short) (narrow) %v3413_v44, 8 }
 0x70a   : > { %3670 = vxpose.xlu1.b32.start.end [1/1] (short) (narrow) %v3405_v26, 8 }
 0x729   : > { %v2502_v46 = vpop.f32.mrb[10].mxu0 }
 0x72a   : > { %3017 = vxpose.xlu0.b32.start.end [1/1] (short) (narrow) %v2502_v46, 8  ;;  %v31883_v48 = vpop.f32.mrb[11].mxu0 }
 0x72d   : > { %v2648_v50 = vpop.f32.mrb[12].mxu0 }
 0x72e   : > { %3702 = vxpose.xlu0.b32.start.end [1/1] (short) (narrow) %v3406_v27, 8  ;;  %v31893_v52 = vpop.f32.mrb[13].mxu0 }
 0x731   : > { %v2794_v53 = vpop.f32.mrb[14].mxu0 }
 0x732   : > { %3446 = vxpose.xlu0.b32.start.end [1/1] (short) (narrow) %v3398_v18, 8  ;;  %v31903_v54 = vpop.f32.mrb[15].mxu0 }
 0x736   : > { %3734 = vxpose.xlu0.b32.start.end [1/1] (short) (narrow) %v3407_v28, 8 }
 0x739   : > { %v3013_v55 = vpop.f32.mrb[18].mxu1 }
 0x73a   : > { %v31918_v56 = vpop.f32.mrb[19].mxu1  ;;  %3478 = vxpose.xlu0.b32.start.end [1/1] (short) (narrow) %v3399_v19, 8 }
 0x73e   : > { %3766 = vxpose.xlu0.b32.start.end [1/1] (short) (narrow) %v3408_v31, 8 }
 0x742   : > { %3510 = vxpose.xlu0.b32.start.end [1/1] (short) (narrow) %v3400_v20, 8 }
 0x746   : > { %3081 = vxpose.xlu0.b32.start.end [1/1] (short) (narrow) %v2648_v50, 8 }
 0x74a   : > { %3113 = vxpose.xlu0.b32.start.end [1/1] (short) (narrow) %v2721_v38, 8 }
 0x74e   : > { %3145 = vxpose.xlu0.b32.start.end [1/1] (short) (narrow) %v2794_v53, 8 }
 0x752   : > { %3177 = vxpose.xlu0.b32.start.end [1/1] (short) (narrow) %v2867_v21, 8 }
 0x753   : > { %v2940_v57 = vpop.f32.mrb[16].mxu0 }
 0x754   : > { %v31913_v58 = vpop.f32.mrb[17].mxu0 }
 0x756   : > { %3209 = vxpose.xlu0.b32.start.end [1/1] (short) (narrow) %v2940_v57, 8 }
 0x75a   : > { %3241 = vxpose.xlu0.b32.start.end [1/1] (short) (narrow) %v3013_v55, 8 }
 0x75e   : > { %3798 = vxpose.xlu0.b32.start.end [1/1] (short) (narrow) %v3409_v32, 8 }
 0x76a   : > { %v3065_v8 = vpop.trf.xlu1 }
 0x76e   : > { %v3846_v11 = vpop.trf.xlu1 }
 0x772   : > { %v3558_v14 = vpop.trf.xlu1 }
 0x776   : > { %v3878_v16 = vpop.trf.xlu1 }
 0x77a   : > { %v3590_v19 = vpop.trf.xlu1 }
 0x77e   : > { %v3910_v22 = vpop.trf.xlu1 }
 0x782   : > { %v3622_v26 = vpop.trf.xlu1 }
 0x786   : > { %v3942_v28 = vpop.trf.xlu1 }
 0x78a   : > { %v3686_v31 = vpop.trf.xlu1 }
 0x7aa   : > { %v3033_v7 = vpop.trf.xlu0 }
 0x7ab   : > { %3273 = vxpose.xlu0.b32.start [1/8] (short) (narrow) %v3033_v7, 8 }
 0x7ae   : > { %v3718_v9 = vpop.trf.xlu0 }
 0x7af   : > { %31939 = vmatpush3.xpose.msk.msra.mxu1 %vm1728_vm3, %v3718_v9  ;;  %3274 = vxpose.xlu0.b32.cont [2/8] (short) (narrow) %v3065_v8, 8 }
 0x7b0   : > { %31943 = vmatprep.subr.mxu1 %v34957_v29 }
 0x7b2   : > { %v3462_v45 = vpop.trf.xlu0 }
 0x7b3   : > { %31941 = vmatmul.mubr.msk.f32.vlgmr.msra.gmra.mrb[20].mxu1 %vm1728_vm3, %v3462_v45 }
 0x7b4   : > { %31945 = vmatprep.mubr.msk.f32.mxu1 %vm34958_vm2, %v34957_v29 }
 0x7b6   : > { %v3750_v47 = vpop.trf.xlu0 }
 0x7b7   : > { %31944 = vmatpush3.xpose.msk.msra.mxu1 %vm1728_vm3, %v3750_v47 }
 0x7b8   : > { %31948 = vmatprep.subr.mxu1 %v34957_v29 }
 0x7ba   : > { %v3494_v10 = vpop.trf.xlu0 }
 0x7bb   : > { %31946 = vmatmul.mubr.msk.f32.vlgmr.msra.gmra.mrb[22].mxu1 %vm1728_vm3, %v3494_v10 }
 0x7bc   : > { %31950 = vmatprep.mubr.msk.f32.mxu1 %vm34958_vm2, %v34957_v29 }
 0x7be   : > { %v3782_v12 = vpop.trf.xlu0 }
 0x7bf   : > { %31949 = vmatpush3.xpose.msk.msra.mxu1 %vm1728_vm3, %v3782_v12 }
 0x7c0   : > { %31953 = vmatprep.subr.mxu1 %v34957_v29 }
 0x7c2   : > { %v3526_v13 = vpop.trf.xlu0 }
 0x7c3   : > { %31951 = vmatmul.mubr.msk.f32.vlgmr.msra.gmra.mrb[24].mxu1 %vm1728_vm3, %v3526_v13 }
 0x7c4   : > { %31955 = vmatprep.mubr.msk.f32.mxu1 %vm34958_vm2, %v34957_v29 }
 0x7c6   : > { %v3097_v15 = vpop.trf.xlu0 }
 0x7c7   : > { %3275 = vxpose.xlu0.b32.cont [3/8] (short) (narrow) %v3097_v15, 8 }
 0x7ca   : > { %v3129_v17 = vpop.trf.xlu0 }
 0x7cb   : > { %3276 = vxpose.xlu0.b32.cont [4/8] (short) (narrow) %v3129_v17, 8 }
 0x7ce   : > { %v3161_v18 = vpop.trf.xlu0 }
 0x7cf   : > { %3277 = vxpose.xlu0.b32.cont [5/8] (short) (narrow) %v3161_v18, 8 }
 0x7d2   : > { %v3193_v20 = vpop.trf.xlu0 }
 0x7d3   : > { %3278 = vxpose.xlu0.b32.cont [6/8] (short) (narrow) %v3193_v20, 8 }
 0x7d6   : > { %v3225_v23 = vpop.trf.xlu0 }
 0x7d7   : > { %3279 = vxpose.xlu0.b32.cont [7/8] (short) (narrow) %v3225_v23, 8 }
 0x7da   : > { %v3257_v24 = vpop.trf.xlu0 }
 0x7db   : > { %3280 = vxpose.xlu0.b32.end [8/8] (short) (narrow) %v3257_v24, 8 }
 0x7de   : > { %v3814_v27 = vpop.trf.xlu0 }
 0x7df   : > { %3638 = vxpose.xlu0.b32.start.end [1/1] (short) (narrow) %v35578_v25, 8  ;;  %31954 = vmatpush3.xpose.msk.msra.mxu1 %vm1728_vm3, %v3814_v27 }
 0x7e0   : > { %31963 = vmatprep.subr.mxu1 %v34957_v29 }
 0x7e2   : > { %31956 = vmatmul.mubr.msk.f32.vlgmr.msra.gmra.mrb[26].mxu1 %vm1728_vm3, %v3558_v14 }
 0x7e3   : > { %31964 = vmatpush3.xpose.msk.msra.mxu1 %vm1728_vm3, %v3878_v16  ;;  %31965 = vmatprep.mubr.msk.f32.mxu1 %vm34958_vm2, %v34957_v29 }
 0x7e4   : > { %31973 = vmatprep.subr.mxu1 %v34957_v29 }
 0x7e6   : > { %31966 = vmatmul.mubr.msk.f32.vlgmr.msra.gmra.mrb[28].mxu1 %vm1728_vm3, %v3622_v26 }
 0x7e7   : > { %31974 = vmatpush3.xpose.msk.msra.mxu1 %vm1728_vm3, %v3942_v28  ;;  %31975 = vmatprep.mubr.msk.f32.mxu1 %vm34958_vm2, %v34957_v29 }
 0x7e8   : > { %31983 = vmatprep.subr.mxu1 %v34957_v29 }
 0x7ea   : > { %31976 = vmatmul.mubr.msk.f32.vlgmr.msra.gmra.mrb[30].mxu1 %vm1728_vm3, %v3686_v31 }
 0x7eb   : > { %31985 = vmatprep.mubr.msk.f32.mxu1 %vm34958_vm2, %v34957_v29 }
 0x83f   : > { %v3289_v25 = vpop.trf.xlu0 }
 0x840   : > { %31936 = vmatmul.mubr.msk.f32.vlgmr.msra.gmra.mrb[18].mxu0 %vm804_vm1, %v3289_v25 }
 0x841   : > { %31959 = vmatpush3.xpose.msk.msra.mxu0 %vm1728_vm3, %v3846_v11  ;;  %31960 = vmatprep.mubr.msk.f32.mxu0 %vm34958_vm2, %v34957_v29 }
 0x842   : > { %31968 = vmatprep.subr.mxu0 %v34957_v29 }
 0x844   : > { %31961 = vmatmul.mubr.msk.f32.vlgmr.msra.gmra.mrb[20].mxu0 %vm1728_vm3, %v3590_v19 }
 0x845   : > { %31969 = vmatpush3.xpose.msk.msra.mxu0 %vm1728_vm3, %v3910_v22  ;;  %31970 = vmatprep.mubr.msk.f32.mxu0 %vm34958_vm2, %v34957_v29 }
 0x846   : > { %31978 = vmatprep.subr.mxu0 %v34957_v29 }
 0x85f   : > { %v3654_v32 = vpop.trf.xlu0 }
 0x860   : > { %31971 = vmatmul.mubr.msk.f32.vlgmr.msra.gmra.mrb[22].mxu0 %vm1728_vm3, %v3654_v32 }
 0x861   : > { %31980 = vmatprep.mubr.msk.f32.mxu0 %vm34958_vm2, %v34957_v29 }
 0x886   : > { %v4294_v33 = vpop.f32.mrb[20].mxu1 }
 0x887   : > { %v35665_v34 = vmul.f32 0.35355338, %v4294_v33  ;;  %v31942_v35 = vpop.f32.mrb[21].mxu1 }
 0x889   : > { %v4838_v38 = vsel %vm1728_vm3, %v35665_v34, -inf }
 0x88a   : > { %4839 = vmax.xlane.f32.xlu0 %v4838_v38 }
 0x88e   : > { %v4370_v41 = vpop.f32.mrb[22].mxu1 }
 0x88f   : > { %v4831_v21 = vmul.f32 0.35355338, %v4370_v41  ;;  %v31947_v30 = vpop.f32.mrb[23].mxu1 }
 0x891   : > { %v4841_v42 = vsel %vm1728_vm3, %v4831_v21, -inf }
 0x892   : > { %4842 = vmax.xlane.f32.xlu1 %v4841_v42 }
 0x896   : > { %v4446_v43 = vpop.f32.mrb[24].mxu1 }
 0x897   : > { %v31952_v44 = vpop.f32.mrb[25].mxu1  ;;  %v4832_v32 = vmul.f32 0.35355338, %v4446_v43 }
 0x899   : > { %v4844_v35 = vsel %vm1728_vm3, %v4832_v32, -inf }
 0x8b5   : > { %v4522_v46 = vpop.f32.mrb[26].mxu1 }
 0x8b6   : > { %v4833_v48 = vmul.f32 0.35355338, %v4522_v46  ;;  %v31957_v50 = vpop.f32.mrb[27].mxu1 }
 0x8b8   : > { %v4847_v52 = vsel %vm1728_vm3, %v4833_v48, -inf }
 0x8b9   : > { %4848 = vmax.xlane.f32.xlu0 %v4847_v52  ;;  %v4674_v53 = vpop.f32.mrb[28].mxu1 }
 0x8ba   : > { %v4835_v54 = vmul.f32 0.35355338, %v4674_v53  ;;  %v31967_v55 = vpop.f32.mrb[29].mxu1 }
 0x8bc   : > { %v4853_v56 = vsel %vm1728_vm3, %v4835_v54, -inf }
 0x8bd   : > { %4854 = vmax.xlane.f32.xlu0 %v4853_v56  ;;  %v4826_v57 = vpop.f32.mrb[30].mxu1 }
 0x8be   : > { %v35672_v58 = vmul.f32 0.35355338, %v4826_v57  ;;  %v31977_v59 = vpop.f32.mrb[31].mxu1 }
 0x8c0   : > { %v4859_v60 = vsel %vm1728_vm3, %v35672_v58, -inf }
 0x8c1   : > { %4860 = vmax.xlane.f32.xlu0 %v4859_v60 }
 0x8ee   : > { %3414 = vxpose.xlu0.b32.start.end [1/1] (short) (narrow) %v35438_v51, 64 }
 0x913   : > { %v35677_v61 = vpop.f32.mrb[18].mxu0 }
 0x914   : > { %v31937_v49 = vpop.f32.mrb[19].mxu0 }
 0x917   : > { %v4598_v2 = vpop.f32.mrb[20].mxu0  ;;  %v4840_v10 = vpop.xlane.xlu0 %4839 }
 0x918   : > { %v31962_v1 = vpop.f32.mrb[21].mxu0  ;;  %v4834_v33 = vmul.f32 0.35355338, %v4598_v2  ;;  %v4862_v42 = vsub.f32 %v35665_v34, %v4840_v10 }
 0x91a   : > { %v4850_v41 = vsel %vm1728_vm3, %v4834_v33, -inf  ;;  %v4870_v44 = vmul.f32 1.442695, %v4862_v42 }
 0x91f   : > { %v4843_v4 = vpop.xlane.xlu1 %4842 }
 0x920   : > { %v4863_v5 = vsub.f32 %v4831_v21, %v4843_v4 }
 0x922   : > { %v4872_v7 = vmul.f32 1.442695, %v4863_v5 }
 0x924   : > { %34267 = vpow2.f32 %v4872_v7 }
 0x92e   : > { %v34268_v8 = vpop.eup %34267 }
 0x92f   : > { %v4889_v47 = vsel %vm1728_vm3, %v34268_v8, 0.0 }
 0x933   : > { %v4750_v9 = vpop.f32.mrb[22].mxu0 }
 0x934   : > { %v31972_v45 = vpop.f32.mrb[23].mxu0  ;;  %v4836_v38 = vmul.f32 0.35355338, %v4750_v9 }
 0x936   : > { %v4856_v21 = vsel %vm1728_vm3, %v4836_v38, -inf }
 0x937   : > { %4890 = vadd.xlane.f32.xlu0 %v4889_v47 }
 0x946   : > { %v4849_v11 = vpop.xlane.xlu0 %4848 }
 0x947   : > { %v4865_v12 = vsub.f32 %v4833_v48, %v4849_v11 }
 0x949   : > { %v4876_v13 = vmul.f32 1.442695, %v4865_v12 }
 0x94a   : > { %v4855_v51 = vpop.xlane.xlu0 %4854 }
 0x94b   : > { %34269 = vpow2.f32 %v4876_v13  ;;  %v4867_v14 = vsub.f32 %v4835_v54, %v4855_v51 }
 0x94d   : > { %v4880_v15 = vmul.f32 1.442695, %v4867_v14 }
 0x94e   : > { %v4861_v20 = vpop.xlane.xlu0 %4860 }
 0x94f   : > { %34271 = vpow2.f32 %v4880_v15  ;;  %v4869_v49 = vsub.f32 %v35672_v58, %v4861_v20 }
 0x950   : > { %34273 = vpow2.f32 %v4870_v44 }
 0x951   : > { %v4884_v4 = vmul.f32 1.442695, %v4869_v49 }
 0x955   : > { %v34270_v16 = vpop.eup %34269 }
 0x956   : > { %v4895_v17 = vsel %vm1728_vm3, %v34270_v16, 0.0 }
 0x957   : > { %4896 = vadd.xlane.f32.xlu0 %v4895_v17 }
 0x959   : > { %v35681_v18 = vpop.eup %34271 }
 0x95a   : > { %v4901_v19 = vsel %vm1728_vm3, %v35681_v18, 0.0  ;;  %v34274_v50 = vpop.eup %34273 }
 0x95b   : > { %4902 = vadd.xlane.f32.xlu0 %v4901_v19  ;;  %v4886_v54 = vsel %vm1728_vm3, %v34274_v50, 0.0 }
 0x96e   : > { %v3430_v22 = vpop.trf.xlu0 }
 0x96f   : > { %3958 = vxpose.xlu1.b32.start.end [1/1] (short) (narrow) %v3430_v22, 8 }
 0x972   : > { %v3431_v23 = vpop.trf.xlu0 }
 0x976   : > { %v3432_v24 = vpop.trf.xlu0 }
 0x977   : > { %4022 = vxpose.xlu1.b32.start.end [1/1] (short) (narrow) %v3432_v24, 8 }
 0x97a   : > { %v3433_v26 = vpop.trf.xlu0 }
 0x97b   : > { %4054 = vxpose.xlu1.b32.start.end [1/1] (short) (narrow) %v3433_v26, 8 }
 0x97e   : > { %v3434_v27 = vpop.trf.xlu0 }
 0x97f   : > { %4086 = vxpose.xlu1.b32.start.end [1/1] (short) (narrow) %v3434_v27, 8 }
 0x982   : > { %v3435_v28 = vpop.trf.xlu0 }
 0x986   : > { %v35685_v31 = vpop.trf.xlu0 }
 0x988   : > { %3990 = vxpose.xlu0.b32.start.end [1/1] (short) (narrow) %v3431_v23, 8 }
 0x98a   : > { %v3437_v25 = vpop.trf.xlu0 }
 0x98c   : > { %4182 = vxpose.xlu0.b32.start.end [1/1] (short) (narrow) %v3437_v25, 8 }
 0x9a6   : > { %4845 = vmax.xlane.f32.xlu1 %v4844_v35 }
 0x9aa   : > { %4851 = vmax.xlane.f32.xlu1 %v4850_v41 }
 0x9ae   : > { %4857 = vmax.xlane.f32.xlu1 %v4856_v21 }
 0x9c4   : > { %v4891_v43 = vpop.xlane.xlu0 %4890 }
 0x9c5   : > { %34275 = vrcp.f32 %v4891_v43 }
 0x9cf   : > { %v34276_v53 = vpop.eup %34275 }
 0x9d0   : > { %v4919_v55 = vmul.f32 %v34276_v53, %v34268_v8 }
 0x9e1   : > { %4118 = vxpose.xlu1.b32.start.end [1/1] (short) (narrow) %v3435_v28, 8 }
 0x9e4   : > { %v4897_v46 = vpop.xlane.xlu0 %4896 }
 0x9e5   : > { %34277 = vrcp.f32 %v4897_v46 }
 0x9e8   : > { %v4903_v52 = vpop.xlane.xlu0 %4902 }
 0x9ef   : > { %v3974_v30 = vpop.trf.xlu1  ;;  %v34278_v59 = vpop.eup %34277 }
 0x9f0   : > { %31979 = vmatpush3.msra.mxu0 %v3974_v30  ;;  %v4921_v34 = vmul.f32 %v34278_v59, %v34270_v16 }
 0x9f1   : > { %31988 = vmatprep.subr.mxu0 %v34957_v29 }
 0x9f7   : > { %v35692_v48 = vpop.trf.xlu1 }
 0x9fb   : > { %v4070_v57 = vpop.trf.xlu1 }
 0x9ff   : > { %v4102_v60 = vpop.trf.xlu1 }
 0xa08   : > { %v4006_v56 = vpop.trf.xlu0  ;;  %4887 = vadd.xlane.f32.xlu1 %v4886_v54 }
 0xa09   : > { %31984 = vmatpush3.msra.mxu1 %v4006_v56 }
 0xa0a   : > { %31986 = vmatmul.mubr.msk.f32.vlgmr.msra.gmra.mrb[32].mxu1 %vm1728_vm3, %v4919_v55  ;;  %31993 = vmatprep.subr.mxu1 %v34957_v29 }
 0xa0b   : > { %31994 = vmatpush3.msra.mxu1 %v4070_v57  ;;  %31995 = vmatprep.mubr.msk.f32.mxu1 %vm34958_vm2, %v34957_v29 }
 0xa0c   : > { %32003 = vmatprep.subr.mxu1 %v34957_v29  ;;  %v4198_v22 = vpop.trf.xlu0 }
 0xa0e   : > { %31996 = vmatmul.mubr.msk.f32.vlgmr.msra.gmra.mrb[34].mxu1 %vm1728_vm3, %v4921_v34  ;;  %v35741_v34 = vld [vmem:[#allocation7] sm:$0xff] }
 0xa0f   : > { %32005 = vmatprep.mubr.msk.f32.mxu1 %vm34958_vm2, %v34957_v29 }
 0xa33   : > { %v4846_v2 = vpop.xlane.xlu1 %4845 }
 0xa34   : > { %v4864_v1 = vsub.f32 %v4832_v32, %v4846_v2 }
 0xa36   : > { %v4874_v5 = vmul.f32 1.442695, %v4864_v1 }
 0xa37   : > { %v4852_v7 = vpop.xlane.xlu1 %4851 }
 0xa38   : > { %34279 = vpow2.f32 %v4874_v5  ;;  %v4866_v8 = vsub.f32 %v4834_v33, %v4852_v7 }
 0xa39   : > { %34281 = vpow2.f32 %v4884_v4 }
 0xa3a   : > { %v4878_v9 = vmul.f32 1.442695, %v4866_v8 }
 0xa3b   : > { %v4858_v45 = vpop.xlane.xlu1 %4857 }
 0xa3c   : > { %v4868_v47 = vsub.f32 %v4836_v38, %v4858_v45  ;;  %34283 = vpow2.f32 %v4878_v9 }
 0xa3e   : > { %v4882_v10 = vmul.f32 1.442695, %v4868_v47 }
 0xa40   : > { %34285 = vpow2.f32 %v4882_v10 }
 0xa41   : > { %34287 = vrcp.f32 %v4903_v52 }
 0xa42   : > { %v34280_v11 = vpop.eup %34279 }
 0xa43   : > { %v4892_v12 = vsel %vm1728_vm3, %v34280_v11, 0.0  ;;  %v34282_v13 = vpop.eup %34281 }
 0xa44   : > { %4893 = vadd.xlane.f32.xlu1 %v4892_v12  ;;  %v4907_v58 = vsel %vm1728_vm3, %v34282_v13, 0.0 }
 0xa46   : > { %v34284_v51 = vpop.eup %34283 }
 0xa47   : > { %v4898_v14 = vsel %vm1728_vm3, %v34284_v51, 0.0 }
 0xa48   : > { %4908 = vadd.xlane.f32.xlu1 %v4907_v58 }
 0xa4a   : > { %v34286_v15 = vpop.eup %34285 }
 0xa4b   : > { %v4904_v16 = vsel %vm1728_vm3, %v34286_v15, 0.0  ;;  %v34288_v17 = vpop.eup %34287 }
 0xa4c   : > { %4899 = vadd.xlane.f32.xlu1 %v4898_v14  ;;  %v4923_v19 = vmul.f32 %v34288_v17, %v35681_v18  ;;  %v35751_v17 = vsub.s32 4, %v35424_v39 }
 0xa50   : > { %4905 = vadd.xlane.f32.xlu1 %v4904_v16 }
 0xa61   : > { %v4134_v20 = vpop.trf.xlu1 }
 0xa62   : > { %32004 = vmatpush3.msra.mxu1 %v4134_v20  ;;  %v35758_v20 = vrot.slane %v35741_v34, %v35751_v17 }
 0xa63   : > { %32006 = vmatmul.mubr.msk.f32.vlgmr.msra.gmra.mrb[36].mxu1 %vm1728_vm3, %v4923_v19  ;;  %32013 = vmatprep.subr.mxu1 %v34957_v29  ;;  %v35754_v19 = vsub.s32 5, %v35424_v39 }
 0xa64   : > { %32014 = vmatpush3.msra.mxu1 %v4198_v22  ;;  %32015 = vmatprep.mubr.msk.f32.mxu1 %vm34958_vm2, %v34957_v29 }
 0xa83   : > { %4150 = vxpose.xlu1.b32.start.end [1/1] (short) (narrow) %v35685_v31, 8 }
 0xa95   : > { %v4888_v23 = vpop.xlane.xlu1 %4887 }
 0xa96   : > { %34289 = vrcp.f32 %v4888_v23 }
 0xaa0   : > { %v34290_v24 = vpop.eup %34289 }
 0xaa1   : > { %v4918_v26 = vmul.f32 %v34290_v24, %v34274_v50  ;;  %v35762_v24 = vrot.slane %v35741_v34, %v35754_v19 }
 0xaa3   : > { %31981 = vmatmul.mubr.msk.f32.vlgmr.msra.gmra.mrb[24].mxu0 %vm1728_vm3, %v4918_v26 }
 0xaa4   : > { %31989 = vmatpush3.msra.mxu0 %v35692_v48  ;;  %31990 = vmatprep.mubr.msk.f32.mxu0 %vm34958_vm2, %v34957_v29 }
 0xaa5   : > { %31998 = vmatprep.subr.mxu0 %v34957_v29 }
 0xad1   : > { %v4894_v18 = vpop.xlane.xlu1 %4893 }
 0xad2   : > { %34291 = vrcp.f32 %v4894_v18 }
 0xad5   : > { %v4909_v27 = vpop.xlane.xlu1 %4908 }
 0xad6   : > { %34293 = vrcp.f32 %v4909_v27 }
 0xad9   : > { %v4900_v28 = vpop.xlane.xlu1 %4899 }
 0xada   : > { %34295 = vrcp.f32 %v4900_v28 }
 0xadc   : > { %v34292_v31 = vpop.eup %34291 }
 0xadd   : > { %v5068_v25 = vpop.f32.mrb[32].mxu1  ;;  %v4920_v32 = vmul.f32 %v34292_v31, %v34280_v11  ;;  %v4906_v44 = vpop.xlane.xlu1 %4905 }
 0xade   : > { %5542 = vxpose.xlu0.b32.start.end [1/1] (short) (narrow) %v5068_v25, 8  ;;  %v31987_v33 = vpop.f32.mrb[33].mxu1  ;;  %34297 = vrcp.f32 %v4906_v44  ;;  %v5914_v44 = vld [vmem:[%s38324_s13 + $0x10] sm:$0xff] }
 0xadf   : > { %31991 = vmatmul.mubr.msk.f32.vlgmr.msra.gmra.mrb[26].mxu0 %vm1728_vm3, %v4920_v32 }
 0xae0   : > { %v34294_v35 = vpop.eup %34293  ;;  %31999 = vmatpush3.msra.mxu0 %v4102_v60  ;;  %32000 = vmatprep.mubr.msk.f32.mxu0 %vm34958_vm2, %v34957_v29 }
 0xae1   : > { %v5214_v38 = vpop.f32.mrb[34].mxu1  ;;  %v4925_v41 = vmul.f32 %v34294_v35, %v34282_v13  ;;  %32008 = vmatprep.subr.mxu0 %v34957_v29 }
 0xae2   : > { %5606 = vxpose.xlu0.b32.start.end [1/1] (short) (narrow) %v5214_v38, 8  ;;  %v31997_v21 = vpop.f32.mrb[35].mxu1 }
 0xae3   : > { %32016 = vmatmul.mubr.msk.f32.vlgmr.msra.gmra.mrb[38].mxu1 %vm1728_vm3, %v4925_v41 }
 0xae4   : > { %v34296_v30 = vpop.eup %34295 }
 0xae5   : > { %v4922_v42 = vmul.f32 %v34296_v30, %v34284_v51  ;;  %v5912_v30 = vld [vmem:[%s38324_s13] sm:$0xff] }
 0xae7   : > { %32001 = vmatmul.mubr.msk.f32.vlgmr.msra.gmra.mrb[28].mxu0 %vm1728_vm3, %v4922_v42 }
 0xae8   : > { %32010 = vmatprep.mubr.msk.f32.mxu0 %vm34958_vm2, %v34957_v29  ;;  %v34298_v43 = vpop.eup %34297 }
 0xae9   : > { %v4924_v48 = vmul.f32 %v34298_v43, %v34286_v15  ;;  %v5915_v43 = vld [vmem:[%s38324_s13 + $0x18] sm:$0xff] }
 0xb03   : > { %v4166_v46 = vpop.trf.xlu1 }
 0xb04   : > { %32009 = vmatpush3.msra.mxu0 %v4166_v46  ;;  %v33589_v46 = vpack.c.bf16 %v5915_v43, %v5914_v44 }
 0xb05   : > { %32011 = vmatmul.mubr.msk.f32.vlgmr.msra.gmra.mrb[30].mxu0 %vm1728_vm3, %v4924_v48  ;;  %33573 = vmatprep.subr.bf16.mxu0 %v34959_v62  ;;  %v5916_v48 = vld [vmem:[%s38324_s13 + $0x20] sm:$0xff] }
 0xb06   : > { %33575 = vmatpush3.bf16.msra.mxu0 %v35590_v63  ;;  %32034 = vmatprep.mubr.msk.f32.mxu0 %vm34958_vm2, %v34957_v29 }
 0xb07   : > { %33576 = vmatprep.subr.bf16.mxu0 %v34959_v62 }
 0xb0a   : > { %33578 = vmatpush3.bf16.msra.mxu0 %v35596_v0 }
 0xb0b   : > { %33579 = vmatprep.subr.bf16.mxu0 %v34959_v62 }
 0xb0e   : > { %33581 = vmatpush3.bf16.msra.mxu0 %v35606_v3  ;;  %v35739_v3 = vsub.s32 1, %v35424_v39 }
 0xb0f   : > { %33582 = vmatprep.subr.bf16.mxu0 %v34959_v62 }
 0xb12   : > { %33584 = vmatpush3.bf16.msra.mxu0 %v35616_v6  ;;  %v3308_v6 = vrot.slane %v35741_v34, %v35739_v3 }
 0xb14   : > { %v3379_v2 = vadd.f32 %v35677_v61, %v3308_v6 }
 0xb16   : > { %v5871_v1 = vadd.f32 %v3379_v2, %v35415_v36 }
 0xb18   : > { %v5873_v4 = vsel %vm804_vm1, %v5871_v1, 0.0 }
 0xb36   : > { %v5360_v50 = vpop.f32.mrb[36].mxu1 }
 0xb37   : > { %5670 = vxpose.xlu0.b32.start.end [1/1] (short) (narrow) %v5360_v50, 8  ;;  %v32007_v52 = vpop.f32.mrb[37].mxu1  ;;  %v5917_v50 = vld [vmem:[%s38324_s13 + $0x28] sm:$0xff] }
 0xb38   : > { %v33593_v52 = vpack.c.bf16 %v5917_v50, %v5916_v48 }
 0xb5e   : > { %v5558_v7 = vpop.trf.xlu0 }
 0xb62   : > { %v5622_v9 = vpop.trf.xlu0 }
 0xb76   : > { %v4995_v53 = vpop.f32.mrb[24].mxu0 }
 0xb77   : > { %5510 = vxpose.xlu1.b32.start.end [1/1] (short) (narrow) %v4995_v53, 8  ;;  %v31982_v63 = vpop.f32.mrb[25].mxu0  ;;  %v5918_v53 = vld [vmem:[%s38324_s13 + $0x30] sm:$0xff] }
 0xb78   : > { %v5919_v63 = vld [vmem:[%s38324_s13 + $0x38] sm:$0xff] }
 0xbb2   : > { %v5141_v54 = vpop.f32.mrb[26].mxu0 }
 0xbb3   : > { %5574 = vxpose.xlu1.b32.start.end [1/1] (short) (narrow) %v5141_v54, 8  ;;  %v31992_v55 = vpop.f32.mrb[27].mxu0  ;;  %v33597_v54 = vpack.c.bf16 %v5919_v63, %v5918_v53 }
 0xbb4   : > { %v6007_v55 = vld [vmem:[%s38325_s23] sm:$0xff] }
 0xbb6   : > { %v5506_v56 = vpop.f32.mrb[38].mxu1 }
 0xbb7   : > { %5734 = vxpose.xlu0.b32.start.end [1/1] (short) (narrow) %v5506_v56, 8  ;;  %v32017_v0 = vpop.f32.mrb[39].mxu1  ;;  %v5686_v47 = vpop.trf.xlu0  ;;  %v6008_v56 = vld [vmem:[%s38325_s23 + $0x8] sm:$0xff] }
 0xbb8   : > { %v6009_v0 = vld [vmem:[%s38325_s23 + $0x10] sm:$0xff] }
 0xbba   : > { %v5287_v57 = vpop.f32.mrb[28].mxu0 }
 0xbbb   : > { %5638 = vxpose.xlu1.b32.start.end [1/1] (short) (narrow) %v5287_v57, 8  ;;  %v32002_v59 = vpop.f32.mrb[29].mxu0  ;;  %v33601_v57 = vpack.c.bf16 %v6008_v56, %v6007_v55  ;;  %v30625_v56 = vld [vmem:[%s38320_s6 + $0x80] sm:$0xff] }
 0xbbc   : > { %v6010_v59 = vld [vmem:[%s38325_s23 + $0x18] sm:$0xff] }
 0xbbd   : > { %33602 = vmatprep.subr.bf16.mxu0 %v33601_v57 }
 0xbd8   : > { %v5433_v60 = vpop.f32.mrb[30].mxu0 }
 0xbd9   : > { %5702 = vxpose.xlu1.b32.start.end [1/1] (short) (narrow) %v5433_v60, 8  ;;  %v32012_v49 = vpop.f32.mrb[31].mxu0  ;;  %v6011_v60 = vld [vmem:[%s38325_s23 + $0x20] sm:$0xff] }
 0xbda   : > { %v6012_v49 = vld [vmem:[%s38325_s23 + $0x28] sm:$0xff] }
 0xbdb   : > { %v33609_v2 = vpack.c.bf16 %v6012_v49, %v6011_v60  ;;  %v30629_v49 = vld [vmem:[%s38320_s6 + $0xa0] sm:$0xff] }
 0xbe4   : > { %5874 = vadd.xlane.f32.xlu0 %v5873_v4  ;;  %v6014_v4 = vld [vmem:[%s38325_s23 + $0x38] sm:$0xff] }
 0xbf7   : > { %v5526_v5 = vpop.trf.xlu1 }
 0xbf8   : > { %5766 = vxpose.xlu1.b32.start [1/8] (short) (narrow) %v5526_v5, 8 }
 0xbfc   : > { %5767 = vxpose.xlu1.b32.cont [2/8] (short) (narrow) %v5558_v7, 8  ;;  %v6015_v7 = vld [vmem:[%s38325_s23 + $0x40] sm:$0xff] }
 0xc33   : > { %v5590_v8 = vpop.trf.xlu1 }
 0xc34   : > { %5768 = vxpose.xlu1.b32.cont [3/8] (short) (narrow) %v5590_v8, 8  ;;  %v6016_v8 = vld [vmem:[%s38325_s23 + $0x48] sm:$0xff] }
 0xc37   : > { %v5750_v61 = vpop.trf.xlu0 }
 0xc38   : > { %5769 = vxpose.xlu1.b32.cont [4/8] (short) (narrow) %v5622_v9, 8  ;;  %v33617_v9 = vpack.c.bf16 %v6016_v8, %v6015_v7  ;;  %v30633_v8 = vld [vmem:[%s38320_s6 + $0xc0] sm:$0xff] }
 0xc3b   : > { %v5654_v45 = vpop.trf.xlu1 }
 0xc3c   : > { %5770 = vxpose.xlu1.b32.cont [5/8] (short) (narrow) %v5654_v45, 8  ;;  %v6017_v45 = vld [vmem:[%s38325_s23 + $0x50] sm:$0xff] }
 0xc40   : > { %5771 = vxpose.xlu1.b32.cont [6/8] (short) (narrow) %v5686_v47, 8  ;;  %v6018_v47 = vld [vmem:[%s38325_s23 + $0x58] sm:$0xff] }
 0xc59   : > { %v5718_v10 = vpop.trf.xlu1 }
 0xc5a   : > { %5772 = vxpose.xlu1.b32.cont [7/8] (short) (narrow) %v5718_v10, 8  ;;  %v33621_v10 = vpack.c.bf16 %v6018_v47, %v6017_v45  ;;  %v30638_v47 = vld [vmem:[%s38320_s6 + $0xe8] sm:$0xff] }
 0xc5e   : > { %5773 = vxpose.xlu1.b32.end [8/8] (short) (narrow) %v5750_v61, 8  ;;  %v6019_v61 = vld [vmem:[%s38325_s23 + $0x60] sm:$0xff] }
 0xc71   : > { %v5875_v36 = vpop.xlane.xlu0 %5874 }
 0xc72   : > { %v5880_v11 = vmul.f32 0.015625, %v5875_v36  ;;  %v6020_v36 = vld [vmem:[%s38325_s23 + $0x68] sm:$0xff] }
 0xc74   : > { %v5882_v12 = vsub.f32 %v5871_v1, %v5880_v11  ;;  %v6013_v1 = vld [vmem:[%s38325_s23 + $0x30] sm:$0xff]  ;;  %v33625_v11 = vpack.c.bf16 %v6020_v36, %v6019_v61  ;;  %v30637_v61 = vld [vmem:[%s38320_s6 + $0xe0] sm:$0xff] }
 0xc75   : > { %v33613_v5 = vpack.c.bf16 %v6014_v4, %v6013_v1  ;;  %v30634_v4 = vld [vmem:[%s38320_s6 + $0xc8] sm:$0xff] }
 0xc76   : > { %v5884_v13 = vmul.f32 %v5882_v12, %v5882_v12 }
 0xc78   : > { %v5886_v58 = vsel %vm804_vm1, %v5884_v13, 0.0 }
 0xc79   : > { %5887 = vadd.xlane.f32.xlu0 %v5886_v58 }
 0xcc2   : > { %v5782_v51 = vpop.trf.xlu1 }
 0xcc3   : > { %32035 = vmatmul.mubr.msk.f32.vlgmr.msra.gmra.mrb[32].mxu0 %vm804_vm1, %v5782_v51 }
 0xcc4   : > { %33604 = vmatpush3.bf16.msra.mxu0 %v33601_v57 }
 0xd06   : > { %v5888_v14 = vpop.xlane.xlu0 %5887 }
 0xd07   : > { %v5892_v15 = vmul.f32 0.015625, %v5888_v14 }
 0xd09   : > { %v5894_v16 = vadd.f32 1e-05, %v5892_v15 }
 0xd0b   : > { %34299 = vrsqrt.f32 %v5894_v16 }
 0xd15   : > { %v34300_v22 = vpop.eup %34299 }
 0xd16   : > { %v5898_v23 = vmul.f32 %v34300_v22, %v5882_v12  ;;  %v6021_v22 = vld [vmem:[%s38325_s23 + $0x70] sm:$0xff] }
 0xd18   : > { %v5904_v26 = vmul.f32 %v35758_v20, %v5898_v23  ;;  %v6022_v23 = vld [vmem:[%s38325_s23 + $0x78] sm:$0xff] }
 0xd1a   : > { %v35766_v18 = vadd.f32 %v35762_v24, %v5904_v26  ;;  %v33629_v26 = vpack.c.bf16 %v6022_v23, %v6021_v22  ;;  %v35921_v23 = vsub.s32 6, %v35424_v39 }
 0xd1c   : > { %32053 = vmatprep.mubr.msk.f32.mxu1 %vm804_vm1, %v35766_v18 }
 0xd96   : > { %v5867_v27 = vpop.f32.mrb[32].mxu0 }
 0xd97   : > { %v5868_v28 = vadd.f32 %v5867_v27, %v3308_v6  ;;  %v32036_v31 = vpop.f32.mrb[33].mxu0  ;;  %v33605_v6 = vpack.c.bf16 %v6010_v59, %v6009_v0  ;;  %v30627_v0 = vld [vmem:[%s38320_s6 + $0x90] sm:$0xff]  ;;  %v30630_v59 = vld [vmem:[%s38320_s6 + $0xa8] sm:$0xff] }
 0xd98   : > { %v33635_v57 = vpack.c.bf16 %v30627_v0, %v30625_v56 }
 0xd99   : > { %v5872_v25 = vadd.f32 %v5868_v28, %v35420_v37  ;;  %v5913_v37 = vld [vmem:[%s38324_s13 + $0x8] sm:$0xff]  ;;  %33606 = vmatprep.subr.bf16.mxu0 %v33605_v6 }
 0xd9a   : > { %v33585_v42 = vpack.c.bf16 %v5913_v37, %v5912_v30  ;;  %33608 = vmatpush3.bf16.msra.mxu0 %v33605_v6  ;;  %v30632_v6 = vld [vmem:[%s38320_s6 + $0xb8] sm:$0xff] }
 0xd9b   : > { %v5876_v32 = vsel %vm804_vm1, %v5872_v25, 0.0  ;;  %33610 = vmatprep.subr.bf16.mxu0 %v33609_v2  ;;  %v33637_v60 = vpack.c.bf16 %v30632_v6, %v30630_v59 }
 0xd9c   : > { %5877 = vadd.xlane.f32.xlu1 %v5876_v32  ;;  %33586 = vmatprep.subr.bf16.mxu1 %v33585_v42 }
 0xd9d   : > { %33588 = vmatpush3.bf16.msra.mxu1 %v33585_v42 }
 0xd9e   : > { %33590 = vmatprep.subr.bf16.mxu1 %v33589_v46  ;;  %33612 = vmatpush3.bf16.msra.mxu0 %v33609_v2  ;;  %v30631_v2 = vld [vmem:[%s38320_s6 + $0xb0] sm:$0xff] }
 0xd9f   : > { %33614 = vmatprep.subr.bf16.mxu0 %v33613_v5  ;;  %v33639_v1 = vpack.c.bf16 %v30631_v2, %v30629_v49 }
 0xda1   : > { %33592 = vmatpush3.bf16.msra.mxu1 %v33589_v46 }
 0xda2   : > { %33594 = vmatprep.subr.bf16.mxu1 %v33593_v52  ;;  %33616 = vmatpush3.bf16.msra.mxu0 %v33613_v5  ;;  %v30636_v5 = vld [vmem:[%s38320_s6 + $0xd8] sm:$0xff] }
 0xda3   : > { %33618 = vmatprep.subr.bf16.mxu0 %v33617_v9  ;;  %v33641_v7 = vpack.c.bf16 %v30636_v5, %v30634_v4 }
 0xda5   : > { %33596 = vmatpush3.bf16.msra.mxu1 %v33593_v52 }
 0xda6   : > { %33598 = vmatprep.subr.bf16.mxu1 %v33597_v54  ;;  %33620 = vmatpush3.bf16.msra.mxu0 %v33617_v9  ;;  %v30635_v9 = vld [vmem:[%s38320_s6 + $0xd0] sm:$0xff] }
 0xda7   : > { %33622 = vmatprep.subr.bf16.mxu0 %v33621_v10  ;;  %v33643_v45 = vpack.c.bf16 %v30635_v9, %v30633_v8 }
 0xda9   : > { %33600 = vmatpush3.bf16.msra.mxu1 %v33597_v54  ;;  %v30626_v54 = vld [vmem:[%s38320_s6 + $0x88] sm:$0xff] }
 0xdaa   : > { %33624 = vmatpush3.bf16.msra.mxu0 %v33621_v10  ;;  %v30640_v10 = vld [vmem:[%s38320_s6 + $0xf8] sm:$0xff] }
 0xdab   : > { %33626 = vmatprep.subr.bf16.mxu0 %v33625_v11  ;;  %v33645_v36 = vpack.c.bf16 %v30640_v10, %v30638_v47 }
 0xdae   : > { %33628 = vmatpush3.bf16.msra.mxu0 %v33625_v11  ;;  %v30639_v11 = vld [vmem:[%s38320_s6 + $0xf0] sm:$0xff] }
 0xdaf   : > { %33630 = vmatprep.subr.bf16.mxu0 %v33629_v26 }
 0xdb2   : > { %33632 = vmatpush3.bf16.msra.mxu0 %v33629_v26 }
 0xdb3   : > { %32106 = vmatprep.subr.mxu0 %v34957_v29 }
 0xe29   : > { %v5878_v33 = vpop.xlane.xlu1 %5877 }
 0xe2a   : > { %v5881_v35 = vmul.f32 0.015625, %v5878_v33 }
 0xe2c   : > { %v35772_v38 = vsub.f32 %v5872_v25, %v5881_v35  ;;  %v35863_v35 = vsub.s32 3, %v35424_v39 }
 0xe2e   : > { %v5885_v41 = vmul.f32 %v35772_v38, %v35772_v38 }
 0xe30   : > { %v5889_v21 = vsel %vm804_vm1, %v5885_v41, 0.0 }
 0xe31   : > { %5890 = vadd.xlane.f32.xlu0 %v5889_v21 }
 0xebe   : > { %v5891_v12 = vpop.xlane.xlu0 %5890 }
 0xebf   : > { %v5893_v13 = vmul.f32 0.015625, %v5891_v12  ;;  %v33647_v12 = vpack.c.bf16 %v30639_v11, %v30637_v61 }
 0xec1   : > { %v5895_v58 = vadd.f32 1e-05, %v5893_v13 }
 0xec3   : > { %34301 = vrsqrt.f32 %v5895_v58 }
 0xecd   : > { %v34302_v51 = vpop.eup %34301 }
 0xece   : > { %v5899_v14 = vmul.f32 %v34302_v51, %v35772_v38  ;;  %v6026_v38 = vrot.slane %v35741_v34, %v35863_v35 }
 0xed0   : > { %v5905_v15 = vmul.f32 %v35758_v20, %v5899_v14  ;;  %v35856_v20 = vsub.s32 2, %v35424_v39 }
 0xed2   : > { %v5911_v16 = vadd.f32 %v35762_v24, %v5905_v15  ;;  %v5923_v24 = vrot.slane %v35741_v34, %v35856_v20 }
 0xed4   : > { %32054 = vmatmul.mubr.msk.f32.vlgmr.msra.gmra.mrb[40].mxu1 %vm804_vm1, %v5911_v16 }
 0xed5   : > { %6240 = vmatprep.mubr.f32.mxu1 %v34957_v29 }
 0xfa7   : > { %v32055_v27 = vpop.f32.mrb[40].mxu1 }
 0xfa8   : > { %v6002_v28 = vadd.f32 %v32055_v27, %v5923_v24  ;;  %v5996_v31 = vpop.f32.mrb[41].mxu1  ;;  %v6133_v27 = vrot.slane %v35741_v34, %v35921_v23 }
 0xfa9   : > { %v5997_v25 = vadd.f32 %v5996_v31, %v5923_v24  ;;  %v35925_v24 = vsub.s32 7, %v35424_v39 }
 0xfaa   : > { %v6006_v33 = vmax.f32 %v6002_v28, 0.0 }
 0xfab   : > { %v6005_v32 = vmax.f32 %v5997_v25, 0.0  ;;  %v6139_v25 = vrot.slane %v35741_v34, %v35925_v24  ;;  %v6143_v34 = vld [vmem:[#allocation7 + $0x10] sm:$0xff] }
 0xfad   : > { %32088 = vmatprep.mubr.f32.mxu0 %v6005_v32 }
 0xfae   : > { %32089 = vmatmul.mubr.f32.vlgmr.msra.gmra.mrb[34].mxu0 %v6006_v33 }
 0xfaf   : > { %32108 = vmatprep.mubr.msk.f32.mxu0 %vm34958_vm2, %v34957_v29 }
0x1081   : > { %v32090_v41 = vpop.f32.mrb[34].mxu0 }
0x1082   : > { %v6099_v21 = vadd.f32 %v32090_v41, %v6026_v38  ;;  %v6093_v30 = vpop.f32.mrb[35].mxu0 }
0x1083   : > { %v6094_v37 = vadd.f32 %v6093_v30, %v6026_v38 }
0x1084   : > { %v6103_v52 = vadd.f32 %v6099_v21, %v5911_v16 }
0x1085   : > { %v6102_v42 = vadd.f32 %v6094_v37, %v35766_v18  ;;  %v30628_v18 = vld [vmem:[%s38320_s6 + $0x98] sm:$0xff] }
0x1086   : > { %v6107_v63 = vsel %vm804_vm1, %v6103_v52, 0.0  ;;  %v33633_v55 = vpack.c.bf16 %v30628_v18, %v30626_v54 }
0x1087   : > { %v6104_v44 = vsel %vm804_vm1, %v6102_v42, 0.0 }
0x1088   : > { %6105 = vadd.xlane.f32.xlu0 %v6104_v44  ;;  %33634 = vmatprep.subr.bf16.mxu1 %v33633_v55  ;;  %v35943_v44 = vrot.slane %v6143_v34, %v35427_v40 }
0x1089   : > { %33636 = vmatpush1.bf16.msra.mxu1 %v33635_v57 }
0x108a   : > { %33638 = vmatprep.subr.bf16.mxu1 %v33637_v60 }
0x108d   : > { %33640 = vmatpush1.bf16.msra.mxu1 %v33639_v1 }
0x108e   : > { %33642 = vmatprep.subr.bf16.mxu1 %v33641_v7 }
0x1091   : > { %33644 = vmatpush1.bf16.msra.mxu1 %v33643_v45 }
0x1092   : > { %33646 = vmatprep.subr.bf16.mxu1 %v33645_v36 }
0x1095   : > { %33648 = vmatpush1.bf16.msra.mxu1 %v33647_v12 }
0x1096   : > { %32091 = vmatprep.subr.mxu1 %v34957_v29 }
0x1115   : > { %v6106_v43 = vpop.xlane.xlu0 %6105 }
0x1116   : > { %v6110_v46 = vmul.f32 0.015625, %v6106_v43 }
0x1118   : > { %v6112_v48 = vsub.f32 %v6102_v42, %v6110_v46 }
0x111a   : > { %v6114_v50 = vmul.f32 %v6112_v48, %v6112_v48 }
0x111c   : > { %v6116_v53 = vsel %vm804_vm1, %v6114_v50, 0.0 }
0x111d   : > { %6117 = vadd.xlane.f32.xlu0 %v6116_v53 }
0x1121   : > { %6108 = vadd.xlane.f32.xlu0 %v6107_v63 }
0x11aa   : > { %v6118_v13 = vpop.xlane.xlu0 %6117 }
0x11ab   : > { %v6122_v58 = vmul.f32 0.015625, %v6118_v13 }
0x11ad   : > { %v6124_v51 = vadd.f32 1e-05, %v6122_v58 }
0x11ae   : > { %v6109_v14 = vpop.xlane.xlu0 %6108 }
0x11af   : > { %34303 = vrsqrt.f32 %v6124_v51  ;;  %v6111_v15 = vmul.f32 0.015625, %v6109_v14 }
0x11b1   : > { %v6113_v16 = vsub.f32 %v6103_v52, %v6111_v15 }
0x11b3   : > { %v6115_v22 = vmul.f32 %v6113_v16, %v6113_v16 }
0x11b5   : > { %v6119_v26 = vsel %vm804_vm1, %v6115_v22, 0.0 }
0x11b6   : > { %6120 = vadd.xlane.f32.xlu0 %v6119_v26 }
0x11b9   : > { %v34304_v28 = vpop.eup %34303 }
0x11ba   : > { %v6128_v31 = vmul.f32 %v34304_v28, %v6112_v48 }
0x11bc   : > { %v6134_v32 = vmul.f32 %v6133_v27, %v6128_v31 }
0x11be   : > { %v35931_v33 = vadd.f32 %v6139_v25, %v6134_v32 }
0x11c0   : > { %30641 = vmatmul.mubr.msk.f32.vlgmr.msra.gmra.mrb[42].mxu1 %vm804_vm1, %v35931_v33 }
0x11c1   : > { %6246 = vmatprep.mubr.f32.mxu1 %v34957_v29 }
0x1243   : > { %v6121_v38 = vpop.xlane.xlu0 %6120 }
0x1244   : > { %v6123_v41 = vmul.f32 0.015625, %v6121_v38 }
0x1246   : > { %v6125_v39 = vadd.f32 1e-05, %v6123_v41 }
0x1248   : > { %34305 = vrsqrt.f32 %v6125_v39 }
0x1252   : > { %v34306_v21 = vpop.eup %34305 }
0x1253   : > { %v6129_v30 = vmul.f32 %v34306_v21, %v6113_v16 }
0x1255   : > { %v6135_v37 = vmul.f32 %v6133_v27, %v6129_v30 }
0x1257   : > { %v35936_v42 = vadd.f32 %v6139_v25, %v6135_v37 }
0x1259   : > { %30642 = vmatmul.mubr.msk.f32.gmra.mrb[44].mxu1 %vm804_vm1, %v35936_v42 }
0x125a   : > { %32093 = vmatprep.mubr.msk.f32.mxu1 %vm34958_vm2, %v34957_v29 }
0x1293   : > { %v6242_v43 = vpop.f32.mrb[42].mxu1 }
0x1294   : > { %v6243_v46 = vadd.f32 %v6242_v43, %v35943_v44  ;;  %v35946_v48 = vpop.f32.mrb[43].mxu1 }
0x1296   : > { %6253 = vxpose.xlu0.b32.start.end [1/1] (short) %v6243_v46, 128 }
0x1316   : > { %v6269_v50 = vpop.trf.xlu0 }
0x1317   : > { %6317 = vxpose.xlu0.b32.start.end [1/1] (short) (narrow) %v6269_v50, 8 }
0x131a   : > { %v6270_v52 = vpop.trf.xlu0 }
0x131b   : > { %6349 = vxpose.xlu1.b32.start.end [1/1] (short) (narrow) %v6270_v52, 8 }
0x131e   : > { %v6271_v53 = vpop.trf.xlu0 }
0x131f   : > { %6381 = vxpose.xlu1.b32.start.end [1/1] (short) (narrow) %v6271_v53, 8 }
0x1322   : > { %v6272_v63 = vpop.trf.xlu0 }
0x1323   : > { %6413 = vxpose.xlu1.b32.start.end [1/1] (short) (narrow) %v6272_v63, 8 }
0x1326   : > { %v6273_v54 = vpop.trf.xlu0 }
0x1327   : > { %6445 = vxpose.xlu1.b32.start.end [1/1] (short) (narrow) %v6273_v54, 8 }
0x132a   : > { %v6274_v18 = vpop.trf.xlu0 }
0x132b   : > { %6477 = vxpose.xlu1.b32.start.end [1/1] (short) (narrow) %v6274_v18, 8 }
0x132c   : > { %v35948_v55 = vpop.f32.mrb[44].mxu1 }
0x132d   : > { %v35950_v56 = vpop.f32.mrb[45].mxu1 }
0x132e   : > { %v6275_v0 = vpop.trf.xlu0 }
0x132f   : > { %6509 = vxpose.xlu1.b32.start.end [1/1] (short) (narrow) %v6275_v0, 8 }
0x1332   : > { %v6276_v57 = vpop.trf.xlu0 }
0x1336   : > { %v6277_v59 = vpop.trf.xlu0 }
0x1337   : > { %6573 = vxpose.xlu1.b32.start.end [1/1] (short) (narrow) %v6277_v59, 8 }
0x133a   : > { %v6278_v6 = vpop.trf.xlu0 }
0x133b   : > { %6605 = vxpose.xlu1.b32.start.end [1/1] (short) (narrow) %v6278_v6, 8 }
0x133e   : > { %v6279_v60 = vpop.trf.xlu0 }
0x133f   : > { %6637 = vxpose.xlu1.b32.start.end [1/1] (short) (narrow) %v6279_v60, 8 }
0x1342   : > { %v6280_v49 = vpop.trf.xlu0 }
0x1343   : > { %6669 = vxpose.xlu1.b32.start.end [1/1] (short) (narrow) %v6280_v49, 8 }
0x1346   : > { %v6281_v2 = vpop.trf.xlu0 }
0x1347   : > { %6701 = vxpose.xlu1.b32.start.end [1/1] (short) (narrow) %v6281_v2, 8 }
0x134a   : > { %v6282_v1 = vpop.trf.xlu0 }
0x134b   : > { %6733 = vxpose.xlu1.b32.start.end [1/1] (short) (narrow) %v6282_v1, 8 }
0x134e   : > { %v6283_v4 = vpop.trf.xlu0 }
0x134f   : > { %6765 = vxpose.xlu1.b32.start.end [1/1] (short) (narrow) %v6283_v4, 8 }
0x1352   : > { %v6284_v5 = vpop.trf.xlu0 }
0x1353   : > { %6797 = vxpose.xlu1.b32.start.end [1/1] (short) (narrow) %v6284_v5, 8 }
0x1357   : > { %6541 = vxpose.xlu1.b32.start.end [1/1] (short) (narrow) %v6276_v57, 8 }
0x1397   : > { %v6333_v36 = vpop.trf.xlu0 }
0x139b   : > { %v6365_v7 = vpop.trf.xlu1 }
0x139f   : > { %v6397_v8 = vpop.trf.xlu1 }
0x13a3   : > { %v6429_v9 = vpop.trf.xlu1 }
0x13a7   : > { %v6461_v45 = vpop.trf.xlu1 }
0x13ab   : > { %v6493_v47 = vpop.trf.xlu1 }
0x13af   : > { %v6525_v10 = vpop.trf.xlu1 }
0x13b7   : > { %v6589_v61 = vpop.trf.xlu1 }
0x13b8   : > { %32092 = vmatpush3.xpose.msk.msra.mxu1 %vm1728_vm3, %v6589_v61 }
0x13b9   : > { %32096 = vmatprep.subr.mxu1 %v34957_v29 }
0x13bb   : > { %v6621_v11 = vpop.trf.xlu1  ;;  %32094 = vmatmul.mubr.msk.f32.vlgmr.msra.gmra.mrb[46].mxu1 %vm1728_vm3, %v6333_v36 }
0x13bc   : > { %32097 = vmatpush3.xpose.msk.msra.mxu1 %vm1728_vm3, %v6621_v11  ;;  %32098 = vmatprep.mubr.msk.f32.mxu1 %vm34958_vm2, %v34957_v29 }
0x13bd   : > { %32101 = vmatprep.subr.mxu1 %v34957_v29 }
0x13bf   : > { %v6653_v12 = vpop.trf.xlu1  ;;  %32099 = vmatmul.mubr.msk.f32.vlgmr.msra.gmra.mrb[48].mxu1 %vm1728_vm3, %v6365_v7  ;;  %v6144_v7 = vld [vmem:[#allocation7 + $0x18] sm:$0xff] }
0x13c0   : > { %32102 = vmatpush3.xpose.msk.msra.mxu1 %vm1728_vm3, %v6653_v12  ;;  %32103 = vmatprep.mubr.msk.f32.mxu1 %vm34958_vm2, %v34957_v29 }
0x13c1   : > { %32111 = vmatprep.subr.mxu1 %v34957_v29 }
0x13c3   : > { %v6685_v13 = vpop.trf.xlu1  ;;  %32104 = vmatmul.mubr.msk.f32.vlgmr.msra.gmra.mrb[50].mxu1 %vm1728_vm3, %v6397_v8  ;;  %v36010_v8 = vrot.slane %v6144_v7, %v35427_v40 }
0x13c4   : > { %32107 = vmatpush3.xpose.msk.msra.mxu0 %vm1728_vm3, %v6685_v13  ;;  %32113 = vmatprep.mubr.msk.f32.mxu1 %vm34958_vm2, %v34957_v29 }
0x13c5   : > { %32116 = vmatprep.subr.mxu0 %v34957_v29 }
0x13c7   : > { %32109 = vmatmul.mubr.msk.f32.vlgmr.msra.gmra.mrb[36].mxu0 %vm1728_vm3, %v6429_v9  ;;  %v6717_v58 = vpop.trf.xlu1  ;;  %v6245_v9 = vadd.f32 %v35946_v48, %v36010_v8 }
0x13c8   : > { %32112 = vmatpush3.xpose.msk.msra.mxu1 %vm1728_vm3, %v6717_v58  ;;  %32118 = vmatprep.mubr.msk.f32.mxu0 %vm34958_vm2, %v34957_v29 }
0x13c9   : > { %32121 = vmatprep.subr.mxu1 %v34957_v29 }
0x13cb   : > { %v6749_v51 = vpop.trf.xlu1  ;;  %32114 = vmatmul.mubr.msk.f32.vlgmr.msra.gmra.mrb[52].mxu1 %vm1728_vm3, %v6461_v45 }
0x13cc   : > { %32117 = vmatpush3.xpose.msk.msra.mxu0 %vm1728_vm3, %v6749_v51  ;;  %32123 = vmatprep.mubr.msk.f32.mxu1 %vm34958_vm2, %v34957_v29 }
0x13cd   : > { %32126 = vmatprep.subr.mxu0 %v34957_v29 }
0x13cf   : > { %32119 = vmatmul.mubr.msk.f32.vlgmr.msra.gmra.mrb[38].mxu0 %vm1728_vm3, %v6493_v47  ;;  %v6781_v14 = vpop.trf.xlu1 }
0x13d0   : > { %32122 = vmatpush3.xpose.msk.msra.mxu1 %vm1728_vm3, %v6781_v14  ;;  %32128 = vmatprep.mubr.msk.f32.mxu0 %vm34958_vm2, %v34957_v29 }
0x13d1   : > { %32131 = vmatprep.subr.mxu1 %v34957_v29 }
0x13d3   : > { %v6813_v15 = vpop.trf.xlu1  ;;  %32124 = vmatmul.mubr.msk.f32.vlgmr.msra.gmra.mrb[54].mxu1 %vm1728_vm3, %v6525_v10 }
0x13d4   : > { %32127 = vmatpush3.xpose.msk.msra.mxu0 %vm1728_vm3, %v6813_v15  ;;  %32133 = vmatprep.mubr.msk.f32.mxu1 %vm34958_vm2, %v34957_v29 }
0x13d5   : > { %32136 = vmatprep.subr.mxu0 %v34957_v29 }
0x13d7   : > { %v6557_v16 = vpop.trf.xlu1 }
0x13d8   : > { %32129 = vmatmul.mubr.msk.f32.vlgmr.msra.gmra.mrb[40].mxu0 %vm1728_vm3, %v6557_v16 }
0x13d9   : > { %32138 = vmatprep.mubr.msk.f32.mxu0 %vm34958_vm2, %v34957_v29 }
0x148e   : > { %v7166_v22 = vpop.f32.mrb[46].mxu1 }
0x148f   : > { %v35992_v26 = vmul.f32 0.35355338, %v7166_v22  ;;  %v32095_v27 = vpop.f32.mrb[47].mxu1 }
0x1491   : > { %v7710_v28 = vsel %vm1728_vm3, %v35992_v26, -inf }
0x1492   : > { %7711 = vmax.xlane.f32.xlu0 %v7710_v28  ;;  %v7242_v31 = vpop.f32.mrb[48].mxu1 }
0x1493   : > { %v7703_v25 = vmul.f32 0.35355338, %v7242_v31  ;;  %v32100_v32 = vpop.f32.mrb[49].mxu1 }
0x1495   : > { %v7713_v38 = vsel %vm1728_vm3, %v7703_v25, -inf }
0x1496   : > { %7714 = vmax.xlane.f32.xlu1 %v7713_v38  ;;  %v7318_v41 = vpop.f32.mrb[50].mxu1 }
0x1497   : > { %v35997_v39 = vmul.f32 0.35355338, %v7318_v41  ;;  %v32105_v21 = vpop.f32.mrb[51].mxu1 }
0x1499   : > { %v7716_v30 = vsel %vm1728_vm3, %v35997_v39, -inf }
0x149a   : > { %v7394_v37 = vpop.f32.mrb[36].mxu0  ;;  %7717 = vmax.xlane.f32.xlu1 %v7716_v30 }
0x149b   : > { %v7705_v34 = vmul.f32 0.35355338, %v7394_v37  ;;  %v32110_v43 = vpop.f32.mrb[37].mxu0 }
0x149d   : > { %v7719_v46 = vsel %vm1728_vm3, %v7705_v34, -inf }
0x149e   : > { %7720 = vmax.xlane.f32.xlu1 %v7719_v46  ;;  %v7470_v50 = vpop.f32.mrb[52].mxu1 }
0x149f   : > { %v36002_v52 = vmul.f32 0.35355338, %v7470_v50  ;;  %v32115_v53 = vpop.f32.mrb[53].mxu1 }
0x14a1   : > { %v7722_v63 = vsel %vm1728_vm3, %v36002_v52, -inf }
0x14a2   : > { %v7546_v54 = vpop.f32.mrb[38].mxu0  ;;  %7723 = vmax.xlane.f32.xlu0 %v7722_v63 }
0x14a3   : > { %v7707_v18 = vmul.f32 0.35355338, %v7546_v54  ;;  %v32120_v0 = vpop.f32.mrb[39].mxu0 }
0x14a5   : > { %v7725_v57 = vsel %vm1728_vm3, %v7707_v18, -inf }
0x14a6   : > { %7726 = vmax.xlane.f32.xlu1 %v7725_v57  ;;  %v7622_v59 = vpop.f32.mrb[54].mxu1 }
0x14a7   : > { %v7708_v6 = vmul.f32 0.35355338, %v7622_v59  ;;  %v32125_v60 = vpop.f32.mrb[55].mxu1 }
0x14a9   : > { %v7728_v49 = vsel %vm1728_vm3, %v7708_v6, -inf }
0x14aa   : > { %7729 = vmax.xlane.f32.xlu0 %v7728_v49 }
0x14ab   : > { %v7698_v2 = vpop.f32.mrb[40].mxu0 }
0x14ac   : > { %v7709_v1 = vmul.f32 0.35355338, %v7698_v2  ;;  %v32130_v4 = vpop.f32.mrb[41].mxu0 }
0x14ae   : > { %v7731_v5 = vsel %vm1728_vm3, %v7709_v1, -inf }
0x14af   : > { %7732 = vmax.xlane.f32.xlu1 %v7731_v5 }
0x14e2   : > { %6285 = vxpose.xlu1.b32.start.end [1/1] (short) (narrow) %v6245_v9, 64 }
0x151f   : > { %v7712_v30 = vpop.xlane.xlu0 %7711 }
0x1520   : > { %v7734_v37 = vsub.f32 %v35992_v26, %v7712_v30 }
0x1523   : > { %v7715_v45 = vpop.xlane.xlu1 %7714 }
0x1524   : > { %v7735_v47 = vsub.f32 %v7703_v25, %v7715_v45 }
0x1526   : > { %v7744_v10 = vmul.f32 1.442695, %v7735_v47 }
0x1527   : > { %v7718_v61 = vpop.xlane.xlu1 %7717 }
0x1528   : > { %34307 = vpow2.f32 %v7744_v10  ;;  %v7736_v43 = vsub.f32 %v35997_v39, %v7718_v61 }
0x152a   : > { %v7746_v50 = vmul.f32 1.442695, %v7736_v43 }
0x152b   : > { %v7721_v36 = vpop.xlane.xlu1 %7720 }
0x152c   : > { %v7737_v11 = vsub.f32 %v7705_v34, %v7721_v36  ;;  %v7742_v34 = vmul.f32 1.442695, %v7734_v37  ;;  %v6249_v36 = vadd.f32 %v35948_v55, %v35943_v44 }
0x152e   : > { %v7748_v12 = vmul.f32 1.442695, %v7737_v11 }
0x152f   : > { %v7724_v46 = vpop.xlane.xlu0 %7723 }
0x1530   : > { %34309 = vpow2.f32 %v7748_v12  ;;  %v7738_v53 = vsub.f32 %v36002_v52, %v7724_v46 }
0x1532   : > { %v36014_v13 = vpop.eup %34307  ;;  %v7750_v54 = vmul.f32 1.442695, %v7738_v53 }
0x1533   : > { %v7727_v58 = vpop.xlane.xlu1 %7726  ;;  %v7761_v51 = vsel %vm1728_vm3, %v36014_v13, 0.0 }
0x1534   : > { %v7739_v14 = vsub.f32 %v7707_v18, %v7727_v58  ;;  %7762 = vadd.xlane.f32.xlu1 %v7761_v51 }
0x1536   : > { %v7752_v15 = vmul.f32 1.442695, %v7739_v14 }
0x1537   : > { %v7730_v63 = vpop.xlane.xlu0 %7729 }
0x1538   : > { %34311 = vpow2.f32 %v7752_v15  ;;  %v7740_v18 = vsub.f32 %v7708_v6, %v7730_v63 }
0x1539   : > { %34313 = vpow2.f32 %v7742_v34 }
0x153a   : > { %v36018_v48 = vpop.eup %34309  ;;  %34315 = vpow2.f32 %v7746_v50  ;;  %v7754_v0 = vmul.f32 1.442695, %v7740_v18 }
0x153b   : > { %v7767_v16 = vsel %vm1728_vm3, %v36018_v48, 0.0  ;;  %34317 = vpow2.f32 %v7750_v54 }
0x153c   : > { %7768 = vadd.xlane.f32.xlu1 %v7767_v16  ;;  %v7733_v28 = vpop.xlane.xlu1 %7732  ;;  %34319 = vpow2.f32 %v7754_v0 }
0x153d   : > { %v7741_v57 = vsub.f32 %v7709_v1, %v7733_v28 }
0x153f   : > { %v7756_v60 = vmul.f32 1.442695, %v7741_v57 }
0x1541   : > { %34321 = vpow2.f32 %v7756_v60 }
0x1542   : > { %v36022_v22 = vpop.eup %34311 }
0x1543   : > { %v7773_v27 = vsel %vm1728_vm3, %v36022_v22, 0.0  ;;  %v34314_v59 = vpop.eup %34313 }
0x1544   : > { %7774 = vadd.xlane.f32.xlu1 %v7773_v27  ;;  %v7758_v26 = vsel %vm1728_vm3, %v34314_v59, 0.0  ;;  %v36030_v49 = vpop.eup %34315 }
0x1545   : > { %v7764_v39 = vsel %vm1728_vm3, %v36030_v49, 0.0  ;;  %v36034_v52 = vpop.eup %34317 }
0x1546   : > { %v7770_v6 = vsel %vm1728_vm3, %v36034_v52, 0.0  ;;  %v36038_v2 = vpop.eup %34319 }
0x1547   : > { %v7776_v1 = vsel %vm1728_vm3, %v36038_v2, 0.0 }
0x154b   : > { %v36042_v4 = vpop.eup %34321 }
0x154c   : > { %v7779_v5 = vsel %vm1728_vm3, %v36042_v4, 0.0 }
0x1562   : > { %v6301_v31 = vpop.trf.xlu1 }
0x1563   : > { %6829 = vxpose.xlu0.b32.start.end [1/1] (short) (narrow) %v6301_v31, 8 }
0x1566   : > { %v6302_v25 = vpop.trf.xlu1 }
0x1567   : > { %6861 = vxpose.xlu0.b32.start.end [1/1] (short) (narrow) %v6302_v25, 8 }
0x156a   : > { %v6303_v32 = vpop.trf.xlu1 }
0x156e   : > { %v6304_v38 = vpop.trf.xlu1 }
0x156f   : > { %6925 = vxpose.xlu0.b32.start.end [1/1] (short) (narrow) %v6304_v38, 8 }
0x1572   : > { %v6305_v41 = vpop.trf.xlu1 }
0x1573   : > { %6957 = vxpose.xlu0.b32.start.end [1/1] (short) (narrow) %v6305_v41, 8 }
0x1576   : > { %v6306_v21 = vpop.trf.xlu1 }
0x1577   : > { %6893 = vxpose.xlu1.b32.start.end [1/1] (short) (narrow) %v6303_v32, 8  ;;  %6989 = vxpose.xlu0.b32.start.end [1/1] (short) (narrow) %v6306_v21, 8 }
0x157a   : > { %v6307_v7 = vpop.trf.xlu1 }
0x157e   : > { %v6308_v9 = vpop.trf.xlu1 }
0x15a4   : > { %7759 = vadd.xlane.f32.xlu0 %v7758_v26 }
0x15a8   : > { %7765 = vadd.xlane.f32.xlu0 %v7764_v39 }
0x15ac   : > { %7771 = vadd.xlane.f32.xlu0 %v7770_v6 }
0x15b0   : > { %7777 = vadd.xlane.f32.xlu0 %v7776_v1 }
0x15b4   : > { %7780 = vadd.xlane.f32.xlu0 %v7779_v5 }
0x15c1   : > { %v7763_v45 = vpop.xlane.xlu1 %7762 }
0x15c2   : > { %34323 = vrcp.f32 %v7763_v45 }
0x15c9   : > { %v7769_v47 = vpop.xlane.xlu1 %7768 }
0x15ca   : > { %34325 = vrcp.f32 %v7769_v47 }
0x15cc   : > { %v34324_v61 = vpop.eup %34323 }
0x15cd   : > { %v7791_v58 = vmul.f32 %v34324_v61, %v36014_v13 }
0x15d1   : > { %v7775_v11 = vpop.xlane.xlu1 %7774 }
0x15d2   : > { %34327 = vrcp.f32 %v7775_v11 }
0x15d4   : > { %v34326_v51 = vpop.eup %34325 }
0x15d5   : > { %v7793_v15 = vmul.f32 %v34326_v51, %v36018_v48 }
0x15dc   : > { %v34328_v55 = vpop.eup %34327 }
0x15dd   : > { %v7795_v16 = vmul.f32 %v34328_v55, %v36022_v22 }
0x15e1   : > { %7021 = vxpose.xlu0.b32.start.end [1/1] (short) (narrow) %v6307_v7, 8 }
0x15e3   : > { %v6845_v10 = vpop.trf.xlu0 }
0x15e4   : > { %32132 = vmatpush3.msra.mxu1 %v6845_v10 }
0x15e5   : > { %7053 = vxpose.xlu0.b32.start.end [1/1] (short) (narrow) %v6308_v9, 8  ;;  %32141 = vmatprep.subr.mxu1 %v34957_v29 }
0x15e7   : > { %v6877_v12 = vpop.trf.xlu0 }
0x15e8   : > { %32137 = vmatpush3.msra.mxu0 %v6877_v12 }
0x15e9   : > { %8747 = vxpose.xlu0.b32.start.end [1/1] (short) %v6249_v36, 128  ;;  %32139 = vmatmul.mubr.msk.f32.vlgmr.msra.gmra.mrb[42].mxu0 %vm1728_vm3, %v7791_v58 }
0x15ea   : > { %32146 = vmatprep.subr.mxu0 %v34957_v29  ;;  %32148 = vmatprep.mubr.msk.f32.mxu0 %vm34958_vm2, %v34957_v29 }
0x15ef   : > { %v6941_v14 = vpop.trf.xlu0 }
0x15f0   : > { %32147 = vmatpush3.msra.mxu0 %v6941_v14 }
0x15f1   : > { %32149 = vmatmul.mubr.msk.f32.vlgmr.msra.gmra.mrb[44].mxu0 %vm1728_vm3, %v7793_v15  ;;  %32156 = vmatprep.subr.mxu0 %v34957_v29 }
0x15f2   : > { %32158 = vmatprep.mubr.msk.f32.mxu0 %vm34958_vm2, %v34957_v29 }
0x15f3   : > { %v6973_v44 = vpop.trf.xlu0 }
0x15f7   : > { %v7005_v13 = vpop.trf.xlu0  ;;  %v6909_v32 = vpop.trf.xlu1 }
0x15f8   : > { %32157 = vmatpush3.msra.mxu0 %v7005_v13 }
0x15f9   : > { %32159 = vmatmul.mubr.msk.f32.vlgmr.msra.gmra.mrb[46].mxu0 %vm1728_vm3, %v7795_v16  ;;  %32166 = vmatprep.subr.mxu0 %v34957_v29 }
0x15fa   : > { %32168 = vmatprep.mubr.msk.f32.mxu0 %vm34958_vm2, %v34957_v29 }
0x1631   : > { %v7760_v48 = vpop.xlane.xlu0 %7759 }
0x1632   : > { %34329 = vrcp.f32 %v7760_v48 }
0x1635   : > { %v7766_v27 = vpop.xlane.xlu0 %7765 }
0x1636   : > { %34331 = vrcp.f32 %v7766_v27 }
0x1639   : > { %v7772_v28 = vpop.xlane.xlu0 %7771 }
0x163a   : > { %34333 = vrcp.f32 %v7772_v28 }
0x163c   : > { %v34330_v31 = vpop.eup %34329 }
0x163d   : > { %v7790_v25 = vmul.f32 %v34330_v31, %v34314_v59  ;;  %v7778_v30 = vpop.xlane.xlu0 %7777 }
0x163e   : > { %34335 = vrcp.f32 %v7778_v30  ;;  %v30646_v30 = vld [vmem:[%s38323_s7 + $0x58] sm:$0xff] }
0x163f   : > { %32134 = vmatmul.mubr.msk.f32.vlgmr.msra.gmra.mrb[56].mxu1 %vm1728_vm3, %v7790_v25 }
0x1640   : > { %v34332_v22 = vpop.eup %34331  ;;  %32142 = vmatpush3.msra.mxu1 %v6909_v32  ;;  %32143 = vmatprep.mubr.msk.f32.mxu1 %vm34958_vm2, %v34957_v29 }
0x1641   : > { %32151 = vmatprep.subr.mxu1 %v34957_v29  ;;  %v7792_v38 = vmul.f32 %v34332_v22, %v36030_v49  ;;  %v7781_v37 = vpop.xlane.xlu0 %7780  ;;  %v30643_v22 = vld [vmem:[%s38323_s7 + $0x40] sm:$0xff] }
0x1642   : > { %34337 = vrcp.f32 %v7781_v37 }
0x1643   : > { %32144 = vmatmul.mubr.msk.f32.vlgmr.msra.gmra.mrb[58].mxu1 %vm1728_vm3, %v7792_v38  ;;  %v30644_v38 = vld [vmem:[%s38323_s7 + $0x48] sm:$0xff] }
0x1644   : > { %v34334_v41 = vpop.eup %34333  ;;  %32152 = vmatpush3.msra.mxu1 %v6973_v44  ;;  %32153 = vmatprep.mubr.msk.f32.mxu1 %vm34958_vm2, %v34957_v29 }
0x1645   : > { %v7794_v21 = vmul.f32 %v34334_v41, %v36034_v52  ;;  %32161 = vmatprep.subr.mxu1 %v34957_v29  ;;  %v30645_v41 = vld [vmem:[%s38323_s7 + $0x50] sm:$0xff] }
0x1646   : > { %v36119_v37 = vpack.c.bf16 %v30646_v30, %v30645_v41 }
0x1647   : > { %32154 = vmatmul.mubr.msk.f32.vlgmr.msra.gmra.mrb[60].mxu1 %vm1728_vm3, %v7794_v21  ;;  %v36113_v21 = vpack.c.bf16 %v30644_v38, %v30643_v22 }
0x1648   : > { %32163 = vmatprep.mubr.msk.f32.mxu1 %vm34958_vm2, %v34957_v29  ;;  %v34336_v34 = vpop.eup %34335 }
0x1649   : > { %v7796_v46 = vmul.f32 %v34336_v34, %v36038_v2  ;;  %v30647_v34 = vld [vmem:[%s38323_s7 + $0x60] sm:$0xff] }
0x164c   : > { %v34338_v50 = vpop.eup %34337 }
0x164d   : > { %v7797_v63 = vmul.f32 %v34338_v50, %v36042_v4  ;;  %v30649_v50 = vld [vmem:[%s38323_s7 + $0x70] sm:$0xff] }
0x1661   : > { %v7037_v43 = vpop.trf.xlu0 }
0x1662   : > { %32162 = vmatpush3.msra.mxu1 %v7037_v43  ;;  %v30648_v43 = vld [vmem:[%s38323_s7 + $0x68] sm:$0xff] }
0x1663   : > { %32164 = vmatmul.mubr.msk.f32.vlgmr.msra.gmra.mrb[62].mxu1 %vm1728_vm3, %v7796_v46  ;;  %33649 = vmatprep.subr.bf16.mxu1 %v34959_v62  ;;  %v36129_v46 = vpack.c.bf16 %v30648_v43, %v30647_v34 }
0x1664   : > { %32187 = vmatprep.mubr.msk.f32.mxu1 %vm34958_vm2, %v34957_v29  ;;  %33651 = vmatpush3.bf16.msra.mxu1 %v36113_v21 }
0x1665   : > { %v7069_v53 = vpop.trf.xlu0  ;;  %33652 = vmatprep.subr.bf16.mxu1 %v34959_v62 }
0x1666   : > { %32167 = vmatpush3.msra.mxu0 %v7069_v53  ;;  %v30650_v53 = vld [vmem:[%s38323_s7 + $0x78] sm:$0xff] }
0x1667   : > { %32169 = vmatmul.mubr.msk.f32.vlgmr.msra.gmra.mrb[48].mxu0 %vm1728_vm3, %v7797_v63  ;;  %32190 = vmatprep.subr.mxu0 %v34957_v29  ;;  %v36139_v63 = vpack.c.bf16 %v30650_v53, %v30649_v50  ;;  %v6251_v53 = vadd.f32 %v35950_v56, %v36010_v8 }
0x1668   : > { %32192 = vmatprep.mubr.msk.f32.mxu0 %vm34958_vm2, %v34957_v29  ;;  %33654 = vmatpush3.bf16.msra.mxu1 %v36119_v37 }
0x1669   : > { %v8763_v54 = vpop.trf.xlu0  ;;  %33655 = vmatprep.subr.bf16.mxu1 %v34959_v62 }
0x166c   : > { %33657 = vmatpush3.bf16.msra.mxu1 %v36129_v46 }
0x166d   : > { %v8764_v18 = vpop.trf.xlu0  ;;  %33658 = vmatprep.subr.bf16.mxu1 %v34959_v62 }
0x1670   : > { %33660 = vmatpush3.bf16.msra.mxu1 %v36139_v63 }
0x1671   : > { %v8765_v0 = vpop.trf.xlu0  ;;  %32210 = vmatprep.subr.mxu1 %v34957_v29 }
0x1675   : > { %v8766_v57 = vpop.trf.xlu0 }
0x1679   : > { %v8767_v59 = vpop.trf.xlu0 }
0x167d   : > { %v8768_v60 = vpop.trf.xlu0 }
0x1681   : > { %v8769_v26 = vpop.trf.xlu0 }
0x1685   : > { %v36087_v49 = vpop.trf.xlu0 }
0x1689   : > { %v8771_v39 = vpop.trf.xlu0 }
0x168a   : > { %9067 = vxpose.xlu1.b32.start.end [1/1] (short) (narrow) %v8771_v39, 8 }
0x168d   : > { %v8772_v52 = vpop.trf.xlu0 }
0x168e   : > { %8811 = vxpose.xlu1.b32.start.end [1/1] (short) (narrow) %v8763_v54, 8 }
0x1691   : > { %v8773_v6 = vpop.trf.xlu0 }
0x1692   : > { %9099 = vxpose.xlu1.b32.start.end [1/1] (short) (narrow) %v8772_v52, 8 }
0x1695   : > { %v8774_v10 = vpop.trf.xlu0 }
0x1696   : > { %8843 = vxpose.xlu1.b32.start.end [1/1] (short) (narrow) %v8764_v18, 8 }
0x1699   : > { %v8775_v12 = vpop.trf.xlu0 }
0x169a   : > { %9131 = vxpose.xlu1.b32.start.end [1/1] (short) (narrow) %v8773_v6, 8 }
0x169d   : > { %v8776_v13 = vpop.trf.xlu0 }
0x169e   : > { %8875 = vxpose.xlu1.b32.start.end [1/1] (short) (narrow) %v8765_v0, 8 }
0x16a1   : > { %v8777_v48 = vpop.trf.xlu0 }
0x16a5   : > { %v8778_v27 = vpop.trf.xlu0 }
0x16bc   : > { %v7940_v2 = vpop.f32.mrb[42].mxu0 }
0x16bd   : > { %v32140_v1 = vpop.f32.mrb[43].mxu0  ;;  %8414 = vxpose.xlu1.b32.start.end [1/1] (short) (narrow) %v7940_v2, 8 }
0x16c4   : > { %v8086_v4 = vpop.f32.mrb[44].mxu0 }
0x16c5   : > { %v32150_v5 = vpop.f32.mrb[45].mxu0 }
0x16cc   : > { %v8232_v7 = vpop.f32.mrb[46].mxu0 }
0x16cd   : > { %v32160_v9 = vpop.f32.mrb[47].mxu0 }
0x170a   : > { %v9083_v45 = vpop.trf.xlu1 }
0x170b   : > { %32191 = vmatpush3.xpose.msk.msra.mxu0 %vm1728_vm3, %v9083_v45 }
0x170c   : > { %32195 = vmatprep.subr.mxu0 %v34957_v29 }
0x170e   : > { %v8827_v47 = vpop.trf.xlu1 }
0x170f   : > { %32193 = vmatmul.mubr.msk.f32.vlgmr.msra.gmra.mrb[50].mxu0 %vm1728_vm3, %v8827_v47 }
0x1710   : > { %32197 = vmatprep.mubr.msk.f32.mxu0 %vm34958_vm2, %v34957_v29 }
0x1712   : > { %v9115_v61 = vpop.trf.xlu1  ;;  %v7867_v36 = vpop.f32.mrb[56].mxu1 }
0x1713   : > { %8382 = vxpose.xlu0.b32.start.end [1/1] (short) (narrow) %v7867_v36, 8  ;;  %v32135_v11 = vpop.f32.mrb[57].mxu1  ;;  %32196 = vmatpush3.xpose.msk.msra.mxu0 %vm1728_vm3, %v9115_v61 }
0x1714   : > { %32200 = vmatprep.subr.mxu0 %v34957_v29 }
0x1716   : > { %v8859_v58 = vpop.trf.xlu1  ;;  %v8013_v51 = vpop.f32.mrb[58].mxu1 }
0x1717   : > { %32198 = vmatmul.mubr.msk.f32.vlgmr.msra.gmra.mrb[52].mxu0 %vm1728_vm3, %v8859_v58  ;;  %9195 = vxpose.xlu0.b32.start.end [1/1] (short) (narrow) %v8775_v12, 8  ;;  %v32145_v14 = vpop.f32.mrb[59].mxu1 }
0x1718   : > { %8446 = vxpose.xlu1.b32.start.end [1/1] (short) (narrow) %v8013_v51, 8  ;;  %32202 = vmatprep.mubr.msk.f32.mxu0 %vm34958_vm2, %v34957_v29 }
0x171a   : > { %v9147_v15 = vpop.trf.xlu1  ;;  %v8159_v44 = vpop.f32.mrb[60].mxu1 }
0x171b   : > { %8907 = vxpose.xlu0.b32.start.end [1/1] (short) (narrow) %v8766_v57, 8  ;;  %v32155_v55 = vpop.f32.mrb[61].mxu1  ;;  %32201 = vmatpush3.xpose.msk.msra.mxu0 %vm1728_vm3, %v9147_v15 }
0x171c   : > { %8478 = vxpose.xlu1.b32.start.end [1/1] (short) (narrow) %v8086_v4, 8  ;;  %32205 = vmatprep.subr.mxu0 %v34957_v29 }
0x171e   : > { %v8891_v16 = vpop.trf.xlu1 }
0x171f   : > { %32203 = vmatmul.mubr.msk.f32.vlgmr.msra.gmra.mrb[54].mxu0 %vm1728_vm3, %v8891_v16  ;;  %9227 = vxpose.xlu0.b32.start.end [1/1] (short) (narrow) %v8776_v13, 8 }
0x1720   : > { %8510 = vxpose.xlu1.b32.start.end [1/1] (short) (narrow) %v8159_v44, 8  ;;  %32207 = vmatprep.mubr.msk.f32.mxu0 %vm34958_vm2, %v34957_v29 }
0x1723   : > { %8939 = vxpose.xlu0.b32.start.end [1/1] (short) (narrow) %v8767_v59, 8 }
0x1724   : > { %8542 = vxpose.xlu1.b32.start.end [1/1] (short) (narrow) %v8232_v7, 8 }
0x1727   : > { %9259 = vxpose.xlu0.b32.start.end [1/1] (short) (narrow) %v8777_v48, 8 }
0x172b   : > { %8971 = vxpose.xlu0.b32.start.end [1/1] (short) (narrow) %v8768_v60, 8 }
0x172f   : > { %9291 = vxpose.xlu0.b32.start.end [1/1] (short) (narrow) %v8778_v27, 8 }
0x1733   : > { %9003 = vxpose.xlu0.b32.start.end [1/1] (short) (narrow) %v8769_v26, 8 }
0x1736   : > { %v8305_v28 = vpop.f32.mrb[62].mxu1 }
0x1737   : > { %8574 = vxpose.xlu1.b32.start.end [1/1] (short) (narrow) %v8305_v28, 8  ;;  %v32165_v31 = vpop.f32.mrb[63].mxu1 }
0x173a   : > { %v8378_v25 = vpop.f32.mrb[48].mxu0 }
0x173b   : > { %v32170_v32 = vpop.f32.mrb[49].mxu0  ;;  %8606 = vxpose.xlu1.b32.start.end [1/1] (short) (narrow) %v8378_v25, 8 }
0x173d   : > { %v8430_v54 = vpop.trf.xlu1 }
0x173f   : > { %9163 = vxpose.xlu1.b32.start.end [1/1] (short) (narrow) %v8774_v10, 8 }
0x1793   : > { %v8398_v18 = vpop.trf.xlu0 }
0x1794   : > { %8638 = vxpose.xlu1.b32.start [1/8] (short) (narrow) %v8398_v18, 8 }
0x1797   : > { %v9211_v60 = vpop.trf.xlu0 }
0x1798   : > { %8639 = vxpose.xlu1.b32.cont [2/8] (short) (narrow) %v8430_v54, 8  ;;  %v8462_v0 = vpop.trf.xlu1 }
0x179b   : > { %v8923_v39 = vpop.trf.xlu0 }
0x179c   : > { %8640 = vxpose.xlu1.b32.cont [3/8] (short) (narrow) %v8462_v0, 8  ;;  %v8494_v57 = vpop.trf.xlu1 }
0x179f   : > { %v9243_v52 = vpop.trf.xlu0 }
0x17a0   : > { %8641 = vxpose.xlu1.b32.cont [4/8] (short) (narrow) %v8494_v57, 8  ;;  %v8526_v59 = vpop.trf.xlu1 }
0x17a3   : > { %v8955_v6 = vpop.trf.xlu0 }
0x17a4   : > { %8642 = vxpose.xlu1.b32.cont [5/8] (short) (narrow) %v8526_v59, 8  ;;  %v8558_v26 = vpop.trf.xlu1 }
0x17a7   : > { %v9275_v4 = vpop.trf.xlu0 }
0x17a8   : > { %8643 = vxpose.xlu1.b32.cont [6/8] (short) (narrow) %v8558_v26, 8 }
0x17ab   : > { %v8987_v7 = vpop.trf.xlu0 }
0x17af   : > { %v9307_v9 = vpop.trf.xlu0 }
0x17b3   : > { %v9019_v25 = vpop.trf.xlu0 }
0x17b7   : > { %v8590_v2 = vpop.trf.xlu1 }
0x17b8   : > { %8644 = vxpose.xlu1.b32.cont [7/8] (short) (narrow) %v8590_v2, 8 }
0x17bb   : > { %v8622_v1 = vpop.trf.xlu1 }
0x17bc   : > { %8645 = vxpose.xlu1.b32.end [8/8] (short) (narrow) %v8622_v1, 8 }
0x17bf   : > { %v9179_v5 = vpop.trf.xlu1 }
0x17c0   : > { %9035 = vxpose.xlu1.b32.start.end [1/1] (short) (narrow) %v36087_v49, 8  ;;  %32206 = vmatpush3.xpose.msk.msra.mxu0 %vm1728_vm3, %v9179_v5 }
0x17c1   : > { %32215 = vmatprep.subr.mxu0 %v34957_v29 }
0x17c3   : > { %32208 = vmatmul.mubr.msk.f32.vlgmr.msra.gmra.mrb[56].mxu0 %vm1728_vm3, %v8923_v39 }
0x17c4   : > { %32216 = vmatpush3.xpose.msk.msra.mxu0 %vm1728_vm3, %v9243_v52  ;;  %32217 = vmatprep.mubr.msk.f32.mxu0 %vm34958_vm2, %v34957_v29 }
0x17c5   : > { %32225 = vmatprep.subr.mxu0 %v34957_v29 }
0x17c7   : > { %32218 = vmatmul.mubr.msk.f32.vlgmr.msra.gmra.mrb[58].mxu0 %vm1728_vm3, %v8987_v7 }
0x17c8   : > { %32226 = vmatpush3.xpose.msk.msra.mxu0 %vm1728_vm3, %v9307_v9  ;;  %32227 = vmatprep.mubr.msk.f32.mxu0 %vm34958_vm2, %v34957_v29 }
0x17c9   : > { %32235 = vmatprep.subr.mxu0 %v34957_v29 }
0x17e2   : > { %v36157_v49 = vpop.f32.mrb[50].mxu0 }
0x17e3   : > { %v32194_v45 = vpop.f32.mrb[51].mxu0 }
0x17ea   : > { %v9735_v47 = vpop.f32.mrb[52].mxu0 }
0x17eb   : > { %v10196_v10 = vmul.f32 0.35355338, %v9735_v47  ;;  %v32199_v61 = vpop.f32.mrb[53].mxu0 }
0x17ed   : > { %v10206_v36 = vsel %vm1728_vm3, %v10196_v10, -inf }
0x17ee   : > { %10207 = vmax.xlane.f32.xlu1 %v10206_v36 }
0x17f2   : > { %v9811_v11 = vpop.f32.mrb[54].mxu0 }
0x17f3   : > { %v36160_v12 = vmul.f32 0.35355338, %v9811_v11  ;;  %v32204_v58 = vpop.f32.mrb[55].mxu0  ;;  %v10195_v11 = vmul.f32 0.35355338, %v36157_v49 }
0x17f5   : > { %v10209_v51 = vsel %vm1728_vm3, %v36160_v12, -inf }
0x17f6   : > { %10210 = vmax.xlane.f32.xlu1 %v10209_v51  ;;  %v10203_v51 = vsel %vm1728_vm3, %v10195_v11, -inf }
0x1820   : > { %v8654_v14 = vpop.trf.xlu1 }
0x1821   : > { %32188 = vmatmul.mubr.msk.f32.vlgmr.msra.gmra.mrb[64].mxu1 %vm804_vm1, %v8654_v14 }
0x1822   : > { %32211 = vmatpush3.xpose.msk.msra.mxu1 %vm1728_vm3, %v9211_v60  ;;  %32212 = vmatprep.mubr.msk.f32.mxu1 %vm34958_vm2, %v34957_v29 }
0x1823   : > { %32220 = vmatprep.subr.mxu1 %v34957_v29 }
0x1825   : > { %32213 = vmatmul.mubr.msk.f32.vlgmr.msra.gmra.mrb[66].mxu1 %vm1728_vm3, %v8955_v6 }
0x1826   : > { %32221 = vmatpush3.xpose.msk.msra.mxu1 %vm1728_vm3, %v9275_v4  ;;  %32222 = vmatprep.mubr.msk.f32.mxu1 %vm34958_vm2, %v34957_v29 }
0x1827   : > { %32230 = vmatprep.subr.mxu1 %v34957_v29 }
0x1829   : > { %32223 = vmatmul.mubr.msk.f32.vlgmr.msra.gmra.mrb[68].mxu1 %vm1728_vm3, %v9019_v25 }
0x182a   : > { %32232 = vmatprep.mubr.msk.f32.mxu1 %vm34958_vm2, %v34957_v29 }
0x1840   : > { %v9051_v15 = vpop.trf.xlu1 }
0x1841   : > { %32228 = vmatmul.mubr.msk.f32.vlgmr.msra.gmra.mrb[60].mxu0 %vm1728_vm3, %v9051_v15 }
0x1842   : > { %32237 = vmatprep.mubr.msk.f32.mxu0 %vm34958_vm2, %v34957_v29 }
0x187b   : > { %v10208_v54 = vpop.xlane.xlu1 %10207 }
0x187c   : > { %v10228_v57 = vsub.f32 %v10196_v10, %v10208_v54 }
0x187e   : > { %v10237_v59 = vmul.f32 1.442695, %v10228_v57 }
0x1880   : > { %34339 = vpow2.f32 %v10237_v59 }
0x1883   : > { %v36190_v18 = vpop.xlane.xlu1 %10210 }
0x188a   : > { %v34340_v1 = vpop.eup %34339 }
0x188b   : > { %v10254_v56 = vsel %vm1728_vm3, %v34340_v1, 0.0 }
0x1896   : > { %v9887_v44 = vpop.f32.mrb[56].mxu0 }
0x1897   : > { %v10198_v55 = vmul.f32 0.35355338, %v9887_v44  ;;  %v32209_v13 = vpop.f32.mrb[57].mxu0 }
0x1899   : > { %v10212_v16 = vsel %vm1728_vm3, %v10198_v55, -inf }
0x189a   : > { %10213 = vmax.xlane.f32.xlu1 %v10212_v16  ;;  %v10039_v48 = vpop.f32.mrb[58].mxu0 }
0x189b   : > { %v10200_v27 = vmul.f32 0.35355338, %v10039_v48  ;;  %v32219_v28 = vpop.f32.mrb[59].mxu0 }
0x189d   : > { %v10218_v31 = vsel %vm1728_vm3, %v10200_v27, -inf }
0x189e   : > { %10219 = vmax.xlane.f32.xlu1 %v10218_v31 }
0x18f4   : > { %v36182_v32 = vpop.f32.mrb[64].mxu1 }
0x18f5   : > { %v32189_v22 = vpop.f32.mrb[65].mxu1 }
0x18f8   : > { %v9963_v38 = vpop.f32.mrb[66].mxu1 }
0x18f9   : > { %v32214_v41 = vpop.f32.mrb[67].mxu1  ;;  %v10199_v58 = vmul.f32 0.35355338, %v9963_v38 }
0x18fb   : > { %v10215_v15 = vsel %vm1728_vm3, %v10199_v58, -inf }
0x18fc   : > { %v10115_v2 = vpop.f32.mrb[68].mxu1 }
0x18fd   : > { %v32224_v4 = vpop.f32.mrb[69].mxu1  ;;  %v10201_v14 = vmul.f32 0.35355338, %v10115_v2 }
0x18ff   : > { %v10221_v44 = vsel %vm1728_vm3, %v10201_v14, -inf }
0x1914   : > { %v10191_v30 = vpop.f32.mrb[60].mxu0 }
0x1915   : > { %v36184_v34 = vmul.f32 0.35355338, %v10191_v30  ;;  %v32229_v43 = vpop.f32.mrb[61].mxu0 }
0x1916   : > { %v10229_v43 = vsub.f32 %v36160_v12, %v36190_v18 }
0x1917   : > { %v10224_v50 = vsel %vm1728_vm3, %v36184_v34, -inf }
0x1918   : > { %10225 = vmax.xlane.f32.xlu1 %v10224_v50  ;;  %v10239_v54 = vmul.f32 1.442695, %v10229_v43 }
0x1927   : > { %v10214_v0 = vpop.xlane.xlu1 %10213 }
0x1928   : > { %v10230_v60 = vsub.f32 %v10198_v55, %v10214_v0 }
0x192a   : > { %v10241_v39 = vmul.f32 1.442695, %v10230_v60 }
0x192b   : > { %v10220_v26 = vpop.xlane.xlu1 %10219 }
0x192c   : > { %v10232_v52 = vsub.f32 %v10200_v27, %v10220_v26  ;;  %34341 = vpow2.f32 %v10241_v39 }
0x192e   : > { %v10245_v6 = vmul.f32 1.442695, %v10232_v52 }
0x1930   : > { %34343 = vpow2.f32 %v10245_v6 }
0x1936   : > { %v34342_v8 = vpop.eup %34341 }
0x1937   : > { %v10260_v5 = vsel %vm1728_vm3, %v34342_v8, 0.0 }
0x193a   : > { %v36194_v7 = vpop.eup %34343 }
0x193b   : > { %v10266_v9 = vsel %vm1728_vm3, %v36194_v7, 0.0 }
0x194b   : > { %8779 = vxpose.xlu1.b32.start.end [1/1] (short) (narrow) %v6251_v53, 64 }
0x198e   : > { %10255 = vadd.xlane.f32.xlu1 %v10254_v56 }
0x1992   : > { %10261 = vadd.xlane.f32.xlu1 %v10260_v5 }
0x1996   : > { %10267 = vadd.xlane.f32.xlu1 %v10266_v9 }
0x19a5   : > { %v10226_v45 = vpop.xlane.xlu1 %10225 }
0x19a6   : > { %v10234_v0 = vsub.f32 %v36184_v34, %v10226_v45 }
0x19a8   : > { %v10249_v60 = vmul.f32 1.442695, %v10234_v0 }
0x19cb   : > { %v8795_v47 = vpop.trf.xlu1 }
0x19cc   : > { %9323 = vxpose.xlu0.b32.start.end [1/1] (short) (narrow) %v8795_v47, 8 }
0x19cf   : > { %v8796_v10 = vpop.trf.xlu1 }
0x19d0   : > { %9355 = vxpose.xlu0.b32.start.end [1/1] (short) (narrow) %v8796_v10, 8 }
0x19d3   : > { %v8797_v61 = vpop.trf.xlu1 }
0x19d4   : > { %9387 = vxpose.xlu1.b32.start.end [1/1] (short) (narrow) %v8797_v61, 8 }
0x19d7   : > { %v8798_v36 = vpop.trf.xlu1 }
0x19d8   : > { %9419 = vxpose.xlu0.b32.start.end [1/1] (short) (narrow) %v8798_v36, 8 }
0x19db   : > { %v8799_v55 = vpop.trf.xlu1 }
0x19df   : > { %v8800_v13 = vpop.trf.xlu1 }
0x19e3   : > { %v8801_v16 = vpop.trf.xlu1 }
0x19e7   : > { %v8802_v48 = vpop.trf.xlu1 }
0x1a05   : > { %10204 = vmax.xlane.f32.xlu0 %v10203_v51 }
0x1a09   : > { %10216 = vmax.xlane.f32.xlu0 %v10215_v15 }
0x1a0d   : > { %10222 = vmax.xlane.f32.xlu0 %v10221_v44 }
0x1a1b   : > { %v10256_v27 = vpop.xlane.xlu1 %10255 }
0x1a1c   : > { %34345 = vrcp.f32 %v10256_v27 }
0x1a1f   : > { %v10262_v28 = vpop.xlane.xlu1 %10261 }
0x1a20   : > { %34347 = vrcp.f32 %v10262_v28 }
0x1a26   : > { %v34346_v31 = vpop.eup %34345 }
0x1a27   : > { %v10284_v22 = vmul.f32 %v34346_v31, %v34340_v1 }
0x1a2a   : > { %v34348_v38 = vpop.eup %34347 }
0x1a2b   : > { %v10286_v30 = vmul.f32 %v34348_v38, %v34342_v8 }
0x1a3a   : > { %9451 = vxpose.xlu0.b32.start.end [1/1] (short) (narrow) %v8799_v55, 8 }
0x1a4c   : > { %v9339_v49 = vpop.trf.xlu0 }
0x1a4d   : > { %32231 = vmatpush3.msra.mxu1 %v9339_v49 }
0x1a4e   : > { %32240 = vmatprep.subr.mxu1 %v34957_v29 }
0x1a50   : > { %v9371_v25 = vpop.trf.xlu0 }
0x1a51   : > { %32236 = vmatpush3.msra.mxu0 %v9371_v25 }
0x1a52   : > { %32238 = vmatmul.mubr.msk.f32.vlgmr.msra.gmra.mrb[62].mxu0 %vm1728_vm3, %v10284_v22  ;;  %32245 = vmatprep.subr.mxu0 %v34957_v29 }
0x1a53   : > { %32247 = vmatprep.mubr.msk.f32.mxu0 %vm34958_vm2, %v34957_v29 }
0x1a58   : > { %v9435_v41 = vpop.trf.xlu0 }
0x1a59   : > { %32246 = vmatpush3.msra.mxu0 %v9435_v41 }
0x1a5a   : > { %32248 = vmatmul.mubr.msk.f32.vlgmr.msra.gmra.mrb[64].mxu0 %vm1728_vm3, %v10286_v30  ;;  %32255 = vmatprep.subr.mxu0 %v34957_v29 }
0x1a5b   : > { %32257 = vmatprep.mubr.msk.f32.mxu0 %vm34958_vm2, %v34957_v29 }
0x1a92   : > { %v10205_v50 = vpop.xlane.xlu0 %10204 }
0x1a93   : > { %v10227_v53 = vsub.f32 %v10195_v11, %v10205_v50 }
0x1a95   : > { %v10235_v57 = vmul.f32 1.442695, %v10227_v53 }
0x1a96   : > { %v10217_v59 = vpop.xlane.xlu0 %10216 }
0x1a97   : > { %34349 = vpow2.f32 %v10235_v57  ;;  %v10231_v26 = vsub.f32 %v10199_v58, %v10217_v59 }
0x1a98   : > { %34351 = vpow2.f32 %v10239_v54 }
0x1a99   : > { %34353 = vpow2.f32 %v10249_v60  ;;  %v10243_v52 = vmul.f32 1.442695, %v10231_v26 }
0x1a9a   : > { %v10223_v39 = vpop.xlane.xlu0 %10222 }
0x1a9b   : > { %v10233_v6 = vsub.f32 %v10201_v14, %v10223_v39  ;;  %34355 = vpow2.f32 %v10243_v52  ;;  %v10268_v14 = vpop.xlane.xlu1 %10267 }
0x1a9d   : > { %v10247_v1 = vmul.f32 1.442695, %v10233_v6  ;;  %v36257_v6 = vld [vmem:[#allocation7 + $0x10] sm:$0xff] }
0x1a9f   : > { %34357 = vpow2.f32 %v10247_v1  ;;  %v9403_v28 = vpop.trf.xlu1 }
0x1aa1   : > { %v34350_v2 = vpop.eup %34349 }
0x1aa2   : > { %v10251_v12 = vsel %vm1728_vm3, %v34350_v2, 0.0  ;;  %v34352_v18 = vpop.eup %34351 }
0x1aa3   : > { %10252 = vadd.xlane.f32.xlu0 %v10251_v12  ;;  %v10257_v34 = vsel %vm1728_vm3, %v34352_v18, 0.0  ;;  %v36216_v4 = vpop.eup %34353 }
0x1aa4   : > { %v10272_v56 = vsel %vm1728_vm3, %v36216_v4, 0.0 }
0x1aa5   : > { %v34356_v8 = vpop.eup %34355 }
0x1aa6   : > { %v10263_v5 = vsel %vm1728_vm3, %v34356_v8, 0.0 }
0x1aa7   : > { %10258 = vadd.xlane.f32.xlu0 %v10257_v34 }
0x1aa9   : > { %v34358_v9 = vpop.eup %34357 }
0x1aaa   : > { %v10269_v45 = vsel %vm1728_vm3, %v34358_v9, 0.0 }
0x1aab   : > { %10273 = vadd.xlane.f32.xlu0 %v10272_v56 }
0x1aaf   : > { %10264 = vadd.xlane.f32.xlu0 %v10263_v5 }
0x1ab3   : > { %10270 = vadd.xlane.f32.xlu0 %v10269_v45 }
0x1aba   : > { %v9467_v61 = vpop.trf.xlu0 }
0x1ae0   : > { %9483 = vxpose.xlu0.b32.start.end [1/1] (short) (narrow) %v8800_v13, 8 }
0x1ae4   : > { %9515 = vxpose.xlu0.b32.start.end [1/1] (short) (narrow) %v8801_v16, 8 }
0x1ae8   : > { %9547 = vxpose.xlu0.b32.start.end [1/1] (short) (narrow) %v8802_v48, 8 }
0x1b25   : > { %v36222_v47 = vpop.f32.mrb[62].mxu0 }
0x1b26   : > { %v32239_v10 = vpop.f32.mrb[63].mxu0 }
0x1b2d   : > { %v36224_v36 = vpop.f32.mrb[64].mxu0 }
0x1b2e   : > { %v32249_v11 = vpop.f32.mrb[65].mxu0 }
0x1b30   : > { %v10253_v58 = vpop.xlane.xlu0 %10252 }
0x1b31   : > { %34359 = vrcp.f32 %v10253_v58 }
0x1b34   : > { %v10259_v51 = vpop.xlane.xlu0 %10258 }
0x1b35   : > { %34361 = vrcp.f32 %v10259_v51 }
0x1b38   : > { %v10274_v15 = vpop.xlane.xlu0 %10273 }
0x1b3b   : > { %v34360_v44 = vpop.eup %34359 }
0x1b3c   : > { %v10265_v55 = vpop.xlane.xlu0 %10264  ;;  %v10283_v27 = vmul.f32 %v34360_v44, %v34350_v2  ;;  %v8673_v2 = vrot.slane %v36257_v6, %v35739_v3 }
0x1b3d   : > { %34363 = vrcp.f32 %v10265_v55 }
0x1b3e   : > { %32233 = vmatmul.mubr.msk.f32.vlgmr.msra.gmra.mrb[70].mxu1 %vm1728_vm3, %v10283_v27  ;;  %34365 = vrcp.f32 %v10268_v14  ;;  %v8744_v1 = vadd.f32 %v36182_v32, %v8673_v2  ;;  %v36272_v27 = vrot.slane %v36257_v6, %v35754_v19 }
0x1b3f   : > { %v34362_v13 = vpop.eup %34361  ;;  %32241 = vmatpush3.msra.mxu1 %v9403_v28  ;;  %32242 = vmatprep.mubr.msk.f32.mxu1 %vm34958_vm2, %v34957_v29 }
0x1b40   : > { %32250 = vmatprep.subr.mxu1 %v34957_v29  ;;  %v10285_v16 = vmul.f32 %v34362_v13, %v34352_v18  ;;  %v10271_v31 = vpop.xlane.xlu0 %10270  ;;  %v11236_v12 = vadd.f32 %v8744_v1, %v35931_v33 }
0x1b41   : > { %34367 = vrcp.f32 %v10271_v31 }
0x1b42   : > { %32243 = vmatmul.mubr.msk.f32.vlgmr.msra.gmra.mrb[72].mxu1 %vm1728_vm3, %v10285_v16  ;;  %34369 = vrcp.f32 %v10274_v15  ;;  %v11238_v18 = vsel %vm804_vm1, %v11236_v12, 0.0  ;;  %v36268_v15 = vrot.slane %v36257_v6, %v35751_v17 }
0x1b43   : > { %32251 = vmatpush3.msra.mxu1 %v9467_v61  ;;  %32252 = vmatprep.mubr.msk.f32.mxu1 %vm34958_vm2, %v34957_v29 }
0x1b44   : > { %32260 = vmatprep.subr.mxu1 %v34957_v29 }
0x1b47   : > { %v34364_v48 = vpop.eup %34363 }
0x1b48   : > { %v10287_v49 = vmul.f32 %v34364_v48, %v34356_v8  ;;  %v34366_v25 = vpop.eup %34365 }
0x1b49   : > { %v10288_v38 = vmul.f32 %v34366_v25, %v36194_v7 }
0x1b4a   : > { %32253 = vmatmul.mubr.msk.f32.vlgmr.msra.gmra.mrb[74].mxu1 %vm1728_vm3, %v10287_v49 }
0x1b4b   : > { %32262 = vmatprep.mubr.msk.f32.mxu1 %vm34958_vm2, %v34957_v29  ;;  %v34368_v41 = vpop.eup %34367 }
0x1b4c   : > { %v10289_v30 = vmul.f32 %v34368_v41, %v34358_v9  ;;  %v34370_v50 = vpop.eup %34369 }
0x1b4d   : > { %v10290_v53 = vmul.f32 %v34370_v50, %v36216_v4  ;;  %v30709_v50 = vld [vmem:[%s38324_s13 + $0x40] sm:$0xff] }
0x1b60   : > { %v9499_v22 = vpop.trf.xlu0 }
0x1b61   : > { %32256 = vmatpush3.msra.mxu0 %v9499_v22 }
0x1b62   : > { %32258 = vmatmul.mubr.msk.f32.vlgmr.msra.gmra.mrb[66].mxu0 %vm1728_vm3, %v10288_v38  ;;  %32265 = vmatprep.subr.mxu0 %v34957_v29 }
0x1b63   : > { %32267 = vmatprep.mubr.msk.f32.mxu0 %vm34958_vm2, %v34957_v29 }
0x1b64   : > { %v9531_v43 = vpop.trf.xlu0 }
0x1b65   : > { %32261 = vmatpush3.msra.mxu1 %v9531_v43 }
0x1b66   : > { %32263 = vmatmul.mubr.msk.f32.vlgmr.msra.gmra.mrb[76].mxu1 %vm1728_vm3, %v10289_v30  ;;  %33661 = vmatprep.subr.bf16.mxu1 %v34959_v62 }
0x1b67   : > { %33663 = vmatpush3.bf16.msra.mxu1 %v36113_v21  ;;  %32286 = vmatprep.mubr.msk.f32.mxu1 %vm34958_vm2, %v34957_v29 }
0x1b68   : > { %v9563_v7 = vpop.trf.xlu0  ;;  %33664 = vmatprep.subr.bf16.mxu1 %v34959_v62 }
0x1b69   : > { %32266 = vmatpush3.msra.mxu0 %v9563_v7 }
0x1b6a   : > { %32268 = vmatmul.mubr.msk.f32.vlgmr.msra.gmra.mrb[68].mxu0 %vm1728_vm3, %v10290_v53  ;;  %v30711_v53 = vld [vmem:[%s38324_s13 + $0x50] sm:$0xff] }
0x1b6b   : > { %33666 = vmatpush3.bf16.msra.mxu1 %v36119_v37 }
0x1b6c   : > { %33667 = vmatprep.subr.bf16.mxu1 %v34959_v62 }
0x1b6f   : > { %33669 = vmatpush3.bf16.msra.mxu1 %v36129_v46 }
0x1b70   : > { %33670 = vmatprep.subr.bf16.mxu1 %v34959_v62 }
0x1b73   : > { %33672 = vmatpush3.bf16.msra.mxu1 %v36139_v63 }
0x1c11   : > { %v10360_v21 = vpop.f32.mrb[70].mxu1 }
0x1c12   : > { %10875 = vxpose.xlu0.b32.start.end [1/1] (short) (narrow) %v10360_v21, 8  ;;  %v32234_v54 = vpop.f32.mrb[71].mxu1  ;;  %v30712_v21 = vld [vmem:[%s38324_s13 + $0x58] sm:$0xff] }
0x1c13   : > { %v33677_v54 = vpack.c.bf16 %v30712_v21, %v30711_v53 }
0x1c15   : > { %v10506_v0 = vpop.f32.mrb[72].mxu1 }
0x1c16   : > { %10907 = vxpose.xlu0.b32.start.end [1/1] (short) (narrow) %v36222_v47, 8  ;;  %10939 = vxpose.xlu1.b32.start.end [1/1] (short) (narrow) %v10506_v0, 8  ;;  %v32244_v57 = vpop.f32.mrb[73].mxu1  ;;  %v30713_v0 = vld [vmem:[%s38324_s13 + $0x60] sm:$0xff] }
0x1c17   : > { %v30714_v57 = vld [vmem:[%s38324_s13 + $0x68] sm:$0xff] }
0x1c1a   : > { %10971 = vxpose.xlu0.b32.start.end [1/1] (short) (narrow) %v36224_v36, 8 }
0x1c1d   : > { %v10652_v59 = vpop.f32.mrb[74].mxu1 }
0x1c1e   : > { %11003 = vxpose.xlu1.b32.start.end [1/1] (short) (narrow) %v10652_v59, 8  ;;  %v32254_v37 = vpop.f32.mrb[75].mxu1  ;;  %v33681_v59 = vpack.c.bf16 %v30714_v57, %v30713_v0 }
0x1c1f   : > { %v30715_v37 = vld [vmem:[%s38324_s13 + $0x70] sm:$0xff] }
0x1c35   : > { %v10725_v60 = vpop.f32.mrb[66].mxu0 }
0x1c36   : > { %v32259_v26 = vpop.f32.mrb[67].mxu0  ;;  %11035 = vxpose.xlu0.b32.start.end [1/1] (short) (narrow) %v10725_v60, 8  ;;  %v30716_v60 = vld [vmem:[%s38324_s13 + $0x78] sm:$0xff] }
0x1c37   : > { %v33685_v26 = vpack.c.bf16 %v30716_v60, %v30715_v37 }
0x1c39   : > { %v10798_v46 = vpop.f32.mrb[76].mxu1 }
0x1c3a   : > { %11067 = vxpose.xlu1.b32.start.end [1/1] (short) (narrow) %v10798_v46, 8  ;;  %v32264_v39 = vpop.f32.mrb[77].mxu1  ;;  %v30719_v46 = vld [vmem:[%s38325_s23 + $0x80] sm:$0xff] }
0x1c3b   : > { %v30720_v39 = vld [vmem:[%s38325_s23 + $0x88] sm:$0xff] }
0x1c3d   : > { %v10871_v63 = vpop.f32.mrb[68].mxu0 }
0x1c3e   : > { %v32269_v52 = vpop.f32.mrb[69].mxu0  ;;  %11099 = vxpose.xlu0.b32.start.end [1/1] (short) (narrow) %v10871_v63, 8  ;;  %v30721_v63 = vld [vmem:[%s38325_s23 + $0x90] sm:$0xff] }
0x1c3f   : > { %v33689_v52 = vpack.c.bf16 %v30720_v39, %v30719_v46  ;;  %v30736_v46 = vld [vmem:[%s38320_s6 + $0x108] sm:$0xff] }
0x1c41   : > { %33690 = vmatprep.subr.bf16.mxu1 %v33689_v52 }
0x1c6b   : > { %11239 = vadd.xlane.f32.xlu0 %v11238_v18  ;;  %v30724_v18 = vld [vmem:[%s38325_s23 + $0xa8] sm:$0xff] }
0x1c92   : > { %v10891_v34 = vpop.trf.xlu0 }
0x1c93   : > { %11131 = vxpose.xlu1.b32.start [1/8] (short) (narrow) %v10891_v34, 8 }
0x1c96   : > { %v10923_v4 = vpop.trf.xlu0  ;;  %v10955_v56 = vpop.trf.xlu1 }
0x1c97   : > { %11132 = vxpose.xlu1.b32.cont [2/8] (short) (narrow) %v10923_v4, 8  ;;  %v30725_v4 = vld [vmem:[%s38325_s23 + $0xb0] sm:$0xff] }
0x1c9a   : > { %v10987_v8 = vpop.trf.xlu0 }
0x1c9b   : > { %11133 = vxpose.xlu1.b32.cont [3/8] (short) (narrow) %v10955_v56, 8  ;;  %v30726_v56 = vld [vmem:[%s38325_s23 + $0xb8] sm:$0xff] }
0x1c9e   : > { %v11019_v5 = vpop.trf.xlu1 }
0x1c9f   : > { %11134 = vxpose.xlu1.b32.cont [4/8] (short) (narrow) %v10987_v8, 8  ;;  %v33701_v8 = vpack.c.bf16 %v30726_v56, %v30725_v4  ;;  %v30741_v4 = vld [vmem:[%s38320_s6 + $0x130] sm:$0xff] }
0x1ca3   : > { %11135 = vxpose.xlu1.b32.cont [5/8] (short) (narrow) %v11019_v5, 8  ;;  %v30727_v5 = vld [vmem:[%s38325_s23 + $0xc0] sm:$0xff] }
0x1cb6   : > { %v11051_v9 = vpop.trf.xlu0 }
0x1cb7   : > { %11136 = vxpose.xlu1.b32.cont [6/8] (short) (narrow) %v11051_v9, 8  ;;  %v30728_v9 = vld [vmem:[%s38325_s23 + $0xc8] sm:$0xff] }
0x1cba   : > { %v11083_v45 = vpop.trf.xlu1 }
0x1cbb   : > { %11137 = vxpose.xlu1.b32.cont [7/8] (short) (narrow) %v11083_v45, 8  ;;  %v33705_v45 = vpack.c.bf16 %v30728_v9, %v30727_v5  ;;  %v30746_v5 = vld [vmem:[%s38320_s6 + $0x158] sm:$0xff] }
0x1cbe   : > { %v11115_v32 = vpop.trf.xlu0 }
0x1cbf   : > { %11138 = vxpose.xlu1.b32.end [8/8] (short) (narrow) %v11115_v32, 8  ;;  %v30729_v32 = vld [vmem:[%s38325_s23 + $0xd0] sm:$0xff] }
0x1cf8   : > { %v11240_v33 = vpop.xlane.xlu0 %11239 }
0x1cf9   : > { %v11244_v47 = vmul.f32 0.015625, %v11240_v33  ;;  %v30730_v33 = vld [vmem:[%s38325_s23 + $0xd8] sm:$0xff] }
0x1cfb   : > { %v11246_v10 = vsub.f32 %v11236_v12, %v11244_v47  ;;  %v30723_v12 = vld [vmem:[%s38325_s23 + $0xa0] sm:$0xff]  ;;  %v33709_v47 = vpack.c.bf16 %v30730_v33, %v30729_v32  ;;  %v30745_v32 = vld [vmem:[%s38320_s6 + $0x150] sm:$0xff] }
0x1cfc   : > { %v33697_v34 = vpack.c.bf16 %v30724_v18, %v30723_v12  ;;  %v30742_v12 = vld [vmem:[%s38320_s6 + $0x138] sm:$0xff] }
0x1cfd   : > { %v11248_v61 = vmul.f32 %v11246_v10, %v11246_v10 }
0x1cff   : > { %v11250_v36 = vsel %vm804_vm1, %v11248_v61, 0.0  ;;  %v30732_v61 = vld [vmem:[%s38325_s23 + $0xe8] sm:$0xff] }
0x1d00   : > { %11251 = vadd.xlane.f32.xlu0 %v11250_v36 }
0x1d23   : > { %v11147_v11 = vpop.trf.xlu1 }
0x1d24   : > { %32287 = vmatmul.mubr.msk.f32.vlgmr.msra.gmra.mrb[78].mxu1 %vm804_vm1, %v11147_v11 }
0x1d25   : > { %33692 = vmatpush3.bf16.msra.mxu1 %v33689_v52  ;;  %v30737_v52 = vld [vmem:[%s38320_s6 + $0x110] sm:$0xff] }
0x1d8d   : > { %v11252_v58 = vpop.xlane.xlu0 %11251 }
0x1d8e   : > { %v11256_v51 = vmul.f32 0.015625, %v11252_v58 }
0x1d90   : > { %v11258_v14 = vadd.f32 1e-05, %v11256_v51 }
0x1d92   : > { %34371 = vrsqrt.f32 %v11258_v14 }
0x1d9c   : > { %v34372_v44 = vpop.eup %34371 }
0x1d9d   : > { %v11262_v55 = vmul.f32 %v34372_v44, %v11246_v10  ;;  %v30731_v10 = vld [vmem:[%s38325_s23 + $0xe0] sm:$0xff] }
0x1d9e   : > { %v33713_v36 = vpack.c.bf16 %v30732_v61, %v30731_v10  ;;  %v30750_v10 = vld [vmem:[%s38320_s6 + $0x178] sm:$0xff]  ;;  %v30747_v61 = vld [vmem:[%s38320_s6 + $0x160] sm:$0xff] }
0x1d9f   : > { %v11268_v28 = vmul.f32 %v36268_v15, %v11262_v55 }
0x1da1   : > { %v36276_v13 = vadd.f32 %v36272_v27, %v11268_v28 }
0x1da3   : > { %32305 = vmatprep.mubr.msk.f32.mxu0 %vm804_vm1, %v36276_v13 }
0x1df7   : > { %v11232_v16 = vpop.f32.mrb[78].mxu1 }
0x1df8   : > { %v11233_v48 = vadd.f32 %v11232_v16, %v8673_v2  ;;  %v32288_v49 = vpop.f32.mrb[79].mxu1  ;;  %v30722_v2 = vld [vmem:[%s38325_s23 + $0x98] sm:$0xff]  ;;  %v30733_v16 = vld [vmem:[%s38325_s23 + $0xf0] sm:$0xff] }
0x1df9   : > { %v33693_v1 = vpack.c.bf16 %v30722_v2, %v30721_v63  ;;  %v30735_v63 = vld [vmem:[%s38320_s6 + $0x100] sm:$0xff] }
0x1dfa   : > { %v11237_v31 = vadd.f32 %v11233_v48, %v35936_v42  ;;  %v30710_v42 = vld [vmem:[%s38324_s13 + $0x48] sm:$0xff]  ;;  %v30734_v48 = vld [vmem:[%s38325_s23 + $0xf8] sm:$0xff]  ;;  %v33723_v2 = vpack.c.bf16 %v30737_v52, %v30735_v63 }
0x1dfb   : > { %v33673_v7 = vpack.c.bf16 %v30710_v42, %v30709_v50  ;;  %33694 = vmatprep.subr.bf16.mxu1 %v33693_v1  ;;  %v33717_v49 = vpack.c.bf16 %v30734_v48, %v30733_v16 }
0x1dfc   : > { %v11241_v25 = vsel %vm804_vm1, %v11237_v31, 0.0  ;;  %33696 = vmatpush3.bf16.msra.mxu1 %v33693_v1  ;;  %v30740_v1 = vld [vmem:[%s38320_s6 + $0x128] sm:$0xff] }
0x1dfd   : > { %11242 = vadd.xlane.f32.xlu1 %v11241_v25  ;;  %33674 = vmatprep.subr.bf16.mxu0 %v33673_v7  ;;  %v33725_v18 = vpack.c.bf16 %v30742_v12, %v30740_v1 }
0x1dfe   : > { %33676 = vmatpush3.bf16.msra.mxu0 %v33673_v7  ;;  %33698 = vmatprep.subr.bf16.mxu1 %v33697_v34 }
0x1dff   : > { %33678 = vmatprep.subr.bf16.mxu0 %v33677_v54 }
0x1e00   : > { %33700 = vmatpush3.bf16.msra.mxu1 %v33697_v34  ;;  %v30739_v34 = vld [vmem:[%s38320_s6 + $0x120] sm:$0xff] }
0x1e01   : > { %33702 = vmatprep.subr.bf16.mxu1 %v33701_v8  ;;  %v33727_v56 = vpack.c.bf16 %v30741_v4, %v30739_v34 }
0x1e02   : > { %33680 = vmatpush3.bf16.msra.mxu0 %v33677_v54 }
0x1e03   : > { %33682 = vmatprep.subr.bf16.mxu0 %v33681_v59 }
0x1e04   : > { %33704 = vmatpush3.bf16.msra.mxu1 %v33701_v8  ;;  %v30744_v8 = vld [vmem:[%s38320_s6 + $0x148] sm:$0xff] }
0x1e05   : > { %33706 = vmatprep.subr.bf16.mxu1 %v33705_v45  ;;  %v33729_v9 = vpack.c.bf16 %v30746_v5, %v30744_v8 }
0x1e06   : > { %33684 = vmatpush3.bf16.msra.mxu0 %v33681_v59 }
0x1e07   : > { %33686 = vmatprep.subr.bf16.mxu0 %v33685_v26 }
0x1e08   : > { %33708 = vmatpush3.bf16.msra.mxu1 %v33705_v45  ;;  %v30743_v45 = vld [vmem:[%s38320_s6 + $0x140] sm:$0xff] }
0x1e09   : > { %33710 = vmatprep.subr.bf16.mxu1 %v33709_v47  ;;  %v33731_v33 = vpack.c.bf16 %v30745_v32, %v30743_v45 }
0x1e0a   : > { %33688 = vmatpush3.bf16.msra.mxu0 %v33685_v26 }
0x1e0c   : > { %33712 = vmatpush3.bf16.msra.mxu1 %v33709_v47  ;;  %v30748_v47 = vld [vmem:[%s38320_s6 + $0x168] sm:$0xff] }
0x1e0d   : > { %33714 = vmatprep.subr.bf16.mxu1 %v33713_v36 }
0x1e10   : > { %33716 = vmatpush3.bf16.msra.mxu1 %v33713_v36  ;;  %v33733_v36 = vpack.c.bf16 %v30750_v10, %v30748_v47 }
0x1e11   : > { %33718 = vmatprep.subr.bf16.mxu1 %v33717_v49 }
0x1e14   : > { %33720 = vmatpush3.bf16.msra.mxu1 %v33717_v49 }
0x1e15   : > { %32358 = vmatprep.subr.mxu1 %v34957_v29 }
0x1e8a   : > { %v11243_v22 = vpop.xlane.xlu1 %11242 }
0x1e8b   : > { %v11245_v38 = vmul.f32 0.015625, %v11243_v22 }
0x1e8d   : > { %v36282_v41 = vsub.f32 %v11237_v31, %v11245_v38 }
0x1e8f   : > { %v11249_v30 = vmul.f32 %v36282_v41, %v36282_v41 }
0x1e91   : > { %v11253_v43 = vsel %vm804_vm1, %v11249_v30, 0.0  ;;  %v11392_v30 = vrot.slane %v36257_v6, %v35863_v35 }
0x1e92   : > { %11254 = vadd.xlane.f32.xlu0 %v11253_v43 }
0x1f1f   : > { %v11255_v11 = vpop.xlane.xlu0 %11254 }
0x1f20   : > { %v11257_v58 = vmul.f32 0.015625, %v11255_v11  ;;  %v30749_v11 = vld [vmem:[%s38320_s6 + $0x170] sm:$0xff] }
0x1f22   : > { %v11259_v51 = vadd.f32 1e-05, %v11257_v58  ;;  %v33735_v58 = vpack.c.bf16 %v30749_v11, %v30747_v61 }
0x1f24   : > { %34373 = vrsqrt.f32 %v11259_v51 }
0x1f2e   : > { %v34374_v14 = vpop.eup %34373 }
0x1f2f   : > { %v11263_v44 = vmul.f32 %v34374_v14, %v36282_v41 }
0x1f31   : > { %v11269_v55 = vmul.f32 %v36268_v15, %v11263_v44  ;;  %v11288_v15 = vrot.slane %v36257_v6, %v35856_v20 }
0x1f33   : > { %v11275_v28 = vadd.f32 %v36272_v27, %v11269_v55 }
0x1f35   : > { %32306 = vmatmul.mubr.msk.f32.vlgmr.msra.gmra.mrb[70].mxu0 %vm804_vm1, %v11275_v28 }
0x1f36   : > { %11606 = vmatprep.mubr.f32.mxu0 %v34957_v29 }
0x2008   : > { %v32307_v27 = vpop.f32.mrb[70].mxu0 }
0x2009   : > { %v11367_v31 = vadd.f32 %v32307_v27, %v11288_v15  ;;  %v11361_v25 = vpop.f32.mrb[71].mxu0 }
0x200a   : > { %v11362_v22 = vadd.f32 %v11361_v25, %v11288_v15  ;;  %v11499_v15 = vrot.slane %v36257_v6, %v35921_v23  ;;  %v11505_v25 = vrot.slane %v36257_v6, %v35925_v24  ;;  %v11509_v6 = vld [vmem:[#allocation7 + $0x20] sm:$0xff] }
0x200b   : > { %v11371_v41 = vmax.f32 %v11367_v31, 0.0 }
0x200c   : > { %v11370_v38 = vmax.f32 %v11362_v22, 0.0 }
0x200e   : > { %32340 = vmatprep.mubr.f32.mxu1 %v11370_v38 }
0x200f   : > { %32341 = vmatmul.mubr.f32.vlgmr.msra.gmra.mrb[80].mxu1 %v11371_v41 }
0x2010   : > { %32360 = vmatprep.mubr.msk.f32.mxu1 %vm34958_vm2, %v34957_v29 }
0x20e2   : > { %v32342_v43 = vpop.f32.mrb[80].mxu1 }
0x20e3   : > { %v11465_v50 = vadd.f32 %v32342_v43, %v11392_v30  ;;  %v11459_v42 = vpop.f32.mrb[81].mxu1 }
0x20e4   : > { %v11460_v7 = vadd.f32 %v11459_v42, %v11392_v30 }
0x20e5   : > { %v11469_v37 = vadd.f32 %v11465_v50, %v11275_v28 }
0x20e6   : > { %v11468_v53 = vadd.f32 %v11460_v7, %v36276_v13  ;;  %v30738_v13 = vld [vmem:[%s38320_s6 + $0x118] sm:$0xff]  ;;  %s38331_s6 = sld [smem:[#allocation35_spill]] }
0x20e7   : > { %v11473_v26 = vsel %vm804_vm1, %v11469_v37, 0.0  ;;  %v33721_v39 = vpack.c.bf16 %v30738_v13, %v30736_v46 }
0x20e8   : > { %v11470_v21 = vsel %vm804_vm1, %v11468_v53, 0.0 }
0x20e9   : > { %11471 = vadd.xlane.f32.xlu0 %v11470_v21  ;;  %33722 = vmatprep.subr.bf16.mxu0 %v33721_v39  ;;  %v36441_v21 = vrot.slane %v11509_v6, %v35427_v40 }
0x20ea   : > { %33724 = vmatpush1.bf16.msra.mxu0 %v33723_v2 }
0x20eb   : > { %33726 = vmatprep.subr.bf16.mxu0 %v33725_v18 }
0x20ee   : > { %33728 = vmatpush1.bf16.msra.mxu0 %v33727_v56 }
0x20ef   : > { %33730 = vmatprep.subr.bf16.mxu0 %v33729_v9 }
0x20f2   : > { %33732 = vmatpush1.bf16.msra.mxu0 %v33731_v33 }
0x20f3   : > { %33734 = vmatprep.subr.bf16.mxu0 %v33733_v36 }
0x20f6   : > { %33736 = vmatpush1.bf16.msra.mxu0 %v33735_v58 }
0x20f7   : > { %32343 = vmatprep.subr.mxu0 %v34957_v29 }
0x2176   : > { %v11472_v54 = vpop.xlane.xlu0 %11471 }
0x2177   : > { %v11476_v0 = vmul.f32 0.015625, %v11472_v54 }
0x2179   : > { %v11478_v57 = vsub.f32 %v11468_v53, %v11476_v0 }
0x217b   : > { %v11480_v59 = vmul.f32 %v11478_v57, %v11478_v57 }
0x217d   : > { %v11482_v60 = vsel %vm804_vm1, %v11480_v59, 0.0 }
0x217e   : > { %11483 = vadd.xlane.f32.xlu0 %v11482_v60 }
0x2182   : > { %11474 = vadd.xlane.f32.xlu0 %v11473_v26 }
0x220b   : > { %v11484_v51 = vpop.xlane.xlu0 %11483 }
0x220c   : > { %v11488_v14 = vmul.f32 0.015625, %v11484_v51 }
0x220e   : > { %v11490_v44 = vadd.f32 1e-05, %v11488_v14 }
0x220f   : > { %v11475_v55 = vpop.xlane.xlu0 %11474 }
0x2210   : > { %34375 = vrsqrt.f32 %v11490_v44  ;;  %v11477_v28 = vmul.f32 0.015625, %v11475_v55 }
0x2212   : > { %v11479_v16 = vsub.f32 %v11469_v37, %v11477_v28 }
0x2214   : > { %v11481_v48 = vmul.f32 %v11479_v16, %v11479_v16 }
0x2216   : > { %v11485_v49 = vsel %vm804_vm1, %v11481_v48, 0.0 }
0x2217   : > { %11486 = vadd.xlane.f32.xlu0 %v11485_v49 }
0x221a   : > { %v34376_v27 = vpop.eup %34375 }
0x221b   : > { %v11494_v31 = vmul.f32 %v34376_v27, %v11478_v57 }
0x221d   : > { %v11500_v22 = vmul.f32 %v11499_v15, %v11494_v31 }
0x221f   : > { %v36429_v38 = vadd.f32 %v11505_v25, %v11500_v22 }
0x2221   : > { %30751 = vmatmul.mubr.msk.f32.vlgmr.msra.gmra.mrb[72].mxu0 %vm804_vm1, %v36429_v38 }
0x2222   : > { %11612 = vmatprep.mubr.f32.mxu0 %v34957_v29 }
0x22a4   : > { %v11487_v41 = vpop.xlane.xlu0 %11486 }
0x22a5   : > { %v11489_v30 = vmul.f32 0.015625, %v11487_v41 }
0x22a7   : > { %v11491_v43 = vadd.f32 1e-05, %v11489_v30 }
0x22a9   : > { %34377 = vrsqrt.f32 %v11491_v43 }
0x22b3   : > { %v34378_v50 = vpop.eup %34377 }
0x22b4   : > { %v11495_v42 = vmul.f32 %v34378_v50, %v11479_v16 }
0x22b6   : > { %v11501_v7 = vmul.f32 %v11499_v15, %v11495_v42 }
0x22b8   : > { %v36434_v53 = vadd.f32 %v11505_v25, %v11501_v7 }
0x22ba   : > { %30752 = vmatmul.mubr.msk.f32.gmra.mrb[74].mxu0 %vm804_vm1, %v36434_v53 }
0x22bb   : > { %32345 = vmatprep.mubr.msk.f32.mxu0 %vm34958_vm2, %v34957_v29 }
0x22f4   : > { %v11608_v54 = vpop.f32.mrb[72].mxu0 }
0x22f5   : > { %v11609_v0 = vadd.f32 %v11608_v54, %v36441_v21  ;;  %v36444_v57 = vpop.f32.mrb[73].mxu0 }
0x22f7   : > { %11619 = vxpose.xlu0.b32.start.end [1/1] (short) %v11609_v0, 128 }
0x2377   : > { %v11635_v59 = vpop.trf.xlu0 }
0x2378   : > { %11683 = vxpose.xlu0.b32.start.end [1/1] (short) (narrow) %v11635_v59, 8 }
0x237b   : > { %v11636_v37 = vpop.trf.xlu0 }
0x237c   : > { %11715 = vxpose.xlu1.b32.start.end [1/1] (short) (narrow) %v11636_v37, 8 }
0x237f   : > { %v11637_v60 = vpop.trf.xlu0 }
0x2380   : > { %11747 = vxpose.xlu1.b32.start.end [1/1] (short) (narrow) %v11637_v60, 8 }
0x2383   : > { %v11638_v26 = vpop.trf.xlu0 }
0x2384   : > { %11779 = vxpose.xlu1.b32.start.end [1/1] (short) (narrow) %v11638_v26, 8 }
0x2387   : > { %v11639_v46 = vpop.trf.xlu0 }
0x2388   : > { %11811 = vxpose.xlu1.b32.start.end [1/1] (short) (narrow) %v11639_v46, 8 }
0x238b   : > { %v11640_v13 = vpop.trf.xlu0 }
0x238c   : > { %11843 = vxpose.xlu1.b32.start.end [1/1] (short) (narrow) %v11640_v13, 8 }
0x238d   : > { %v36446_v39 = vpop.f32.mrb[74].mxu0 }
0x238e   : > { %v36448_v63 = vpop.f32.mrb[75].mxu0 }
0x238f   : > { %v11641_v52 = vpop.trf.xlu0 }
0x2390   : > { %11875 = vxpose.xlu1.b32.start.end [1/1] (short) (narrow) %v11641_v52, 8 }
0x2393   : > { %v11642_v2 = vpop.trf.xlu0 }
0x2397   : > { %v11643_v1 = vpop.trf.xlu0 }
0x2398   : > { %11939 = vxpose.xlu1.b32.start.end [1/1] (short) (narrow) %v11643_v1, 8 }
0x239b   : > { %v11644_v12 = vpop.trf.xlu0 }
0x239c   : > { %11971 = vxpose.xlu1.b32.start.end [1/1] (short) (narrow) %v11644_v12, 8 }
0x239f   : > { %v11645_v18 = vpop.trf.xlu0 }
0x23a0   : > { %12003 = vxpose.xlu1.b32.start.end [1/1] (short) (narrow) %v11645_v18, 8 }
0x23a3   : > { %v11646_v34 = vpop.trf.xlu0 }
0x23a4   : > { %12035 = vxpose.xlu1.b32.start.end [1/1] (short) (narrow) %v11646_v34, 8 }
0x23a7   : > { %v11647_v4 = vpop.trf.xlu0 }
0x23a8   : > { %12067 = vxpose.xlu1.b32.start.end [1/1] (short) (narrow) %v11647_v4, 8 }
0x23ab   : > { %v11648_v56 = vpop.trf.xlu0 }
0x23ac   : > { %12099 = vxpose.xlu1.b32.start.end [1/1] (short) (narrow) %v11648_v56, 8 }
0x23af   : > { %v11649_v8 = vpop.trf.xlu0 }
0x23b0   : > { %12131 = vxpose.xlu1.b32.start.end [1/1] (short) (narrow) %v11649_v8, 8 }
0x23b3   : > { %v11650_v5 = vpop.trf.xlu0 }
0x23b4   : > { %12163 = vxpose.xlu1.b32.start.end [1/1] (short) (narrow) %v11650_v5, 8 }
0x23b8   : > { %11907 = vxpose.xlu1.b32.start.end [1/1] (short) (narrow) %v11642_v2, 8 }
0x23f8   : > { %v11699_v36 = vpop.trf.xlu0 }
0x23fc   : > { %v11731_v9 = vpop.trf.xlu1 }
0x2400   : > { %v11763_v45 = vpop.trf.xlu1 }
0x2404   : > { %v11795_v32 = vpop.trf.xlu1 }
0x2408   : > { %v11827_v33 = vpop.trf.xlu1 }
0x240c   : > { %v11859_v47 = vpop.trf.xlu1 }
0x2410   : > { %v11891_v10 = vpop.trf.xlu1 }
0x2418   : > { %v11955_v61 = vpop.trf.xlu1 }
0x2419   : > { %32344 = vmatpush3.xpose.msk.msra.mxu0 %vm1728_vm3, %v11955_v61 }
0x241a   : > { %32348 = vmatprep.subr.mxu0 %v34957_v29 }
0x241c   : > { %v11987_v11 = vpop.trf.xlu1  ;;  %32346 = vmatmul.mubr.msk.f32.vlgmr.msra.gmra.mrb[76].mxu0 %vm1728_vm3, %v11699_v36 }
0x241d   : > { %32349 = vmatpush3.xpose.msk.msra.mxu0 %vm1728_vm3, %v11987_v11  ;;  %32350 = vmatprep.mubr.msk.f32.mxu0 %vm34958_vm2, %v34957_v29 }
0x241e   : > { %32353 = vmatprep.subr.mxu0 %v34957_v29 }
0x2420   : > { %v12019_v58 = vpop.trf.xlu1  ;;  %32351 = vmatmul.mubr.msk.f32.vlgmr.msra.gmra.mrb[78].mxu0 %vm1728_vm3, %v11731_v9  ;;  %v11510_v9 = vld [vmem:[#allocation7 + $0x28] sm:$0xff] }
0x2421   : > { %32354 = vmatpush3.xpose.msk.msra.mxu0 %vm1728_vm3, %v12019_v58  ;;  %32355 = vmatprep.mubr.msk.f32.mxu0 %vm34958_vm2, %v34957_v29 }
0x2422   : > { %32363 = vmatprep.subr.mxu0 %v34957_v29 }
0x2424   : > { %v12051_v51 = vpop.trf.xlu1  ;;  %32356 = vmatmul.mubr.msk.f32.vlgmr.msra.gmra.mrb[80].mxu0 %vm1728_vm3, %v11763_v45  ;;  %v36508_v45 = vrot.slane %v11510_v9, %v35427_v40 }
0x2425   : > { %32359 = vmatpush3.xpose.msk.msra.mxu1 %vm1728_vm3, %v12051_v51  ;;  %32365 = vmatprep.mubr.msk.f32.mxu0 %vm34958_vm2, %v34957_v29 }
0x2426   : > { %32368 = vmatprep.subr.mxu1 %v34957_v29 }
0x2428   : > { %32361 = vmatmul.mubr.msk.f32.vlgmr.msra.gmra.mrb[82].mxu1 %vm1728_vm3, %v11795_v32  ;;  %v12083_v14 = vpop.trf.xlu1  ;;  %v11611_v32 = vadd.f32 %v36444_v57, %v36508_v45 }
0x2429   : > { %32364 = vmatpush3.xpose.msk.msra.mxu0 %vm1728_vm3, %v12083_v14  ;;  %32370 = vmatprep.mubr.msk.f32.mxu1 %vm34958_vm2, %v34957_v29 }
0x242a   : > { %32373 = vmatprep.subr.mxu0 %v34957_v29 }
0x242c   : > { %v12115_v44 = vpop.trf.xlu1  ;;  %32366 = vmatmul.mubr.msk.f32.vlgmr.msra.gmra.mrb[82].mxu0 %vm1728_vm3, %v11827_v33 }
0x242d   : > { %32369 = vmatpush3.xpose.msk.msra.mxu1 %vm1728_vm3, %v12115_v44  ;;  %32375 = vmatprep.mubr.msk.f32.mxu0 %vm34958_vm2, %v34957_v29 }
0x242e   : > { %32378 = vmatprep.subr.mxu1 %v34957_v29 }
0x2430   : > { %32371 = vmatmul.mubr.msk.f32.vlgmr.msra.gmra.mrb[84].mxu1 %vm1728_vm3, %v11859_v47  ;;  %v12147_v55 = vpop.trf.xlu1 }
0x2431   : > { %32374 = vmatpush3.xpose.msk.msra.mxu0 %vm1728_vm3, %v12147_v55  ;;  %32380 = vmatprep.mubr.msk.f32.mxu1 %vm34958_vm2, %v34957_v29 }
0x2432   : > { %32383 = vmatprep.subr.mxu0 %v34957_v29 }
0x2434   : > { %v12179_v28 = vpop.trf.xlu1  ;;  %32376 = vmatmul.mubr.msk.f32.vlgmr.msra.gmra.mrb[84].mxu0 %vm1728_vm3, %v11891_v10 }
0x2435   : > { %32379 = vmatpush3.xpose.msk.msra.mxu1 %vm1728_vm3, %v12179_v28  ;;  %32385 = vmatprep.mubr.msk.f32.mxu0 %vm34958_vm2, %v34957_v29 }
0x2436   : > { %32388 = vmatprep.subr.mxu1 %v34957_v29 }
0x2438   : > { %v11923_v16 = vpop.trf.xlu1 }
0x2439   : > { %32381 = vmatmul.mubr.msk.f32.vlgmr.msra.gmra.mrb[86].mxu1 %vm1728_vm3, %v11923_v16 }
0x243a   : > { %32390 = vmatprep.mubr.msk.f32.mxu1 %vm34958_vm2, %v34957_v29 }
0x24ef   : > { %v12532_v48 = vpop.f32.mrb[76].mxu0 }
0x24f0   : > { %v36490_v49 = vmul.f32 0.35355338, %v12532_v48  ;;  %v32347_v15 = vpop.f32.mrb[77].mxu0 }
0x24f2   : > { %v13076_v27 = vsel %vm1728_vm3, %v36490_v49, -inf }
0x24f3   : > { %13077 = vmax.xlane.f32.xlu0 %v13076_v27  ;;  %v12608_v31 = vpop.f32.mrb[78].mxu0 }
0x24f4   : > { %v13069_v25 = vmul.f32 0.35355338, %v12608_v31  ;;  %v32352_v22 = vpop.f32.mrb[79].mxu0 }
0x24f6   : > { %v13079_v41 = vsel %vm1728_vm3, %v13069_v25, -inf }
0x24f7   : > { %13080 = vmax.xlane.f32.xlu1 %v13079_v41  ;;  %v12684_v30 = vpop.f32.mrb[80].mxu0 }
0x24f8   : > { %v36495_v43 = vmul.f32 0.35355338, %v12684_v30  ;;  %v32357_v50 = vpop.f32.mrb[81].mxu0 }
0x24fa   : > { %v13082_v42 = vsel %vm1728_vm3, %v36495_v43, -inf }
0x24fb   : > { %v12760_v7 = vpop.f32.mrb[82].mxu1  ;;  %13083 = vmax.xlane.f32.xlu1 %v13082_v42 }
0x24fc   : > { %v13071_v6 = vmul.f32 0.35355338, %v12760_v7  ;;  %v32362_v54 = vpop.f32.mrb[83].mxu1 }
0x24fe   : > { %v13085_v0 = vsel %vm1728_vm3, %v13071_v6, -inf }
0x24ff   : > { %13086 = vmax.xlane.f32.xlu1 %v13085_v0  ;;  %v12836_v59 = vpop.f32.mrb[82].mxu0 }
0x2500   : > { %v36500_v37 = vmul.f32 0.35355338, %v12836_v59  ;;  %v32367_v60 = vpop.f32.mrb[83].mxu0 }
0x2502   : > { %v13088_v26 = vsel %vm1728_vm3, %v36500_v37, -inf }
0x2503   : > { %v12912_v46 = vpop.f32.mrb[84].mxu1  ;;  %13089 = vmax.xlane.f32.xlu0 %v13088_v26 }
0x2504   : > { %v13073_v13 = vmul.f32 0.35355338, %v12912_v46  ;;  %v32372_v52 = vpop.f32.mrb[85].mxu1 }
0x2506   : > { %v13091_v2 = vsel %vm1728_vm3, %v13073_v13, -inf }
0x2507   : > { %13092 = vmax.xlane.f32.xlu1 %v13091_v2  ;;  %v12988_v1 = vpop.f32.mrb[84].mxu0 }
0x2508   : > { %v13074_v12 = vmul.f32 0.35355338, %v12988_v1  ;;  %v32377_v18 = vpop.f32.mrb[85].mxu0 }
0x250a   : > { %v13094_v34 = vsel %vm1728_vm3, %v13074_v12, -inf }
0x250b   : > { %13095 = vmax.xlane.f32.xlu0 %v13094_v34 }
0x250c   : > { %v13064_v4 = vpop.f32.mrb[86].mxu1 }
0x250d   : > { %v13075_v56 = vmul.f32 0.35355338, %v13064_v4  ;;  %v32382_v8 = vpop.f32.mrb[87].mxu1 }
0x250f   : > { %v13097_v5 = vsel %vm1728_vm3, %v13075_v56, -inf }
0x2510   : > { %13098 = vmax.xlane.f32.xlu1 %v13097_v5 }
0x2543   : > { %11651 = vxpose.xlu1.b32.start.end [1/1] (short) (narrow) %v11611_v32, 64 }
0x2580   : > { %v13078_v42 = vpop.xlane.xlu0 %13077 }
0x2581   : > { %v13100_v7 = vsub.f32 %v36490_v49, %v13078_v42 }
0x2584   : > { %v13081_v33 = vpop.xlane.xlu1 %13080 }
0x2585   : > { %v13101_v47 = vsub.f32 %v13069_v25, %v13081_v33 }
0x2587   : > { %v13110_v10 = vmul.f32 1.442695, %v13101_v47 }
0x2588   : > { %v13084_v61 = vpop.xlane.xlu1 %13083 }
0x2589   : > { %34379 = vpow2.f32 %v13110_v10  ;;  %v13102_v54 = vsub.f32 %v36495_v43, %v13084_v61 }
0x258b   : > { %v13112_v59 = vmul.f32 1.442695, %v13102_v54 }
0x258c   : > { %v13087_v36 = vpop.xlane.xlu1 %13086 }
0x258d   : > { %v13103_v11 = vsub.f32 %v13071_v6, %v13087_v36  ;;  %v13108_v6 = vmul.f32 1.442695, %v13100_v7  ;;  %v11615_v36 = vadd.f32 %v36446_v39, %v36441_v21 }
0x258f   : > { %v13114_v58 = vmul.f32 1.442695, %v13103_v11 }
0x2590   : > { %v13090_v0 = vpop.xlane.xlu0 %13089 }
0x2591   : > { %34381 = vpow2.f32 %v13114_v58  ;;  %v13104_v60 = vsub.f32 %v36500_v37, %v13090_v0 }
0x2593   : > { %v36512_v51 = vpop.eup %34379  ;;  %v13116_v46 = vmul.f32 1.442695, %v13104_v60 }
0x2594   : > { %v13093_v14 = vpop.xlane.xlu1 %13092  ;;  %v13127_v44 = vsel %vm1728_vm3, %v36512_v51, 0.0 }
0x2595   : > { %v13105_v55 = vsub.f32 %v13073_v13, %v13093_v14  ;;  %13128 = vadd.xlane.f32.xlu1 %v13127_v44 }
0x2597   : > { %v13118_v28 = vmul.f32 1.442695, %v13105_v55 }
0x2598   : > { %v13096_v26 = vpop.xlane.xlu0 %13095 }
0x2599   : > { %34383 = vpow2.f32 %v13118_v28  ;;  %v13106_v13 = vsub.f32 %v13074_v12, %v13096_v26 }
0x259a   : > { %34385 = vpow2.f32 %v13108_v6 }
0x259b   : > { %v36516_v57 = vpop.eup %34381  ;;  %34387 = vpow2.f32 %v13112_v59  ;;  %v13120_v52 = vmul.f32 1.442695, %v13106_v13 }
0x259c   : > { %v13133_v16 = vsel %vm1728_vm3, %v36516_v57, 0.0  ;;  %34389 = vpow2.f32 %v13116_v46 }
0x259d   : > { %13134 = vadd.xlane.f32.xlu1 %v13133_v16  ;;  %v13099_v27 = vpop.xlane.xlu1 %13098  ;;  %34391 = vpow2.f32 %v13120_v52 }
0x259e   : > { %v13107_v2 = vsub.f32 %v13075_v56, %v13099_v27 }
0x25a0   : > { %v13122_v18 = vmul.f32 1.442695, %v13107_v2 }
0x25a2   : > { %34393 = vpow2.f32 %v13122_v18 }
0x25a3   : > { %v36520_v48 = vpop.eup %34383 }
0x25a4   : > { %v13139_v15 = vsel %vm1728_vm3, %v36520_v48, 0.0  ;;  %v34386_v1 = vpop.eup %34385 }
0x25a5   : > { %13140 = vadd.xlane.f32.xlu1 %v13139_v15  ;;  %v13124_v49 = vsel %vm1728_vm3, %v34386_v1, 0.0  ;;  %v36528_v34 = vpop.eup %34387 }
0x25a6   : > { %v13130_v43 = vsel %vm1728_vm3, %v36528_v34, 0.0  ;;  %v36532_v37 = vpop.eup %34389 }
0x25a7   : > { %v13136_v12 = vsel %vm1728_vm3, %v36532_v37, 0.0  ;;  %v36536_v4 = vpop.eup %34391 }
0x25a8   : > { %v13142_v56 = vsel %vm1728_vm3, %v36536_v4, 0.0 }
0x25ac   : > { %v36540_v8 = vpop.eup %34393 }
0x25ad   : > { %v13145_v5 = vsel %vm1728_vm3, %v36540_v8, 0.0 }
0x25c3   : > { %v11667_v31 = vpop.trf.xlu1 }
0x25c4   : > { %12195 = vxpose.xlu0.b32.start.end [1/1] (short) (narrow) %v11667_v31, 8 }
0x25c7   : > { %v11668_v25 = vpop.trf.xlu1 }
0x25c8   : > { %12227 = vxpose.xlu0.b32.start.end [1/1] (short) (narrow) %v11668_v25, 8 }
0x25cb   : > { %v11669_v22 = vpop.trf.xlu1 }
0x25cf   : > { %v11670_v41 = vpop.trf.xlu1 }
0x25d0   : > { %12291 = vxpose.xlu0.b32.start.end [1/1] (short) (narrow) %v11670_v41, 8 }
0x25d3   : > { %v11671_v30 = vpop.trf.xlu1 }
0x25d4   : > { %12323 = vxpose.xlu0.b32.start.end [1/1] (short) (narrow) %v11671_v30, 8 }
0x25d7   : > { %v11672_v50 = vpop.trf.xlu1 }
0x25d8   : > { %12259 = vxpose.xlu1.b32.start.end [1/1] (short) (narrow) %v11669_v22, 8  ;;  %12355 = vxpose.xlu0.b32.start.end [1/1] (short) (narrow) %v11672_v50, 8 }
0x25db   : > { %v11673_v9 = vpop.trf.xlu1 }
0x25df   : > { %v11674_v32 = vpop.trf.xlu1 }
0x2605   : > { %13125 = vadd.xlane.f32.xlu0 %v13124_v49 }
0x2609   : > { %13131 = vadd.xlane.f32.xlu0 %v13130_v43 }
0x260d   : > { %13137 = vadd.xlane.f32.xlu0 %v13136_v12 }
0x2611   : > { %13143 = vadd.xlane.f32.xlu0 %v13142_v56 }
0x2615   : > { %13146 = vadd.xlane.f32.xlu0 %v13145_v5 }
0x2622   : > { %v13129_v33 = vpop.xlane.xlu1 %13128 }
0x2623   : > { %34395 = vrcp.f32 %v13129_v33 }
0x262a   : > { %v13135_v47 = vpop.xlane.xlu1 %13134 }
0x262b   : > { %34397 = vrcp.f32 %v13135_v47 }
0x262d   : > { %v34396_v61 = vpop.eup %34395 }
0x262e   : > { %v13157_v11 = vmul.f32 %v34396_v61, %v36512_v51 }
0x2632   : > { %v13141_v58 = vpop.xlane.xlu1 %13140 }
0x2633   : > { %34399 = vrcp.f32 %v13141_v58 }
0x2635   : > { %v34398_v44 = vpop.eup %34397 }
0x2636   : > { %v13159_v55 = vmul.f32 %v34398_v44, %v36516_v57 }
0x263d   : > { %v34400_v39 = vpop.eup %34399 }
0x263e   : > { %v13161_v51 = vmul.f32 %v34400_v39, %v36520_v48 }
0x2642   : > { %12387 = vxpose.xlu0.b32.start.end [1/1] (short) (narrow) %v11673_v9, 8 }
0x2644   : > { %v12211_v10 = vpop.trf.xlu0 }
0x2645   : > { %32384 = vmatpush3.msra.mxu0 %v12211_v10 }
0x2646   : > { %12419 = vxpose.xlu0.b32.start.end [1/1] (short) (narrow) %v11674_v32, 8  ;;  %32393 = vmatprep.subr.mxu0 %v34957_v29 }
0x2648   : > { %v12243_v14 = vpop.trf.xlu0 }
0x2649   : > { %32389 = vmatpush3.msra.mxu1 %v12243_v14 }
0x264a   : > { %14113 = vxpose.xlu0.b32.start.end [1/1] (short) %v11615_v36, 128  ;;  %32391 = vmatmul.mubr.msk.f32.vlgmr.msra.gmra.mrb[88].mxu1 %vm1728_vm3, %v13157_v11 }
0x264b   : > { %32398 = vmatprep.subr.mxu1 %v34957_v29  ;;  %32400 = vmatprep.mubr.msk.f32.mxu1 %vm34958_vm2, %v34957_v29 }
0x2650   : > { %v12307_v28 = vpop.trf.xlu0 }
0x2651   : > { %32399 = vmatpush3.msra.mxu1 %v12307_v28 }
0x2652   : > { %32401 = vmatmul.mubr.msk.f32.vlgmr.msra.gmra.mrb[90].mxu1 %vm1728_vm3, %v13159_v55  ;;  %32408 = vmatprep.subr.mxu1 %v34957_v29 }
0x2653   : > { %32410 = vmatprep.mubr.msk.f32.mxu1 %vm34958_vm2, %v34957_v29 }
0x2654   : > { %v12339_v21 = vpop.trf.xlu0 }
0x2658   : > { %v12371_v16 = vpop.trf.xlu0  ;;  %v12275_v22 = vpop.trf.xlu1 }
0x2659   : > { %32409 = vmatpush3.msra.mxu1 %v12371_v16 }
0x265a   : > { %32411 = vmatmul.mubr.msk.f32.vlgmr.msra.gmra.mrb[92].mxu1 %vm1728_vm3, %v13161_v51  ;;  %32418 = vmatprep.subr.mxu1 %v34957_v29 }
0x265b   : > { %32420 = vmatprep.mubr.msk.f32.mxu1 %vm34958_vm2, %v34957_v29 }
0x2692   : > { %v13126_v57 = vpop.xlane.xlu0 %13125 }
0x2693   : > { %34401 = vrcp.f32 %v13126_v57 }
0x2696   : > { %v13132_v15 = vpop.xlane.xlu0 %13131 }
0x2697   : > { %34403 = vrcp.f32 %v13132_v15 }
0x269a   : > { %v13138_v27 = vpop.xlane.xlu0 %13137 }
0x269b   : > { %34405 = vrcp.f32 %v13138_v27 }
0x269d   : > { %v34402_v31 = vpop.eup %34401 }
0x269e   : > { %v13156_v25 = vmul.f32 %v34402_v31, %v34386_v1  ;;  %v13144_v42 = vpop.xlane.xlu0 %13143 }
0x269f   : > { %34407 = vrcp.f32 %v13144_v42  ;;  %v30756_v42 = vld [vmem:[%s38323_s7 + $0x98] sm:$0xff] }
0x26a0   : > { %32386 = vmatmul.mubr.msk.f32.vlgmr.msra.gmra.mrb[86].mxu0 %vm1728_vm3, %v13156_v25 }
0x26a1   : > { %v34404_v48 = vpop.eup %34403  ;;  %32394 = vmatpush3.msra.mxu0 %v12275_v22  ;;  %32395 = vmatprep.mubr.msk.f32.mxu0 %vm34958_vm2, %v34957_v29 }
0x26a2   : > { %32403 = vmatprep.subr.mxu0 %v34957_v29  ;;  %v13158_v41 = vmul.f32 %v34404_v48, %v36528_v34  ;;  %v13147_v7 = vpop.xlane.xlu0 %13146  ;;  %v30753_v48 = vld [vmem:[%s38323_s7 + $0x80] sm:$0xff] }
0x26a3   : > { %34409 = vrcp.f32 %v13147_v7 }
0x26a4   : > { %32396 = vmatmul.mubr.msk.f32.vlgmr.msra.gmra.mrb[88].mxu0 %vm1728_vm3, %v13158_v41  ;;  %v30754_v41 = vld [vmem:[%s38323_s7 + $0x88] sm:$0xff] }
0x26a5   : > { %v34406_v30 = vpop.eup %34405  ;;  %32404 = vmatpush3.msra.mxu0 %v12339_v21  ;;  %32405 = vmatprep.mubr.msk.f32.mxu0 %vm34958_vm2, %v34957_v29 }
0x26a6   : > { %v13160_v50 = vmul.f32 %v34406_v30, %v36532_v37  ;;  %32413 = vmatprep.subr.mxu0 %v34957_v29  ;;  %v30755_v30 = vld [vmem:[%s38323_s7 + $0x90] sm:$0xff] }
0x26a7   : > { %v36617_v7 = vpack.c.bf16 %v30756_v42, %v30755_v30 }
0x26a8   : > { %32406 = vmatmul.mubr.msk.f32.vlgmr.msra.gmra.mrb[90].mxu0 %vm1728_vm3, %v13160_v50  ;;  %v36611_v50 = vpack.c.bf16 %v30754_v41, %v30753_v48 }
0x26a9   : > { %32415 = vmatprep.mubr.msk.f32.mxu0 %vm34958_vm2, %v34957_v29  ;;  %v34408_v6 = vpop.eup %34407 }
0x26aa   : > { %v13162_v0 = vmul.f32 %v34408_v6, %v36536_v4  ;;  %v30757_v6 = vld [vmem:[%s38323_s7 + $0xa0] sm:$0xff] }
0x26ad   : > { %v34410_v59 = vpop.eup %34409 }
0x26ae   : > { %v13163_v26 = vmul.f32 %v34410_v59, %v36540_v8  ;;  %v30759_v59 = vld [vmem:[%s38323_s7 + $0xb0] sm:$0xff] }
0x26c2   : > { %v12403_v54 = vpop.trf.xlu0 }
0x26c3   : > { %32414 = vmatpush3.msra.mxu0 %v12403_v54  ;;  %v30758_v54 = vld [vmem:[%s38323_s7 + $0xa8] sm:$0xff] }
0x26c4   : > { %32416 = vmatmul.mubr.msk.f32.vlgmr.msra.gmra.mrb[92].mxu0 %vm1728_vm3, %v13162_v0  ;;  %33737 = vmatprep.subr.bf16.mxu0 %v34959_v62  ;;  %v36627_v0 = vpack.c.bf16 %v30758_v54, %v30757_v6 }
0x26c5   : > { %32439 = vmatprep.mubr.msk.f32.mxu0 %vm34958_vm2, %v34957_v29  ;;  %33739 = vmatpush3.bf16.msra.mxu0 %v36611_v50 }
0x26c6   : > { %v12435_v60 = vpop.trf.xlu0  ;;  %33740 = vmatprep.subr.bf16.mxu0 %v34959_v62 }
0x26c7   : > { %32419 = vmatpush3.msra.mxu1 %v12435_v60  ;;  %v30760_v60 = vld [vmem:[%s38323_s7 + $0xb8] sm:$0xff]  ;;  %s38199_s7 = scalar_lea.hbm %s38331_s6, %s31077_s4 }
0x26c8   : > { %32421 = vmatmul.mubr.msk.f32.vlgmr.msra.gmra.mrb[94].mxu1 %vm1728_vm3, %v13163_v26  ;;  %32442 = vmatprep.subr.mxu1 %v34957_v29  ;;  %v36637_v26 = vpack.c.bf16 %v30760_v60, %v30759_v59  ;;  %v11617_v60 = vadd.f32 %v36448_v63, %v36508_v45 }
0x26c9   : > { %32444 = vmatprep.mubr.msk.f32.mxu1 %vm34958_vm2, %v34957_v29  ;;  %33742 = vmatpush3.bf16.msra.mxu0 %v36617_v7 }
0x26ca   : > { %v14129_v46 = vpop.trf.xlu0  ;;  %33743 = vmatprep.subr.bf16.mxu0 %v34959_v62 }
0x26cd   : > { %33745 = vmatpush3.bf16.msra.mxu0 %v36627_v0 }
0x26ce   : > { %v14130_v13 = vpop.trf.xlu0  ;;  %33746 = vmatprep.subr.bf16.mxu0 %v34959_v62 }
0x26d1   : > { %33748 = vmatpush3.bf16.msra.mxu0 %v36637_v26 }
0x26d2   : > { %v14131_v52 = vpop.trf.xlu0  ;;  %32462 = vmatprep.subr.mxu0 %v34957_v29 }
0x26d6   : > { %v14132_v2 = vpop.trf.xlu0 }
0x26da   : > { %v14133_v1 = vpop.trf.xlu0 }
0x26de   : > { %v14134_v18 = vpop.trf.xlu0 }
0x26e2   : > { %v14135_v49 = vpop.trf.xlu0 }
0x26e6   : > { %v36585_v34 = vpop.trf.xlu0 }
0x26ea   : > { %v14137_v43 = vpop.trf.xlu0 }
0x26eb   : > { %14433 = vxpose.xlu1.b32.start.end [1/1] (short) (narrow) %v14137_v43, 8 }
0x26ee   : > { %v14138_v37 = vpop.trf.xlu0 }
0x26ef   : > { %14177 = vxpose.xlu1.b32.start.end [1/1] (short) (narrow) %v14129_v46, 8 }
0x26f2   : > { %v14139_v12 = vpop.trf.xlu0 }
0x26f3   : > { %14465 = vxpose.xlu1.b32.start.end [1/1] (short) (narrow) %v14138_v37, 8 }
0x26f6   : > { %v14140_v10 = vpop.trf.xlu0 }
0x26f7   : > { %14209 = vxpose.xlu1.b32.start.end [1/1] (short) (narrow) %v14130_v13, 8 }
0x26fa   : > { %v14141_v58 = vpop.trf.xlu0 }
0x26fb   : > { %14497 = vxpose.xlu1.b32.start.end [1/1] (short) (narrow) %v14139_v12, 8 }
0x26fe   : > { %v14142_v51 = vpop.trf.xlu0 }
0x26ff   : > { %14241 = vxpose.xlu1.b32.start.end [1/1] (short) (narrow) %v14131_v52, 8 }
0x2702   : > { %v14143_v57 = vpop.trf.xlu0 }
0x2706   : > { %v14144_v15 = vpop.trf.xlu0 }
0x271d   : > { %v13306_v4 = vpop.f32.mrb[88].mxu1 }
0x271e   : > { %v32392_v56 = vpop.f32.mrb[89].mxu1  ;;  %13780 = vxpose.xlu1.b32.start.end [1/1] (short) (narrow) %v13306_v4, 8 }
0x2725   : > { %v13452_v8 = vpop.f32.mrb[90].mxu1 }
0x2726   : > { %v32402_v5 = vpop.f32.mrb[91].mxu1 }
0x272d   : > { %v13598_v9 = vpop.f32.mrb[92].mxu1 }
0x272e   : > { %v32412_v32 = vpop.f32.mrb[93].mxu1 }
0x276b   : > { %v14449_v33 = vpop.trf.xlu1 }
0x276c   : > { %32443 = vmatpush3.xpose.msk.msra.mxu1 %vm1728_vm3, %v14449_v33 }
0x276d   : > { %32447 = vmatprep.subr.mxu1 %v34957_v29 }
0x276f   : > { %v14193_v47 = vpop.trf.xlu1 }
0x2770   : > { %32445 = vmatmul.mubr.msk.f32.vlgmr.msra.gmra.mrb[96].mxu1 %vm1728_vm3, %v14193_v47 }
0x2771   : > { %32449 = vmatprep.mubr.msk.f32.mxu1 %vm34958_vm2, %v34957_v29 }
0x2773   : > { %v14481_v61 = vpop.trf.xlu1  ;;  %v13233_v36 = vpop.f32.mrb[86].mxu0 }
0x2774   : > { %13748 = vxpose.xlu0.b32.start.end [1/1] (short) (narrow) %v13233_v36, 8  ;;  %v32387_v11 = vpop.f32.mrb[87].mxu0  ;;  %32448 = vmatpush3.xpose.msk.msra.mxu1 %vm1728_vm3, %v14481_v61 }
0x2775   : > { %32452 = vmatprep.subr.mxu1 %v34957_v29 }
0x2777   : > { %v14225_v14 = vpop.trf.xlu1  ;;  %v13379_v44 = vpop.f32.mrb[88].mxu0 }
0x2778   : > { %32450 = vmatmul.mubr.msk.f32.vlgmr.msra.gmra.mrb[98].mxu1 %vm1728_vm3, %v14225_v14  ;;  %14561 = vxpose.xlu0.b32.start.end [1/1] (short) (narrow) %v14141_v58, 8  ;;  %v32397_v55 = vpop.f32.mrb[89].mxu0 }
0x2779   : > { %13812 = vxpose.xlu1.b32.start.end [1/1] (short) (narrow) %v13379_v44, 8  ;;  %32454 = vmatprep.mubr.msk.f32.mxu1 %vm34958_vm2, %v34957_v29 }
0x277b   : > { %v14513_v28 = vpop.trf.xlu1  ;;  %v13525_v21 = vpop.f32.mrb[90].mxu0 }
0x277c   : > { %14273 = vxpose.xlu0.b32.start.end [1/1] (short) (narrow) %v14132_v2, 8  ;;  %v32407_v39 = vpop.f32.mrb[91].mxu0  ;;  %32453 = vmatpush3.xpose.msk.msra.mxu1 %vm1728_vm3, %v14513_v28 }
0x277d   : > { %13844 = vxpose.xlu1.b32.start.end [1/1] (short) (narrow) %v13452_v8, 8  ;;  %32457 = vmatprep.subr.mxu1 %v34957_v29 }
0x277f   : > { %v14257_v16 = vpop.trf.xlu1 }
0x2780   : > { %32455 = vmatmul.mubr.msk.f32.vlgmr.msra.gmra.mrb[100].mxu1 %vm1728_vm3, %v14257_v16  ;;  %14593 = vxpose.xlu0.b32.start.end [1/1] (short) (narrow) %v14142_v51, 8 }
0x2781   : > { %13876 = vxpose.xlu1.b32.start.end [1/1] (short) (narrow) %v13525_v21, 8  ;;  %32459 = vmatprep.mubr.msk.f32.mxu1 %vm34958_vm2, %v34957_v29 }
0x2784   : > { %14305 = vxpose.xlu0.b32.start.end [1/1] (short) (narrow) %v14133_v1, 8 }
0x2785   : > { %13908 = vxpose.xlu1.b32.start.end [1/1] (short) (narrow) %v13598_v9, 8 }
0x2788   : > { %14625 = vxpose.xlu0.b32.start.end [1/1] (short) (narrow) %v14143_v57, 8 }
0x278c   : > { %14337 = vxpose.xlu0.b32.start.end [1/1] (short) (narrow) %v14134_v18, 8 }
0x2790   : > { %14657 = vxpose.xlu0.b32.start.end [1/1] (short) (narrow) %v14144_v15, 8 }
0x2794   : > { %14369 = vxpose.xlu0.b32.start.end [1/1] (short) (narrow) %v14135_v49, 8 }
0x2797   : > { %v13671_v27 = vpop.f32.mrb[92].mxu0 }
0x2798   : > { %13940 = vxpose.xlu1.b32.start.end [1/1] (short) (narrow) %v13671_v27, 8  ;;  %v32417_v31 = vpop.f32.mrb[93].mxu0 }
0x279b   : > { %v13744_v25 = vpop.f32.mrb[94].mxu1 }
0x279c   : > { %v32422_v22 = vpop.f32.mrb[95].mxu1  ;;  %13972 = vxpose.xlu1.b32.start.end [1/1] (short) (narrow) %v13744_v25, 8 }
0x279e   : > { %v13796_v46 = vpop.trf.xlu1 }
0x27a0   : > { %14529 = vxpose.xlu1.b32.start.end [1/1] (short) (narrow) %v14140_v10, 8 }
0x27f4   : > { %v13764_v13 = vpop.trf.xlu0 }
0x27f5   : > { %14004 = vxpose.xlu1.b32.start [1/8] (short) (narrow) %v13764_v13, 8 }
0x27f8   : > { %v14577_v18 = vpop.trf.xlu0 }
0x27f9   : > { %14005 = vxpose.xlu1.b32.cont [2/8] (short) (narrow) %v13796_v46, 8  ;;  %v13828_v52 = vpop.trf.xlu1 }
0x27fc   : > { %v14289_v43 = vpop.trf.xlu0 }
0x27fd   : > { %14006 = vxpose.xlu1.b32.cont [3/8] (short) (narrow) %v13828_v52, 8  ;;  %v13860_v2 = vpop.trf.xlu1 }
0x2800   : > { %v14609_v37 = vpop.trf.xlu0 }
0x2801   : > { %14007 = vxpose.xlu1.b32.cont [4/8] (short) (narrow) %v13860_v2, 8  ;;  %v13892_v1 = vpop.trf.xlu1 }
0x2804   : > { %v14321_v12 = vpop.trf.xlu0 }
0x2805   : > { %14008 = vxpose.xlu1.b32.cont [5/8] (short) (narrow) %v13892_v1, 8  ;;  %v13924_v49 = vpop.trf.xlu1 }
0x2808   : > { %v14641_v8 = vpop.trf.xlu0 }
0x2809   : > { %14009 = vxpose.xlu1.b32.cont [6/8] (short) (narrow) %v13924_v49, 8 }
0x280c   : > { %v14353_v9 = vpop.trf.xlu0 }
0x2810   : > { %v14673_v32 = vpop.trf.xlu0 }
0x2814   : > { %v14385_v25 = vpop.trf.xlu0 }
0x2818   : > { %v13956_v4 = vpop.trf.xlu1 }
0x2819   : > { %14010 = vxpose.xlu1.b32.cont [7/8] (short) (narrow) %v13956_v4, 8 }
0x281c   : > { %v13988_v56 = vpop.trf.xlu1 }
0x281d   : > { %14011 = vxpose.xlu1.b32.end [8/8] (short) (narrow) %v13988_v56, 8 }
0x2820   : > { %v14545_v5 = vpop.trf.xlu1 }
0x2821   : > { %14401 = vxpose.xlu1.b32.start.end [1/1] (short) (narrow) %v36585_v34, 8  ;;  %32458 = vmatpush3.xpose.msk.msra.mxu1 %vm1728_vm3, %v14545_v5 }
0x2822   : > { %32467 = vmatprep.subr.mxu1 %v34957_v29 }
0x2824   : > { %32460 = vmatmul.mubr.msk.f32.vlgmr.msra.gmra.mrb[102].mxu1 %vm1728_vm3, %v14289_v43 }
0x2825   : > { %32468 = vmatpush3.xpose.msk.msra.mxu1 %vm1728_vm3, %v14609_v37  ;;  %32469 = vmatprep.mubr.msk.f32.mxu1 %vm34958_vm2, %v34957_v29 }
0x2826   : > { %32477 = vmatprep.subr.mxu1 %v34957_v29 }
0x2828   : > { %32470 = vmatmul.mubr.msk.f32.vlgmr.msra.gmra.mrb[104].mxu1 %vm1728_vm3, %v14353_v9 }
0x2829   : > { %32478 = vmatpush3.xpose.msk.msra.mxu1 %vm1728_vm3, %v14673_v32  ;;  %32479 = vmatprep.mubr.msk.f32.mxu1 %vm34958_vm2, %v34957_v29 }
0x282a   : > { %32487 = vmatprep.subr.mxu1 %v34957_v29 }
0x2843   : > { %v36655_v34 = vpop.f32.mrb[96].mxu1 }
0x2844   : > { %v32446_v33 = vpop.f32.mrb[97].mxu1 }
0x284b   : > { %v15101_v47 = vpop.f32.mrb[98].mxu1 }
0x284c   : > { %v15562_v10 = vmul.f32 0.35355338, %v15101_v47  ;;  %v32451_v61 = vpop.f32.mrb[99].mxu1 }
0x284e   : > { %v15572_v36 = vsel %vm1728_vm3, %v15562_v10, -inf }
0x284f   : > { %15573 = vmax.xlane.f32.xlu1 %v15572_v36 }
0x2853   : > { %v15177_v11 = vpop.f32.mrb[100].mxu1 }
0x2854   : > { %v36658_v58 = vmul.f32 0.35355338, %v15177_v11  ;;  %v32456_v14 = vpop.f32.mrb[101].mxu1  ;;  %v15561_v11 = vmul.f32 0.35355338, %v36655_v34 }
0x2856   : > { %v15575_v44 = vsel %vm1728_vm3, %v36658_v58, -inf }
0x2857   : > { %15576 = vmax.xlane.f32.xlu1 %v15575_v44  ;;  %v15569_v44 = vsel %vm1728_vm3, %v15561_v11, -inf }
0x2881   : > { %v14020_v55 = vpop.trf.xlu1 }
0x2882   : > { %32440 = vmatmul.mubr.msk.f32.vlgmr.msra.gmra.mrb[94].mxu0 %vm804_vm1, %v14020_v55 }
0x2883   : > { %32463 = vmatpush3.xpose.msk.msra.mxu0 %vm1728_vm3, %v14577_v18  ;;  %32464 = vmatprep.mubr.msk.f32.mxu0 %vm34958_vm2, %v34957_v29 }
0x2884   : > { %32472 = vmatprep.subr.mxu0 %v34957_v29 }
0x2886   : > { %32465 = vmatmul.mubr.msk.f32.vlgmr.msra.gmra.mrb[96].mxu0 %vm1728_vm3, %v14321_v12 }
0x2887   : > { %32473 = vmatpush3.xpose.msk.msra.mxu0 %vm1728_vm3, %v14641_v8  ;;  %32474 = vmatprep.mubr.msk.f32.mxu0 %vm34958_vm2, %v34957_v29 }
0x2888   : > { %32482 = vmatprep.subr.mxu0 %v34957_v29 }
0x288a   : > { %32475 = vmatmul.mubr.msk.f32.vlgmr.msra.gmra.mrb[98].mxu0 %vm1728_vm3, %v14385_v25 }
0x288b   : > { %32484 = vmatprep.mubr.msk.f32.mxu0 %vm34958_vm2, %v34957_v29 }
0x28a1   : > { %v14417_v28 = vpop.trf.xlu1 }
0x28a2   : > { %32480 = vmatmul.mubr.msk.f32.vlgmr.msra.gmra.mrb[106].mxu1 %vm1728_vm3, %v14417_v28 }
0x28a3   : > { %32489 = vmatprep.mubr.msk.f32.mxu1 %vm34958_vm2, %v34957_v29 }
0x28dc   : > { %v15574_v46 = vpop.xlane.xlu1 %15573 }
0x28dd   : > { %v15594_v2 = vsub.f32 %v15562_v10, %v15574_v46 }
0x28df   : > { %v15603_v1 = vmul.f32 1.442695, %v15594_v2 }
0x28e1   : > { %34411 = vpow2.f32 %v15603_v1 }
0x28e4   : > { %v36688_v13 = vpop.xlane.xlu1 %15576 }
0x28eb   : > { %v34412_v56 = vpop.eup %34411 }
0x28ec   : > { %v15620_v63 = vsel %vm1728_vm3, %v34412_v56, 0.0 }
0x28f7   : > { %v15253_v21 = vpop.f32.mrb[102].mxu1 }
0x28f8   : > { %v15564_v39 = vmul.f32 0.35355338, %v15253_v21  ;;  %v32461_v51 = vpop.f32.mrb[103].mxu1 }
0x28fa   : > { %v15578_v16 = vsel %vm1728_vm3, %v15564_v39, -inf }
0x28fb   : > { %15579 = vmax.xlane.f32.xlu1 %v15578_v16  ;;  %v15405_v57 = vpop.f32.mrb[104].mxu1 }
0x28fc   : > { %v15566_v15 = vmul.f32 0.35355338, %v15405_v57  ;;  %v32471_v27 = vpop.f32.mrb[105].mxu1 }
0x28fe   : > { %v15584_v31 = vsel %vm1728_vm3, %v15566_v15, -inf }
0x28ff   : > { %15585 = vmax.xlane.f32.xlu1 %v15584_v31 }
0x2955   : > { %v36680_v22 = vpop.f32.mrb[94].mxu0 }
0x2956   : > { %v32441_v48 = vpop.f32.mrb[95].mxu0 }
0x2959   : > { %v15329_v41 = vpop.f32.mrb[96].mxu0 }
0x295a   : > { %v32466_v30 = vpop.f32.mrb[97].mxu0  ;;  %v15565_v14 = vmul.f32 0.35355338, %v15329_v41 }
0x295c   : > { %v15581_v28 = vsel %vm1728_vm3, %v15565_v14, -inf }
0x295d   : > { %v15481_v4 = vpop.f32.mrb[98].mxu0 }
0x295e   : > { %v32476_v8 = vpop.f32.mrb[99].mxu0  ;;  %v15567_v55 = vmul.f32 0.35355338, %v15481_v4 }
0x2960   : > { %v15587_v21 = vsel %vm1728_vm3, %v15567_v55, -inf }
0x2975   : > { %v15557_v42 = vpop.f32.mrb[106].mxu1 }
0x2976   : > { %v36682_v6 = vmul.f32 0.35355338, %v15557_v42  ;;  %v32481_v54 = vpop.f32.mrb[107].mxu1 }
0x2977   : > { %v15595_v54 = vsub.f32 %v36658_v58, %v36688_v13 }
0x2978   : > { %v15590_v59 = vsel %vm1728_vm3, %v36682_v6, -inf }
0x2979   : > { %15591 = vmax.xlane.f32.xlu1 %v15590_v59  ;;  %v15605_v46 = vmul.f32 1.442695, %v15595_v54 }
0x2988   : > { %v15580_v52 = vpop.xlane.xlu1 %15579 }
0x2989   : > { %v15596_v18 = vsub.f32 %v15564_v39, %v15580_v52 }
0x298b   : > { %v15607_v43 = vmul.f32 1.442695, %v15596_v18 }
0x298c   : > { %v15586_v49 = vpop.xlane.xlu1 %15585 }
0x298d   : > { %v15598_v37 = vsub.f32 %v15566_v15, %v15586_v49  ;;  %34413 = vpow2.f32 %v15607_v43 }
0x298f   : > { %v15611_v12 = vmul.f32 1.442695, %v15598_v37 }
0x2991   : > { %34415 = vpow2.f32 %v15611_v12 }
0x2997   : > { %v34414_v45 = vpop.eup %34413 }
0x2998   : > { %v15626_v5 = vsel %vm1728_vm3, %v34414_v45, 0.0 }
0x299b   : > { %v36692_v9 = vpop.eup %34415 }
0x299c   : > { %v15632_v32 = vsel %vm1728_vm3, %v36692_v9, 0.0 }
0x29ac   : > { %14145 = vxpose.xlu1.b32.start.end [1/1] (short) (narrow) %v11617_v60, 64 }
0x29ef   : > { %15621 = vadd.xlane.f32.xlu1 %v15620_v63 }
0x29f3   : > { %15627 = vadd.xlane.f32.xlu1 %v15626_v5 }
0x29f7   : > { %15633 = vadd.xlane.f32.xlu1 %v15632_v32 }
0x2a06   : > { %v15592_v33 = vpop.xlane.xlu1 %15591 }
0x2a07   : > { %v15600_v52 = vsub.f32 %v36682_v6, %v15592_v33 }
0x2a09   : > { %v15615_v18 = vmul.f32 1.442695, %v15600_v52 }
0x2a2c   : > { %v14161_v47 = vpop.trf.xlu1 }
0x2a2d   : > { %14689 = vxpose.xlu0.b32.start.end [1/1] (short) (narrow) %v14161_v47, 8 }
0x2a30   : > { %v14162_v10 = vpop.trf.xlu1 }
0x2a31   : > { %14721 = vxpose.xlu0.b32.start.end [1/1] (short) (narrow) %v14162_v10, 8 }
0x2a34   : > { %v14163_v61 = vpop.trf.xlu1 }
0x2a35   : > { %14753 = vxpose.xlu1.b32.start.end [1/1] (short) (narrow) %v14163_v61, 8 }
0x2a38   : > { %v14164_v36 = vpop.trf.xlu1 }
0x2a39   : > { %14785 = vxpose.xlu0.b32.start.end [1/1] (short) (narrow) %v14164_v36, 8 }
0x2a3c   : > { %v14165_v39 = vpop.trf.xlu1 }
0x2a40   : > { %v14166_v51 = vpop.trf.xlu1 }
0x2a44   : > { %v14167_v16 = vpop.trf.xlu1 }
0x2a48   : > { %v14168_v57 = vpop.trf.xlu1 }
0x2a66   : > { %15570 = vmax.xlane.f32.xlu0 %v15569_v44 }
0x2a6a   : > { %15582 = vmax.xlane.f32.xlu0 %v15581_v28 }
0x2a6e   : > { %15588 = vmax.xlane.f32.xlu0 %v15587_v21 }
0x2a7c   : > { %v15622_v15 = vpop.xlane.xlu1 %15621 }
0x2a7d   : > { %34417 = vrcp.f32 %v15622_v15 }
0x2a80   : > { %v15628_v27 = vpop.xlane.xlu1 %15627 }
0x2a81   : > { %34419 = vrcp.f32 %v15628_v27 }
0x2a87   : > { %v34418_v31 = vpop.eup %34417 }
0x2a88   : > { %v15650_v25 = vmul.f32 %v34418_v31, %v34412_v56 }
0x2a8b   : > { %v34420_v41 = vpop.eup %34419 }
0x2a8c   : > { %v15652_v30 = vmul.f32 %v34420_v41, %v34414_v45 }
0x2a9b   : > { %14817 = vxpose.xlu0.b32.start.end [1/1] (short) (narrow) %v14165_v39, 8 }
0x2aad   : > { %v14705_v34 = vpop.trf.xlu0 }
0x2aae   : > { %32483 = vmatpush3.msra.mxu0 %v14705_v34 }
0x2aaf   : > { %32492 = vmatprep.subr.mxu0 %v34957_v29 }
0x2ab1   : > { %v14737_v48 = vpop.trf.xlu0 }
0x2ab2   : > { %32488 = vmatpush3.msra.mxu1 %v14737_v48 }
0x2ab3   : > { %32490 = vmatmul.mubr.msk.f32.vlgmr.msra.gmra.mrb[108].mxu1 %vm1728_vm3, %v15650_v25  ;;  %32497 = vmatprep.subr.mxu1 %v34957_v29 }
0x2ab4   : > { %32499 = vmatprep.mubr.msk.f32.mxu1 %vm34958_vm2, %v34957_v29 }
0x2ab9   : > { %v14801_v42 = vpop.trf.xlu0 }
0x2aba   : > { %32498 = vmatpush3.msra.mxu1 %v14801_v42 }
0x2abb   : > { %32500 = vmatmul.mubr.msk.f32.vlgmr.msra.gmra.mrb[110].mxu1 %vm1728_vm3, %v15652_v30  ;;  %32507 = vmatprep.subr.mxu1 %v34957_v29 }
0x2abc   : > { %32509 = vmatprep.mubr.msk.f32.mxu1 %vm34958_vm2, %v34957_v29 }
0x2af3   : > { %v15571_v59 = vpop.xlane.xlu0 %15570 }
0x2af4   : > { %v15593_v60 = vsub.f32 %v15561_v11, %v15571_v59 }
0x2af6   : > { %v15601_v2 = vmul.f32 1.442695, %v15593_v60 }
0x2af7   : > { %v15583_v1 = vpop.xlane.xlu0 %15582 }
0x2af8   : > { %34421 = vpow2.f32 %v15601_v2  ;;  %v15597_v49 = vsub.f32 %v15565_v14, %v15583_v1 }
0x2af9   : > { %34423 = vpow2.f32 %v15605_v46 }
0x2afa   : > { %34425 = vpow2.f32 %v15615_v18  ;;  %v15609_v37 = vmul.f32 1.442695, %v15597_v49 }
0x2afb   : > { %v15589_v43 = vpop.xlane.xlu0 %15588 }
0x2afc   : > { %v15599_v12 = vsub.f32 %v15567_v55, %v15589_v43  ;;  %34427 = vpow2.f32 %v15609_v37  ;;  %v15634_v55 = vpop.xlane.xlu1 %15633 }
0x2afe   : > { %v15613_v56 = vmul.f32 1.442695, %v15599_v12  ;;  %v36755_v12 = vld [vmem:[#allocation7 + $0x20] sm:$0xff] }
0x2b00   : > { %34429 = vpow2.f32 %v15613_v56  ;;  %v14769_v27 = vpop.trf.xlu1 }
0x2b02   : > { %v34422_v4 = vpop.eup %34421 }
0x2b03   : > { %v15617_v58 = vsel %vm1728_vm3, %v34422_v4, 0.0  ;;  %v34424_v13 = vpop.eup %34423 }
0x2b04   : > { %15618 = vadd.xlane.f32.xlu0 %v15617_v58  ;;  %v15623_v6 = vsel %vm1728_vm3, %v34424_v13, 0.0  ;;  %v36714_v8 = vpop.eup %34425 }
0x2b05   : > { %v15638_v63 = vsel %vm1728_vm3, %v36714_v8, 0.0 }
0x2b06   : > { %v34428_v45 = vpop.eup %34427 }
0x2b07   : > { %v15629_v5 = vsel %vm1728_vm3, %v34428_v45, 0.0 }
0x2b08   : > { %15624 = vadd.xlane.f32.xlu0 %v15623_v6 }
0x2b0a   : > { %v34430_v32 = vpop.eup %34429 }
0x2b0b   : > { %v15635_v33 = vsel %vm1728_vm3, %v34430_v32, 0.0 }
0x2b0c   : > { %15639 = vadd.xlane.f32.xlu0 %v15638_v63 }
0x2b10   : > { %15630 = vadd.xlane.f32.xlu0 %v15629_v5 }
0x2b14   : > { %15636 = vadd.xlane.f32.xlu0 %v15635_v33 }
0x2b1b   : > { %v14833_v61 = vpop.trf.xlu0 }
0x2b41   : > { %14849 = vxpose.xlu0.b32.start.end [1/1] (short) (narrow) %v14166_v51, 8 }
0x2b45   : > { %14881 = vxpose.xlu0.b32.start.end [1/1] (short) (narrow) %v14167_v16, 8 }
0x2b49   : > { %14913 = vxpose.xlu0.b32.start.end [1/1] (short) (narrow) %v14168_v57, 8 }
0x2b86   : > { %v36720_v47 = vpop.f32.mrb[108].mxu1 }
0x2b87   : > { %v32491_v10 = vpop.f32.mrb[109].mxu1 }
0x2b8e   : > { %v36722_v36 = vpop.f32.mrb[110].mxu1 }
0x2b8f   : > { %v32501_v11 = vpop.f32.mrb[111].mxu1 }
0x2b91   : > { %v15619_v14 = vpop.xlane.xlu0 %15618 }
0x2b92   : > { %34431 = vrcp.f32 %v15619_v14 }
0x2b95   : > { %v15625_v44 = vpop.xlane.xlu0 %15624 }
0x2b96   : > { %34433 = vrcp.f32 %v15625_v44 }
0x2b99   : > { %v15640_v28 = vpop.xlane.xlu0 %15639 }
0x2b9c   : > { %v34432_v21 = vpop.eup %34431 }
0x2b9d   : > { %v15649_v39 = vmul.f32 %v34432_v21, %v34422_v4  ;;  %v15631_v15 = vpop.xlane.xlu0 %15630  ;;  %v14039_v4 = vrot.slane %v36755_v12, %v35739_v3 }
0x2b9e   : > { %34435 = vrcp.f32 %v15631_v15  ;;  %v36770_v15 = vrot.slane %v36755_v12, %v35754_v19 }
0x2b9f   : > { %32485 = vmatmul.mubr.msk.f32.vlgmr.msra.gmra.mrb[100].mxu0 %vm1728_vm3, %v15649_v39  ;;  %34437 = vrcp.f32 %v15634_v55  ;;  %v14110_v56 = vadd.f32 %v36680_v22, %v14039_v4 }
0x2ba0   : > { %v34434_v51 = vpop.eup %34433  ;;  %32493 = vmatpush3.msra.mxu0 %v14769_v27  ;;  %32494 = vmatprep.mubr.msk.f32.mxu0 %vm34958_vm2, %v34957_v29 }
0x2ba1   : > { %v15651_v16 = vmul.f32 %v34434_v51, %v34424_v13  ;;  %32502 = vmatprep.subr.mxu0 %v34957_v29  ;;  %v15637_v31 = vpop.xlane.xlu0 %15636  ;;  %v16602_v58 = vadd.f32 %v14110_v56, %v36429_v38 }
0x2ba2   : > { %34439 = vrcp.f32 %v15637_v31 }
0x2ba3   : > { %32495 = vmatmul.mubr.msk.f32.vlgmr.msra.gmra.mrb[102].mxu0 %vm1728_vm3, %v15651_v16  ;;  %34441 = vrcp.f32 %v15640_v28  ;;  %v16604_v13 = vsel %vm804_vm1, %v16602_v58, 0.0  ;;  %v36766_v28 = vrot.slane %v36755_v12, %v35751_v17 }
0x2ba4   : > { %32503 = vmatpush3.msra.mxu0 %v14833_v61  ;;  %32504 = vmatprep.mubr.msk.f32.mxu0 %vm34958_vm2, %v34957_v29 }
0x2ba5   : > { %32512 = vmatprep.subr.mxu0 %v34957_v29 }
0x2ba8   : > { %v34436_v57 = vpop.eup %34435 }
0x2ba9   : > { %v15653_v34 = vmul.f32 %v34436_v57, %v34428_v45  ;;  %v34438_v25 = vpop.eup %34437 }
0x2baa   : > { %v15654_v48 = vmul.f32 %v34438_v25, %v36692_v9 }
0x2bab   : > { %32505 = vmatmul.mubr.msk.f32.vlgmr.msra.gmra.mrb[104].mxu0 %vm1728_vm3, %v15653_v34 }
0x2bac   : > { %32514 = vmatprep.mubr.msk.f32.mxu0 %vm34958_vm2, %v34957_v29  ;;  %v34440_v30 = vpop.eup %34439 }
0x2bad   : > { %v15655_v54 = vmul.f32 %v34440_v30, %v34430_v32  ;;  %v34442_v59 = vpop.eup %34441 }
0x2bae   : > { %v15656_v9 = vmul.f32 %v34442_v59, %v36714_v8  ;;  %v30819_v59 = vld [vmem:[%s38324_s13 + $0x80] sm:$0xff] }
0x2bc1   : > { %v14865_v41 = vpop.trf.xlu0 }
0x2bc2   : > { %32508 = vmatpush3.msra.mxu1 %v14865_v41 }
0x2bc3   : > { %32510 = vmatmul.mubr.msk.f32.vlgmr.msra.gmra.mrb[112].mxu1 %vm1728_vm3, %v15654_v48  ;;  %32517 = vmatprep.subr.mxu1 %v34957_v29 }
0x2bc4   : > { %32519 = vmatprep.mubr.msk.f32.mxu1 %vm34958_vm2, %v34957_v29 }
0x2bc5   : > { %v14897_v42 = vpop.trf.xlu0 }
0x2bc6   : > { %32513 = vmatpush3.msra.mxu0 %v14897_v42 }
0x2bc7   : > { %32515 = vmatmul.mubr.msk.f32.vlgmr.msra.gmra.mrb[106].mxu0 %vm1728_vm3, %v15655_v54  ;;  %33749 = vmatprep.subr.bf16.mxu0 %v34959_v62 }
0x2bc8   : > { %33751 = vmatpush3.bf16.msra.mxu0 %v36611_v50  ;;  %32538 = vmatprep.mubr.msk.f32.mxu0 %vm34958_vm2, %v34957_v29 }
0x2bc9   : > { %v14929_v60 = vpop.trf.xlu0  ;;  %33752 = vmatprep.subr.bf16.mxu0 %v34959_v62 }
0x2bca   : > { %32518 = vmatpush3.msra.mxu1 %v14929_v60  ;;  %v30821_v60 = vld [vmem:[%s38324_s13 + $0x90] sm:$0xff] }
0x2bcb   : > { %32520 = vmatmul.mubr.msk.f32.vlgmr.msra.gmra.mrb[114].mxu1 %vm1728_vm3, %v15656_v9 }
0x2bcc   : > { %33754 = vmatpush3.bf16.msra.mxu0 %v36617_v7 }
0x2bcd   : > { %33755 = vmatprep.subr.bf16.mxu0 %v34959_v62 }
0x2bd0   : > { %33757 = vmatpush3.bf16.msra.mxu0 %v36627_v0 }
0x2bd1   : > { %33758 = vmatprep.subr.bf16.mxu0 %v34959_v62 }
0x2bd4   : > { %33760 = vmatpush3.bf16.msra.mxu0 %v36637_v26 }
0x2c72   : > { %v15726_v50 = vpop.f32.mrb[100].mxu0 }
0x2c73   : > { %16241 = vxpose.xlu0.b32.start.end [1/1] (short) (narrow) %v15726_v50, 8  ;;  %v32486_v46 = vpop.f32.mrb[101].mxu0  ;;  %v30822_v50 = vld [vmem:[%s38324_s13 + $0x98] sm:$0xff] }
0x2c74   : > { %v33765_v46 = vpack.c.bf16 %v30822_v50, %v30821_v60  ;;  %v30843_v60 = vld [vmem:[%s38325_s23 + $0x170] sm:$0xff]  ;;  %v30844_v50 = vld [vmem:[%s38325_s23 + $0x178] sm:$0xff] }
0x2c76   : > { %v15872_v52 = vpop.f32.mrb[102].mxu0 }
0x2c77   : > { %16273 = vxpose.xlu0.b32.start.end [1/1] (short) (narrow) %v36720_v47, 8  ;;  %16305 = vxpose.xlu1.b32.start.end [1/1] (short) (narrow) %v15872_v52, 8  ;;  %v32496_v2 = vpop.f32.mrb[103].mxu0  ;;  %v30823_v52 = vld [vmem:[%s38324_s13 + $0xa0] sm:$0xff] }
0x2c78   : > { %v30824_v2 = vld [vmem:[%s38324_s13 + $0xa8] sm:$0xff] }
0x2c7b   : > { %16337 = vxpose.xlu0.b32.start.end [1/1] (short) (narrow) %v36722_v36, 8 }
0x2c7e   : > { %v16018_v1 = vpop.f32.mrb[104].mxu0 }
0x2c7f   : > { %16369 = vxpose.xlu1.b32.start.end [1/1] (short) (narrow) %v16018_v1, 8  ;;  %v32506_v7 = vpop.f32.mrb[105].mxu0  ;;  %v33769_v1 = vpack.c.bf16 %v30824_v2, %v30823_v52  ;;  %v16654_v52 = vrot.slane %v36755_v12, %v35856_v20 }
0x2c80   : > { %v30825_v7 = vld [vmem:[%s38324_s13 + $0xb0] sm:$0xff] }
0x2c96   : > { %v16091_v18 = vpop.f32.mrb[112].mxu1 }
0x2c97   : > { %v32511_v49 = vpop.f32.mrb[113].mxu1  ;;  %16401 = vxpose.xlu0.b32.start.end [1/1] (short) (narrow) %v16091_v18, 8  ;;  %v30826_v18 = vld [vmem:[%s38324_s13 + $0xb8] sm:$0xff] }
0x2c98   : > { %v33773_v49 = vpack.c.bf16 %v30826_v18, %v30825_v7 }
0x2c9a   : > { %v16164_v0 = vpop.f32.mrb[106].mxu0 }
0x2c9b   : > { %16433 = vxpose.xlu1.b32.start.end [1/1] (short) (narrow) %v16164_v0, 8  ;;  %v32516_v43 = vpop.f32.mrb[107].mxu0  ;;  %v30829_v0 = vld [vmem:[%s38325_s23 + $0x100] sm:$0xff] }
0x2c9c   : > { %v30830_v43 = vld [vmem:[%s38325_s23 + $0x108] sm:$0xff] }
0x2c9e   : > { %v16237_v26 = vpop.f32.mrb[114].mxu1 }
0x2c9f   : > { %v32521_v37 = vpop.f32.mrb[115].mxu1  ;;  %16465 = vxpose.xlu0.b32.start.end [1/1] (short) (narrow) %v16237_v26, 8  ;;  %v30831_v26 = vld [vmem:[%s38325_s23 + $0x110] sm:$0xff] }
0x2ca0   : > { %v33777_v37 = vpack.c.bf16 %v30830_v43, %v30829_v0  ;;  %v36901_v43 = vld [vmem:[#allocation13] sm:$0xff] }
0x2ca2   : > { %33778 = vmatprep.subr.bf16.mxu0 %v33777_v37 }
0x2ccc   : > { %16605 = vadd.xlane.f32.xlu0 %v16604_v13  ;;  %v30834_v13 = vld [vmem:[%s38325_s23 + $0x128] sm:$0xff] }
0x2cf3   : > { %v16257_v6 = vpop.trf.xlu0 }
0x2cf4   : > { %16497 = vxpose.xlu1.b32.start [1/8] (short) (narrow) %v16257_v6, 8 }
0x2cf7   : > { %v16289_v8 = vpop.trf.xlu0  ;;  %v16321_v63 = vpop.trf.xlu1 }
0x2cf8   : > { %16498 = vxpose.xlu1.b32.cont [2/8] (short) (narrow) %v16289_v8, 8  ;;  %v30835_v8 = vld [vmem:[%s38325_s23 + $0x130] sm:$0xff] }
0x2cfb   : > { %v16353_v45 = vpop.trf.xlu0 }
0x2cfc   : > { %16499 = vxpose.xlu1.b32.cont [3/8] (short) (narrow) %v16321_v63, 8  ;;  %v30836_v63 = vld [vmem:[%s38325_s23 + $0x138] sm:$0xff] }
0x2cff   : > { %v16385_v5 = vpop.trf.xlu1 }
0x2d00   : > { %16500 = vxpose.xlu1.b32.cont [4/8] (short) (narrow) %v16353_v45, 8  ;;  %v33789_v45 = vpack.c.bf16 %v30836_v63, %v30835_v8 }
0x2d04   : > { %16501 = vxpose.xlu1.b32.cont [5/8] (short) (narrow) %v16385_v5, 8  ;;  %v30837_v5 = vld [vmem:[%s38325_s23 + $0x140] sm:$0xff] }
0x2d17   : > { %v16417_v32 = vpop.trf.xlu0 }
0x2d18   : > { %16502 = vxpose.xlu1.b32.cont [6/8] (short) (narrow) %v16417_v32, 8  ;;  %v30838_v32 = vld [vmem:[%s38325_s23 + $0x148] sm:$0xff] }
0x2d1b   : > { %v16449_v33 = vpop.trf.xlu1 }
0x2d1c   : > { %16503 = vxpose.xlu1.b32.cont [7/8] (short) (narrow) %v16449_v33, 8  ;;  %v33793_v33 = vpack.c.bf16 %v30838_v32, %v30837_v5 }
0x2d1f   : > { %v16481_v22 = vpop.trf.xlu0 }
0x2d20   : > { %16504 = vxpose.xlu1.b32.end [8/8] (short) (narrow) %v16481_v22, 8  ;;  %v30839_v22 = vld [vmem:[%s38325_s23 + $0x150] sm:$0xff] }
0x2d59   : > { %v16606_v38 = vpop.xlane.xlu0 %16605 }
0x2d5a   : > { %v16610_v47 = vmul.f32 0.015625, %v16606_v38  ;;  %v30840_v38 = vld [vmem:[%s38325_s23 + $0x158] sm:$0xff] }
0x2d5c   : > { %v16612_v10 = vsub.f32 %v16602_v58, %v16610_v47  ;;  %v30833_v58 = vld [vmem:[%s38325_s23 + $0x120] sm:$0xff]  ;;  %v33797_v47 = vpack.c.bf16 %v30840_v38, %v30839_v22 }
0x2d5d   : > { %v33785_v6 = vpack.c.bf16 %v30834_v13, %v30833_v58 }
0x2d5e   : > { %v16614_v61 = vmul.f32 %v16612_v10, %v16612_v10 }
0x2d60   : > { %v16616_v36 = vsel %vm804_vm1, %v16614_v61, 0.0  ;;  %v30842_v61 = vld [vmem:[%s38325_s23 + $0x168] sm:$0xff] }
0x2d61   : > { %16617 = vadd.xlane.f32.xlu0 %v16616_v36 }
0x2d84   : > { %v16513_v11 = vpop.trf.xlu1 }
0x2d85   : > { %32539 = vmatmul.mubr.msk.f32.vlgmr.msra.gmra.mrb[108].mxu0 %vm804_vm1, %v16513_v11 }
0x2d86   : > { %33780 = vmatpush3.bf16.msra.mxu0 %v33777_v37 }
0x2dee   : > { %v16618_v14 = vpop.xlane.xlu0 %16617 }
0x2def   : > { %v16622_v44 = vmul.f32 0.015625, %v16618_v14 }
0x2df1   : > { %v16624_v55 = vadd.f32 1e-05, %v16622_v44 }
0x2df3   : > { %34443 = vrsqrt.f32 %v16624_v55 }
0x2dfd   : > { %v34444_v21 = vpop.eup %34443 }
0x2dfe   : > { %v16628_v39 = vmul.f32 %v34444_v21, %v16612_v10  ;;  %v30841_v10 = vld [vmem:[%s38325_s23 + $0x160] sm:$0xff] }
0x2dff   : > { %v33801_v36 = vpack.c.bf16 %v30842_v61, %v30841_v10 }
0x2e00   : > { %v16634_v27 = vmul.f32 %v36766_v28, %v16628_v39  ;;  %v16881_v39 = vld [vmem:[%s38326_s22] sm:$0xff] }
0x2e02   : > { %v36774_v51 = vadd.f32 %v36770_v15, %v16634_v27  ;;  %v16882_v27 = vld [vmem:[%s38326_s22 + $0x8] sm:$0xff] }
0x2e04   : > { %32557 = vmatprep.mubr.msk.f32.mxu1 %vm804_vm1, %v36774_v51 }
0x2e58   : > { %v16598_v16 = vpop.f32.mrb[108].mxu0 }
0x2e59   : > { %v16599_v57 = vadd.f32 %v16598_v16, %v14039_v4  ;;  %v32540_v34 = vpop.f32.mrb[109].mxu0  ;;  %v30832_v4 = vld [vmem:[%s38325_s23 + $0x118] sm:$0xff] }
0x2e5a   : > { %v33781_v56 = vpack.c.bf16 %v30832_v4, %v30831_v26  ;;  %v16966_v26 = vrot.slane %v36901_v43, %v35427_v40 }
0x2e5b   : > { %v16603_v31 = vadd.f32 %v16599_v57, %v36434_v53  ;;  %v30820_v53 = vld [vmem:[%s38324_s13 + $0x88] sm:$0xff]  ;;  %v33810_v57 = vpack.c.bf16 %v16882_v27, %v16881_v39  ;;  %v16996_v27 = vld [vmem:[%s38327_s8 + $0x20] sm:$0xff] }
0x2e5c   : > { %v33761_v9 = vpack.c.bf16 %v30820_v53, %v30819_v59  ;;  %33782 = vmatprep.subr.bf16.mxu0 %v33781_v56  ;;  %v34664_v59 = vld [vmem:[%s38322_s11] sm:$0xff] }
0x2e5d   : > { %v16607_v25 = vsel %vm804_vm1, %v16603_v31, 0.0  ;;  %33784 = vmatpush3.bf16.msra.mxu0 %v33781_v56  ;;  %v16875_v53 = vrot.slane %v34664_v59, 7 }
0x2e5e   : > { %16608 = vadd.xlane.f32.xlu1 %v16607_v25  ;;  %33762 = vmatprep.subr.bf16.mxu1 %v33761_v9  ;;  %v16884_v25 = vld [vmem:[%s38326_s22 + $0x18] sm:$0xff] }
0x2e5f   : > { %33764 = vmatpush3.bf16.msra.mxu1 %v33761_v9  ;;  %33786 = vmatprep.subr.bf16.mxu0 %v33785_v6  ;;  %v16878_v9 = vsel %vm16877_vm4, %v34664_v59, %v16875_v53 }
0x2e60   : > { %33766 = vmatprep.subr.bf16.mxu1 %v33765_v46 }
0x2e61   : > { %33788 = vmatpush3.bf16.msra.mxu0 %v33785_v6  ;;  %v16758_v6 = vrot.slane %v36755_v12, %v35863_v35 }
0x2e62   : > { %33790 = vmatprep.subr.bf16.mxu0 %v33789_v45 }
0x2e63   : > { %33768 = vmatpush3.bf16.msra.mxu1 %v33765_v46  ;;  %v33805_v46 = vpack.c.bf16 %v30844_v50, %v30843_v60 }
0x2e64   : > { %33770 = vmatprep.subr.bf16.mxu1 %v33769_v1 }
0x2e65   : > { %33792 = vmatpush3.bf16.msra.mxu0 %v33789_v45 }
0x2e66   : > { %33794 = vmatprep.subr.bf16.mxu0 %v33793_v33 }
0x2e67   : > { %33772 = vmatpush3.bf16.msra.mxu1 %v33769_v1 }
0x2e68   : > { %33774 = vmatprep.subr.bf16.mxu1 %v33773_v49 }
0x2e69   : > { %33796 = vmatpush3.bf16.msra.mxu0 %v33793_v33 }
0x2e6a   : > { %33798 = vmatprep.subr.bf16.mxu0 %v33797_v47 }
0x2e6b   : > { %33776 = vmatpush3.bf16.msra.mxu1 %v33773_v49 }
0x2e6c   : > { %33809 = vmatprep.subr.bf16.mxu1 %v34959_v62 }
0x2e6d   : > { %33800 = vmatpush3.bf16.msra.mxu0 %v33797_v47 }
0x2e6e   : > { %33802 = vmatprep.subr.bf16.mxu0 %v33801_v36 }
0x2e71   : > { %33804 = vmatpush3.bf16.msra.mxu0 %v33801_v36 }
0x2e72   : > { %33806 = vmatprep.subr.bf16.mxu0 %v33805_v46 }
0x2e75   : > { %33808 = vmatpush3.bf16.msra.mxu0 %v33805_v46 }
0x2eeb   : > { %v16609_v48 = vpop.xlane.xlu1 %16608 }
0x2eec   : > { %v16611_v41 = vmul.f32 0.015625, %v16609_v48 }
0x2eee   : > { %v36780_v30 = vsub.f32 %v16603_v31, %v16611_v41  ;;  %v16883_v31 = vld [vmem:[%s38326_s22 + $0x10] sm:$0xff] }
0x2eef   : > { %v33813_v48 = vpack.c.bf16 %v16884_v25, %v16883_v31  ;;  %v16999_v31 = vld [vmem:[%s38327_s8 + $0x38] sm:$0xff] }
0x2ef0   : > { %v16615_v42 = vmul.f32 %v36780_v30, %v36780_v30 }
0x2ef2   : > { %v16619_v54 = vsel %vm804_vm1, %v16615_v42, 0.0  ;;  %v16888_v42 = vld [vmem:[%s38326_s22 + $0x38] sm:$0xff] }
0x2ef3   : > { %16620 = vadd.xlane.f32.xlu0 %v16619_v54 }
0x2f80   : > { %v16621_v11 = vpop.xlane.xlu0 %16620 }
0x2f81   : > { %v16623_v14 = vmul.f32 0.015625, %v16621_v11 }
0x2f83   : > { %v16625_v44 = vadd.f32 1e-05, %v16623_v14  ;;  %v16992_v14 = vld [vmem:[%s38327_s8] sm:$0xff] }
0x2f85   : > { %34445 = vrsqrt.f32 %v16625_v44 }
0x2f8f   : > { %v34446_v55 = vpop.eup %34445 }
0x2f90   : > { %v16629_v21 = vmul.f32 %v34446_v55, %v36780_v30  ;;  %v16887_v30 = vld [vmem:[%s38326_s22 + $0x30] sm:$0xff] }
0x2f91   : > { %v33819_v54 = vpack.c.bf16 %v16888_v42, %v16887_v30  ;;  %v16994_v55 = vld [vmem:[%s38327_s8 + $0x10] sm:$0xff] }
0x2f92   : > { %v16635_v16 = vmul.f32 %v36766_v28, %v16629_v21  ;;  %v16885_v28 = vld [vmem:[%s38326_s22 + $0x20] sm:$0xff]  ;;  %v16995_v21 = vld [vmem:[%s38327_s8 + $0x18] sm:$0xff] }
0x2f93   : > { %v33825_v39 = vpack.c.bf16 %v16995_v21, %v16994_v55 }
0x2f94   : > { %v16641_v34 = vadd.f32 %v36770_v15, %v16635_v16  ;;  %v16886_v15 = vld [vmem:[%s38326_s22 + $0x28] sm:$0xff] }
0x2f95   : > { %v33816_v41 = vpack.c.bf16 %v16886_v15, %v16885_v28  ;;  %v16997_v16 = vld [vmem:[%s38327_s8 + $0x28] sm:$0xff] }
0x2f96   : > { %32558 = vmatmul.mubr.msk.f32.vlgmr.msra.gmra.mrb[116].mxu1 %vm804_vm1, %v16641_v34 }
0x2f97   : > { %33811 = vmatpush3.bf16.msra.mxu1 %v33810_v57  ;;  %32611 = vmatprep.mubr.msk.f32.mxu1 %vm34958_vm2, %v34957_v29  ;;  %v33828_v57 = vpack.c.bf16 %v16997_v16, %v16996_v27 }
0x2f98   : > { %33812 = vmatprep.subr.bf16.mxu1 %v34959_v62 }
0x2f9b   : > { %33814 = vmatpush3.bf16.msra.mxu1 %v33813_v48 }
0x2f9c   : > { %33815 = vmatprep.subr.bf16.mxu1 %v34959_v62 }
0x2f9f   : > { %33817 = vmatpush3.bf16.msra.mxu1 %v33816_v41 }
0x2fa0   : > { %33818 = vmatprep.subr.bf16.mxu1 %v34959_v62 }
0x2fa3   : > { %33820 = vmatpush3.bf16.msra.mxu1 %v33819_v54 }
0x2fa4   : > { %33821 = vmatprep.subr.bf16.mxu1 %v34959_v62 }
0x2fa6   : > { %32612 = vmatmul.mubr.msk.f32.vlgmr.msra.gmra.mrb[118].mxu1 %vm804_vm1, %v16878_v9 }
0x2fa7   : > { %32630 = vmatprep.mubr.msk.f32.mxu1 %vm34958_vm2, %v34957_v29 }
0x3069   : > { %v32559_v2 = vpop.f32.mrb[116].mxu1 }
0x306a   : > { %v16733_v1 = vadd.f32 %v32559_v2, %v16654_v52  ;;  %v16727_v7 = vpop.f32.mrb[117].mxu1 }
0x306b   : > { %v16728_v18 = vadd.f32 %v16727_v7, %v16654_v52  ;;  %v16985_v52 = vrot.slane %v36901_v43, %v35921_v23  ;;  %v16990_v7 = vrot.slane %v36901_v43, %v35925_v24 }
0x306c   : > { %v16737_v0 = vmax.f32 %v16733_v1, 0.0 }
0x306d   : > { %v16736_v49 = vmax.f32 %v16728_v18, 0.0 }
0x306f   : > { %32592 = vmatprep.mubr.f32.mxu0 %v16736_v49 }
0x3070   : > { %32593 = vmatmul.mubr.f32.vlgmr.msra.gmra.mrb[110].mxu0 %v16737_v0  ;;  %v17077_v0 = vld [vmem:[#allocation8] sm:$0xff] }
0x3079   : > { %v16958_v37 = vpop.f32.mrb[118].mxu1 }
0x307a   : > { %v16962_v4 = vadd.f32 %v16958_v37, %v16878_v9  ;;  %v32613_v56 = vpop.f32.mrb[119].mxu1 }
0x307b   : > { %v17080_v56 = vld [vmem:[#allocation8 + $0x18] sm:$0xff] }
0x307c   : > { %v16967_v58 = vadd.f32 %v16966_v26, %v16962_v4  ;;  %v17078_v26 = vld [vmem:[#allocation8 + $0x8] sm:$0xff]  ;;  %v17079_v4 = vld [vmem:[#allocation8 + $0x10] sm:$0xff] }
0x307d   : > { %v33833_v37 = vpack.c.bf16 %v17078_v26, %v17077_v0 }
0x307e   : > { %v16969_v13 = vsel %vm16968_vm5, %v16967_v58, 0.0 }
0x307f   : > { %16970 = vadd.xlane.f32.xlu0 %v16969_v13  ;;  %33834 = vmatprep.subr.bf16.mxu0 %v33833_v37  ;;  %v17081_v13 = vld [vmem:[#allocation8 + $0x20] sm:$0xff] }
0x3080   : > { %33836 = vmatpush3.bf16.msra.mxu0 %v33833_v37 }
0x310c   : > { %v16971_v8 = vpop.xlane.xlu0 %16970 }
0x310d   : > { %v16972_v5 = vmul.f32 0.015625, %v16971_v8 }
0x310f   : > { %v16973_v38 = vsub.f32 %v16967_v58, %v16972_v5  ;;  %v33837_v58 = vpack.c.bf16 %v17080_v56, %v17079_v4 }
0x3111   : > { %v16974_v36 = vmul.f32 %v16973_v38, %v16973_v38  ;;  %33838 = vmatprep.subr.bf16.mxu0 %v33837_v58 }
0x3112   : > { %33840 = vmatpush3.bf16.msra.mxu0 %v33837_v58 }
0x3113   : > { %v16975_v11 = vsel %vm16968_vm5, %v16974_v36, 0.0 }
0x3143   : > { %v32594_v63 = vpop.f32.mrb[110].mxu0 }
0x3144   : > { %v16825_v45 = vpop.f32.mrb[111].mxu0  ;;  %v16831_v32 = vadd.f32 %v32594_v63, %v16758_v6  ;;  %v17083_v63 = vld [vmem:[#allocation8 + $0x30] sm:$0xff] }
0x3145   : > { %v16826_v33 = vadd.f32 %v16825_v45, %v16758_v6  ;;  %v17082_v6 = vld [vmem:[#allocation8 + $0x28] sm:$0xff]  ;;  %v17084_v45 = vld [vmem:[#allocation8 + $0x38] sm:$0xff] }
0x3146   : > { %v16835_v47 = vadd.f32 %v16831_v32, %v16641_v34  ;;  %v16998_v34 = vld [vmem:[%s38327_s8 + $0x30] sm:$0xff]  ;;  %v33841_v8 = vpack.c.bf16 %v17082_v6, %v17081_v13  ;;  %v33845_v5 = vpack.c.bf16 %v17084_v45, %v17083_v63 }
0x3147   : > { %v16834_v22 = vadd.f32 %v16826_v33, %v36774_v51  ;;  %v16993_v51 = vld [vmem:[%s38327_s8 + $0x8] sm:$0xff]  ;;  %v33831_v25 = vpack.c.bf16 %v16999_v31, %v16998_v34 }
0x3148   : > { %v16839_v61 = vsel %vm804_vm1, %v16835_v47, 0.0  ;;  %v33822_v44 = vpack.c.bf16 %v16993_v51, %v16992_v14  ;;  %33842 = vmatprep.subr.bf16.mxu0 %v33841_v8  ;;  %v16871_v14 = vrot.slane %v36755_v12, %v35925_v24 }
0x3149   : > { %v16836_v10 = vsel %vm804_vm1, %v16834_v22, 0.0  ;;  %33844 = vmatpush3.bf16.msra.mxu0 %v33841_v8 }
0x314a   : > { %16837 = vadd.xlane.f32.xlu0 %v16836_v10  ;;  %33823 = vmatpush3.bf16.msra.mxu1 %v33822_v44 }
0x314b   : > { %33824 = vmatprep.subr.bf16.mxu1 %v34959_v62  ;;  %33846 = vmatprep.subr.bf16.mxu0 %v33845_v5 }
0x314d   : > { %33848 = vmatpush3.bf16.msra.mxu0 %v33845_v5 }
0x314e   : > { %16840 = vadd.xlane.f32.xlu0 %v16839_v61  ;;  %33826 = vmatpush3.bf16.msra.mxu1 %v33825_v39  ;;  %v16865_v61 = vrot.slane %v36755_v12, %v35921_v23  ;;  %v17003_v12 = vrot.slane %v36901_v43, %v35739_v3 }
0x314f   : > { %33827 = vmatprep.subr.bf16.mxu1 %v34959_v62  ;;  %32672 = vmatprep.subr.mxu0 %v34957_v29 }
0x3152   : > { %16976 = vadd.xlane.f32.xlu0 %v16975_v11  ;;  %33829 = vmatpush3.bf16.msra.mxu1 %v33828_v57 }
0x3153   : > { %33830 = vmatprep.subr.bf16.mxu1 %v34959_v62 }
0x3156   : > { %33832 = vmatpush3.bf16.msra.mxu1 %v33831_v25 }
0x3157   : > { %32652 = vmatprep.subr.mxu1 %v34957_v29 }
0x31d7   : > { %v16838_v48 = vpop.xlane.xlu0 %16837 }
0x31d8   : > { %v16842_v28 = vmul.f32 0.015625, %v16838_v48 }
0x31da   : > { %v16844_v15 = vsub.f32 %v16834_v22, %v16842_v28  ;;  %v17088_v28 = vrot.slane %v36901_v43, %v35856_v20 }
0x31db   : > { %v16841_v41 = vpop.xlane.xlu0 %16840 }
0x31dc   : > { %v16843_v30 = vmul.f32 0.015625, %v16841_v41  ;;  %v16846_v42 = vmul.f32 %v16844_v15, %v16844_v15 }
0x31de   : > { %v16845_v54 = vsub.f32 %v16835_v47, %v16843_v30  ;;  %v16848_v59 = vsel %vm804_vm1, %v16846_v42, 0.0 }
0x31df   : > { %16849 = vadd.xlane.f32.xlu0 %v16848_v59  ;;  %v16977_v53 = vpop.xlane.xlu0 %16976 }
0x31e0   : > { %v16978_v9 = vmul.f32 0.015625, %v16977_v53  ;;  %v16847_v60 = vmul.f32 %v16845_v54, %v16845_v54 }
0x31e2   : > { %v16979_v50 = vadd.f32 1e-05, %v16978_v9  ;;  %v16851_v46 = vsel %vm804_vm1, %v16847_v60, 0.0 }
0x31e3   : > { %16852 = vadd.xlane.f32.xlu1 %v16851_v46 }
0x31e4   : > { %34447 = vrsqrt.f32 %v16979_v50 }
0x31ee   : > { %v34448_v2 = vpop.eup %34447 }
0x31ef   : > { %v16981_v1 = vmul.f32 %v34448_v2, %v16973_v38 }
0x31f1   : > { %v16986_v18 = vmul.f32 %v16985_v52, %v16981_v1 }
0x31f3   : > { %v36946_v49 = vadd.f32 %v16990_v7, %v16986_v18 }
0x31f5   : > { %32631 = vmatmul.mubr.msk.f32.vlgmr.msra.gmra.mrb[120].mxu1 %vm804_vm1, %v36946_v49 }
0x31f6   : > { %32654 = vmatprep.mubr.msk.f32.mxu1 %vm34958_vm2, %v34957_v29 }
0x326c   : > { %v16850_v32 = vpop.xlane.xlu0 %16849 }
0x326d   : > { %v16854_v33 = vmul.f32 0.015625, %v16850_v32 }
0x326f   : > { %v16856_v22 = vadd.f32 1e-05, %v16854_v33 }
0x3270   : > { %v16853_v38 = vpop.xlane.xlu1 %16852 }
0x3271   : > { %34449 = vrsqrt.f32 %v16856_v22  ;;  %v16855_v47 = vmul.f32 0.015625, %v16853_v38 }
0x3273   : > { %v16857_v10 = vadd.f32 1e-05, %v16855_v47 }
0x3275   : > { %34451 = vrsqrt.f32 %v16857_v10 }
0x327b   : > { %v34450_v36 = vpop.eup %34449 }
0x327c   : > { %v16860_v11 = vmul.f32 %v34450_v36, %v16844_v15 }
0x327e   : > { %v16866_v51 = vmul.f32 %v16865_v61, %v16860_v11 }
0x327f   : > { %v34452_v44 = vpop.eup %34451 }
0x3280   : > { %v16861_v55 = vmul.f32 %v34452_v44, %v16845_v54  ;;  %v36957_v21 = vadd.f32 %v16871_v14, %v16866_v51 }
0x3282   : > { %v16867_v39 = vmul.f32 %v16865_v61, %v16861_v55  ;;  %32649 = vmatprep.mubr.msk.f32.mxu0 %vm804_vm1, %v36957_v21 }
0x3284   : > { %v36961_v27 = vadd.f32 %v16871_v14, %v16867_v39 }
0x3286   : > { %32650 = vmatmul.mubr.msk.f32.vlgmr.msra.gmra.mrb[112].mxu0 %vm804_vm1, %v36961_v27 }
0x3287   : > { %32674 = vmatprep.mubr.msk.f32.mxu0 %vm34958_vm2, %v34957_v29 }
0x32c8   : > { %v17073_v16 = vpop.f32.mrb[120].mxu1 }
0x32c9   : > { %v36969_v57 = vadd.f32 %v17073_v16, %v17003_v12  ;;  %v32632_v34 = vpop.f32.mrb[121].mxu1 }
0x32cb   : > { %17170 = vxpose.xlu0.b32.start.end [1/1] (short) (narrow) %v36969_v57, 64 }
0x334b   : > { %v17186_v31 = vpop.trf.xlu0 }
0x334c   : > { %17202 = vxpose.xlu0.b32.start.end [1/1] (short) (narrow) %v17186_v31, 8 }
0x334f   : > { %v17187_v25 = vpop.trf.xlu0 }
0x3353   : > { %v17188_v48 = vpop.trf.xlu0 }
0x3354   : > { %17266 = vxpose.xlu0.b32.start.end [1/1] (short) (narrow) %v17188_v48, 8 }
0x3357   : > { %v17189_v15 = vpop.trf.xlu0 }
0x3358   : > { %17298 = vxpose.xlu0.b32.start.end [1/1] (short) (narrow) %v17189_v15, 8 }
0x3359   : > { %v32651_v41 = vpop.f32.mrb[112].mxu0 }
0x335a   : > { %v36974_v30 = vadd.f32 %v32651_v41, %v17088_v28  ;;  %v17161_v42 = vpop.f32.mrb[113].mxu0 }
0x335b   : > { %v17162_v54 = vadd.f32 %v17161_v42, %v17088_v28  ;;  %v17190_v59 = vpop.trf.xlu0 }
0x335c   : > { %17330 = vxpose.xlu0.b32.start.end [1/1] (short) (narrow) %v17190_v59, 8 }
0x335d   : > { %17458 = vxpose.xlu1.b32.start.end [1/1] (short) %v17162_v54, 128 }
0x335f   : > { %v17191_v53 = vpop.trf.xlu0 }
0x3360   : > { %17362 = vxpose.xlu0.b32.start.end [1/1] (short) (narrow) %v17191_v53, 8 }
0x3363   : > { %v17192_v9 = vpop.trf.xlu0 }
0x3364   : > { %17394 = vxpose.xlu0.b32.start.end [1/1] (short) (narrow) %v17192_v9, 8 }
0x3367   : > { %v17193_v60 = vpop.trf.xlu0 }
0x3368   : > { %17426 = vxpose.xlu0.b32.start.end [1/1] (short) (narrow) %v17193_v60, 8 }
0x339a   : > { %17234 = vxpose.xlu1.b32.start.end [1/1] (short) (narrow) %v17187_v25, 8 }
0x33cc   : > { %v17218_v50 = vpop.trf.xlu0 }
0x33d4   : > { %v17282_v46 = vpop.trf.xlu0 }
0x33d8   : > { %v17314_v2 = vpop.trf.xlu0 }
0x33dc   : > { %v17346_v7 = vpop.trf.xlu0 }
0x33dd   : > { %v17474_v43 = vpop.trf.xlu1 }
0x33de   : > { %32653 = vmatpush3.msra.mxu1 %v17474_v43 }
0x33df   : > { %32655 = vmatmul.mubr.msk.f32.vlgmr.msra.gmra.mrb[122].mxu1 %vm1728_vm3, %v17218_v50  ;;  %32657 = vmatprep.subr.mxu1 %v34957_v29 }
0x33e0   : > { %32659 = vmatprep.mubr.msk.f32.mxu1 %vm34958_vm2, %v34957_v29  ;;  %v17378_v26 = vpop.trf.xlu0 }
0x33e1   : > { %v17475_v52 = vpop.trf.xlu1 }
0x33e2   : > { %32658 = vmatpush3.msra.mxu1 %v17475_v52 }
0x33e3   : > { %32662 = vmatprep.subr.mxu1 %v34957_v29 }
0x33e4   : > { %v17410_v4 = vpop.trf.xlu0 }
0x33e5   : > { %v17476_v1 = vpop.trf.xlu1 }
0x33e8   : > { %v17442_v38 = vpop.trf.xlu0 }
0x33e9   : > { %v17477_v18 = vpop.trf.xlu1 }
0x33ed   : > { %v17478_v0 = vpop.trf.xlu1 }
0x33ee   : > { %32673 = vmatpush3.msra.mxu0 %v17478_v0 }
0x33ef   : > { %32682 = vmatprep.subr.mxu0 %v34957_v29  ;;  %32675 = vmatmul.mubr.msk.f32.vlgmr.msra.gmra.mrb[114].mxu0 %vm1728_vm3, %v17346_v7 }
0x33f0   : > { %32684 = vmatprep.mubr.msk.f32.mxu0 %vm34958_vm2, %v34957_v29 }
0x33f1   : > { %v17479_v37 = vpop.trf.xlu1 }
0x33f5   : > { %v17480_v56 = vpop.trf.xlu1 }
0x33f6   : > { %32683 = vmatpush3.msra.mxu0 %v17480_v56 }
0x33f7   : > { %32692 = vmatprep.subr.mxu0 %v34957_v29  ;;  %32685 = vmatmul.mubr.msk.f32.vlgmr.msra.gmra.mrb[116].mxu0 %vm1728_vm3, %v17410_v4 }
0x33f8   : > { %32694 = vmatprep.mubr.msk.f32.mxu0 %vm34958_vm2, %v34957_v29 }
0x33f9   : > { %v17481_v58 = vpop.trf.xlu1 }
0x33fd   : > { %v17482_v13 = vpop.trf.xlu1 }
0x33fe   : > { %32693 = vmatpush3.xpose.msk.msra.mxu0 %vm1728_vm3, %v17482_v13 }
0x33ff   : > { %32702 = vmatprep.subr.mxu0 %v34957_v29 }
0x3401   : > { %v17483_v6 = vpop.trf.xlu1 }
0x3405   : > { %v36991_v8 = vpop.trf.xlu1 }
0x3409   : > { %v36993_v63 = vpop.trf.xlu1 }
0x340d   : > { %v36995_v45 = vpop.trf.xlu1 }
0x3411   : > { %v36997_v5 = vpop.trf.xlu1 }
0x3415   : > { %v36999_v32 = vpop.trf.xlu1 }
0x3419   : > { %v37001_v33 = vpop.trf.xlu1 }
0x341d   : > { %v17250_v22 = vpop.trf.xlu1 }
0x341e   : > { %32660 = vmatmul.mubr.msk.f32.vlgmr.msra.gmra.mrb[124].mxu1 %vm1728_vm3, %v17250_v22 }
0x341f   : > { %32663 = vmatpush3.msra.mxu1 %v17476_v1  ;;  %32664 = vmatprep.mubr.msk.f32.mxu1 %vm34958_vm2, %v34957_v29 }
0x3420   : > { %32667 = vmatprep.subr.mxu1 %v34957_v29 }
0x3422   : > { %32665 = vmatmul.mubr.msk.f32.vlgmr.msra.gmra.mrb[126].mxu1 %vm1728_vm3, %v17282_v46 }
0x3423   : > { %32668 = vmatpush3.msra.mxu1 %v17477_v18  ;;  %32669 = vmatprep.mubr.msk.f32.mxu1 %vm34958_vm2, %v34957_v29 }
0x3424   : > { %32677 = vmatprep.subr.mxu1 %v34957_v29 }
0x3426   : > { %32670 = vmatmul.mubr.msk.f32.vlgmr.msra.gmra.mrb[128].mxu1 %vm1728_vm3, %v17314_v2 }
0x3427   : > { %32678 = vmatpush3.msra.mxu1 %v17479_v37  ;;  %32679 = vmatprep.mubr.msk.f32.mxu1 %vm34958_vm2, %v34957_v29 }
0x3428   : > { %32687 = vmatprep.subr.mxu1 %v34957_v29 }
0x342a   : > { %32680 = vmatmul.mubr.msk.f32.vlgmr.msra.gmra.mrb[130].mxu1 %vm1728_vm3, %v17378_v26 }
0x342b   : > { %32688 = vmatpush3.msra.mxu1 %v17481_v58  ;;  %32689 = vmatprep.mubr.msk.f32.mxu1 %vm34958_vm2, %v34957_v29 }
0x342c   : > { %32697 = vmatprep.subr.mxu1 %v34957_v29 }
0x342e   : > { %32690 = vmatmul.mubr.msk.f32.vlgmr.msra.gmra.mrb[132].mxu1 %vm1728_vm3, %v17442_v38 }
0x342f   : > { %32699 = vmatprep.mubr.msk.f32.mxu1 %vm34958_vm2, %v34957_v29 }
0x3432   : > { %32698 = vmatpush3.xpose.msk.msra.mxu1 %vm1728_vm3, %v17483_v6 }
0x3433   : > { %32707 = vmatprep.subr.mxu1 %v34957_v29 }
0x34b2   : > { %v17567_v47 = vpop.f32.mrb[122].mxu1 }
0x34b3   : > { %v18082_v10 = vmul.f32 0.35355338, %v17567_v47  ;;  %v32656_v61 = vpop.f32.mrb[123].mxu1 }
0x34b5   : > { %v18091_v36 = vsel %vm18090_vm6, %v18082_v10, -inf }
0x34b6   : > { %18092 = vmax.xlane.f32.xlu0 %v18091_v36 }
0x34c2   : > { %v17859_v11 = vpop.f32.mrb[114].mxu0 }
0x34c3   : > { %v32676_v14 = vpop.f32.mrb[115].mxu0  ;;  %v18086_v42 = vmul.f32 0.35355338, %v17859_v11 }
0x34c5   : > { %v18103_v60 = vsel %vm18090_vm6, %v18086_v42, -inf }
0x34ca   : > { %v18005_v51 = vpop.f32.mrb[116].mxu0 }
0x34cb   : > { %v32686_v44 = vpop.f32.mrb[117].mxu0  ;;  %v18088_v50 = vmul.f32 0.35355338, %v18005_v51 }
0x34cd   : > { %v18109_v2 = vsel %vm18090_vm6, %v18088_v50, -inf }
0x34f1   : > { %v17640_v55 = vpop.f32.mrb[124].mxu1 }
0x34f2   : > { %v18083_v39 = vmul.f32 0.35355338, %v17640_v55  ;;  %v32661_v12 = vpop.f32.mrb[125].mxu1 }
0x34f4   : > { %v18094_v16 = vsel %vm18090_vm6, %v18083_v39, -inf }
0x34f5   : > { %18095 = vmax.xlane.f32.xlu1 %v18094_v16  ;;  %v17713_v34 = vpop.f32.mrb[126].mxu1 }
0x34f6   : > { %v18084_v31 = vmul.f32 0.35355338, %v17713_v34  ;;  %v32666_v25 = vpop.f32.mrb[127].mxu1 }
0x34f8   : > { %v18097_v48 = vsel %vm18090_vm6, %v18084_v31, -inf }
0x34f9   : > { %18098 = vmax.xlane.f32.xlu0 %v18097_v48  ;;  %v17786_v28 = vpop.f32.mrb[128].mxu1 }
0x34fa   : > { %v18085_v15 = vmul.f32 0.35355338, %v17786_v28  ;;  %v32671_v41 = vpop.f32.mrb[129].mxu1 }
0x34fc   : > { %v18100_v54 = vsel %vm18090_vm6, %v18085_v15, -inf }
0x34fd   : > { %18101 = vmax.xlane.f32.xlu0 %v18100_v54  ;;  %v17932_v59 = vpop.f32.mrb[130].mxu1 }
0x34fe   : > { %v18087_v53 = vmul.f32 0.35355338, %v17932_v59  ;;  %v32681_v9 = vpop.f32.mrb[131].mxu1 }
0x3500   : > { %v18106_v46 = vsel %vm18090_vm6, %v18087_v53, -inf }
0x3501   : > { %18104 = vmax.xlane.f32.xlu0 %v18103_v60  ;;  %18107 = vmax.xlane.f32.xlu1 %v18106_v46  ;;  %v18078_v43 = vpop.f32.mrb[132].mxu1 }
0x3502   : > { %v18089_v52 = vmul.f32 0.35355338, %v18078_v43  ;;  %v32691_v1 = vpop.f32.mrb[133].mxu1 }
0x3504   : > { %v18112_v7 = vsel %vm18090_vm6, %v18089_v52, -inf }
0x3505   : > { %18110 = vmax.xlane.f32.xlu0 %v18109_v2  ;;  %18113 = vmax.xlane.f32.xlu1 %v18112_v7  ;;  %v19152_v2 = vrot.slane %v36969_v57, 1 }
0x3543   : > { %v18093_v18 = vpop.xlane.xlu0 %18092 }
0x3544   : > { %v18115_v0 = vsub.f32 %v18082_v10, %v18093_v18 }
0x3546   : > { %v18123_v26 = vmul.f32 1.442695, %v18115_v0 }
0x3548   : > { %34453 = vpow2.f32 %v18123_v26 }
0x3552   : > { %v34454_v37 = vpop.eup %34453 }
0x3553   : > { %v18139_v4 = vsel %vm18090_vm6, %v34454_v37, 0.0 }
0x3554   : > { %18140 = vadd.xlane.f32.xlu0 %v18139_v4 }
0x3582   : > { %v18096_v56 = vpop.xlane.xlu1 %18095 }
0x3583   : > { %v18116_v58 = vsub.f32 %v18083_v39, %v18096_v56 }
0x3585   : > { %v18125_v13 = vmul.f32 1.442695, %v18116_v58 }
0x3586   : > { %v18099_v6 = vpop.xlane.xlu0 %18098 }
0x3587   : > { %34455 = vpow2.f32 %v18125_v13  ;;  %v18117_v22 = vsub.f32 %v18084_v31, %v18099_v6 }
0x3589   : > { %v18127_v38 = vmul.f32 1.442695, %v18117_v22 }
0x358a   : > { %v18102_v47 = vpop.xlane.xlu0 %18101 }
0x358b   : > { %34457 = vpow2.f32 %v18127_v38  ;;  %v18118_v61 = vsub.f32 %v18085_v15, %v18102_v47 }
0x358d   : > { %v18129_v36 = vmul.f32 1.442695, %v18118_v61 }
0x358e   : > { %v18108_v11 = vpop.xlane.xlu1 %18107  ;;  %v18105_v14 = vpop.xlane.xlu0 %18104 }
0x358f   : > { %34459 = vpow2.f32 %v18129_v36  ;;  %v18120_v10 = vsub.f32 %v18087_v53, %v18108_v11  ;;  %v18119_v51 = vsub.f32 %v18086_v42, %v18105_v14 }
0x3591   : > { %v34456_v44 = vpop.eup %34455  ;;  %v18133_v55 = vmul.f32 1.442695, %v18120_v10  ;;  %v18131_v12 = vmul.f32 1.442695, %v18119_v51 }
0x3592   : > { %v18114_v16 = vpop.xlane.xlu1 %18113  ;;  %v18111_v34 = vpop.xlane.xlu0 %18110  ;;  %v18142_v39 = vsel %vm18090_vm6, %v34456_v44, 0.0 }
0x3593   : > { %34461 = vpow2.f32 %v18133_v55  ;;  %v18122_v25 = vsub.f32 %v18089_v52, %v18114_v16  ;;  %v18121_v31 = vsub.f32 %v18088_v50, %v18111_v34  ;;  %18143 = vadd.xlane.f32.xlu1 %v18142_v39 }
0x3594   : > { %34463 = vpow2.f32 %v18131_v12 }
0x3595   : > { %v34458_v48 = vpop.eup %34457  ;;  %v18137_v28 = vmul.f32 1.442695, %v18122_v25  ;;  %v18135_v15 = vmul.f32 1.442695, %v18121_v31 }
0x3596   : > { %v18145_v41 = vsel %vm18090_vm6, %v34458_v48, 0.0 }
0x3597   : > { %34465 = vpow2.f32 %v18137_v28  ;;  %18146 = vadd.xlane.f32.xlu0 %v18145_v41 }
0x3598   : > { %34467 = vpow2.f32 %v18135_v15 }
0x3599   : > { %v34460_v42 = vpop.eup %34459 }
0x359a   : > { %v18148_v54 = vsel %vm18090_vm6, %v34460_v42, 0.0 }
0x359b   : > { %18149 = vadd.xlane.f32.xlu1 %v18148_v54 }
0x359d   : > { %v34462_v59 = vpop.eup %34461 }
0x359e   : > { %v34464_v53 = vpop.eup %34463  ;;  %v18154_v9 = vsel %vm18090_vm6, %v34462_v59, 0.0 }
0x359f   : > { %18155 = vadd.xlane.f32.xlu1 %v18154_v9  ;;  %v18151_v60 = vsel %vm18090_vm6, %v34464_v53, 0.0 }
0x35a0   : > { %18152 = vadd.xlane.f32.xlu0 %v18151_v60 }
0x35a1   : > { %v34466_v50 = vpop.eup %34465 }
0x35a2   : > { %v34468_v46 = vpop.eup %34467  ;;  %v18160_v43 = vsel %vm18090_vm6, %v34466_v50, 0.0 }
0x35a3   : > { %18161 = vadd.xlane.f32.xlu1 %v18160_v43  ;;  %v18157_v52 = vsel %vm18090_vm6, %v34468_v46, 0.0 }
0x35a4   : > { %18158 = vadd.xlane.f32.xlu0 %v18157_v52 }
0x35d1   : > { %19154 = vxpose.xlu0.b32.start.end [1/1] (short) (narrow) %v19152_v2, 64  ;;  %v17490_v2 = vld [vmem:[#allocation10] sm:$0xff] }
0x35e1   : > { %v18141_v1 = vpop.xlane.xlu0 %18140 }
0x35e2   : > { %34469 = vrcp.f32 %v18141_v1  ;;  %v17491_v1 = vld [vmem:[#allocation10 + $0x8] sm:$0xff] }
0x35ec   : > { %v34470_v7 = vpop.eup %34469 }
0x35ed   : > { %v18171_v18 = vmul.f32 %v34470_v7, %v34454_v37  ;;  %v17492_v7 = vld [vmem:[#allocation10 + $0x10] sm:$0xff] }
0x35ef   : > { %32695 = vmatmul.mubr.msk.f32.vlgmr.msra.gmra.mrb[118].mxu0 %vm1728_vm3, %v18171_v18  ;;  %v37084_v18 = vpack.c.bf16 %v17491_v1, %v17490_v2 }
0x35f0   : > { %32703 = vmatpush3.xpose.msk.msra.mxu0 %vm1728_vm3, %v36991_v8  ;;  %32704 = vmatprep.mubr.msk.f32.mxu0 %vm34958_vm2, %v34957_v29 }
0x35f1   : > { %32712 = vmatprep.subr.mxu0 %v34957_v29 }
0x3620   : > { %v18144_v0 = vpop.xlane.xlu1 %18143 }
0x3621   : > { %34471 = vrcp.f32 %v18144_v0  ;;  %v17493_v0 = vld [vmem:[#allocation10 + $0x18] sm:$0xff] }
0x3624   : > { %v18147_v26 = vpop.xlane.xlu0 %18146 }
0x3625   : > { %34473 = vrcp.f32 %v18147_v26  ;;  %v37087_v26 = vpack.c.bf16 %v17493_v0, %v17492_v7 }
0x3628   : > { %v18150_v57 = vpop.xlane.xlu1 %18149 }
0x3629   : > { %34475 = vrcp.f32 %v18150_v57  ;;  %v17495_v57 = vld [vmem:[#allocation10 + $0x28] sm:$0xff] }
0x362b   : > { %v34472_v4 = vpop.eup %34471 }
0x362c   : > { %v18172_v56 = vmul.f32 %v34472_v4, %v34456_v44  ;;  %v18156_v58 = vpop.xlane.xlu1 %18155 }
0x362d   : > { %34477 = vrcp.f32 %v18156_v58  ;;  %v18153_v37 = vpop.xlane.xlu0 %18152  ;;  %v17497_v58 = vld [vmem:[#allocation10 + $0x38] sm:$0xff] }
0x362e   : > { %34479 = vrcp.f32 %v18153_v37  ;;  %32700 = vmatmul.mubr.msk.f32.vlgmr.msra.gmra.mrb[134].mxu1 %vm1728_vm3, %v18172_v56  ;;  %v17496_v56 = vld [vmem:[#allocation10 + $0x30] sm:$0xff] }
0x362f   : > { %v34474_v8 = vpop.eup %34473  ;;  %32708 = vmatpush3.xpose.msk.msra.mxu1 %vm1728_vm3, %v36993_v63  ;;  %32709 = vmatprep.mubr.msk.f32.mxu1 %vm34958_vm2, %v34957_v29  ;;  %v37095_v37 = vpack.c.bf16 %v17497_v58, %v17496_v56 }
0x3630   : > { %v18162_v13 = vpop.xlane.xlu1 %18161  ;;  %v18173_v6 = vmul.f32 %v34474_v8, %v34458_v48  ;;  %32717 = vmatprep.subr.mxu1 %v34957_v29 }
0x3631   : > { %34481 = vrcp.f32 %v18162_v13  ;;  %v18159_v22 = vpop.xlane.xlu0 %18158 }
0x3632   : > { %34483 = vrcp.f32 %v18159_v22  ;;  %32705 = vmatmul.mubr.msk.f32.vlgmr.msra.gmra.mrb[120].mxu0 %vm1728_vm3, %v18173_v6 }
0x3633   : > { %v34476_v38 = vpop.eup %34475  ;;  %32713 = vmatpush3.xpose.msk.msra.mxu0 %vm1728_vm3, %v36995_v45  ;;  %32714 = vmatprep.mubr.msk.f32.mxu0 %vm34958_vm2, %v34957_v29 }
0x3634   : > { %v18174_v63 = vmul.f32 %v34476_v38, %v34460_v42  ;;  %32722 = vmatprep.subr.mxu0 %v34957_v29 }
0x3636   : > { %32710 = vmatmul.mubr.msk.f32.vlgmr.msra.gmra.mrb[136].mxu1 %vm1728_vm3, %v18174_v63 }
0x3637   : > { %v34478_v47 = vpop.eup %34477  ;;  %32718 = vmatpush3.xpose.msk.msra.mxu1 %vm1728_vm3, %v36997_v5  ;;  %32719 = vmatprep.mubr.msk.f32.mxu1 %vm34958_vm2, %v34957_v29 }
0x3638   : > { %v34480_v61 = vpop.eup %34479  ;;  %v18176_v36 = vmul.f32 %v34478_v47, %v34462_v59  ;;  %32727 = vmatprep.subr.mxu1 %v34957_v29 }
0x3639   : > { %v18175_v45 = vmul.f32 %v34480_v61, %v34464_v53 }
0x363a   : > { %32720 = vmatmul.mubr.msk.f32.vlgmr.msra.gmra.mrb[138].mxu1 %vm1728_vm3, %v18176_v36 }
0x363b   : > { %v34482_v11 = vpop.eup %34481  ;;  %32715 = vmatmul.mubr.msk.f32.vlgmr.msra.gmra.mrb[122].mxu0 %vm1728_vm3, %v18175_v45  ;;  %32728 = vmatpush3.xpose.msk.msra.mxu1 %vm1728_vm3, %v37001_v33 }
0x363c   : > { %v34484_v14 = vpop.eup %34483  ;;  %v18178_v10 = vmul.f32 %v34482_v11, %v34466_v50  ;;  %32723 = vmatpush3.xpose.msk.msra.mxu0 %vm1728_vm3, %v36999_v32  ;;  %32724 = vmatprep.mubr.msk.f32.mxu0 %vm34958_vm2, %v34957_v29 }
0x363d   : > { %32729 = vmatprep.mubr.msk.f32.mxu1 %vm34958_vm2, %v34957_v29  ;;  %v18177_v5 = vmul.f32 %v34484_v14, %v34468_v46  ;;  %32751 = vmatprep.subr.mxu1 %v34957_v29 }
0x363e   : > { %32730 = vmatmul.mubr.msk.f32.vlgmr.msra.gmra.mrb[140].mxu1 %vm1728_vm3, %v18178_v10  ;;  %33849 = vmatprep.subr.bf16.mxu0 %v34959_v62 }
0x363f   : > { %32725 = vmatmul.mubr.msk.f32.vlgmr.msra.gmra.mrb[124].mxu0 %vm1728_vm3, %v18177_v5  ;;  %32753 = vmatprep.mubr.msk.f32.mxu1 %vm34958_vm2, %v34957_v29 }
0x3640   : > { %32748 = vmatprep.mubr.msk.f32.mxu0 %vm34958_vm2, %v34957_v29  ;;  %33851 = vmatpush3.bf16.msra.mxu0 %v37084_v18 }
0x3641   : > { %33852 = vmatprep.subr.bf16.mxu0 %v34959_v62 }
0x3644   : > { %33854 = vmatpush3.bf16.msra.mxu0 %v37087_v26 }
0x3645   : > { %33855 = vmatprep.subr.bf16.mxu0 %v34959_v62 }
0x3651   : > { %v19170_v12 = vpop.trf.xlu0 }
0x3655   : > { %v19171_v25 = vpop.trf.xlu0 }
0x3659   : > { %v19172_v42 = vpop.trf.xlu0 }
0x365d   : > { %v19173_v9 = vpop.trf.xlu0 }
0x3661   : > { %v19174_v60 = vpop.trf.xlu0 }
0x3665   : > { %v19175_v50 = vpop.trf.xlu0 }
0x3669   : > { %v19176_v46 = vpop.trf.xlu0 }
0x366d   : > { %v19177_v43 = vpop.trf.xlu0 }
0x36c2   : > { %v18251_v32 = vpop.f32.mrb[118].mxu0 }
0x36c3   : > { %18787 = vxpose.xlu0.b32.start.end [1/1] (short) (narrow) %v18251_v32, 8  ;;  %v32696_v33 = vpop.f32.mrb[119].mxu0 }
0x3701   : > { %v18327_v51 = vpop.f32.mrb[134].mxu1 }
0x3702   : > { %v32701_v44 = vpop.f32.mrb[135].mxu1  ;;  %18819 = vxpose.xlu1.b32.start.end [1/1] (short) (narrow) %v18327_v51, 8 }
0x3705   : > { %v18403_v55 = vpop.f32.mrb[120].mxu0 }
0x3706   : > { %18851 = vxpose.xlu0.b32.start.end [1/1] (short) (narrow) %v18403_v55, 8  ;;  %v32706_v16 = vpop.f32.mrb[121].mxu0 }
0x3709   : > { %v18479_v34 = vpop.f32.mrb[136].mxu1 }
0x370a   : > { %18883 = vxpose.xlu1.b32.start.end [1/1] (short) (narrow) %v18479_v34, 8  ;;  %v32711_v39 = vpop.f32.mrb[137].mxu1 }
0x370d   : > { %v18631_v31 = vpop.f32.mrb[138].mxu1 }
0x370e   : > { %v18555_v48 = vpop.f32.mrb[122].mxu0  ;;  %18947 = vxpose.xlu1.b32.start.end [1/1] (short) (narrow) %v18631_v31, 8  ;;  %v32721_v28 = vpop.f32.mrb[139].mxu1 }
0x370f   : > { %18915 = vxpose.xlu0.b32.start.end [1/1] (short) (narrow) %v18555_v48, 8  ;;  %v32716_v15 = vpop.f32.mrb[123].mxu0 }
0x3711   : > { %v18783_v41 = vpop.f32.mrb[140].mxu1 }
0x3712   : > { %v18707_v54 = vpop.f32.mrb[124].mxu0  ;;  %v32731_v59 = vpop.f32.mrb[141].mxu1 }
0x3713   : > { %18979 = vxpose.xlu1.b32.start.end [1/1] (short) (narrow) %v18707_v54, 8  ;;  %v32726_v53 = vpop.f32.mrb[125].mxu0  ;;  %19218 = vxpose.xlu0.b32.start.end [1/1] (short) (narrow) %v19171_v25, 8 }
0x3717   : > { %19011 = vxpose.xlu1.b32.start.end [1/1] (short) (narrow) %v18783_v41, 8  ;;  %19250 = vxpose.xlu0.b32.start.end [1/1] (short) (narrow) %v19172_v42, 8 }
0x371b   : > { %19442 = vxpose.xlu1.b32.start.end [1/1] (short) %v36974_v30, 128  ;;  %19282 = vxpose.xlu0.b32.start.end [1/1] (short) (narrow) %v19173_v9, 8  ;;  %v17494_v30 = vld [vmem:[#allocation10 + $0x20] sm:$0xff] }
0x371c   : > { %v37091_v4 = vpack.c.bf16 %v17495_v57, %v17494_v30 }
0x371e   : > { %33857 = vmatpush3.bf16.msra.mxu0 %v37091_v4 }
0x371f   : > { %33858 = vmatprep.subr.bf16.mxu0 %v34959_v62 }
0x3722   : > { %33860 = vmatpush3.bf16.msra.mxu0 %v37095_v37 }
0x3723   : > { %32771 = vmatprep.subr.mxu0 %v34957_v29 }
0x3743   : > { %v18803_v52 = vpop.trf.xlu0 }
0x3744   : > { %19043 = vxpose.xlu0.b32.start [1/8] (short) (narrow) %v18803_v52, 8 }
0x3758   : > { %19186 = vxpose.xlu1.b32.start.end [1/1] (short) (narrow) %v19170_v12, 8 }
0x375c   : > { %19378 = vxpose.xlu1.b32.start.end [1/1] (short) (narrow) %v19176_v46, 8 }
0x3782   : > { %v18835_v8 = vpop.trf.xlu1 }
0x3783   : > { %19044 = vxpose.xlu0.b32.cont [2/8] (short) (narrow) %v18835_v8, 8 }
0x3786   : > { %v18867_v13 = vpop.trf.xlu0 }
0x3787   : > { %19045 = vxpose.xlu0.b32.cont [3/8] (short) (narrow) %v18867_v13, 8 }
0x378a   : > { %v18899_v6 = vpop.trf.xlu1 }
0x378b   : > { %19046 = vxpose.xlu0.b32.cont [4/8] (short) (narrow) %v18899_v6, 8 }
0x378e   : > { %v18963_v22 = vpop.trf.xlu1 }
0x378f   : > { %v18931_v38 = vpop.trf.xlu0 }
0x3790   : > { %19047 = vxpose.xlu0.b32.cont [5/8] (short) (narrow) %v18931_v38, 8 }
0x3793   : > { %v18995_v63 = vpop.trf.xlu1  ;;  %v19234_v25 = vpop.trf.xlu0 }
0x3794   : > { %19048 = vxpose.xlu0.b32.cont [6/8] (short) (narrow) %v18963_v22, 8 }
0x3797   : > { %v19027_v47 = vpop.trf.xlu1  ;;  %v19266_v48 = vpop.trf.xlu0 }
0x3798   : > { %19049 = vxpose.xlu0.b32.cont [7/8] (short) (narrow) %v18995_v63, 8 }
0x379b   : > { %v19458_v61 = vpop.trf.xlu1  ;;  %v19298_v28 = vpop.trf.xlu0 }
0x379c   : > { %19050 = vxpose.xlu0.b32.end [8/8] (short) (narrow) %v19027_v47, 8  ;;  %32752 = vmatpush3.msra.mxu1 %v19458_v61 }
0x379d   : > { %32756 = vmatprep.subr.mxu1 %v34957_v29 }
0x379f   : > { %v19459_v36 = vpop.trf.xlu1 }
0x37a0   : > { %19314 = vxpose.xlu0.b32.start.end [1/1] (short) (narrow) %v19174_v60, 8 }
0x37a3   : > { %v19460_v45 = vpop.trf.xlu1 }
0x37a4   : > { %19346 = vxpose.xlu0.b32.start.end [1/1] (short) (narrow) %v19175_v50, 8 }
0x37a7   : > { %v19461_v11 = vpop.trf.xlu1 }
0x37a8   : > { %19410 = vxpose.xlu0.b32.start.end [1/1] (short) (narrow) %v19177_v43, 8 }
0x37ab   : > { %v19462_v14 = vpop.trf.xlu1 }
0x37af   : > { %v19463_v10 = vpop.trf.xlu1 }
0x37b3   : > { %v19464_v5 = vpop.trf.xlu1 }
0x37b7   : > { %v19465_v32 = vpop.trf.xlu1 }
0x37bb   : > { %v19466_v33 = vpop.trf.xlu1 }
0x37bf   : > { %v19467_v51 = vpop.trf.xlu1 }
0x37c3   : > { %v37101_v44 = vpop.trf.xlu1 }
0x37c7   : > { %v37103_v55 = vpop.trf.xlu1 }
0x37cb   : > { %v37105_v12 = vpop.trf.xlu1 }
0x37cf   : > { %v37107_v16 = vpop.trf.xlu1 }
0x37d3   : > { %v37109_v34 = vpop.trf.xlu1 }
0x37d7   : > { %v37111_v39 = vpop.trf.xlu1 }
0x37db   : > { %v19202_v31 = vpop.trf.xlu1 }
0x37dc   : > { %32754 = vmatmul.mubr.msk.f32.vlgmr.msra.gmra.mrb[142].mxu1 %vm1728_vm3, %v19202_v31 }
0x37dd   : > { %32757 = vmatpush3.msra.mxu1 %v19459_v36  ;;  %32758 = vmatprep.mubr.msk.f32.mxu1 %vm34958_vm2, %v34957_v29 }
0x37de   : > { %32761 = vmatprep.subr.mxu1 %v34957_v29 }
0x37df   : > { %v19394_v42 = vpop.trf.xlu1 }
0x37e0   : > { %32759 = vmatmul.mubr.msk.f32.vlgmr.msra.gmra.mrb[144].mxu1 %vm1728_vm3, %v19234_v25 }
0x37e1   : > { %32762 = vmatpush3.msra.mxu1 %v19460_v45  ;;  %32763 = vmatprep.mubr.msk.f32.mxu1 %vm34958_vm2, %v34957_v29 }
0x37e2   : > { %32766 = vmatprep.subr.mxu1 %v34957_v29 }
0x37e4   : > { %32764 = vmatmul.mubr.msk.f32.vlgmr.msra.gmra.mrb[146].mxu1 %vm1728_vm3, %v19266_v48 }
0x37e5   : > { %32767 = vmatpush3.msra.mxu1 %v19461_v11  ;;  %32768 = vmatprep.mubr.msk.f32.mxu1 %vm34958_vm2, %v34957_v29 }
0x37e6   : > { %32776 = vmatprep.subr.mxu1 %v34957_v29 }
0x37e8   : > { %32769 = vmatmul.mubr.msk.f32.vlgmr.msra.gmra.mrb[148].mxu1 %vm1728_vm3, %v19298_v28 }
0x37e9   : > { %32777 = vmatpush3.msra.mxu1 %v19463_v10  ;;  %32778 = vmatprep.mubr.msk.f32.mxu1 %vm34958_vm2, %v34957_v29 }
0x37ea   : > { %32786 = vmatprep.subr.mxu1 %v34957_v29 }
0x3800   : > { %v19059_v15 = vpop.trf.xlu0 }
0x3801   : > { %32749 = vmatmul.mubr.msk.f32.vlgmr.msra.gmra.mrb[126].mxu0 %vm804_vm1, %v19059_v15 }
0x3802   : > { %32772 = vmatpush3.msra.mxu0 %v19462_v14  ;;  %32773 = vmatprep.mubr.msk.f32.mxu0 %vm34958_vm2, %v34957_v29 }
0x3803   : > { %32781 = vmatprep.subr.mxu0 %v34957_v29 }
0x3820   : > { %v19330_v41 = vpop.trf.xlu0 }
0x3821   : > { %32774 = vmatmul.mubr.msk.f32.vlgmr.msra.gmra.mrb[128].mxu0 %vm1728_vm3, %v19330_v41 }
0x3822   : > { %32782 = vmatpush3.msra.mxu0 %v19464_v5  ;;  %32783 = vmatprep.mubr.msk.f32.mxu0 %vm34958_vm2, %v34957_v29 }
0x3823   : > { %32791 = vmatprep.subr.mxu0 %v34957_v29 }
0x3824   : > { %v19362_v54 = vpop.trf.xlu0 }
0x3825   : > { %32779 = vmatmul.mubr.msk.f32.vlgmr.msra.gmra.mrb[150].mxu1 %vm1728_vm3, %v19362_v54  ;;  %32784 = vmatmul.mubr.msk.f32.vlgmr.msra.gmra.mrb[130].mxu0 %vm1728_vm3, %v19394_v42 }
0x3826   : > { %32787 = vmatpush3.msra.mxu1 %v19465_v32  ;;  %32788 = vmatprep.mubr.msk.f32.mxu1 %vm34958_vm2, %v34957_v29 }
0x3827   : > { %32796 = vmatprep.subr.mxu1 %v34957_v29  ;;  %32793 = vmatprep.mubr.msk.f32.mxu0 %vm34958_vm2, %v34957_v29 }
0x3828   : > { %v19426_v59 = vpop.trf.xlu0 }
0x3829   : > { %32792 = vmatpush3.xpose.msk.msra.mxu0 %vm1728_vm3, %v19466_v33  ;;  %32789 = vmatmul.mubr.msk.f32.vlgmr.msra.gmra.mrb[152].mxu1 %vm1728_vm3, %v19426_v59 }
0x382a   : > { %32801 = vmatprep.subr.mxu0 %v34957_v29  ;;  %32798 = vmatprep.mubr.msk.f32.mxu1 %vm34958_vm2, %v34957_v29 }
0x382d   : > { %32797 = vmatpush3.xpose.msk.msra.mxu1 %vm1728_vm3, %v19467_v51 }
0x382e   : > { %32806 = vmatprep.subr.mxu1 %v34957_v29 }
0x38af   : > { %v19551_v53 = vpop.f32.mrb[142].mxu1 }
0x38b0   : > { %v20066_v9 = vmul.f32 0.35355338, %v19551_v53  ;;  %v32755_v60 = vpop.f32.mrb[143].mxu1 }
0x38b2   : > { %v20074_v50 = vsel %vm18090_vm6, %v20066_v9, -inf }
0x38b3   : > { %20075 = vmax.xlane.f32.xlu1 %v20074_v50  ;;  %v19624_v46 = vpop.f32.mrb[144].mxu1 }
0x38b4   : > { %v20067_v43 = vmul.f32 0.35355338, %v19624_v46  ;;  %v32760_v52 = vpop.f32.mrb[145].mxu1 }
0x38b6   : > { %v20077_v2 = vsel %vm18090_vm6, %v20067_v43, -inf }
0x38b7   : > { %20078 = vmax.xlane.f32.xlu0 %v20077_v2  ;;  %v19697_v1 = vpop.f32.mrb[146].mxu1 }
0x38b8   : > { %v20068_v7 = vmul.f32 0.35355338, %v19697_v1  ;;  %v32765_v0 = vpop.f32.mrb[147].mxu1 }
0x38ba   : > { %v20080_v30 = vsel %vm18090_vm6, %v20068_v7, -inf }
0x38bb   : > { %20081 = vmax.xlane.f32.xlu1 %v20080_v30  ;;  %v19770_v57 = vpop.f32.mrb[148].mxu1 }
0x38bc   : > { %v20069_v56 = vmul.f32 0.35355338, %v19770_v57  ;;  %v32770_v58 = vpop.f32.mrb[149].mxu1 }
0x38be   : > { %v20083_v8 = vsel %vm18090_vm6, %v20069_v56, -inf }
0x38bf   : > { %20084 = vmax.xlane.f32.xlu1 %v20083_v8 }
0x38d4   : > { %v37155_v13 = vpop.f32.mrb[126].mxu0 }
0x38d5   : > { %v32750_v6 = vpop.f32.mrb[127].mxu0 }
0x38f4   : > { %v19843_v22 = vpop.f32.mrb[128].mxu0 }
0x38f5   : > { %v20070_v38 = vmul.f32 0.35355338, %v19843_v22  ;;  %v32775_v63 = vpop.f32.mrb[129].mxu0 }
0x38f7   : > { %v20086_v47 = vsel %vm18090_vm6, %v20070_v38, -inf }
0x38f8   : > { %20087 = vmax.xlane.f32.xlu0 %v20086_v47  ;;  %v19916_v61 = vpop.f32.mrb[150].mxu1  ;;  %v19989_v36 = vpop.f32.mrb[130].mxu0 }
0x38f9   : > { %v20071_v45 = vmul.f32 0.35355338, %v19916_v61  ;;  %v20072_v11 = vmul.f32 0.35355338, %v19989_v36  ;;  %v32780_v14 = vpop.f32.mrb[151].mxu1  ;;  %v32785_v10 = vpop.f32.mrb[131].mxu0 }
0x38fb   : > { %v20092_v5 = vsel %vm18090_vm6, %v20072_v11, -inf  ;;  %v20089_v32 = vsel %vm18090_vm6, %v20071_v45, -inf }
0x38fc   : > { %20093 = vmax.xlane.f32.xlu0 %v20092_v5  ;;  %20090 = vmax.xlane.f32.xlu1 %v20089_v32  ;;  %v20062_v33 = vpop.f32.mrb[152].mxu1 }
0x38fd   : > { %v20073_v51 = vmul.f32 0.35355338, %v20062_v33  ;;  %v32790_v25 = vpop.f32.mrb[153].mxu1 }
0x38ff   : > { %v20095_v31 = vsel %vm18090_vm6, %v20073_v51, -inf }
0x3900   : > { %20096 = vmax.xlane.f32.xlu1 %v20095_v31 }
0x3940   : > { %v20076_v48 = vpop.xlane.xlu1 %20075 }
0x3941   : > { %v20098_v28 = vsub.f32 %v20066_v9, %v20076_v48 }
0x3943   : > { %v20106_v15 = vmul.f32 1.442695, %v20098_v28 }
0x3944   : > { %v20079_v41 = vpop.xlane.xlu0 %20078 }
0x3945   : > { %34485 = vpow2.f32 %v20106_v15  ;;  %v20099_v42 = vsub.f32 %v20067_v43, %v20079_v41 }
0x3947   : > { %v20108_v54 = vmul.f32 1.442695, %v20099_v42 }
0x3948   : > { %v20082_v59 = vpop.xlane.xlu1 %20081 }
0x3949   : > { %34487 = vpow2.f32 %v20108_v54  ;;  %v20100_v53 = vsub.f32 %v20068_v7, %v20082_v59 }
0x394b   : > { %v20110_v60 = vmul.f32 1.442695, %v20100_v53 }
0x394c   : > { %v20085_v50 = vpop.xlane.xlu1 %20084 }
0x394d   : > { %34489 = vpow2.f32 %v20110_v60  ;;  %v20101_v46 = vsub.f32 %v20069_v56, %v20085_v50 }
0x394f   : > { %v34486_v52 = vpop.eup %34485  ;;  %v20112_v2 = vmul.f32 1.442695, %v20101_v46 }
0x3950   : > { %v20122_v1 = vsel %vm18090_vm6, %v34486_v52, 0.0 }
0x3951   : > { %34491 = vpow2.f32 %v20112_v2  ;;  %20123 = vadd.xlane.f32.xlu0 %v20122_v1 }
0x3953   : > { %v34488_v0 = vpop.eup %34487 }
0x3954   : > { %v20125_v9 = vsel %vm18090_vm6, %v34488_v0, 0.0 }
0x3955   : > { %20126 = vadd.xlane.f32.xlu1 %v20125_v9 }
0x3957   : > { %v34490_v30 = vpop.eup %34489 }
0x3958   : > { %v20128_v43 = vsel %vm18090_vm6, %v34490_v30, 0.0 }
0x3959   : > { %20129 = vadd.xlane.f32.xlu0 %v20128_v43 }
0x395b   : > { %v34492_v57 = vpop.eup %34491 }
0x395c   : > { %v20131_v7 = vsel %vm18090_vm6, %v34492_v57, 0.0 }
0x395d   : > { %20132 = vadd.xlane.f32.xlu1 %v20131_v7 }
0x3985   : > { %v20088_v58 = vpop.xlane.xlu0 %20087 }
0x3986   : > { %v20102_v56 = vsub.f32 %v20070_v38, %v20088_v58 }
0x3988   : > { %v20114_v8 = vmul.f32 1.442695, %v20102_v56 }
0x3989   : > { %v20091_v6 = vpop.xlane.xlu1 %20090  ;;  %v20094_v22 = vpop.xlane.xlu0 %20093 }
0x398a   : > { %34493 = vpow2.f32 %v20114_v8  ;;  %v20103_v63 = vsub.f32 %v20071_v45, %v20091_v6  ;;  %v20104_v47 = vsub.f32 %v20072_v11, %v20094_v22 }
0x398c   : > { %v20116_v61 = vmul.f32 1.442695, %v20103_v63  ;;  %v20118_v36 = vmul.f32 1.442695, %v20104_v47 }
0x398d   : > { %v20097_v14 = vpop.xlane.xlu1 %20096 }
0x398e   : > { %34495 = vpow2.f32 %v20116_v61  ;;  %v20105_v10 = vsub.f32 %v20073_v51, %v20097_v14 }
0x398f   : > { %34497 = vpow2.f32 %v20118_v36 }
0x3990   : > { %v20120_v5 = vmul.f32 1.442695, %v20105_v10 }
0x3992   : > { %34499 = vpow2.f32 %v20120_v5 }
0x3994   : > { %v34494_v32 = vpop.eup %34493 }
0x3995   : > { %v20134_v33 = vsel %vm18090_vm6, %v34494_v32, 0.0 }
0x3996   : > { %20135 = vadd.xlane.f32.xlu0 %v20134_v33 }
0x3998   : > { %v34496_v25 = vpop.eup %34495 }
0x3999   : > { %v34498_v38 = vpop.eup %34497  ;;  %v20137_v31 = vsel %vm18090_vm6, %v34496_v25, 0.0 }
0x399a   : > { %20138 = vadd.xlane.f32.xlu1 %v20137_v31  ;;  %v20140_v45 = vsel %vm18090_vm6, %v34498_v38, 0.0 }
0x399b   : > { %20141 = vadd.xlane.f32.xlu0 %v20140_v45 }
0x399c   : > { %v34500_v11 = vpop.eup %34499 }
0x399d   : > { %v20143_v48 = vsel %vm18090_vm6, %v34500_v11, 0.0 }
0x399e   : > { %20144 = vadd.xlane.f32.xlu1 %v20143_v48  ;;  %v37222_v48 = vld [vmem:[#allocation13] sm:$0xff] }
0x39de   : > { %v20124_v51 = vpop.xlane.xlu0 %20123 }
0x39df   : > { %34501 = vrcp.f32 %v20124_v51  ;;  %v19076_v51 = vrot.slane %v37222_v48, 3 }
0x39e2   : > { %v20127_v28 = vpop.xlane.xlu1 %20126 }
0x39e3   : > { %34503 = vrcp.f32 %v20127_v28 }
0x39e6   : > { %v20130_v15 = vpop.xlane.xlu0 %20129 }
0x39e7   : > { %34505 = vrcp.f32 %v20130_v15 }
0x39e9   : > { %v34502_v41 = vpop.eup %34501 }
0x39ea   : > { %v20133_v42 = vpop.xlane.xlu1 %20132  ;;  %v20154_v54 = vmul.f32 %v34502_v41, %v34486_v52 }
0x39eb   : > { %34507 = vrcp.f32 %v20133_v42  ;;  %v19148_v42 = vadd.f32 %v37155_v13, %v19076_v51  ;;  %v21160_v13 = vld [vmem:[#allocation11 + $0x8] sm:$0xff] }
0x39ec   : > { %32794 = vmatmul.mubr.msk.f32.vlgmr.msra.gmra.mrb[132].mxu0 %vm1728_vm3, %v20154_v54 }
0x39ed   : > { %v34504_v59 = vpop.eup %34503  ;;  %32802 = vmatpush3.xpose.msk.msra.mxu0 %vm1728_vm3, %v37101_v44  ;;  %32803 = vmatprep.mubr.msk.f32.mxu0 %vm34958_vm2, %v34957_v29 }
0x39ee   : > { %v20155_v53 = vmul.f32 %v34504_v59, %v34488_v0  ;;  %32811 = vmatprep.subr.mxu0 %v34957_v29 }
0x39f0   : > { %32799 = vmatmul.mubr.msk.f32.vlgmr.msra.gmra.mrb[154].mxu1 %vm1728_vm3, %v20155_v53 }
0x39f1   : > { %v34506_v60 = vpop.eup %34505  ;;  %32807 = vmatpush3.xpose.msk.msra.mxu1 %vm1728_vm3, %v37103_v55  ;;  %32808 = vmatprep.mubr.msk.f32.mxu1 %vm34958_vm2, %v34957_v29 }
0x39f2   : > { %v20156_v50 = vmul.f32 %v34506_v60, %v34490_v30  ;;  %32816 = vmatprep.subr.mxu1 %v34957_v29 }
0x39f4   : > { %32804 = vmatmul.mubr.msk.f32.vlgmr.msra.gmra.mrb[134].mxu0 %vm1728_vm3, %v20156_v50 }
0x39f5   : > { %v34508_v44 = vpop.eup %34507  ;;  %32812 = vmatpush3.xpose.msk.msra.mxu0 %vm1728_vm3, %v37105_v12  ;;  %32813 = vmatprep.mubr.msk.f32.mxu0 %vm34958_vm2, %v34957_v29 }
0x39f6   : > { %v20157_v46 = vmul.f32 %v34508_v44, %v34492_v57  ;;  %32821 = vmatprep.subr.mxu0 %v34957_v29 }
0x39f8   : > { %32809 = vmatmul.mubr.msk.f32.vlgmr.msra.gmra.mrb[156].mxu1 %vm1728_vm3, %v20157_v46 }
0x39f9   : > { %32817 = vmatpush3.xpose.msk.msra.mxu1 %vm1728_vm3, %v37107_v16  ;;  %32818 = vmatprep.mubr.msk.f32.mxu1 %vm34958_vm2, %v34957_v29 }
0x39fa   : > { %32826 = vmatprep.subr.mxu1 %v34957_v29 }
0x3a23   : > { %v20136_v55 = vpop.xlane.xlu0 %20135 }
0x3a24   : > { %34509 = vrcp.f32 %v20136_v55 }
0x3a27   : > { %v20139_v52 = vpop.xlane.xlu1 %20138 }
0x3a28   : > { %34511 = vrcp.f32 %v20139_v52  ;;  %v20142_v12 = vpop.xlane.xlu0 %20141 }
0x3a29   : > { %34513 = vrcp.f32 %v20142_v12  ;;  %v21159_v12 = vld [vmem:[#allocation11] sm:$0xff] }
0x3a2b   : > { %v20145_v2 = vpop.xlane.xlu1 %20144 }
0x3a2c   : > { %34515 = vrcp.f32 %v20145_v2  ;;  %v33874_v2 = vpack.c.bf16 %v21160_v13, %v21159_v12  ;;  %v21562_v12 = vld [vmem:[#allocation8 + $0x50] sm:$0xff]  ;;  %v21563_v13 = vld [vmem:[#allocation8 + $0x58] sm:$0xff] }
0x3a2e   : > { %v34510_v1 = vpop.eup %34509 }
0x3a2f   : > { %v20158_v0 = vmul.f32 %v34510_v1, %v34494_v32  ;;  %v21162_v1 = vld [vmem:[#allocation11 + $0x18] sm:$0xff] }
0x3a31   : > { %32814 = vmatmul.mubr.msk.f32.vlgmr.msra.gmra.mrb[136].mxu0 %vm1728_vm3, %v20158_v0 }
0x3a32   : > { %v34512_v9 = vpop.eup %34511  ;;  %32822 = vmatpush3.xpose.msk.msra.mxu0 %vm1728_vm3, %v37109_v34  ;;  %32823 = vmatprep.mubr.msk.f32.mxu0 %vm34958_vm2, %v34957_v29 }
0x3a33   : > { %v34514_v16 = vpop.eup %34513  ;;  %v20159_v30 = vmul.f32 %v34512_v9, %v34496_v25  ;;  %33861 = vmatprep.subr.bf16.mxu0 %v34959_v62  ;;  %v21163_v9 = vld [vmem:[#allocation11 + $0x20] sm:$0xff] }
0x3a34   : > { %v20160_v43 = vmul.f32 %v34514_v16, %v34498_v38  ;;  %v21164_v16 = vld [vmem:[#allocation11 + $0x28] sm:$0xff] }
0x3a35   : > { %32819 = vmatmul.mubr.msk.f32.vlgmr.msra.gmra.mrb[158].mxu1 %vm1728_vm3, %v20159_v30  ;;  %v33880_v30 = vpack.c.bf16 %v21164_v16, %v21163_v9  ;;  %v21564_v9 = vld [vmem:[#allocation8 + $0x60] sm:$0xff]  ;;  %v21565_v16 = vld [vmem:[#allocation8 + $0x68] sm:$0xff] }
0x3a36   : > { %v34516_v57 = vpop.eup %34515  ;;  %32824 = vmatmul.mubr.msk.f32.vlgmr.msra.gmra.mrb[138].mxu0 %vm1728_vm3, %v20160_v43  ;;  %32827 = vmatpush3.xpose.msk.msra.mxu1 %vm1728_vm3, %v37111_v39  ;;  %v21165_v43 = vld [vmem:[#allocation11 + $0x30] sm:$0xff] }
0x3a37   : > { %32828 = vmatprep.mubr.msk.f32.mxu1 %vm34958_vm2, %v34957_v29  ;;  %v20161_v34 = vmul.f32 %v34516_v57, %v34500_v11  ;;  %33863 = vmatpush3.bf16.msra.mxu0 %v37084_v18  ;;  %v21166_v57 = vld [vmem:[#allocation11 + $0x38] sm:$0xff] }
0x3a38   : > { %33864 = vmatprep.subr.bf16.mxu0 %v34959_v62  ;;  %32847 = vmatprep.mubr.msk.f32.mxu0 %vm34958_vm2, %v34957_v29 }
0x3a39   : > { %32829 = vmatmul.mubr.msk.f32.vlgmr.msra.gmra.mrb[160].mxu1 %vm1728_vm3, %v20161_v34  ;;  %33873 = vmatprep.subr.bf16.mxu1 %v34959_v62  ;;  %v33883_v34 = vpack.c.bf16 %v21166_v57, %v21165_v43  ;;  %v21566_v43 = vld [vmem:[#allocation8 + $0x70] sm:$0xff]  ;;  %v21567_v57 = vld [vmem:[#allocation8 + $0x78] sm:$0xff] }
0x3a3a   : > { %32866 = vmatprep.mubr.msk.f32.mxu1 %vm34958_vm2, %v34957_v29  ;;  %33875 = vmatpush3.bf16.msra.mxu1 %v33874_v2 }
0x3a3b   : > { %33866 = vmatpush3.bf16.msra.mxu0 %v37087_v26  ;;  %33876 = vmatprep.subr.bf16.mxu1 %v34959_v62 }
0x3a3c   : > { %33867 = vmatprep.subr.bf16.mxu0 %v34959_v62 }
0x3a3f   : > { %33869 = vmatpush3.bf16.msra.mxu0 %v37091_v4 }
0x3a40   : > { %33870 = vmatprep.subr.bf16.mxu0 %v34959_v62 }
0x3a43   : > { %33872 = vmatpush3.bf16.msra.mxu0 %v37095_v37 }
0x3a44   : > { %33885 = vmatprep.subr.bf16.mxu0 %v34959_v62 }
0x3abf   : > { %v20234_v18 = vpop.f32.mrb[132].mxu0 }
0x3ac0   : > { %20770 = vxpose.xlu0.b32.start.end [1/1] (short) (narrow) %v20234_v18, 8  ;;  %v32795_v39 = vpop.f32.mrb[133].mxu0  ;;  %v21245_v18 = vld [vmem:[%s38328_s18] sm:$0xff] }
0x3ac1   : > { %v21246_v39 = vld [vmem:[%s38328_s18 + $0x8] sm:$0xff] }
0x3ac3   : > { %v20310_v7 = vpop.f32.mrb[154].mxu1 }
0x3ac4   : > { %20802 = vxpose.xlu1.b32.start.end [1/1] (short) (narrow) %v20310_v7, 8  ;;  %v32800_v58 = vpop.f32.mrb[155].mxu1  ;;  %v21247_v7 = vld [vmem:[%s38328_s18 + $0x10] sm:$0xff] }
0x3ac5   : > { %v33886_v58 = vpack.c.bf16 %v21246_v39, %v21245_v18  ;;  %v21264_v18 = vrot.slane %v37222_v48, %v35754_v19 }
0x3ac7   : > { %v20386_v56 = vpop.f32.mrb[134].mxu0 }
0x3ac8   : > { %20834 = vxpose.xlu0.b32.start.end [1/1] (short) (narrow) %v20386_v56, 8  ;;  %v32805_v8 = vpop.f32.mrb[135].mxu0  ;;  %v21248_v56 = vld [vmem:[%s38328_s18 + $0x18] sm:$0xff] }
0x3ac9   : > { %v33889_v8 = vpack.c.bf16 %v21248_v56, %v21247_v7 }
0x3acb   : > { %v20462_v26 = vpop.f32.mrb[156].mxu1 }
0x3acc   : > { %v32810_v6 = vpop.f32.mrb[157].mxu1  ;;  %20866 = vxpose.xlu0.b32.start.end [1/1] (short) (narrow) %v20462_v26, 8  ;;  %v21249_v26 = vld [vmem:[%s38328_s18 + $0x20] sm:$0xff] }
0x3acd   : > { %v21250_v6 = vld [vmem:[%s38328_s18 + $0x28] sm:$0xff] }
0x3b04   : > { %v20538_v22 = vpop.f32.mrb[136].mxu0 }
0x3b05   : > { %20898 = vxpose.xlu1.b32.start.end [1/1] (short) (narrow) %v20538_v22, 8  ;;  %v32815_v4 = vpop.f32.mrb[137].mxu0  ;;  %v33892_v22 = vpack.c.bf16 %v21250_v6, %v21249_v26  ;;  %v37315_v26 = vld [vmem:[#allocation13 + $0x10] sm:$0xff] }
0x3b06   : > { %v21251_v4 = vld [vmem:[%s38328_s18 + $0x30] sm:$0xff]  ;;  %v21571_v6 = vrot.slane %v37315_v26, %v35856_v20 }
0x3b08   : > { %v20614_v63 = vpop.f32.mrb[158].mxu1 }
0x3b09   : > { %v20690_v47 = vpop.f32.mrb[138].mxu0  ;;  %v32820_v37 = vpop.f32.mrb[159].mxu1  ;;  %20930 = vxpose.xlu0.b32.start.end [1/1] (short) (narrow) %v20614_v63, 8  ;;  %v21252_v63 = vld [vmem:[%s38328_s18 + $0x38] sm:$0xff] }
0x3b0a   : > { %20962 = vxpose.xlu1.b32.start.end [1/1] (short) (narrow) %v20690_v47, 8  ;;  %v32825_v61 = vpop.f32.mrb[139].mxu0  ;;  %v33895_v47 = vpack.c.bf16 %v21252_v63, %v21251_v4  ;;  %v21253_v37 = vld [vmem:[%s38328_s18 + $0x40] sm:$0xff] }
0x3b0b   : > { %v21254_v61 = vld [vmem:[%s38328_s18 + $0x48] sm:$0xff] }
0x3b0c   : > { %v20766_v36 = vpop.f32.mrb[160].mxu1 }
0x3b0d   : > { %v32830_v14 = vpop.f32.mrb[161].mxu1  ;;  %20994 = vxpose.xlu0.b32.start.end [1/1] (short) (narrow) %v20766_v36, 8  ;;  %v33898_v36 = vpack.c.bf16 %v21254_v61, %v21253_v37 }
0x3b0e   : > { %v21255_v14 = vld [vmem:[%s38328_s18 + $0x50] sm:$0xff] }
0x3b40   : > { %v20786_v10 = vpop.trf.xlu0 }
0x3b41   : > { %21026 = vxpose.xlu1.b32.start [1/8] (short) (narrow) %v20786_v10, 8  ;;  %v21256_v10 = vld [vmem:[%s38328_s18 + $0x58] sm:$0xff] }
0x3b44   : > { %v20818_v5 = vpop.trf.xlu1 }
0x3b45   : > { %21027 = vxpose.xlu1.b32.cont [2/8] (short) (narrow) %v20818_v5, 8  ;;  %v33901_v5 = vpack.c.bf16 %v21256_v10, %v21255_v14  ;;  %v30900_v10 = vld [vmem:[%s38326_s22 + $0x40] sm:$0xff] }
0x3b48   : > { %v20850_v32 = vpop.trf.xlu0 }
0x3b49   : > { %21028 = vxpose.xlu1.b32.cont [3/8] (short) (narrow) %v20850_v32, 8  ;;  %v21257_v32 = vld [vmem:[%s38328_s18 + $0x60] sm:$0xff] }
0x3b4c   : > { %v20882_v33 = vpop.trf.xlu0 }
0x3b4d   : > { %21029 = vxpose.xlu1.b32.cont [4/8] (short) (narrow) %v20882_v33, 8  ;;  %v21258_v33 = vld [vmem:[%s38328_s18 + $0x68] sm:$0xff] }
0x3b85   : > { %v20914_v25 = vpop.trf.xlu1 }
0x3b86   : > { %21030 = vxpose.xlu1.b32.cont [5/8] (short) (narrow) %v20914_v25, 8  ;;  %v33904_v25 = vpack.c.bf16 %v21258_v33, %v21257_v32  ;;  %v30902_v33 = vld [vmem:[%s38326_s22 + $0x50] sm:$0xff] }
0x3b89   : > { %v20946_v38 = vpop.trf.xlu0 }
0x3b8a   : > { %21031 = vxpose.xlu1.b32.cont [6/8] (short) (narrow) %v20946_v38, 8  ;;  %v20978_v31 = vpop.trf.xlu1 }
0x3b8d   : > { %v21010_v45 = vpop.trf.xlu0 }
0x3b8e   : > { %21032 = vxpose.xlu1.b32.cont [7/8] (short) (narrow) %v20978_v31, 8 }
0x3b92   : > { %21033 = vxpose.xlu1.b32.end [8/8] (short) (narrow) %v21010_v45, 8 }
0x3bf6   : > { %v21042_v11 = vpop.trf.xlu1 }
0x3bf7   : > { %32848 = vmatmul.mubr.msk.f32.vlgmr.msra.gmra.mrb[140].mxu0 %vm804_vm1, %v21042_v11  ;;  %v37287_v11 = vld [vmem:[#allocation13 + $0x8] sm:$0xf] }
0x3bf8   : > { %32901 = vmatprep.mubr.msk.f32.mxu0 %vm34958_vm2, %v34957_v29  ;;  %33887 = vmatpush3.bf16.msra.mxu0 %v33886_v58 }
0x3bf9   : > { %33888 = vmatprep.subr.bf16.mxu0 %v34959_v62 }
0x3bfc   : > { %33890 = vmatpush3.bf16.msra.mxu0 %v33889_v8 }
0x3bfd   : > { %33891 = vmatprep.subr.bf16.mxu0 %v34959_v62 }
0x3c00   : > { %33893 = vmatpush3.bf16.msra.mxu0 %v33892_v22 }
0x3c01   : > { %33894 = vmatprep.subr.bf16.mxu0 %v34959_v62 }
0x3c04   : > { %33896 = vmatpush3.bf16.msra.mxu0 %v33895_v47 }
0x3c05   : > { %33897 = vmatprep.subr.bf16.mxu0 %v34959_v62 }
0x3c08   : > { %33899 = vmatpush3.bf16.msra.mxu0 %v33898_v36 }
0x3c09   : > { %33900 = vmatprep.subr.bf16.mxu0 %v34959_v62 }
0x3c0c   : > { %33902 = vmatpush3.bf16.msra.mxu0 %v33901_v5  ;;  %v30901_v5 = vld [vmem:[%s38326_s22 + $0x48] sm:$0xff] }
0x3c0d   : > { %33903 = vmatprep.subr.bf16.mxu0 %v34959_v62  ;;  %v33910_v32 = vpack.c.bf16 %v30901_v5, %v30900_v10  ;;  %v21471_v10 = vrot.slane %v37315_v26, %v35925_v24 }
0x3c10   : > { %33905 = vmatpush3.bf16.msra.mxu0 %v33904_v25  ;;  %v30903_v25 = vld [vmem:[%s38326_s22 + $0x58] sm:$0xff] }
0x3c11   : > { %33906 = vmatprep.subr.bf16.mxu0 %v34959_v62 }
0x3cca   : > { %v21127_v28 = vpop.f32.mrb[140].mxu0 }
0x3ccb   : > { %v21128_v15 = vadd.f32 %v21127_v28, %v19076_v51  ;;  %v32849_v41 = vpop.f32.mrb[141].mxu0  ;;  %v21152_v51 = vrot.slane %v37287_v11, %v35427_v40 }
0x3ccc   : > { %v21157_v41 = vrot.slane %v37287_v11, %v35739_v3 }
0x3ccd   : > { %v21132_v54 = vrot.slane %v21128_v15, 7 }
0x3ccf   : > { %v21134_v59 = vsel %vm16877_vm4, %v19148_v42, %v21132_v54 }
0x3cd0   : > { %v21135_v53 = vadd.f32 %v21134_v59, %v36946_v49  ;;  %v21161_v49 = vld [vmem:[#allocation11 + $0x10] sm:$0xff] }
0x3cd1   : > { %v33877_v0 = vpack.c.bf16 %v21162_v1, %v21161_v49  ;;  %v21259_v59 = vld [vmem:[%s38328_s18 + $0x70] sm:$0xff] }
0x3cd2   : > { %v21136_v60 = vsel %vm16968_vm5, %v21135_v53, 0.0 }
0x3cd3   : > { %21137 = vadd.xlane.f32.xlu0 %v21136_v60  ;;  %33878 = vmatpush3.bf16.msra.mxu1 %v33877_v0  ;;  %v33937_v0 = vpack.c.bf16 %v21563_v13, %v21562_v12 }
0x3cd4   : > { %33879 = vmatprep.subr.bf16.mxu1 %v34959_v62 }
0x3cd7   : > { %33881 = vmatpush3.bf16.msra.mxu1 %v33880_v30  ;;  %v33941_v30 = vpack.c.bf16 %v21565_v16, %v21564_v9 }
0x3cd8   : > { %33882 = vmatprep.subr.bf16.mxu1 %v34959_v62 }
0x3cdb   : > { %33884 = vmatpush3.bf16.msra.mxu1 %v33883_v34  ;;  %v33945_v34 = vpack.c.bf16 %v21567_v57, %v21566_v43  ;;  %v30909_v43 = vld [vmem:[%s38327_s8 + $0x40] sm:$0xff]  ;;  %v30910_v57 = vld [vmem:[%s38327_s8 + $0x48] sm:$0xff] }
0x3cdc   : > { %33909 = vmatprep.subr.bf16.mxu1 %v34959_v62 }
0x3d60   : > { %v21138_v50 = vpop.xlane.xlu0 %21137 }
0x3d61   : > { %v21139_v44 = vmul.f32 0.015625, %v21138_v50  ;;  %v21560_v50 = vld [vmem:[#allocation8 + $0x40] sm:$0xff] }
0x3d63   : > { %v37229_v46 = vsub.f32 %v21135_v53, %v21139_v44  ;;  %v21260_v53 = vld [vmem:[%s38328_s18 + $0x78] sm:$0xff]  ;;  %v21561_v44 = vld [vmem:[#allocation8 + $0x48] sm:$0xff] }
0x3d64   : > { %v33907_v60 = vpack.c.bf16 %v21260_v53, %v21259_v59  ;;  %v21352_v53 = vrot.slane %v37287_v11, %v35856_v20 }
0x3d65   : > { %v21141_v55 = vmul.f32 %v37229_v46, %v37229_v46 }
0x3d66   : > { %33908 = vmatpush3.bf16.msra.mxu0 %v33907_v60 }
0x3d67   : > { %v21142_v52 = vsel %vm16968_vm5, %v21141_v55, 0.0  ;;  %v21170_v55 = vrot.slane %v37222_v48, %v35751_v17 }
0x3d68   : > { %21143 = vadd.xlane.f32.xlu1 %v21142_v52 }
0x3df5   : > { %v21144_v38 = vpop.xlane.xlu1 %21143 }
0x3df6   : > { %v21145_v31 = vmul.f32 0.015625, %v21144_v38  ;;  %v33913_v38 = vpack.c.bf16 %v30903_v25, %v30902_v33  ;;  %v21485_v33 = vrot.slane %v37315_v26, %v35739_v3 }
0x3df8   : > { %v21146_v45 = vadd.f32 1e-05, %v21145_v31  ;;  %v30904_v31 = vld [vmem:[%s38326_s22 + $0x60] sm:$0xff] }
0x3dfa   : > { %34517 = vrsqrt.f32 %v21146_v45  ;;  %v30905_v45 = vld [vmem:[%s38326_s22 + $0x68] sm:$0xff] }
0x3e04   : > { %v34518_v28 = vpop.eup %34517 }
0x3e05   : > { %v21148_v15 = vmul.f32 %v34518_v28, %v37229_v46  ;;  %v33933_v46 = vpack.c.bf16 %v21561_v44, %v21560_v50  ;;  %v30906_v28 = vld [vmem:[%s38326_s22 + $0x70] sm:$0xff]  ;;  %v21357_v44 = vrot.slane %v37287_v11, %v35863_v35 }
0x3e07   : > { %v21153_v42 = vmul.f32 %v21152_v51, %v21148_v15  ;;  %33934 = vmatprep.subr.bf16.mxu0 %v33933_v46  ;;  %v33916_v51 = vpack.c.bf16 %v30905_v45, %v30904_v31  ;;  %v30907_v15 = vld [vmem:[%s38326_s22 + $0x78] sm:$0xff] }
0x3e09   : > { %v21158_v54 = vadd.f32 %v21157_v41, %v21153_v42  ;;  %v33919_v41 = vpack.c.bf16 %v30907_v15, %v30906_v28 }
0x3e0b   : > { %32867 = vmatmul.mubr.msk.f32.vlgmr.msra.gmra.mrb[162].mxu1 %vm804_vm1, %v21158_v54 }
0x3e0c   : > { %32920 = vmatprep.mubr.msk.f32.mxu1 %vm34958_vm2, %v34957_v29  ;;  %33911 = vmatpush3.bf16.msra.mxu1 %v33910_v32 }
0x3e0d   : > { %33912 = vmatprep.subr.bf16.mxu1 %v34959_v62 }
0x3e10   : > { %33914 = vmatpush3.bf16.msra.mxu1 %v33913_v38 }
0x3e11   : > { %33915 = vmatprep.subr.bf16.mxu1 %v34959_v62 }
0x3e14   : > { %33917 = vmatpush3.bf16.msra.mxu1 %v33916_v51 }
0x3e15   : > { %33918 = vmatprep.subr.bf16.mxu1 %v34959_v62 }
0x3e18   : > { %33920 = vmatpush3.bf16.msra.mxu1 %v33919_v41 }
0x3e19   : > { %33921 = vmatprep.subr.bf16.mxu1 %v34959_v62 }
0x3ede   : > { %v21240_v52 = vpop.f32.mrb[162].mxu1 }
0x3edf   : > { %v21241_v2 = vadd.f32 %v21240_v52, %v21170_v55  ;;  %v32868_v49 = vpop.f32.mrb[163].mxu1  ;;  %v21448_v52 = vrot.slane %v37315_v26, %v35427_v40 }
0x3ee1   : > { %v21244_v1 = vmax.f32 %v21241_v2, 0.0 }
0x3ee3   : > { %32902 = vmatmul.mubr.f32.vlgmr.msra.gmra.mrb[142].mxu0 %v21244_v1 }
0x3ee4   : > { %33936 = vmatpush3.bf16.msra.mxu0 %v33933_v46  ;;  %32958 = vmatprep.mubr.msk.f32.mxu0 %vm804_vm1, %v36957_v21 }
0x3ee5   : > { %33938 = vmatprep.subr.bf16.mxu0 %v33937_v0 }
0x3ee8   : > { %33940 = vmatpush3.bf16.msra.mxu0 %v33937_v0 }
0x3ee9   : > { %33942 = vmatprep.subr.bf16.mxu0 %v33941_v30 }
0x3eec   : > { %33944 = vmatpush3.bf16.msra.mxu0 %v33941_v30 }
0x3eed   : > { %33946 = vmatprep.subr.bf16.mxu0 %v33945_v34 }
0x3ef0   : > { %33948 = vmatpush3.bf16.msra.mxu0 %v33945_v34  ;;  %v33922_v34 = vpack.c.bf16 %v30910_v57, %v30909_v43 }
0x3ef1   : > { %32981 = vmatprep.subr.mxu0 %v34957_v29 }
0x3ef3   : > { %32959 = vmatmul.mubr.msk.f32.vlgmr.msra.gmra.mrb[144].mxu0 %vm804_vm1, %v36961_v27 }
0x3ef4   : > { %32983 = vmatprep.mubr.msk.f32.mxu0 %vm34958_vm2, %v34957_v29 }
0x3fb6   : > { %v21331_v39 = vpop.f32.mrb[142].mxu0 }
0x3fb7   : > { %v21332_v7 = vadd.f32 %v21331_v39, %v21264_v18  ;;  %v32903_v58 = vpop.f32.mrb[143].mxu0  ;;  %v30911_v18 = vld [vmem:[%s38327_s8 + $0x50] sm:$0xff]  ;;  %v30912_v39 = vld [vmem:[%s38327_s8 + $0x58] sm:$0xff] }
0x3fb8   : > { %v30913_v58 = vld [vmem:[%s38327_s8 + $0x60] sm:$0xff] }
0x3fb9   : > { %v21335_v56 = vadd.f32 %v21332_v7, %v21158_v54  ;;  %v33925_v7 = vpack.c.bf16 %v30912_v39, %v30911_v18 }
0x3fbb   : > { %v21336_v8 = vsel %vm16968_vm5, %v21335_v56, 0.0 }
0x3fbc   : > { %21337 = vadd.xlane.f32.xlu0 %v21336_v8 }
0x3fc6   : > { %v32960_v22 = vpop.f32.mrb[144].mxu0 }
0x3fc7   : > { %v37319_v4 = vadd.f32 %v32960_v22, %v21571_v6  ;;  %v21638_v63 = vpop.f32.mrb[145].mxu0  ;;  %v30916_v22 = vld [vmem:[%s38327_s8 + $0x78] sm:$0xff] }
0x3fc8   : > { %v21639_v47 = vadd.f32 %v21638_v63, %v21571_v6  ;;  %v30915_v6 = vld [vmem:[%s38327_s8 + $0x70] sm:$0xff] }
0x3fc9   : > { %v33931_v63 = vpack.c.bf16 %v30916_v22, %v30915_v6 }
0x3fca   : > { %21935 = vxpose.xlu1.b32.start.end [1/1] (short) %v21639_v47, 128 }
0x4049   : > { %v21338_v37 = vpop.xlane.xlu0 %21337 }
0x404a   : > { %v21339_v48 = vmul.f32 0.015625, %v21338_v37  ;;  %v21951_v45 = vpop.trf.xlu1 }
0x404c   : > { %v21340_v61 = vsub.f32 %v21335_v56, %v21339_v48  ;;  %v30914_v56 = vld [vmem:[%s38327_s8 + $0x68] sm:$0xff] }
0x404d   : > { %v33928_v8 = vpack.c.bf16 %v30914_v56, %v30913_v58 }
0x404e   : > { %v21341_v36 = vmul.f32 %v21340_v61, %v21340_v61  ;;  %v21952_v51 = vpop.trf.xlu1 }
0x4050   : > { %v21342_v14 = vsel %vm16968_vm5, %v21341_v36, 0.0 }
0x4051   : > { %21343 = vadd.xlane.f32.xlu0 %v21342_v14 }
0x4052   : > { %v21953_v28 = vpop.trf.xlu1 }
0x4056   : > { %v21954_v15 = vpop.trf.xlu1 }
0x405a   : > { %v21955_v41 = vpop.trf.xlu1 }
0x405b   : > { %32982 = vmatpush3.msra.mxu0 %v21955_v41 }
0x405c   : > { %32991 = vmatprep.subr.mxu0 %v34957_v29 }
0x40de   : > { %v21344_v42 = vpop.xlane.xlu0 %21343 }
0x40df   : > { %v21345_v54 = vmul.f32 0.015625, %v21344_v42 }
0x40e1   : > { %v21346_v59 = vadd.f32 1e-05, %v21345_v54 }
0x40e3   : > { %34519 = vrsqrt.f32 %v21346_v59 }
0x40ed   : > { %v34520_v60 = vpop.eup %34519 }
0x40ee   : > { %v21348_v50 = vmul.f32 %v34520_v60, %v21340_v61  ;;  %v21466_v61 = vrot.slane %v37315_v26, %v35921_v23 }
0x40f0   : > { %v21353_v46 = vmul.f32 %v21352_v53, %v21348_v50 }
0x40f2   : > { %v21358_v55 = vadd.f32 %v21357_v44, %v21353_v46  ;;  %v21956_v46 = vpop.trf.xlu1 }
0x40f4   : > { %32921 = vmatmul.mubr.msk.f32.vlgmr.msra.gmra.mrb[164].mxu1 %vm804_vm1, %v21358_v55 }
0x40f5   : > { %32939 = vmatprep.mubr.msk.f32.mxu1 %vm34958_vm2, %v34957_v29  ;;  %33923 = vmatpush3.bf16.msra.mxu1 %v33922_v34 }
0x40f6   : > { %33924 = vmatprep.subr.bf16.mxu1 %v34959_v62 }
0x40f9   : > { %33926 = vmatpush3.bf16.msra.mxu1 %v33925_v7 }
0x40fa   : > { %33927 = vmatprep.subr.bf16.mxu1 %v34959_v62 }
0x40fd   : > { %33929 = vmatpush3.bf16.msra.mxu1 %v33928_v8 }
0x40fe   : > { %33930 = vmatprep.subr.bf16.mxu1 %v34959_v62 }
0x4101   : > { %33932 = vmatpush3.bf16.msra.mxu1 %v33931_v63 }
0x4102   : > { %32961 = vmatprep.subr.mxu1 %v34957_v29 }
0x41c7   : > { %v21440_v12 = vpop.f32.mrb[164].mxu1 }
0x41c8   : > { %v21444_v13 = vadd.f32 %v21440_v12, %v21358_v55  ;;  %v32922_v2 = vpop.f32.mrb[165].mxu1  ;;  %v21957_v55 = vpop.trf.xlu1 }
0x41ca   : > { %v21449_v49 = vadd.f32 %v21448_v52, %v21444_v13 }
0x41cc   : > { %v21450_v1 = vsel %vm16968_vm5, %v21449_v49, 0.0  ;;  %v21958_v52 = vpop.trf.xlu1 }
0x41cd   : > { %21451 = vadd.xlane.f32.xlu0 %v21450_v1 }
0x41d0   : > { %v21959_v12 = vpop.trf.xlu1 }
0x41d4   : > { %v21960_v13 = vpop.trf.xlu1 }
0x41d8   : > { %v37406_v2 = vpop.trf.xlu1 }
0x425a   : > { %v21452_v0 = vpop.xlane.xlu0 %21451 }
0x425b   : > { %v21453_v9 = vmul.f32 0.015625, %v21452_v0 }
0x425d   : > { %v21454_v11 = vsub.f32 %v21449_v49, %v21453_v9  ;;  %v37408_v49 = vpop.trf.xlu1 }
0x425f   : > { %v21455_v16 = vmul.f32 %v21454_v11, %v21454_v11 }
0x4261   : > { %v21456_v30 = vsel %vm16968_vm5, %v21455_v16, 0.0  ;;  %v37410_v1 = vpop.trf.xlu1 }
0x4262   : > { %21457 = vadd.xlane.f32.xlu0 %v21456_v30 }
0x4265   : > { %v37412_v0 = vpop.trf.xlu1 }
0x4269   : > { %v37414_v9 = vpop.trf.xlu1 }
0x42ef   : > { %v21458_v47 = vpop.xlane.xlu0 %21457 }
0x42f0   : > { %v21459_v37 = vmul.f32 0.015625, %v21458_v47 }
0x42f2   : > { %v21460_v48 = vadd.f32 1e-05, %v21459_v37 }
0x42f4   : > { %34521 = vrsqrt.f32 %v21460_v48 }
0x42fe   : > { %v34522_v36 = vpop.eup %34521 }
0x42ff   : > { %v21462_v14 = vmul.f32 %v34522_v36, %v21454_v11  ;;  %v37416_v11 = vpop.trf.xlu1 }
0x4301   : > { %v21467_v5 = vmul.f32 %v21466_v61, %v21462_v14 }
0x4303   : > { %v37393_v32 = vadd.f32 %v21471_v10, %v21467_v5 }
0x4305   : > { %32940 = vmatmul.mubr.msk.f32.vlgmr.msra.gmra.mrb[166].mxu1 %vm804_vm1, %v37393_v32 }
0x4306   : > { %32963 = vmatprep.mubr.msk.f32.mxu1 %vm34958_vm2, %v34957_v29  ;;  %32962 = vmatpush3.msra.mxu1 %v21951_v45 }
0x4307   : > { %32966 = vmatprep.subr.mxu1 %v34957_v29 }
0x43d8   : > { %v21555_v25 = vpop.f32.mrb[166].mxu1 }
0x43d9   : > { %v37401_v38 = vadd.f32 %v21555_v25, %v21485_v33  ;;  %v32941_v31 = vpop.f32.mrb[167].mxu1 }
0x43db   : > { %21647 = vxpose.xlu0.b32.start.end [1/1] (short) (narrow) %v37401_v38, 64 }
0x445b   : > { %v21663_v42 = vpop.trf.xlu0 }
0x445c   : > { %21679 = vxpose.xlu0.b32.start.end [1/1] (short) (narrow) %v21663_v42, 8 }
0x445f   : > { %v21664_v26 = vpop.trf.xlu0 }
0x4460   : > { %21711 = vxpose.xlu1.b32.start.end [1/1] (short) (narrow) %v21664_v26, 8 }
0x4463   : > { %v21665_v54 = vpop.trf.xlu0 }
0x4464   : > { %21743 = vxpose.xlu0.b32.start.end [1/1] (short) (narrow) %v21665_v54, 8 }
0x4467   : > { %v21666_v59 = vpop.trf.xlu0 }
0x4468   : > { %21775 = vxpose.xlu0.b32.start.end [1/1] (short) (narrow) %v21666_v59, 8 }
0x446b   : > { %v21667_v53 = vpop.trf.xlu0 }
0x446c   : > { %21807 = vxpose.xlu0.b32.start.end [1/1] (short) (narrow) %v21667_v53, 8 }
0x446f   : > { %v21668_v60 = vpop.trf.xlu0 }
0x4470   : > { %21839 = vxpose.xlu0.b32.start.end [1/1] (short) (narrow) %v21668_v60, 8 }
0x4473   : > { %v21669_v50 = vpop.trf.xlu0 }
0x4474   : > { %21871 = vxpose.xlu0.b32.start.end [1/1] (short) (narrow) %v21669_v50, 8 }
0x4477   : > { %v21670_v44 = vpop.trf.xlu0 }
0x4478   : > { %21903 = vxpose.xlu0.b32.start.end [1/1] (short) (narrow) %v21670_v44, 8 }
0x44dc   : > { %v21695_v16 = vpop.trf.xlu0 }
0x44dd   : > { %32964 = vmatmul.mubr.msk.f32.vlgmr.msra.gmra.mrb[168].mxu1 %vm1728_vm3, %v21695_v16 }
0x44de   : > { %32967 = vmatpush3.msra.mxu1 %v21952_v51  ;;  %32968 = vmatprep.mubr.msk.f32.mxu1 %vm34958_vm2, %v34957_v29 }
0x44df   : > { %32971 = vmatprep.subr.mxu1 %v34957_v29 }
0x44e0   : > { %v21727_v30 = vpop.trf.xlu1 }
0x44e1   : > { %32969 = vmatmul.mubr.msk.f32.vlgmr.msra.gmra.mrb[170].mxu1 %vm1728_vm3, %v21727_v30 }
0x44e2   : > { %32972 = vmatpush3.msra.mxu1 %v21953_v28  ;;  %32973 = vmatprep.mubr.msk.f32.mxu1 %vm34958_vm2, %v34957_v29 }
0x44e3   : > { %32976 = vmatprep.subr.mxu1 %v34957_v29 }
0x44e4   : > { %v21759_v43 = vpop.trf.xlu0 }
0x44e5   : > { %32974 = vmatmul.mubr.msk.f32.vlgmr.msra.gmra.mrb[172].mxu1 %vm1728_vm3, %v21759_v43 }
0x44e6   : > { %32977 = vmatpush3.msra.mxu1 %v21954_v15  ;;  %32978 = vmatprep.mubr.msk.f32.mxu1 %vm34958_vm2, %v34957_v29 }
0x44e7   : > { %32986 = vmatprep.subr.mxu1 %v34957_v29 }
0x44e8   : > { %v21791_v57 = vpop.trf.xlu0 }
0x44e9   : > { %32979 = vmatmul.mubr.msk.f32.vlgmr.msra.gmra.mrb[174].mxu1 %vm1728_vm3, %v21791_v57 }
0x44ea   : > { %32987 = vmatpush3.msra.mxu1 %v21956_v46  ;;  %32988 = vmatprep.mubr.msk.f32.mxu1 %vm34958_vm2, %v34957_v29 }
0x44eb   : > { %32996 = vmatprep.subr.mxu1 %v34957_v29 }
0x44ec   : > { %v21823_v34 = vpop.trf.xlu0 }
0x44ed   : > { %32984 = vmatmul.mubr.msk.f32.vlgmr.msra.gmra.mrb[146].mxu0 %vm1728_vm3, %v21823_v34 }
0x44ee   : > { %32992 = vmatpush3.msra.mxu0 %v21957_v55  ;;  %32993 = vmatprep.mubr.msk.f32.mxu0 %vm34958_vm2, %v34957_v29 }
0x44ef   : > { %33001 = vmatprep.subr.mxu0 %v34957_v29 }
0x44f0   : > { %v21855_v18 = vpop.trf.xlu0 }
0x44f1   : > { %32989 = vmatmul.mubr.msk.f32.vlgmr.msra.gmra.mrb[176].mxu1 %vm1728_vm3, %v21855_v18 }
0x44f2   : > { %32997 = vmatpush3.msra.mxu1 %v21958_v52  ;;  %32998 = vmatprep.mubr.msk.f32.mxu1 %vm34958_vm2, %v34957_v29 }
0x44f3   : > { %33006 = vmatprep.subr.mxu1 %v34957_v29 }
0x44f4   : > { %v21887_v39 = vpop.trf.xlu0 }
0x44f5   : > { %32994 = vmatmul.mubr.msk.f32.vlgmr.msra.gmra.mrb[148].mxu0 %vm1728_vm3, %v21887_v39 }
0x44f6   : > { %33002 = vmatpush3.xpose.msk.msra.mxu0 %vm1728_vm3, %v21959_v12  ;;  %33003 = vmatprep.mubr.msk.f32.mxu0 %vm34958_vm2, %v34957_v29 }
0x44f7   : > { %33011 = vmatprep.subr.mxu0 %v34957_v29 }
0x44f8   : > { %v21919_v7 = vpop.trf.xlu0 }
0x44f9   : > { %32999 = vmatmul.mubr.msk.f32.vlgmr.msra.gmra.mrb[178].mxu1 %vm1728_vm3, %v21919_v7 }
0x44fa   : > { %33007 = vmatpush3.xpose.msk.msra.mxu1 %vm1728_vm3, %v21960_v13  ;;  %33008 = vmatprep.mubr.msk.f32.mxu1 %vm34958_vm2, %v34957_v29 }
0x44fb   : > { %33016 = vmatprep.subr.mxu1 %v34957_v29 }
0x45b0   : > { %v22045_v58 = vpop.f32.mrb[168].mxu1 }
0x45b1   : > { %v22560_v56 = vmul.f32 0.35355338, %v22045_v58  ;;  %v32965_v8 = vpop.f32.mrb[169].mxu1 }
0x45b3   : > { %v22568_v6 = vsel %vm18090_vm6, %v22560_v56, -inf }
0x45b4   : > { %22569 = vmax.xlane.f32.xlu0 %v22568_v6  ;;  %v22118_v22 = vpop.f32.mrb[170].mxu1 }
0x45b5   : > { %v22561_v63 = vmul.f32 0.35355338, %v22118_v22  ;;  %v32970_v47 = vpop.f32.mrb[171].mxu1 }
0x45b7   : > { %v22571_v37 = vsel %vm18090_vm6, %v22561_v63, -inf }
0x45b8   : > { %22572 = vmax.xlane.f32.xlu1 %v22571_v37  ;;  %v22191_v48 = vpop.f32.mrb[172].mxu1 }
0x45b9   : > { %v22562_v61 = vmul.f32 0.35355338, %v22191_v48  ;;  %v32975_v36 = vpop.f32.mrb[173].mxu1 }
0x45bb   : > { %v22574_v14 = vsel %vm18090_vm6, %v22562_v61, -inf }
0x45bc   : > { %22575 = vmax.xlane.f32.xlu0 %v22574_v14  ;;  %v22264_v10 = vpop.f32.mrb[174].mxu1 }
0x45bd   : > { %v22563_v5 = vmul.f32 0.35355338, %v22264_v10  ;;  %v32980_v33 = vpop.f32.mrb[175].mxu1 }
0x45bf   : > { %v22577_v25 = vsel %vm18090_vm6, %v22563_v5, -inf }
0x45c0   : > { %v22337_v31 = vpop.f32.mrb[146].mxu0  ;;  %22578 = vmax.xlane.f32.xlu0 %v22577_v25 }
0x45c1   : > { %v22564_v45 = vmul.f32 0.35355338, %v22337_v31  ;;  %v32985_v51 = vpop.f32.mrb[147].mxu0 }
0x45c3   : > { %v22580_v28 = vsel %vm18090_vm6, %v22564_v45, -inf }
0x45c4   : > { %22581 = vmax.xlane.f32.xlu0 %v22580_v28  ;;  %v22410_v15 = vpop.f32.mrb[176].mxu1 }
0x45c5   : > { %v22565_v41 = vmul.f32 0.35355338, %v22410_v15  ;;  %v32990_v42 = vpop.f32.mrb[177].mxu1 }
0x45c7   : > { %v22583_v26 = vsel %vm18090_vm6, %v22565_v41, -inf }
0x45c8   : > { %v22483_v54 = vpop.f32.mrb[148].mxu0  ;;  %22584 = vmax.xlane.f32.xlu0 %v22583_v26 }
0x45c9   : > { %v22566_v59 = vmul.f32 0.35355338, %v22483_v54  ;;  %v32995_v53 = vpop.f32.mrb[149].mxu0 }
0x45cb   : > { %v22586_v60 = vsel %vm18090_vm6, %v22566_v59, -inf }
0x45cc   : > { %22587 = vmax.xlane.f32.xlu0 %v22586_v60  ;;  %v22556_v50 = vpop.f32.mrb[178].mxu1 }
0x45cd   : > { %v22567_v44 = vmul.f32 0.35355338, %v22556_v50  ;;  %v33000_v46 = vpop.f32.mrb[179].mxu1 }
0x45cf   : > { %v22589_v55 = vsel %vm18090_vm6, %v22567_v44, -inf }
0x45d0   : > { %22590 = vmax.xlane.f32.xlu1 %v22589_v55 }
0x4641   : > { %v22570_v52 = vpop.xlane.xlu0 %22569 }
0x4642   : > { %v22592_v12 = vsub.f32 %v22560_v56, %v22570_v52 }
0x4644   : > { %v22600_v13 = vmul.f32 1.442695, %v22592_v12 }
0x4645   : > { %v22573_v16 = vpop.xlane.xlu1 %22572 }
0x4646   : > { %34523 = vpow2.f32 %v22600_v13  ;;  %v22593_v30 = vsub.f32 %v22561_v63, %v22573_v16 }
0x4648   : > { %v22602_v43 = vmul.f32 1.442695, %v22593_v30 }
0x4649   : > { %v22576_v57 = vpop.xlane.xlu0 %22575 }
0x464a   : > { %34525 = vpow2.f32 %v22602_v43  ;;  %v22594_v34 = vsub.f32 %v22562_v61, %v22576_v57 }
0x464c   : > { %v22604_v18 = vmul.f32 1.442695, %v22594_v34 }
0x464d   : > { %v22579_v39 = vpop.xlane.xlu0 %22578 }
0x464e   : > { %34527 = vpow2.f32 %v22604_v18  ;;  %v22595_v7 = vsub.f32 %v22563_v5, %v22579_v39 }
0x4650   : > { %v34524_v58 = vpop.eup %34523  ;;  %v22606_v8 = vmul.f32 1.442695, %v22595_v7 }
0x4651   : > { %v22582_v6 = vpop.xlane.xlu0 %22581  ;;  %v22616_v22 = vsel %vm18090_vm6, %v34524_v58, 0.0 }
0x4652   : > { %34529 = vpow2.f32 %v22606_v8  ;;  %v22596_v47 = vsub.f32 %v22564_v45, %v22582_v6  ;;  %22617 = vadd.xlane.f32.xlu0 %v22616_v22 }
0x4654   : > { %v34526_v56 = vpop.eup %34525  ;;  %v22608_v37 = vmul.f32 1.442695, %v22596_v47 }
0x4655   : > { %v22585_v48 = vpop.xlane.xlu0 %22584  ;;  %v22619_v63 = vsel %vm18090_vm6, %v34526_v56, 0.0 }
0x4656   : > { %34531 = vpow2.f32 %v22608_v37  ;;  %v22597_v36 = vsub.f32 %v22565_v41, %v22585_v48  ;;  %22620 = vadd.xlane.f32.xlu1 %v22619_v63 }
0x4658   : > { %v34528_v61 = vpop.eup %34527  ;;  %v22610_v14 = vmul.f32 1.442695, %v22597_v36 }
0x4659   : > { %v22588_v10 = vpop.xlane.xlu0 %22587  ;;  %v22622_v5 = vsel %vm18090_vm6, %v34528_v61, 0.0 }
0x465a   : > { %34533 = vpow2.f32 %v22610_v14  ;;  %v22598_v33 = vsub.f32 %v22566_v59, %v22588_v10  ;;  %22623 = vadd.xlane.f32.xlu0 %v22622_v5 }
0x465c   : > { %v34530_v25 = vpop.eup %34529  ;;  %v22612_v31 = vmul.f32 1.442695, %v22598_v33 }
0x465d   : > { %v22591_v45 = vpop.xlane.xlu1 %22590  ;;  %v22625_v51 = vsel %vm18090_vm6, %v34530_v25, 0.0 }
0x465e   : > { %34535 = vpow2.f32 %v22612_v31  ;;  %v22599_v28 = vsub.f32 %v22567_v44, %v22591_v45  ;;  %22626 = vadd.xlane.f32.xlu1 %v22625_v51  ;;  %v23629_v44 = vrot.slane %v37401_v38, 1 }
0x4660   : > { %v34532_v15 = vpop.eup %34531  ;;  %v22614_v42 = vmul.f32 1.442695, %v22599_v28 }
0x4661   : > { %v22628_v41 = vsel %vm18090_vm6, %v34532_v15, 0.0 }
0x4662   : > { %34537 = vpow2.f32 %v22614_v42  ;;  %22629 = vadd.xlane.f32.xlu0 %v22628_v41 }
0x4664   : > { %v34534_v26 = vpop.eup %34533 }
0x4665   : > { %v22631_v54 = vsel %vm18090_vm6, %v34534_v26, 0.0 }
0x4666   : > { %22632 = vadd.xlane.f32.xlu1 %v22631_v54 }
0x4668   : > { %v34536_v59 = vpop.eup %34535 }
0x4669   : > { %v22634_v53 = vsel %vm18090_vm6, %v34536_v59, 0.0 }
0x466a   : > { %22635 = vadd.xlane.f32.xlu0 %v22634_v53 }
0x466c   : > { %v34538_v60 = vpop.eup %34537 }
0x466d   : > { %v22637_v50 = vsel %vm18090_vm6, %v34538_v60, 0.0 }
0x466e   : > { %22638 = vadd.xlane.f32.xlu1 %v22637_v50  ;;  %v21969_v50 = vld [vmem:[#allocation10 + $0x48] sm:$0xff] }
0x4697   : > { %23631 = vxpose.xlu0.b32.start.end [1/1] (short) (narrow) %v23629_v44, 64  ;;  %v21970_v44 = vld [vmem:[#allocation10 + $0x50] sm:$0xff] }
0x46df   : > { %v22618_v46 = vpop.xlane.xlu0 %22617 }
0x46e0   : > { %34539 = vrcp.f32 %v22618_v46 }
0x46e3   : > { %v22621_v55 = vpop.xlane.xlu1 %22620 }
0x46e4   : > { %34541 = vrcp.f32 %v22621_v55  ;;  %v21971_v55 = vld [vmem:[#allocation10 + $0x58] sm:$0xff] }
0x46e7   : > { %v22624_v52 = vpop.xlane.xlu0 %22623 }
0x46e8   : > { %34543 = vrcp.f32 %v22624_v52  ;;  %v37515_v52 = vpack.c.bf16 %v21971_v55, %v21970_v44 }
0x46ea   : > { %v34540_v12 = vpop.eup %34539 }
0x46eb   : > { %v22627_v13 = vpop.xlane.xlu1 %22626  ;;  %v22648_v16 = vmul.f32 %v34540_v12, %v34524_v58  ;;  %v21972_v12 = vld [vmem:[#allocation10 + $0x60] sm:$0xff] }
0x46ec   : > { %34545 = vrcp.f32 %v22627_v13  ;;  %v21973_v13 = vld [vmem:[#allocation10 + $0x68] sm:$0xff] }
0x46ed   : > { %33004 = vmatmul.mubr.msk.f32.vlgmr.msra.gmra.mrb[150].mxu0 %vm1728_vm3, %v22648_v16  ;;  %v21974_v16 = vld [vmem:[#allocation10 + $0x70] sm:$0xff] }
0x46ee   : > { %v34542_v30 = vpop.eup %34541  ;;  %33012 = vmatpush3.xpose.msk.msra.mxu0 %vm1728_vm3, %v37406_v2  ;;  %33013 = vmatprep.mubr.msk.f32.mxu0 %vm34958_vm2, %v34957_v29 }
0x46ef   : > { %v22649_v38 = vmul.f32 %v34542_v30, %v34526_v56  ;;  %v22630_v43 = vpop.xlane.xlu0 %22629  ;;  %33021 = vmatprep.subr.mxu0 %v34957_v29  ;;  %v21975_v30 = vld [vmem:[#allocation10 + $0x78] sm:$0xff] }
0x46f0   : > { %34547 = vrcp.f32 %v22630_v43 }
0x46f1   : > { %33009 = vmatmul.mubr.msk.f32.vlgmr.msra.gmra.mrb[180].mxu1 %vm1728_vm3, %v22649_v38  ;;  %v37523_v38 = vpack.c.bf16 %v21975_v30, %v21974_v16 }
0x46f2   : > { %v34544_v57 = vpop.eup %34543  ;;  %33017 = vmatpush3.xpose.msk.msra.mxu1 %vm1728_vm3, %v37408_v49  ;;  %33018 = vmatprep.mubr.msk.f32.mxu1 %vm34958_vm2, %v34957_v29 }
0x46f3   : > { %v22633_v34 = vpop.xlane.xlu1 %22632  ;;  %v22650_v18 = vmul.f32 %v34544_v57, %v34528_v61  ;;  %33026 = vmatprep.subr.mxu1 %v34957_v29 }
0x46f4   : > { %34549 = vrcp.f32 %v22633_v34 }
0x46f5   : > { %33014 = vmatmul.mubr.msk.f32.vlgmr.msra.gmra.mrb[152].mxu0 %vm1728_vm3, %v22650_v18 }
0x46f6   : > { %v34546_v2 = vpop.eup %34545  ;;  %33022 = vmatpush3.xpose.msk.msra.mxu0 %vm1728_vm3, %v37410_v1  ;;  %33023 = vmatprep.mubr.msk.f32.mxu0 %vm34958_vm2, %v34957_v29 }
0x46f7   : > { %v22651_v39 = vmul.f32 %v34546_v2, %v34530_v25  ;;  %v22636_v7 = vpop.xlane.xlu0 %22635  ;;  %33031 = vmatprep.subr.mxu0 %v34957_v29 }
0x46f8   : > { %34551 = vrcp.f32 %v22636_v7 }
0x46f9   : > { %33019 = vmatmul.mubr.msk.f32.vlgmr.msra.gmra.mrb[182].mxu1 %vm1728_vm3, %v22651_v39 }
0x46fa   : > { %v34548_v49 = vpop.eup %34547  ;;  %33027 = vmatpush3.xpose.msk.msra.mxu1 %vm1728_vm3, %v37412_v0  ;;  %33028 = vmatprep.mubr.msk.f32.mxu1 %vm34958_vm2, %v34957_v29 }
0x46fb   : > { %v22639_v58 = vpop.xlane.xlu1 %22638  ;;  %v22652_v8 = vmul.f32 %v34548_v49, %v34532_v15  ;;  %33036 = vmatprep.subr.mxu1 %v34957_v29 }
0x46fc   : > { %34553 = vrcp.f32 %v22639_v58 }
0x46fd   : > { %33024 = vmatmul.mubr.msk.f32.vlgmr.msra.gmra.mrb[154].mxu0 %vm1728_vm3, %v22652_v8 }
0x46fe   : > { %v34550_v1 = vpop.eup %34549  ;;  %33032 = vmatpush3.xpose.msk.msra.mxu0 %vm1728_vm3, %v37414_v9  ;;  %33033 = vmatprep.mubr.msk.f32.mxu0 %vm34958_vm2, %v34957_v29 }
0x46ff   : > { %v22653_v6 = vmul.f32 %v34550_v1, %v34534_v26  ;;  %33949 = vmatprep.subr.bf16.mxu0 %v34959_v62 }
0x4701   : > { %33029 = vmatmul.mubr.msk.f32.vlgmr.msra.gmra.mrb[184].mxu1 %vm1728_vm3, %v22653_v6 }
0x4702   : > { %v34552_v0 = vpop.eup %34551  ;;  %33037 = vmatpush3.xpose.msk.msra.mxu1 %vm1728_vm3, %v37416_v11  ;;  %33038 = vmatprep.mubr.msk.f32.mxu1 %vm34958_vm2, %v34957_v29 }
0x4703   : > { %v22654_v22 = vmul.f32 %v34552_v0, %v34536_v59  ;;  %33060 = vmatprep.subr.mxu1 %v34957_v29 }
0x4705   : > { %33034 = vmatmul.mubr.msk.f32.vlgmr.msra.gmra.mrb[156].mxu0 %vm1728_vm3, %v22654_v22 }
0x4706   : > { %v34554_v9 = vpop.eup %34553  ;;  %33057 = vmatprep.mubr.msk.f32.mxu0 %vm34958_vm2, %v34957_v29 }
0x4707   : > { %v22655_v47 = vmul.f32 %v34554_v9, %v34538_v60  ;;  %v21968_v60 = vld [vmem:[#allocation10 + $0x40] sm:$0xff] }
0x4708   : > { %v37512_v46 = vpack.c.bf16 %v21969_v50, %v21968_v60 }
0x4709   : > { %33039 = vmatmul.mubr.msk.f32.vlgmr.msra.gmra.mrb[186].mxu1 %vm1728_vm3, %v22655_v47 }
0x470a   : > { %33062 = vmatprep.mubr.msk.f32.mxu1 %vm34958_vm2, %v34957_v29  ;;  %33951 = vmatpush3.bf16.msra.mxu0 %v37512_v46 }
0x470b   : > { %33952 = vmatprep.subr.bf16.mxu0 %v34959_v62 }
0x470e   : > { %33954 = vmatpush3.bf16.msra.mxu0 %v37515_v52 }
0x470f   : > { %33955 = vmatprep.subr.bf16.mxu0 %v34959_v62 }
0x4717   : > { %v23647_v36 = vpop.trf.xlu0 }
0x471b   : > { %v23648_v5 = vpop.trf.xlu0 }
0x471f   : > { %v23649_v45 = vpop.trf.xlu0 }
0x4723   : > { %v23650_v42 = vpop.trf.xlu0 }
0x4727   : > { %v23651_v54 = vpop.trf.xlu0 }
0x472b   : > { %v23652_v59 = vpop.trf.xlu0 }
0x472f   : > { %v23653_v53 = vpop.trf.xlu0 }
0x4733   : > { %v23654_v43 = vpop.trf.xlu0 }
0x47c0   : > { %v22728_v56 = vpop.f32.mrb[150].mxu0 }
0x47c1   : > { %23264 = vxpose.xlu0.b32.start.end [1/1] (short) (narrow) %v22728_v56, 8  ;;  %v33005_v11 = vpop.f32.mrb[151].mxu0 }
0x47c4   : > { %v22804_v37 = vpop.f32.mrb[180].mxu1 }
0x47c5   : > { %23296 = vxpose.xlu1.b32.start.end [1/1] (short) (narrow) %v22804_v37, 8  ;;  %v33010_v48 = vpop.f32.mrb[181].mxu1 }
0x47c8   : > { %v22880_v63 = vpop.f32.mrb[152].mxu0 }
0x47c9   : > { %23328 = vxpose.xlu0.b32.start.end [1/1] (short) (narrow) %v22880_v63, 8  ;;  %v33015_v61 = vpop.f32.mrb[153].mxu0 }
0x47cc   : > { %v22956_v14 = vpop.f32.mrb[182].mxu1 }
0x47cd   : > { %23360 = vxpose.xlu1.b32.start.end [1/1] (short) (narrow) %v22956_v14, 8  ;;  %v33020_v10 = vpop.f32.mrb[183].mxu1 }
0x47d0   : > { %v23032_v33 = vpop.f32.mrb[154].mxu0 }
0x47d1   : > { %23392 = vxpose.xlu0.b32.start.end [1/1] (short) (narrow) %v23032_v33, 8  ;;  %v33025_v25 = vpop.f32.mrb[155].mxu0 }
0x47d4   : > { %v23108_v31 = vpop.f32.mrb[184].mxu1 }
0x47d5   : > { %23424 = vxpose.xlu1.b32.start.end [1/1] (short) (narrow) %v23108_v31, 8  ;;  %v33030_v51 = vpop.f32.mrb[185].mxu1  ;;  %23695 = vxpose.xlu0.b32.start.end [1/1] (short) (narrow) %v23648_v5, 8 }
0x47d8   : > { %v23184_v28 = vpop.f32.mrb[156].mxu0 }
0x47d9   : > { %v33035_v15 = vpop.f32.mrb[157].mxu0  ;;  %23456 = vxpose.xlu1.b32.start.end [1/1] (short) (narrow) %v23184_v28, 8  ;;  %23727 = vxpose.xlu0.b32.start.end [1/1] (short) (narrow) %v23649_v45, 8 }
0x47dc   : > { %v23260_v41 = vpop.f32.mrb[186].mxu1 }
0x47dd   : > { %23488 = vxpose.xlu1.b32.start.end [1/1] (short) (narrow) %v23260_v41, 8  ;;  %v33040_v26 = vpop.f32.mrb[187].mxu1  ;;  %23759 = vxpose.xlu0.b32.start.end [1/1] (short) (narrow) %v23650_v42, 8 }
0x47e1   : > { %23919 = vxpose.xlu1.b32.start.end [1/1] (short) %v37319_v4, 128  ;;  %v37519_v4 = vpack.c.bf16 %v21973_v13, %v21972_v12 }
0x47e3   : > { %33957 = vmatpush3.bf16.msra.mxu0 %v37519_v4 }
0x47e4   : > { %33958 = vmatprep.subr.bf16.mxu0 %v34959_v62 }
0x47e7   : > { %33960 = vmatpush3.bf16.msra.mxu0 %v37523_v38 }
0x47e8   : > { %33080 = vmatprep.subr.mxu0 %v34957_v29 }
0x481e   : > { %23663 = vxpose.xlu1.b32.start.end [1/1] (short) (narrow) %v23647_v36, 8 }
0x4822   : > { %23855 = vxpose.xlu1.b32.start.end [1/1] (short) (narrow) %v23653_v53, 8 }
0x4841   : > { %v23280_v57 = vpop.trf.xlu0 }
0x4842   : > { %23520 = vxpose.xlu0.b32.start [1/8] (short) (narrow) %v23280_v57, 8 }
0x4845   : > { %v23312_v34 = vpop.trf.xlu1 }
0x4846   : > { %23521 = vxpose.xlu0.b32.cont [2/8] (short) (narrow) %v23312_v34, 8 }
0x4849   : > { %v23344_v18 = vpop.trf.xlu0 }
0x484a   : > { %23522 = vxpose.xlu0.b32.cont [3/8] (short) (narrow) %v23344_v18, 8 }
0x484d   : > { %v23376_v2 = vpop.trf.xlu1 }
0x484e   : > { %23523 = vxpose.xlu0.b32.cont [4/8] (short) (narrow) %v23376_v2, 8 }
0x4851   : > { %v23408_v39 = vpop.trf.xlu0 }
0x4852   : > { %23524 = vxpose.xlu0.b32.cont [5/8] (short) (narrow) %v23408_v39, 8 }
0x4855   : > { %v23440_v7 = vpop.trf.xlu1  ;;  %v23711_v5 = vpop.trf.xlu0 }
0x4856   : > { %23525 = vxpose.xlu0.b32.cont [6/8] (short) (narrow) %v23440_v7, 8 }
0x4859   : > { %v23472_v49 = vpop.trf.xlu1  ;;  %v23743_v25 = vpop.trf.xlu0 }
0x485a   : > { %23526 = vxpose.xlu0.b32.cont [7/8] (short) (narrow) %v23472_v49, 8 }
0x485d   : > { %v23504_v58 = vpop.trf.xlu1  ;;  %v23775_v31 = vpop.trf.xlu0 }
0x485e   : > { %23527 = vxpose.xlu0.b32.end [8/8] (short) (narrow) %v23504_v58, 8 }
0x4861   : > { %v23935_v8 = vpop.trf.xlu1 }
0x4862   : > { %23791 = vxpose.xlu0.b32.start.end [1/1] (short) (narrow) %v23651_v54, 8  ;;  %33061 = vmatpush3.msra.mxu1 %v23935_v8 }
0x4863   : > { %33065 = vmatprep.subr.mxu1 %v34957_v29 }
0x4865   : > { %v23936_v1 = vpop.trf.xlu1 }
0x4866   : > { %23823 = vxpose.xlu0.b32.start.end [1/1] (short) (narrow) %v23652_v59, 8 }
0x4869   : > { %v23937_v6 = vpop.trf.xlu1 }
0x486a   : > { %23887 = vxpose.xlu0.b32.start.end [1/1] (short) (narrow) %v23654_v43, 8 }
0x486d   : > { %v23938_v0 = vpop.trf.xlu1 }
0x4871   : > { %v23939_v22 = vpop.trf.xlu1 }
0x4875   : > { %v23940_v9 = vpop.trf.xlu1 }
0x4879   : > { %v23941_v47 = vpop.trf.xlu1 }
0x487d   : > { %v23942_v56 = vpop.trf.xlu1 }
0x4881   : > { %v23943_v11 = vpop.trf.xlu1 }
0x4885   : > { %v23944_v37 = vpop.trf.xlu1 }
0x4889   : > { %v37529_v48 = vpop.trf.xlu1 }
0x488d   : > { %v37531_v63 = vpop.trf.xlu1 }
0x4891   : > { %v37533_v36 = vpop.trf.xlu1 }
0x4895   : > { %v37535_v61 = vpop.trf.xlu1 }
0x4899   : > { %v37537_v14 = vpop.trf.xlu1 }
0x489d   : > { %v37539_v10 = vpop.trf.xlu1 }
0x48a1   : > { %v23679_v33 = vpop.trf.xlu1 }
0x48a2   : > { %33063 = vmatmul.mubr.msk.f32.vlgmr.msra.gmra.mrb[188].mxu1 %vm1728_vm3, %v23679_v33 }
0x48a3   : > { %33066 = vmatpush3.msra.mxu1 %v23936_v1  ;;  %33067 = vmatprep.mubr.msk.f32.mxu1 %vm34958_vm2, %v34957_v29 }
0x48a4   : > { %33070 = vmatprep.subr.mxu1 %v34957_v29 }
0x48a5   : > { %v23871_v28 = vpop.trf.xlu1 }
0x48a6   : > { %33068 = vmatmul.mubr.msk.f32.vlgmr.msra.gmra.mrb[190].mxu1 %vm1728_vm3, %v23711_v5 }
0x48a7   : > { %33071 = vmatpush3.msra.mxu1 %v23937_v6  ;;  %33072 = vmatprep.mubr.msk.f32.mxu1 %vm34958_vm2, %v34957_v29 }
0x48a8   : > { %33075 = vmatprep.subr.mxu1 %v34957_v29 }
0x48aa   : > { %33073 = vmatmul.mubr.msk.f32.vlgmr.msra.gmra.mrb[192].mxu1 %vm1728_vm3, %v23743_v25 }
0x48ab   : > { %33076 = vmatpush3.msra.mxu1 %v23938_v0  ;;  %33077 = vmatprep.mubr.msk.f32.mxu1 %vm34958_vm2, %v34957_v29 }
0x48ac   : > { %33085 = vmatprep.subr.mxu1 %v34957_v29 }
0x48ae   : > { %33078 = vmatmul.mubr.msk.f32.vlgmr.msra.gmra.mrb[194].mxu1 %vm1728_vm3, %v23775_v31 }
0x48af   : > { %33086 = vmatpush3.msra.mxu1 %v23940_v9  ;;  %33087 = vmatprep.mubr.msk.f32.mxu1 %vm34958_vm2, %v34957_v29 }
0x48b0   : > { %33095 = vmatprep.subr.mxu1 %v34957_v29 }
0x48c2   : > { %v23536_v45 = vpop.trf.xlu0 }
0x48c3   : > { %33058 = vmatmul.mubr.msk.f32.vlgmr.msra.gmra.mrb[158].mxu0 %vm804_vm1, %v23536_v45 }
0x48c4   : > { %33081 = vmatpush3.msra.mxu0 %v23939_v22  ;;  %33082 = vmatprep.mubr.msk.f32.mxu0 %vm34958_vm2, %v34957_v29 }
0x48c5   : > { %33090 = vmatprep.subr.mxu0 %v34957_v29 }
0x48e2   : > { %v23807_v51 = vpop.trf.xlu0 }
0x48e3   : > { %33083 = vmatmul.mubr.msk.f32.vlgmr.msra.gmra.mrb[160].mxu0 %vm1728_vm3, %v23807_v51 }
0x48e4   : > { %33091 = vmatpush3.msra.mxu0 %v23941_v47  ;;  %33092 = vmatprep.mubr.msk.f32.mxu0 %vm34958_vm2, %v34957_v29 }
0x48e5   : > { %33100 = vmatprep.subr.mxu0 %v34957_v29 }
0x48e6   : > { %v23839_v15 = vpop.trf.xlu0 }
0x48e7   : > { %33088 = vmatmul.mubr.msk.f32.vlgmr.msra.gmra.mrb[196].mxu1 %vm1728_vm3, %v23839_v15  ;;  %33093 = vmatmul.mubr.msk.f32.vlgmr.msra.gmra.mrb[162].mxu0 %vm1728_vm3, %v23871_v28 }
0x48e8   : > { %33096 = vmatpush3.msra.mxu1 %v23942_v56  ;;  %33097 = vmatprep.mubr.msk.f32.mxu1 %vm34958_vm2, %v34957_v29 }
0x48e9   : > { %33105 = vmatprep.subr.mxu1 %v34957_v29  ;;  %33102 = vmatprep.mubr.msk.f32.mxu0 %vm34958_vm2, %v34957_v29 }
0x48ea   : > { %v23903_v42 = vpop.trf.xlu0 }
0x48eb   : > { %33101 = vmatpush3.xpose.msk.msra.mxu0 %vm1728_vm3, %v23943_v11  ;;  %33098 = vmatmul.mubr.msk.f32.vlgmr.msra.gmra.mrb[198].mxu1 %vm1728_vm3, %v23903_v42 }
0x48ec   : > { %33110 = vmatprep.subr.mxu0 %v34957_v29  ;;  %33107 = vmatprep.mubr.msk.f32.mxu1 %vm34958_vm2, %v34957_v29 }
0x48ef   : > { %33106 = vmatpush3.xpose.msk.msra.mxu1 %vm1728_vm3, %v23944_v37 }
0x48f0   : > { %33115 = vmatprep.subr.mxu1 %v34957_v29 }
0x4975   : > { %v24028_v41 = vpop.f32.mrb[188].mxu1 }
0x4976   : > { %v24543_v26 = vmul.f32 0.35355338, %v24028_v41  ;;  %v33064_v54 = vpop.f32.mrb[189].mxu1 }
0x4978   : > { %v24551_v59 = vsel %vm18090_vm6, %v24543_v26, -inf }
0x4979   : > { %24552 = vmax.xlane.f32.xlu1 %v24551_v59  ;;  %v24101_v53 = vpop.f32.mrb[190].mxu1 }
0x497a   : > { %v24544_v60 = vmul.f32 0.35355338, %v24101_v53  ;;  %v33069_v50 = vpop.f32.mrb[191].mxu1 }
0x497c   : > { %v24554_v44 = vsel %vm18090_vm6, %v24544_v60, -inf }
0x497d   : > { %24555 = vmax.xlane.f32.xlu0 %v24554_v44  ;;  %v24174_v55 = vpop.f32.mrb[192].mxu1 }
0x497e   : > { %v24545_v12 = vmul.f32 0.35355338, %v24174_v55  ;;  %v33074_v13 = vpop.f32.mrb[193].mxu1 }
0x4980   : > { %v24557_v16 = vsel %vm18090_vm6, %v24545_v12, -inf }
0x4981   : > { %24558 = vmax.xlane.f32.xlu1 %v24557_v16  ;;  %v24247_v30 = vpop.f32.mrb[194].mxu1 }
0x4982   : > { %v24546_v43 = vmul.f32 0.35355338, %v24247_v30  ;;  %v33079_v57 = vpop.f32.mrb[195].mxu1 }
0x4984   : > { %v24560_v34 = vsel %vm18090_vm6, %v24546_v43, -inf }
0x4985   : > { %24561 = vmax.xlane.f32.xlu1 %v24560_v34 }
0x4996   : > { %v37583_v18 = vpop.f32.mrb[158].mxu0 }
0x4997   : > { %v33059_v2 = vpop.f32.mrb[159].mxu0 }
0x49b6   : > { %v24320_v39 = vpop.f32.mrb[160].mxu0 }
0x49b7   : > { %v24547_v7 = vmul.f32 0.35355338, %v24320_v39  ;;  %v33084_v49 = vpop.f32.mrb[161].mxu0 }
0x49b9   : > { %v24563_v58 = vsel %vm18090_vm6, %v24547_v7, -inf }
0x49ba   : > { %v24466_v8 = vpop.f32.mrb[162].mxu0  ;;  %24564 = vmax.xlane.f32.xlu0 %v24563_v58  ;;  %v24393_v1 = vpop.f32.mrb[196].mxu1 }
0x49bb   : > { %v24549_v6 = vmul.f32 0.35355338, %v24466_v8  ;;  %v24548_v0 = vmul.f32 0.35355338, %v24393_v1  ;;  %v33089_v22 = vpop.f32.mrb[197].mxu1  ;;  %v33094_v9 = vpop.f32.mrb[163].mxu0 }
0x49bd   : > { %v24569_v47 = vsel %vm18090_vm6, %v24549_v6, -inf  ;;  %v24566_v56 = vsel %vm18090_vm6, %v24548_v0, -inf }
0x49be   : > { %24570 = vmax.xlane.f32.xlu0 %v24569_v47  ;;  %24567 = vmax.xlane.f32.xlu1 %v24566_v56  ;;  %v24539_v11 = vpop.f32.mrb[198].mxu1 }
0x49bf   : > { %v24550_v37 = vmul.f32 0.35355338, %v24539_v11  ;;  %v33099_v5 = vpop.f32.mrb[199].mxu1 }
0x49c1   : > { %v24572_v33 = vsel %vm18090_vm6, %v24550_v37, -inf }
0x49c2   : > { %24573 = vmax.xlane.f32.xlu1 %v24572_v33 }
0x4a06   : > { %v24553_v25 = vpop.xlane.xlu1 %24552 }
0x4a07   : > { %v24575_v31 = vsub.f32 %v24543_v26, %v24553_v25 }
0x4a09   : > { %v24583_v45 = vmul.f32 1.442695, %v24575_v31 }
0x4a0a   : > { %v24556_v51 = vpop.xlane.xlu0 %24555 }
0x4a0b   : > { %34555 = vpow2.f32 %v24583_v45  ;;  %v24576_v28 = vsub.f32 %v24544_v60, %v24556_v51 }
0x4a0d   : > { %v24585_v15 = vmul.f32 1.442695, %v24576_v28 }
0x4a0e   : > { %v24559_v42 = vpop.xlane.xlu1 %24558 }
0x4a0f   : > { %34557 = vpow2.f32 %v24585_v15  ;;  %v24577_v41 = vsub.f32 %v24545_v12, %v24559_v42 }
0x4a11   : > { %v24587_v54 = vmul.f32 1.442695, %v24577_v41 }
0x4a12   : > { %v24562_v59 = vpop.xlane.xlu1 %24561 }
0x4a13   : > { %34559 = vpow2.f32 %v24587_v54  ;;  %v24578_v53 = vsub.f32 %v24546_v43, %v24562_v59 }
0x4a15   : > { %v34556_v50 = vpop.eup %34555  ;;  %v24589_v44 = vmul.f32 1.442695, %v24578_v53 }
0x4a16   : > { %v24599_v55 = vsel %vm18090_vm6, %v34556_v50, 0.0 }
0x4a17   : > { %34561 = vpow2.f32 %v24589_v44  ;;  %24600 = vadd.xlane.f32.xlu0 %v24599_v55 }
0x4a19   : > { %v34558_v13 = vpop.eup %34557 }
0x4a1a   : > { %v24602_v26 = vsel %vm18090_vm6, %v34558_v13, 0.0 }
0x4a1b   : > { %24603 = vadd.xlane.f32.xlu1 %v24602_v26 }
0x4a1d   : > { %v34560_v16 = vpop.eup %34559 }
0x4a1e   : > { %v24605_v60 = vsel %vm18090_vm6, %v34560_v16, 0.0 }
0x4a1f   : > { %24606 = vadd.xlane.f32.xlu0 %v24605_v60 }
0x4a21   : > { %v34562_v30 = vpop.eup %34561 }
0x4a22   : > { %v24608_v12 = vsel %vm18090_vm6, %v34562_v30, 0.0 }
0x4a23   : > { %24609 = vadd.xlane.f32.xlu1 %v24608_v12 }
0x4a47   : > { %v24565_v57 = vpop.xlane.xlu0 %24564 }
0x4a48   : > { %v24579_v43 = vsub.f32 %v24547_v7, %v24565_v57 }
0x4a4a   : > { %v24591_v34 = vmul.f32 1.442695, %v24579_v43 }
0x4a4b   : > { %v24571_v2 = vpop.xlane.xlu0 %24570  ;;  %v24568_v39 = vpop.xlane.xlu1 %24567 }
0x4a4c   : > { %34563 = vpow2.f32 %v24591_v34  ;;  %v24581_v49 = vsub.f32 %v24549_v6, %v24571_v2  ;;  %v24580_v58 = vsub.f32 %v24548_v0, %v24568_v39 }
0x4a4e   : > { %v24595_v8 = vmul.f32 1.442695, %v24581_v49  ;;  %v24593_v1 = vmul.f32 1.442695, %v24580_v58 }
0x4a4f   : > { %v24574_v22 = vpop.xlane.xlu1 %24573 }
0x4a50   : > { %34565 = vpow2.f32 %v24595_v8  ;;  %v24582_v9 = vsub.f32 %v24550_v37, %v24574_v22 }
0x4a51   : > { %34567 = vpow2.f32 %v24593_v1 }
0x4a52   : > { %v24597_v47 = vmul.f32 1.442695, %v24582_v9 }
0x4a54   : > { %34569 = vpow2.f32 %v24597_v47 }
0x4a56   : > { %v34564_v56 = vpop.eup %34563 }
0x4a57   : > { %v24611_v11 = vsel %vm18090_vm6, %v34564_v56, 0.0 }
0x4a58   : > { %24612 = vadd.xlane.f32.xlu0 %v24611_v11 }
0x4a5a   : > { %v34566_v5 = vpop.eup %34565 }
0x4a5b   : > { %v34568_v7 = vpop.eup %34567  ;;  %v24617_v33 = vsel %vm18090_vm6, %v34566_v5, 0.0 }
0x4a5c   : > { %24618 = vadd.xlane.f32.xlu0 %v24617_v33  ;;  %v24614_v6 = vsel %vm18090_vm6, %v34568_v7, 0.0 }
0x4a5d   : > { %24615 = vadd.xlane.f32.xlu1 %v24614_v6 }
0x4a5e   : > { %v34570_v0 = vpop.eup %34569 }
0x4a5f   : > { %v24620_v25 = vsel %vm18090_vm6, %v34570_v0, 0.0 }
0x4a61   : > { %24621 = vadd.xlane.f32.xlu1 %v24620_v25  ;;  %v37650_v25 = vld [vmem:[#allocation13 + $0x10] sm:$0xff] }
0x4aa4   : > { %v24601_v37 = vpop.xlane.xlu0 %24600 }
0x4aa5   : > { %34571 = vrcp.f32 %v24601_v37  ;;  %v23553_v37 = vrot.slane %v37650_v25, 3 }
0x4aa8   : > { %v24604_v31 = vpop.xlane.xlu1 %24603 }
0x4aa9   : > { %34573 = vrcp.f32 %v24604_v31 }
0x4aac   : > { %v24607_v45 = vpop.xlane.xlu0 %24606 }
0x4aad   : > { %34575 = vrcp.f32 %v24607_v45 }
0x4aaf   : > { %v34572_v51 = vpop.eup %34571 }
0x4ab0   : > { %v24610_v28 = vpop.xlane.xlu1 %24609  ;;  %v24631_v15 = vmul.f32 %v34572_v51, %v34556_v50 }
0x4ab1   : > { %34577 = vrcp.f32 %v24610_v28  ;;  %v23625_v28 = vadd.f32 %v37583_v18, %v23553_v37  ;;  %v25638_v18 = vld [vmem:[#allocation11 + $0x48] sm:$0xff] }
0x4ab2   : > { %33103 = vmatmul.mubr.msk.f32.vlgmr.msra.gmra.mrb[164].mxu0 %vm1728_vm3, %v24631_v15 }
0x4ab3   : > { %v34574_v42 = vpop.eup %34573  ;;  %33111 = vmatpush3.xpose.msk.msra.mxu0 %vm1728_vm3, %v37529_v48  ;;  %33112 = vmatprep.mubr.msk.f32.mxu0 %vm34958_vm2, %v34957_v29 }
0x4ab4   : > { %v24632_v41 = vmul.f32 %v34574_v42, %v34558_v13  ;;  %33120 = vmatprep.subr.mxu0 %v34957_v29 }
0x4ab6   : > { %33108 = vmatmul.mubr.msk.f32.vlgmr.msra.gmra.mrb[200].mxu1 %vm1728_vm3, %v24632_v41 }
0x4ab7   : > { %v34576_v54 = vpop.eup %34575  ;;  %33116 = vmatpush3.xpose.msk.msra.mxu1 %vm1728_vm3, %v37531_v63  ;;  %33117 = vmatprep.mubr.msk.f32.mxu1 %vm34958_vm2, %v34957_v29 }
0x4ab8   : > { %v24633_v59 = vmul.f32 %v34576_v54, %v34560_v16  ;;  %33125 = vmatprep.subr.mxu1 %v34957_v29 }
0x4aba   : > { %33113 = vmatmul.mubr.msk.f32.vlgmr.msra.gmra.mrb[166].mxu0 %vm1728_vm3, %v24633_v59 }
0x4abb   : > { %v34578_v48 = vpop.eup %34577  ;;  %33121 = vmatpush3.xpose.msk.msra.mxu0 %vm1728_vm3, %v37533_v36  ;;  %33122 = vmatprep.mubr.msk.f32.mxu0 %vm34958_vm2, %v34957_v29 }
0x4abc   : > { %v24634_v53 = vmul.f32 %v34578_v48, %v34562_v30  ;;  %33130 = vmatprep.subr.mxu0 %v34957_v29 }
0x4abe   : > { %33118 = vmatmul.mubr.msk.f32.vlgmr.msra.gmra.mrb[202].mxu1 %vm1728_vm3, %v24634_v53 }
0x4abf   : > { %33126 = vmatpush3.xpose.msk.msra.mxu1 %vm1728_vm3, %v37535_v61  ;;  %33127 = vmatprep.mubr.msk.f32.mxu1 %vm34958_vm2, %v34957_v29 }
0x4ac0   : > { %33135 = vmatprep.subr.mxu1 %v34957_v29 }
0x4ae5   : > { %v24613_v63 = vpop.xlane.xlu0 %24612 }
0x4ae6   : > { %34579 = vrcp.f32 %v24613_v63 }
0x4ae9   : > { %v24619_v50 = vpop.xlane.xlu0 %24618 }
0x4aea   : > { %34581 = vrcp.f32 %v24619_v50  ;;  %v24616_v36 = vpop.xlane.xlu1 %24615 }
0x4aeb   : > { %34583 = vrcp.f32 %v24616_v36  ;;  %v25637_v36 = vld [vmem:[#allocation11 + $0x40] sm:$0xff] }
0x4aee   : > { %v24622_v44 = vpop.xlane.xlu1 %24621 }
0x4aef   : > { %34585 = vrcp.f32 %v24622_v44  ;;  %v33974_v44 = vpack.c.bf16 %v25638_v18, %v25637_v36  ;;  %v26041_v36 = vld [vmem:[#allocation8 + $0x90] sm:$0xff]  ;;  %v26042_v18 = vld [vmem:[#allocation8 + $0x98] sm:$0xff] }
0x4af0   : > { %v34580_v55 = vpop.eup %34579 }
0x4af1   : > { %v24635_v13 = vmul.f32 %v34580_v55, %v34564_v56  ;;  %v25640_v55 = vld [vmem:[#allocation11 + $0x58] sm:$0xff] }
0x4af3   : > { %33123 = vmatmul.mubr.msk.f32.vlgmr.msra.gmra.mrb[168].mxu0 %vm1728_vm3, %v24635_v13 }
0x4af4   : > { %v34582_v26 = vpop.eup %34581  ;;  %33131 = vmatpush3.xpose.msk.msra.mxu0 %vm1728_vm3, %v37537_v14  ;;  %33132 = vmatprep.mubr.msk.f32.mxu0 %vm34958_vm2, %v34957_v29 }
0x4af5   : > { %v34584_v61 = vpop.eup %34583  ;;  %v24637_v16 = vmul.f32 %v34582_v26, %v34566_v5  ;;  %33961 = vmatprep.subr.bf16.mxu0 %v34959_v62  ;;  %v25641_v26 = vld [vmem:[#allocation11 + $0x60] sm:$0xff] }
0x4af6   : > { %v24636_v60 = vmul.f32 %v34584_v61, %v34568_v7  ;;  %v25642_v61 = vld [vmem:[#allocation11 + $0x68] sm:$0xff] }
0x4af7   : > { %33133 = vmatmul.mubr.msk.f32.vlgmr.msra.gmra.mrb[170].mxu0 %vm1728_vm3, %v24637_v16  ;;  %v33980_v16 = vpack.c.bf16 %v25642_v61, %v25641_v26  ;;  %v26043_v26 = vld [vmem:[#allocation8 + $0xa0] sm:$0xff]  ;;  %v26044_v61 = vld [vmem:[#allocation8 + $0xa8] sm:$0xff] }
0x4af8   : > { %33128 = vmatmul.mubr.msk.f32.vlgmr.msra.gmra.mrb[204].mxu1 %vm1728_vm3, %v24636_v60  ;;  %33963 = vmatpush3.bf16.msra.mxu0 %v37512_v46  ;;  %v25643_v60 = vld [vmem:[#allocation11 + $0x70] sm:$0xff] }
0x4af9   : > { %v34586_v30 = vpop.eup %34585  ;;  %33136 = vmatpush3.xpose.msk.msra.mxu1 %vm1728_vm3, %v37539_v10  ;;  %33137 = vmatprep.mubr.msk.f32.mxu1 %vm34958_vm2, %v34957_v29 }
0x4afa   : > { %v24638_v14 = vmul.f32 %v34586_v30, %v34570_v0  ;;  %33964 = vmatprep.subr.bf16.mxu0 %v34959_v62  ;;  %33156 = vmatprep.mubr.msk.f32.mxu0 %vm34958_vm2, %v34957_v29  ;;  %v25644_v30 = vld [vmem:[#allocation11 + $0x78] sm:$0xff] }
0x4afb   : > { %33973 = vmatprep.subr.bf16.mxu1 %v34959_v62 }
0x4afc   : > { %33138 = vmatmul.mubr.msk.f32.vlgmr.msra.gmra.mrb[206].mxu1 %vm1728_vm3, %v24638_v14  ;;  %33966 = vmatpush3.bf16.msra.mxu0 %v37515_v52  ;;  %v33983_v14 = vpack.c.bf16 %v25644_v30, %v25643_v60  ;;  %v26045_v60 = vld [vmem:[#allocation8 + $0xb0] sm:$0xff]  ;;  %v26046_v30 = vld [vmem:[#allocation8 + $0xb8] sm:$0xff] }
0x4afd   : > { %33967 = vmatprep.subr.bf16.mxu0 %v34959_v62  ;;  %33175 = vmatprep.mubr.msk.f32.mxu1 %vm34958_vm2, %v34957_v29 }
0x4afe   : > { %33975 = vmatpush3.bf16.msra.mxu1 %v33974_v44 }
0x4aff   : > { %33976 = vmatprep.subr.bf16.mxu1 %v34959_v62 }
0x4b00   : > { %33969 = vmatpush3.bf16.msra.mxu0 %v37519_v4 }
0x4b01   : > { %33970 = vmatprep.subr.bf16.mxu0 %v34959_v62 }
0x4b04   : > { %33972 = vmatpush3.bf16.msra.mxu0 %v37523_v38 }
0x4b05   : > { %33985 = vmatprep.subr.bf16.mxu0 %v34959_v62 }
0x4b85   : > { %v24711_v46 = vpop.f32.mrb[164].mxu0 }
0x4b86   : > { %v33104_v10 = vpop.f32.mrb[165].mxu0  ;;  %25247 = vxpose.xlu0.b32.start.end [1/1] (short) (narrow) %v24711_v46, 8  ;;  %v30971_v46 = vld [vmem:[%s38328_s18 + $0x80] sm:$0xff] }
0x4b87   : > { %v30972_v10 = vld [vmem:[%s38328_s18 + $0x88] sm:$0xff] }
0x4b89   : > { %v24787_v12 = vpop.f32.mrb[200].mxu1 }
0x4b8a   : > { %25279 = vxpose.xlu1.b32.start.end [1/1] (short) (narrow) %v24787_v12, 8  ;;  %v33109_v57 = vpop.f32.mrb[201].mxu1  ;;  %v30973_v12 = vld [vmem:[%s38328_s18 + $0x90] sm:$0xff] }
0x4b8b   : > { %v33986_v57 = vpack.c.bf16 %v30972_v10, %v30971_v46 }
0x4b8d   : > { %v24863_v52 = vpop.f32.mrb[166].mxu0 }
0x4b8e   : > { %25311 = vxpose.xlu0.b32.start.end [1/1] (short) (narrow) %v24863_v52, 8  ;;  %v33114_v43 = vpop.f32.mrb[167].mxu0  ;;  %v30974_v52 = vld [vmem:[%s38328_s18 + $0x98] sm:$0xff] }
0x4b8f   : > { %v33989_v43 = vpack.c.bf16 %v30974_v52, %v30973_v12 }
0x4b91   : > { %v24939_v34 = vpop.f32.mrb[202].mxu1 }
0x4b92   : > { %25343 = vxpose.xlu0.b32.start.end [1/1] (short) (narrow) %v24939_v34, 8  ;;  %v33119_v2 = vpop.f32.mrb[203].mxu1  ;;  %v30975_v34 = vld [vmem:[%s38328_s18 + $0xa0] sm:$0xff] }
0x4b93   : > { %v30976_v2 = vld [vmem:[%s38328_s18 + $0xa8] sm:$0xff] }
0x4bc6   : > { %v25015_v39 = vpop.f32.mrb[168].mxu0 }
0x4bc7   : > { %v33124_v4 = vpop.f32.mrb[169].mxu0  ;;  %25375 = vxpose.xlu1.b32.start.end [1/1] (short) (narrow) %v25015_v39, 8  ;;  %v33992_v39 = vpack.c.bf16 %v30976_v2, %v30975_v34 }
0x4bc8   : > { %v30977_v4 = vld [vmem:[%s38328_s18 + $0xb0] sm:$0xff] }
0x4bca   : > { %v25167_v49 = vpop.f32.mrb[170].mxu0 }
0x4bcb   : > { %v25091_v58 = vpop.f32.mrb[204].mxu1  ;;  %v33134_v38 = vpop.f32.mrb[171].mxu0  ;;  %25439 = vxpose.xlu1.b32.start.end [1/1] (short) (narrow) %v25167_v49, 8  ;;  %v30978_v49 = vld [vmem:[%s38328_s18 + $0xb8] sm:$0xff] }
0x4bcc   : > { %25407 = vxpose.xlu0.b32.start.end [1/1] (short) (narrow) %v25091_v58, 8  ;;  %v33129_v8 = vpop.f32.mrb[205].mxu1  ;;  %v33995_v58 = vpack.c.bf16 %v30978_v49, %v30977_v4  ;;  %v30979_v38 = vld [vmem:[%s38328_s18 + $0xc0] sm:$0xff] }
0x4bcd   : > { %v30980_v8 = vld [vmem:[%s38328_s18 + $0xc8] sm:$0xff] }
0x4bcf   : > { %v25243_v1 = vpop.f32.mrb[206].mxu1 }
0x4bd0   : > { %25471 = vxpose.xlu0.b32.start.end [1/1] (short) (narrow) %v25243_v1, 8  ;;  %v33139_v22 = vpop.f32.mrb[207].mxu1  ;;  %v33998_v1 = vpack.c.bf16 %v30980_v8, %v30979_v38 }
0x4bd1   : > { %v30981_v22 = vld [vmem:[%s38328_s18 + $0xd0] sm:$0xff] }
0x4c06   : > { %v25263_v9 = vpop.trf.xlu0 }
0x4c07   : > { %25503 = vxpose.xlu1.b32.start [1/8] (short) (narrow) %v25263_v9, 8  ;;  %v30982_v9 = vld [vmem:[%s38328_s18 + $0xd8] sm:$0xff] }
0x4c0a   : > { %v25295_v47 = vpop.trf.xlu1 }
0x4c0b   : > { %25504 = vxpose.xlu1.b32.cont [2/8] (short) (narrow) %v25295_v47, 8  ;;  %v34001_v47 = vpack.c.bf16 %v30982_v9, %v30981_v22  ;;  %v30988_v22 = vld [vmem:[%s38326_s22 + $0x88] sm:$0xff] }
0x4c0e   : > { %v25327_v56 = vpop.trf.xlu0 }
0x4c0f   : > { %25505 = vxpose.xlu1.b32.cont [3/8] (short) (narrow) %v25327_v56, 8  ;;  %v30983_v56 = vld [vmem:[%s38328_s18 + $0xe0] sm:$0xff] }
0x4c12   : > { %v25359_v11 = vpop.trf.xlu0 }
0x4c13   : > { %25506 = vxpose.xlu1.b32.cont [4/8] (short) (narrow) %v25359_v11, 8  ;;  %v30984_v11 = vld [vmem:[%s38328_s18 + $0xe8] sm:$0xff] }
0x4c47   : > { %v25391_v5 = vpop.trf.xlu1 }
0x4c48   : > { %25507 = vxpose.xlu1.b32.cont [5/8] (short) (narrow) %v25391_v5, 8  ;;  %v34004_v5 = vpack.c.bf16 %v30984_v11, %v30983_v56  ;;  %v30990_v56 = vld [vmem:[%s38326_s22 + $0x98] sm:$0xff] }
0x4c4b   : > { %v25455_v33 = vpop.trf.xlu1 }
0x4c4c   : > { %v25423_v7 = vpop.trf.xlu0 }
0x4c4d   : > { %25508 = vxpose.xlu1.b32.cont [6/8] (short) (narrow) %v25423_v7, 8 }
0x4c50   : > { %v25487_v6 = vpop.trf.xlu0 }
0x4c51   : > { %25509 = vxpose.xlu1.b32.cont [7/8] (short) (narrow) %v25455_v33, 8 }
0x4c55   : > { %25510 = vxpose.xlu1.b32.end [8/8] (short) (narrow) %v25487_v6, 8 }
0x4cb9   : > { %v25519_v0 = vpop.trf.xlu1 }
0x4cba   : > { %33157 = vmatmul.mubr.msk.f32.vlgmr.msra.gmra.mrb[172].mxu0 %vm804_vm1, %v25519_v0  ;;  %v37715_v0 = vld [vmem:[#allocation13 + $0x18] sm:$0xf] }
0x4cbb   : > { %33210 = vmatprep.mubr.msk.f32.mxu0 %vm34958_vm2, %v34957_v29  ;;  %33987 = vmatpush3.bf16.msra.mxu0 %v33986_v57 }
0x4cbc   : > { %33988 = vmatprep.subr.bf16.mxu0 %v34959_v62 }
0x4cbf   : > { %33990 = vmatpush3.bf16.msra.mxu0 %v33989_v43  ;;  %v37743_v43 = vld [vmem:[#allocation13 + $0x20] sm:$0xff] }
0x4cc0   : > { %33991 = vmatprep.subr.bf16.mxu0 %v34959_v62  ;;  %v26050_v34 = vrot.slane %v37743_v43, %v35856_v20 }
0x4cc3   : > { %33993 = vmatpush3.bf16.msra.mxu0 %v33992_v39 }
0x4cc4   : > { %33994 = vmatprep.subr.bf16.mxu0 %v34959_v62 }
0x4cc7   : > { %33996 = vmatpush3.bf16.msra.mxu0 %v33995_v58 }
0x4cc8   : > { %33997 = vmatprep.subr.bf16.mxu0 %v34959_v62 }
0x4ccb   : > { %33999 = vmatpush3.bf16.msra.mxu0 %v33998_v1  ;;  %v30987_v1 = vld [vmem:[%s38326_s22 + $0x80] sm:$0xff] }
0x4ccc   : > { %34000 = vmatprep.subr.bf16.mxu0 %v34959_v62  ;;  %v34010_v9 = vpack.c.bf16 %v30988_v22, %v30987_v1  ;;  %v25964_v22 = vrot.slane %v37743_v43, %v35739_v3 }
0x4ccf   : > { %34002 = vmatpush3.bf16.msra.mxu0 %v34001_v47  ;;  %v30989_v47 = vld [vmem:[%s38326_s22 + $0x90] sm:$0xff] }
0x4cd0   : > { %34003 = vmatprep.subr.bf16.mxu0 %v34959_v62  ;;  %v34013_v11 = vpack.c.bf16 %v30990_v56, %v30989_v47 }
0x4cd3   : > { %34005 = vmatpush3.bf16.msra.mxu0 %v34004_v5  ;;  %v30991_v5 = vld [vmem:[%s38326_s22 + $0xa0] sm:$0xff] }
0x4cd4   : > { %34006 = vmatprep.subr.bf16.mxu0 %v34959_v62 }
0x4d8d   : > { %v25604_v31 = vpop.f32.mrb[172].mxu0 }
0x4d8e   : > { %v25605_v45 = vadd.f32 %v25604_v31, %v23553_v37  ;;  %v33158_v51 = vpop.f32.mrb[173].mxu0  ;;  %v25629_v37 = vrot.slane %v37715_v0, %v35427_v40 }
0x4d8f   : > { %v25634_v51 = vrot.slane %v37715_v0, %v35739_v3 }
0x4d90   : > { %v25609_v15 = vrot.slane %v25605_v45, 7 }
0x4d92   : > { %v25611_v42 = vsel %vm16877_vm4, %v23625_v28, %v25609_v15 }
0x4d93   : > { %v25612_v41 = vadd.f32 %v25611_v42, %v37393_v32  ;;  %v25639_v32 = vld [vmem:[#allocation11 + $0x50] sm:$0xff] }
0x4d94   : > { %v33977_v13 = vpack.c.bf16 %v25640_v55, %v25639_v32  ;;  %v30985_v42 = vld [vmem:[%s38328_s18 + $0xf0] sm:$0xff] }
0x4d95   : > { %v25613_v54 = vsel %vm16968_vm5, %v25612_v41, 0.0 }
0x4d96   : > { %25614 = vadd.xlane.f32.xlu0 %v25613_v54  ;;  %33978 = vmatpush3.bf16.msra.mxu1 %v33977_v13  ;;  %v34037_v13 = vpack.c.bf16 %v26042_v18, %v26041_v36 }
0x4d97   : > { %33979 = vmatprep.subr.bf16.mxu1 %v34959_v62 }
0x4d9a   : > { %33981 = vmatpush3.bf16.msra.mxu1 %v33980_v16  ;;  %v34041_v16 = vpack.c.bf16 %v26044_v61, %v26043_v26  ;;  %v30996_v61 = vld [vmem:[%s38327_s8 + $0x80] sm:$0xff] }
0x4d9b   : > { %33982 = vmatprep.subr.bf16.mxu1 %v34959_v62 }
0x4d9e   : > { %33984 = vmatpush3.bf16.msra.mxu1 %v33983_v14  ;;  %v34045_v14 = vpack.c.bf16 %v26046_v30, %v26045_v60  ;;  %v30998_v30 = vld [vmem:[%s38327_s8 + $0x90] sm:$0xff] }
0x4d9f   : > { %34009 = vmatprep.subr.bf16.mxu1 %v34959_v62 }
0x4e23   : > { %v25615_v59 = vpop.xlane.xlu0 %25614 }
0x4e24   : > { %v25616_v48 = vmul.f32 0.015625, %v25615_v59  ;;  %v26039_v59 = vld [vmem:[#allocation8 + $0x80] sm:$0xff] }
0x4e26   : > { %v37657_v53 = vsub.f32 %v25612_v41, %v25616_v48  ;;  %v30986_v41 = vld [vmem:[%s38328_s18 + $0xf8] sm:$0xff]  ;;  %v26040_v48 = vld [vmem:[#allocation8 + $0x88] sm:$0xff] }
0x4e27   : > { %v34007_v54 = vpack.c.bf16 %v30986_v41, %v30985_v42 }
0x4e28   : > { %v25618_v63 = vmul.f32 %v37657_v53, %v37657_v53 }
0x4e29   : > { %34008 = vmatpush3.bf16.msra.mxu0 %v34007_v54  ;;  %v25836_v54 = vrot.slane %v37715_v0, %v35863_v35 }
0x4e2a   : > { %v25619_v50 = vsel %vm16968_vm5, %v25618_v63, 0.0  ;;  %v25648_v63 = vrot.slane %v37650_v25, %v35751_v17 }
0x4e2b   : > { %25620 = vadd.xlane.f32.xlu1 %v25619_v50 }
0x4eb8   : > { %v25621_v7 = vpop.xlane.xlu1 %25620 }
0x4eb9   : > { %v25622_v33 = vmul.f32 0.015625, %v25621_v7  ;;  %v30992_v7 = vld [vmem:[%s38326_s22 + $0xa8] sm:$0xff] }
0x4ebb   : > { %v25623_v6 = vadd.f32 1e-05, %v25622_v33  ;;  %v34016_v33 = vpack.c.bf16 %v30992_v7, %v30991_v5 }
0x4ebd   : > { %34587 = vrsqrt.f32 %v25623_v6  ;;  %v30993_v6 = vld [vmem:[%s38326_s22 + $0xb0] sm:$0xff] }
0x4ec7   : > { %v34588_v31 = vpop.eup %34587 }
0x4ec8   : > { %v25625_v45 = vmul.f32 %v34588_v31, %v37657_v53  ;;  %v34033_v53 = vpack.c.bf16 %v26040_v48, %v26039_v59 }
0x4eca   : > { %v25630_v28 = vmul.f32 %v25629_v37, %v25625_v45  ;;  %34034 = vmatprep.subr.bf16.mxu0 %v34033_v53  ;;  %v30994_v37 = vld [vmem:[%s38326_s22 + $0xb8] sm:$0xff] }
0x4ecb   : > { %v34019_v31 = vpack.c.bf16 %v30994_v37, %v30993_v6 }
0x4ecc   : > { %v25635_v15 = vadd.f32 %v25634_v51, %v25630_v28 }
0x4ece   : > { %33176 = vmatmul.mubr.msk.f32.vlgmr.msra.gmra.mrb[208].mxu1 %vm804_vm1, %v25635_v15 }
0x4ecf   : > { %33229 = vmatprep.mubr.msk.f32.mxu1 %vm34958_vm2, %v34957_v29  ;;  %34011 = vmatpush3.bf16.msra.mxu1 %v34010_v9 }
0x4ed0   : > { %34012 = vmatprep.subr.bf16.mxu1 %v34959_v62 }
0x4ed3   : > { %34014 = vmatpush3.bf16.msra.mxu1 %v34013_v11 }
0x4ed4   : > { %34015 = vmatprep.subr.bf16.mxu1 %v34959_v62 }
0x4ed7   : > { %34017 = vmatpush3.bf16.msra.mxu1 %v34016_v33 }
0x4ed8   : > { %34018 = vmatprep.subr.bf16.mxu1 %v34959_v62 }
0x4edb   : > { %34020 = vmatpush3.bf16.msra.mxu1 %v34019_v31 }
0x4edc   : > { %34021 = vmatprep.subr.bf16.mxu1 %v34959_v62 }
0x4fa1   : > { %v25718_v50 = vpop.f32.mrb[208].mxu1 }
0x4fa2   : > { %v25719_v44 = vadd.f32 %v25718_v50, %v25648_v63  ;;  %v33177_v32 = vpop.f32.mrb[209].mxu1 }
0x4fa4   : > { %v25722_v55 = vmax.f32 %v25719_v44, 0.0 }
0x4fa6   : > { %33211 = vmatmul.mubr.f32.vlgmr.msra.gmra.mrb[174].mxu0 %v25722_v55 }
0x4fa7   : > { %34036 = vmatpush3.bf16.msra.mxu0 %v34033_v53  ;;  %33267 = vmatprep.mubr.msk.f32.mxu0 %vm804_vm1, %v36957_v21  ;;  %v25743_v21 = vrot.slane %v37650_v25, %v35754_v19  ;;  %v25927_v53 = vrot.slane %v37743_v43, %v35427_v40 }
0x4fa8   : > { %34038 = vmatprep.subr.bf16.mxu0 %v34037_v13 }
0x4fab   : > { %34040 = vmatpush3.bf16.msra.mxu0 %v34037_v13 }
0x4fac   : > { %34042 = vmatprep.subr.bf16.mxu0 %v34041_v16 }
0x4faf   : > { %34044 = vmatpush3.bf16.msra.mxu0 %v34041_v16  ;;  %v30997_v16 = vld [vmem:[%s38327_s8 + $0x88] sm:$0xff] }
0x4fb0   : > { %34046 = vmatprep.subr.bf16.mxu0 %v34045_v14  ;;  %v34022_v60 = vpack.c.bf16 %v30997_v16, %v30996_v61 }
0x4fb3   : > { %34048 = vmatpush3.bf16.msra.mxu0 %v34045_v14  ;;  %v30999_v14 = vld [vmem:[%s38327_s8 + $0x98] sm:$0xff] }
0x4fb4   : > { %33290 = vmatprep.subr.mxu0 %v34957_v29 }
0x4fb6   : > { %33268 = vmatmul.mubr.msk.f32.vlgmr.msra.gmra.mrb[176].mxu0 %vm804_vm1, %v36961_v27 }
0x4fb7   : > { %33292 = vmatprep.mubr.msk.f32.mxu0 %vm34958_vm2, %v34957_v29 }
0x5079   : > { %v25810_v46 = vpop.f32.mrb[174].mxu0 }
0x507a   : > { %v25811_v10 = vadd.f32 %v25810_v46, %v25743_v21  ;;  %v33212_v12 = vpop.f32.mrb[175].mxu0  ;;  %v34025_v21 = vpack.c.bf16 %v30999_v14, %v30998_v30  ;;  %v31000_v46 = vld [vmem:[%s38327_s8 + $0xa0] sm:$0xff] }
0x507c   : > { %v25814_v57 = vadd.f32 %v25811_v10, %v25635_v15  ;;  %v25831_v15 = vrot.slane %v37715_v0, %v35856_v20  ;;  %v31001_v10 = vld [vmem:[%s38327_s8 + $0xa8] sm:$0xff] }
0x507d   : > { %v34028_v12 = vpack.c.bf16 %v31001_v10, %v31000_v46 }
0x507e   : > { %v25815_v52 = vsel %vm16968_vm5, %v25814_v57, 0.0 }
0x507f   : > { %25816 = vadd.xlane.f32.xlu0 %v25815_v52  ;;  %v31003_v52 = vld [vmem:[%s38327_s8 + $0xb8] sm:$0xff] }
0x5089   : > { %v33269_v2 = vpop.f32.mrb[176].mxu0 }
0x508a   : > { %v37747_v27 = vadd.f32 %v33269_v2, %v26050_v34  ;;  %v26117_v39 = vpop.f32.mrb[177].mxu0 }
0x508b   : > { %v26118_v4 = vadd.f32 %v26117_v39, %v26050_v34 }
0x508d   : > { %26414 = vxpose.xlu1.b32.start.end [1/1] (short) %v26118_v4, 128 }
0x510c   : > { %v25817_v49 = vpop.xlane.xlu0 %25816 }
0x510d   : > { %v25818_v25 = vmul.f32 0.015625, %v25817_v49  ;;  %v25945_v49 = vrot.slane %v37743_v43, %v35921_v23  ;;  %v26430_v56 = vpop.trf.xlu1 }
0x510f   : > { %v25819_v58 = vsub.f32 %v25814_v57, %v25818_v25  ;;  %v31002_v57 = vld [vmem:[%s38327_s8 + $0xb0] sm:$0xff]  ;;  %s30407_s8 = scalar_lea.sflag [#allocation4], %s35336_s19 }
0x5110   : > { %v34031_v34 = vpack.c.bf16 %v31003_v52, %v31002_v57 }
0x5111   : > { %v25820_v38 = vmul.f32 %v25819_v58, %v25819_v58 }
0x5113   : > { %v25821_v8 = vsel %vm16968_vm5, %v25820_v38, 0.0  ;;  %v25950_v38 = vrot.slane %v37743_v43, %v35925_v24  ;;  %v26431_v24 = vpop.trf.xlu1 }
0x5114   : > { %25822 = vadd.xlane.f32.xlu0 %v25821_v8 }
0x5117   : > { %v26432_v11 = vpop.trf.xlu1 }
0x511b   : > { %v26433_v5 = vpop.trf.xlu1 }
0x511f   : > { %v26434_v7 = vpop.trf.xlu1 }
0x5120   : > { %33291 = vmatpush3.msra.mxu0 %v26434_v7 }
0x5121   : > { %33300 = vmatprep.subr.mxu0 %v34957_v29 }
0x51a1   : > { %v25823_v45 = vpop.xlane.xlu0 %25822 }
0x51a2   : > { %v25824_v51 = vmul.f32 0.015625, %v25823_v45 }
0x51a4   : > { %v25825_v28 = vadd.f32 1e-05, %v25824_v51 }
0x51a6   : > { %34589 = vrsqrt.f32 %v25825_v28 }
0x51b0   : > { %v34590_v42 = vpop.eup %34589 }
0x51b1   : > { %v25827_v41 = vmul.f32 %v34590_v42, %v25819_v58 }
0x51b3   : > { %v25832_v59 = vmul.f32 %v25831_v15, %v25827_v41  ;;  %v26435_v15 = vpop.trf.xlu1 }
0x51b5   : > { %v25837_v48 = vadd.f32 %v25836_v54, %v25832_v59 }
0x51b7   : > { %33230 = vmatmul.mubr.msk.f32.vlgmr.msra.gmra.mrb[210].mxu1 %vm804_vm1, %v25837_v48  ;;  %v26436_v42 = vpop.trf.xlu1 }
0x51b8   : > { %33248 = vmatprep.mubr.msk.f32.mxu1 %vm34958_vm2, %v34957_v29  ;;  %34023 = vmatpush3.bf16.msra.mxu1 %v34022_v60 }
0x51b9   : > { %34024 = vmatprep.subr.bf16.mxu1 %v34959_v62 }
0x51bb   : > { %v26437_v41 = vpop.trf.xlu1 }
0x51bc   : > { %34026 = vmatpush3.bf16.msra.mxu1 %v34025_v21 }
0x51bd   : > { %34027 = vmatprep.subr.bf16.mxu1 %v34959_v62 }
0x51bf   : > { %v26438_v54 = vpop.trf.xlu1 }
0x51c0   : > { %34029 = vmatpush3.bf16.msra.mxu1 %v34028_v12 }
0x51c1   : > { %34030 = vmatprep.subr.bf16.mxu1 %v34959_v62 }
0x51c3   : > { %v26439_v59 = vpop.trf.xlu1 }
0x51c4   : > { %34032 = vmatpush3.bf16.msra.mxu1 %v34031_v34 }
0x51c5   : > { %33270 = vmatprep.subr.mxu1 %v34957_v29 }
0x528a   : > { %v25919_v63 = vpop.f32.mrb[210].mxu1 }
0x528b   : > { %v25923_v50 = vadd.f32 %v25919_v63, %v25837_v48  ;;  %v33231_v36 = vpop.f32.mrb[211].mxu1  ;;  %v37834_v48 = vpop.trf.xlu1 }
0x528d   : > { %v25928_v18 = vadd.f32 %v25927_v53, %v25923_v50 }
0x528f   : > { %v25929_v44 = vsel %vm16968_vm5, %v25928_v18, 0.0  ;;  %v37836_v53 = vpop.trf.xlu1 }
0x5290   : > { %25930 = vadd.xlane.f32.xlu0 %v25929_v44 }
0x5293   : > { %v37838_v63 = vpop.trf.xlu1 }
0x5297   : > { %v37840_v50 = vpop.trf.xlu1 }
0x529b   : > { %v37842_v36 = vpop.trf.xlu1 }
0x531d   : > { %v25931_v32 = vpop.xlane.xlu0 %25930 }
0x531e   : > { %v25932_v55 = vmul.f32 0.015625, %v25931_v32 }
0x5320   : > { %v25933_v0 = vsub.f32 %v25928_v18, %v25932_v55  ;;  %v37844_v18 = vpop.trf.xlu1 }
0x5322   : > { %v25934_v13 = vmul.f32 %v25933_v0, %v25933_v0 }
0x5324   : > { %v25935_v26 = vsel %vm16968_vm5, %v25934_v13, 0.0 }
0x5325   : > { %25936 = vadd.xlane.f32.xlu0 %v25935_v26 }
0x53b2   : > { %v25937_v2 = vpop.xlane.xlu0 %25936 }
0x53b3   : > { %v25938_v39 = vmul.f32 0.015625, %v25937_v2 }
0x53b5   : > { %v25939_v4 = vadd.f32 1e-05, %v25938_v39 }
0x53b7   : > { %34591 = vrsqrt.f32 %v25939_v4 }
0x53c1   : > { %v34592_v25 = vpop.eup %34591 }
0x53c2   : > { %v25941_v58 = vmul.f32 %v34592_v25, %v25933_v0 }
0x53c4   : > { %v25946_v8 = vmul.f32 %v25945_v49, %v25941_v58 }
0x53c6   : > { %v37821_v1 = vadd.f32 %v25950_v38, %v25946_v8 }
0x53c8   : > { %33249 = vmatmul.mubr.msk.f32.vlgmr.msra.gmra.mrb[212].mxu1 %vm804_vm1, %v37821_v1 }
0x53c9   : > { %33272 = vmatprep.mubr.msk.f32.mxu1 %vm34958_vm2, %v34957_v29  ;;  %33271 = vmatpush3.msra.mxu1 %v26430_v56 }
0x53ca   : > { %33275 = vmatprep.subr.mxu1 %v34957_v29 }
0x549b   : > { %v26034_v9 = vpop.f32.mrb[212].mxu1 }
0x549c   : > { %v37829_v47 = vadd.f32 %v26034_v9, %v25964_v22  ;;  %v33250_v23 = vpop.f32.mrb[213].mxu1 }
0x549e   : > { %26126 = vxpose.xlu0.b32.start.end [1/1] (short) (narrow) %v37829_v47, 64 }
0x551e   : > { %v26142_v33 = vpop.trf.xlu0 }
0x551f   : > { %26158 = vxpose.xlu0.b32.start.end [1/1] (short) (narrow) %v26142_v33, 8 }
0x5522   : > { %v26143_v43 = vpop.trf.xlu0 }
0x5523   : > { %26190 = vxpose.xlu1.b32.start.end [1/1] (short) (narrow) %v26143_v43, 8 }
0x5526   : > { %v26144_v6 = vpop.trf.xlu0 }
0x5527   : > { %26222 = vxpose.xlu0.b32.start.end [1/1] (short) (narrow) %v26144_v6, 8 }
0x552a   : > { %v26145_v37 = vpop.trf.xlu0 }
0x552b   : > { %26254 = vxpose.xlu0.b32.start.end [1/1] (short) (narrow) %v26145_v37, 8 }
0x552e   : > { %v26146_v31 = vpop.trf.xlu0 }
0x552f   : > { %26286 = vxpose.xlu0.b32.start.end [1/1] (short) (narrow) %v26146_v31, 8 }
0x5532   : > { %v26147_v45 = vpop.trf.xlu0 }
0x5533   : > { %26318 = vxpose.xlu0.b32.start.end [1/1] (short) (narrow) %v26147_v45, 8 }
0x5536   : > { %v26148_v51 = vpop.trf.xlu0 }
0x5537   : > { %26350 = vxpose.xlu0.b32.start.end [1/1] (short) (narrow) %v26148_v51, 8 }
0x553a   : > { %v26149_v28 = vpop.trf.xlu0 }
0x553b   : > { %26382 = vxpose.xlu0.b32.start.end [1/1] (short) (narrow) %v26149_v28, 8 }
0x559f   : > { %v26174_v44 = vpop.trf.xlu0 }
0x55a0   : > { %33273 = vmatmul.mubr.msk.f32.vlgmr.msra.gmra.mrb[214].mxu1 %vm1728_vm3, %v26174_v44 }
0x55a1   : > { %33276 = vmatpush3.msra.mxu1 %v26431_v24  ;;  %33277 = vmatprep.mubr.msk.f32.mxu1 %vm34958_vm2, %v34957_v29 }
0x55a2   : > { %33280 = vmatprep.subr.mxu1 %v34957_v29 }
0x55a3   : > { %v26206_v32 = vpop.trf.xlu1 }
0x55a4   : > { %33278 = vmatmul.mubr.msk.f32.vlgmr.msra.gmra.mrb[216].mxu1 %vm1728_vm3, %v26206_v32 }
0x55a5   : > { %33281 = vmatpush3.msra.mxu1 %v26432_v11  ;;  %33282 = vmatprep.mubr.msk.f32.mxu1 %vm34958_vm2, %v34957_v29 }
0x55a6   : > { %33285 = vmatprep.subr.mxu1 %v34957_v29 }
0x55a7   : > { %v26238_v55 = vpop.trf.xlu0 }
0x55a8   : > { %33283 = vmatmul.mubr.msk.f32.vlgmr.msra.gmra.mrb[218].mxu1 %vm1728_vm3, %v26238_v55 }
0x55a9   : > { %33286 = vmatpush3.msra.mxu1 %v26433_v5  ;;  %33287 = vmatprep.mubr.msk.f32.mxu1 %vm34958_vm2, %v34957_v29 }
0x55aa   : > { %33295 = vmatprep.subr.mxu1 %v34957_v29 }
0x55ab   : > { %v26270_v0 = vpop.trf.xlu0 }
0x55ac   : > { %33288 = vmatmul.mubr.msk.f32.vlgmr.msra.gmra.mrb[220].mxu1 %vm1728_vm3, %v26270_v0 }
0x55ad   : > { %33296 = vmatpush3.msra.mxu1 %v26435_v15  ;;  %33297 = vmatprep.mubr.msk.f32.mxu1 %vm34958_vm2, %v34957_v29 }
0x55ae   : > { %33305 = vmatprep.subr.mxu1 %v34957_v29 }
0x55af   : > { %v26302_v13 = vpop.trf.xlu0 }
0x55b0   : > { %33293 = vmatmul.mubr.msk.f32.vlgmr.msra.gmra.mrb[178].mxu0 %vm1728_vm3, %v26302_v13 }
0x55b1   : > { %33301 = vmatpush3.msra.mxu0 %v26436_v42  ;;  %33302 = vmatprep.mubr.msk.f32.mxu0 %vm34958_vm2, %v34957_v29 }
0x55b2   : > { %33310 = vmatprep.subr.mxu0 %v34957_v29 }
0x55b3   : > { %v26334_v26 = vpop.trf.xlu0 }
0x55b4   : > { %33298 = vmatmul.mubr.msk.f32.vlgmr.msra.gmra.mrb[222].mxu1 %vm1728_vm3, %v26334_v26 }
0x55b5   : > { %33306 = vmatpush3.msra.mxu1 %v26437_v41  ;;  %33307 = vmatprep.mubr.msk.f32.mxu1 %vm34958_vm2, %v34957_v29 }
0x55b6   : > { %33315 = vmatprep.subr.mxu1 %v34957_v29 }
0x55b7   : > { %v26366_v61 = vpop.trf.xlu0 }
0x55b8   : > { %33303 = vmatmul.mubr.msk.f32.vlgmr.msra.gmra.mrb[180].mxu0 %vm1728_vm3, %v26366_v61 }
0x55b9   : > { %33311 = vmatpush3.xpose.msk.msra.mxu0 %vm1728_vm3, %v26438_v54  ;;  %33312 = vmatprep.mubr.msk.f32.mxu0 %vm34958_vm2, %v34957_v29 }
0x55ba   : > { %33320 = vmatprep.subr.mxu0 %v34957_v29 }
0x55bb   : > { %v26398_v16 = vpop.trf.xlu0 }
0x55bc   : > { %33308 = vmatmul.mubr.msk.f32.vlgmr.msra.gmra.mrb[224].mxu1 %vm1728_vm3, %v26398_v16 }
0x55bd   : > { %33316 = vmatpush3.xpose.msk.msra.mxu1 %vm1728_vm3, %v26439_v59  ;;  %33317 = vmatprep.mubr.msk.f32.mxu1 %vm34958_vm2, %v34957_v29 }
0x55be   : > { %33325 = vmatprep.subr.mxu1 %v34957_v29 }
0x5673   : > { %v26524_v60 = vpop.f32.mrb[214].mxu1 }
0x5674   : > { %v27039_v30 = vmul.f32 0.35355338, %v26524_v60  ;;  %v33274_v14 = vpop.f32.mrb[215].mxu1 }
0x5676   : > { %v27047_v21 = vsel %vm18090_vm6, %v27039_v30, -inf }
0x5677   : > { %27048 = vmax.xlane.f32.xlu0 %v27047_v21  ;;  %v26597_v46 = vpop.f32.mrb[216].mxu1 }
0x5678   : > { %v27040_v10 = vmul.f32 0.35355338, %v26597_v46  ;;  %v33279_v12 = vpop.f32.mrb[217].mxu1 }
0x567a   : > { %v27050_v57 = vsel %vm18090_vm6, %v27040_v10, -inf }
0x567b   : > { %27051 = vmax.xlane.f32.xlu1 %v27050_v57  ;;  %v26670_v52 = vpop.f32.mrb[218].mxu1 }
0x567c   : > { %v27041_v34 = vmul.f32 0.35355338, %v26670_v52  ;;  %v33284_v2 = vpop.f32.mrb[219].mxu1 }
0x567e   : > { %v27053_v39 = vsel %vm18090_vm6, %v27041_v34, -inf }
0x567f   : > { %27054 = vmax.xlane.f32.xlu0 %v27053_v39  ;;  %v26743_v4 = vpop.f32.mrb[220].mxu1 }
0x5680   : > { %v27042_v49 = vmul.f32 0.35355338, %v26743_v4  ;;  %v33289_v25 = vpop.f32.mrb[221].mxu1 }
0x5682   : > { %v27056_v58 = vsel %vm18090_vm6, %v27042_v49, -inf }
0x5683   : > { %v26816_v38 = vpop.f32.mrb[178].mxu0  ;;  %27057 = vmax.xlane.f32.xlu0 %v27056_v58 }
0x5684   : > { %v27043_v8 = vmul.f32 0.35355338, %v26816_v38  ;;  %v33294_v22 = vpop.f32.mrb[179].mxu0 }
0x5686   : > { %v27059_v9 = vsel %vm18090_vm6, %v27043_v8, -inf }
0x5687   : > { %27060 = vmax.xlane.f32.xlu0 %v27059_v9  ;;  %v26889_v23 = vpop.f32.mrb[222].mxu1 }
0x5688   : > { %v27044_v56 = vmul.f32 0.35355338, %v26889_v23  ;;  %v33299_v24 = vpop.f32.mrb[223].mxu1 }
0x568a   : > { %v27062_v11 = vsel %vm18090_vm6, %v27044_v56, -inf }
0x568b   : > { %v26962_v5 = vpop.f32.mrb[180].mxu0  ;;  %27063 = vmax.xlane.f32.xlu0 %v27062_v11 }
0x568c   : > { %v27045_v7 = vmul.f32 0.35355338, %v26962_v5  ;;  %v33304_v33 = vpop.f32.mrb[181].mxu0 }
0x568e   : > { %v27065_v43 = vsel %vm18090_vm6, %v27045_v7, -inf }
0x568f   : > { %27066 = vmax.xlane.f32.xlu0 %v27065_v43  ;;  %v27035_v6 = vpop.f32.mrb[224].mxu1 }
0x5690   : > { %v27046_v37 = vmul.f32 0.35355338, %v27035_v6  ;;  %v33309_v31 = vpop.f32.mrb[225].mxu1 }
0x5692   : > { %v27068_v45 = vsel %vm18090_vm6, %v27046_v37, -inf }
0x5693   : > { %27069 = vmax.xlane.f32.xlu1 %v27068_v45 }
0x5704   : > { %v27049_v51 = vpop.xlane.xlu0 %27048 }
0x5705   : > { %v27071_v28 = vsub.f32 %v27039_v30, %v27049_v51 }
0x5707   : > { %v27079_v15 = vmul.f32 1.442695, %v27071_v28 }
0x5708   : > { %v27052_v42 = vpop.xlane.xlu1 %27051 }
0x5709   : > { %34593 = vpow2.f32 %v27079_v15  ;;  %v27072_v41 = vsub.f32 %v27040_v10, %v27052_v42 }
0x570b   : > { %v27081_v54 = vmul.f32 1.442695, %v27072_v41 }
0x570c   : > { %v27055_v59 = vpop.xlane.xlu0 %27054 }
0x570d   : > { %34595 = vpow2.f32 %v27081_v54  ;;  %v27073_v44 = vsub.f32 %v27041_v34, %v27055_v59 }
0x570f   : > { %v27083_v32 = vmul.f32 1.442695, %v27073_v44 }
0x5710   : > { %v27058_v55 = vpop.xlane.xlu0 %27057 }
0x5711   : > { %34597 = vpow2.f32 %v27083_v32  ;;  %v27074_v0 = vsub.f32 %v27042_v49, %v27058_v55 }
0x5713   : > { %v34594_v13 = vpop.eup %34593  ;;  %v27085_v26 = vmul.f32 1.442695, %v27074_v0 }
0x5714   : > { %v27061_v61 = vpop.xlane.xlu0 %27060  ;;  %v27095_v16 = vsel %vm18090_vm6, %v34594_v13, 0.0 }
0x5715   : > { %34599 = vpow2.f32 %v27085_v26  ;;  %v27075_v60 = vsub.f32 %v27043_v8, %v27061_v61  ;;  %27096 = vadd.xlane.f32.xlu0 %v27095_v16 }
0x5717   : > { %v34596_v30 = vpop.eup %34595  ;;  %v27087_v14 = vmul.f32 1.442695, %v27075_v60 }
0x5718   : > { %v27064_v21 = vpop.xlane.xlu0 %27063  ;;  %v27098_v46 = vsel %vm18090_vm6, %v34596_v30, 0.0 }
0x5719   : > { %34601 = vpow2.f32 %v27087_v14  ;;  %v27076_v10 = vsub.f32 %v27044_v56, %v27064_v21  ;;  %27099 = vadd.xlane.f32.xlu1 %v27098_v46 }
0x571b   : > { %v34598_v12 = vpop.eup %34597  ;;  %v27089_v57 = vmul.f32 1.442695, %v27076_v10 }
0x571c   : > { %v27067_v52 = vpop.xlane.xlu0 %27066  ;;  %v27101_v34 = vsel %vm18090_vm6, %v34598_v12, 0.0 }
0x571d   : > { %34603 = vpow2.f32 %v27089_v57  ;;  %v27077_v2 = vsub.f32 %v27045_v7, %v27067_v52  ;;  %27102 = vadd.xlane.f32.xlu0 %v27101_v34  ;;  %v28108_v7 = vrot.slane %v37829_v47, 1 }
0x571f   : > { %v34600_v39 = vpop.eup %34599  ;;  %v27091_v4 = vmul.f32 1.442695, %v27077_v2 }
0x5720   : > { %v27070_v49 = vpop.xlane.xlu1 %27069  ;;  %v27104_v25 = vsel %vm18090_vm6, %v34600_v39, 0.0 }
0x5721   : > { %34605 = vpow2.f32 %v27091_v4  ;;  %v27078_v58 = vsub.f32 %v27046_v37, %v27070_v49  ;;  %27105 = vadd.xlane.f32.xlu1 %v27104_v25 }
0x5723   : > { %v34602_v38 = vpop.eup %34601  ;;  %v27093_v8 = vmul.f32 1.442695, %v27078_v58 }
0x5724   : > { %v27107_v22 = vsel %vm18090_vm6, %v34602_v38, 0.0 }
0x5725   : > { %34607 = vpow2.f32 %v27093_v8  ;;  %27108 = vadd.xlane.f32.xlu0 %v27107_v22 }
0x5727   : > { %v34604_v9 = vpop.eup %34603 }
0x5728   : > { %v27110_v23 = vsel %vm18090_vm6, %v34604_v9, 0.0 }
0x5729   : > { %27111 = vadd.xlane.f32.xlu1 %v27110_v23  ;;  %v26448_v23 = vld [vmem:[#allocation10 + $0x88] sm:$0xff] }
0x572b   : > { %v34606_v56 = vpop.eup %34605 }
0x572c   : > { %v27113_v24 = vsel %vm18090_vm6, %v34606_v56, 0.0 }
0x572d   : > { %27114 = vadd.xlane.f32.xlu0 %v27113_v24 }
0x572f   : > { %v34608_v11 = vpop.eup %34607 }
0x5730   : > { %v27116_v5 = vsel %vm18090_vm6, %v34608_v11, 0.0 }
0x5731   : > { %27117 = vadd.xlane.f32.xlu1 %v27116_v5 }
0x575a   : > { %28110 = vxpose.xlu0.b32.start.end [1/1] (short) (narrow) %v28108_v7, 64  ;;  %v26451_v7 = vld [vmem:[#allocation10 + $0xa0] sm:$0xff] }
0x57a2   : > { %v27097_v33 = vpop.xlane.xlu0 %27096 }
0x57a3   : > { %34609 = vrcp.f32 %v27097_v33  ;;  %v26452_v33 = vld [vmem:[#allocation10 + $0xa8] sm:$0xff] }
0x57a6   : > { %v27100_v43 = vpop.xlane.xlu1 %27099 }
0x57a7   : > { %34611 = vrcp.f32 %v27100_v43  ;;  %v26453_v43 = vld [vmem:[#allocation10 + $0xb0] sm:$0xff] }
0x57aa   : > { %v27103_v6 = vpop.xlane.xlu0 %27102 }
0x57ab   : > { %34613 = vrcp.f32 %v27103_v6  ;;  %v26454_v6 = vld [vmem:[#allocation10 + $0xb8] sm:$0xff] }
0x57ad   : > { %v34610_v37 = vpop.eup %34609 }
0x57ae   : > { %v27127_v31 = vmul.f32 %v34610_v37, %v34594_v13  ;;  %v27106_v45 = vpop.xlane.xlu1 %27105  ;;  %v37951_v37 = vpack.c.bf16 %v26454_v6, %v26453_v43 }
0x57af   : > { %34615 = vrcp.f32 %v27106_v45 }
0x57b0   : > { %33313 = vmatmul.mubr.msk.f32.vlgmr.msra.gmra.mrb[182].mxu0 %vm1728_vm3, %v27127_v31 }
0x57b1   : > { %v34612_v51 = vpop.eup %34611  ;;  %33321 = vmatpush3.xpose.msk.msra.mxu0 %vm1728_vm3, %v37834_v48  ;;  %33322 = vmatprep.mubr.msk.f32.mxu0 %vm34958_vm2, %v34957_v29 }
0x57b2   : > { %v27128_v47 = vmul.f32 %v34612_v51, %v34596_v30  ;;  %v27109_v28 = vpop.xlane.xlu0 %27108  ;;  %33330 = vmatprep.subr.mxu0 %v34957_v29 }
0x57b3   : > { %34617 = vrcp.f32 %v27109_v28 }
0x57b4   : > { %33318 = vmatmul.mubr.msk.f32.vlgmr.msra.gmra.mrb[226].mxu1 %vm1728_vm3, %v27128_v47 }
0x57b5   : > { %v34614_v15 = vpop.eup %34613  ;;  %33326 = vmatpush3.xpose.msk.msra.mxu1 %vm1728_vm3, %v37836_v53  ;;  %33327 = vmatprep.mubr.msk.f32.mxu1 %vm34958_vm2, %v34957_v29 }
0x57b6   : > { %v27129_v42 = vmul.f32 %v34614_v15, %v34598_v12  ;;  %v27112_v41 = vpop.xlane.xlu1 %27111  ;;  %33335 = vmatprep.subr.mxu1 %v34957_v29 }
0x57b7   : > { %34619 = vrcp.f32 %v27112_v41 }
0x57b8   : > { %33323 = vmatmul.mubr.msk.f32.vlgmr.msra.gmra.mrb[184].mxu0 %vm1728_vm3, %v27129_v42 }
0x57b9   : > { %v34616_v48 = vpop.eup %34615  ;;  %33331 = vmatpush3.xpose.msk.msra.mxu0 %vm1728_vm3, %v37838_v63  ;;  %33332 = vmatprep.mubr.msk.f32.mxu0 %vm34958_vm2, %v34957_v29 }
0x57ba   : > { %v27130_v54 = vmul.f32 %v34616_v48, %v34600_v39  ;;  %v27115_v59 = vpop.xlane.xlu0 %27114  ;;  %33340 = vmatprep.subr.mxu0 %v34957_v29 }
0x57bb   : > { %34621 = vrcp.f32 %v27115_v59 }
0x57bc   : > { %33328 = vmatmul.mubr.msk.f32.vlgmr.msra.gmra.mrb[228].mxu1 %vm1728_vm3, %v27130_v54 }
0x57bd   : > { %v34618_v53 = vpop.eup %34617  ;;  %33336 = vmatpush3.xpose.msk.msra.mxu1 %vm1728_vm3, %v37840_v50  ;;  %33337 = vmatprep.mubr.msk.f32.mxu1 %vm34958_vm2, %v34957_v29 }
0x57be   : > { %v27131_v44 = vmul.f32 %v34618_v53, %v34602_v38  ;;  %v27118_v32 = vpop.xlane.xlu1 %27117  ;;  %33345 = vmatprep.subr.mxu1 %v34957_v29 }
0x57bf   : > { %34623 = vrcp.f32 %v27118_v32 }
0x57c0   : > { %33333 = vmatmul.mubr.msk.f32.vlgmr.msra.gmra.mrb[186].mxu0 %vm1728_vm3, %v27131_v44 }
0x57c1   : > { %v34620_v63 = vpop.eup %34619  ;;  %33341 = vmatpush3.xpose.msk.msra.mxu0 %vm1728_vm3, %v37842_v36  ;;  %33342 = vmatprep.mubr.msk.f32.mxu0 %vm34958_vm2, %v34957_v29 }
0x57c2   : > { %v27132_v55 = vmul.f32 %v34620_v63, %v34604_v9  ;;  %34049 = vmatprep.subr.bf16.mxu0 %v34959_v62  ;;  %v26447_v9 = vld [vmem:[#allocation10 + $0x80] sm:$0xff] }
0x57c3   : > { %v37940_v24 = vpack.c.bf16 %v26448_v23, %v26447_v9 }
0x57c4   : > { %33338 = vmatmul.mubr.msk.f32.vlgmr.msra.gmra.mrb[230].mxu1 %vm1728_vm3, %v27132_v55 }
0x57c5   : > { %v34622_v50 = vpop.eup %34621  ;;  %33346 = vmatpush3.xpose.msk.msra.mxu1 %vm1728_vm3, %v37844_v18  ;;  %33347 = vmatprep.mubr.msk.f32.mxu1 %vm34958_vm2, %v34957_v29 }
0x57c6   : > { %v27133_v0 = vmul.f32 %v34622_v50, %v34606_v56  ;;  %33369 = vmatprep.subr.mxu1 %v34957_v29  ;;  %v26449_v56 = vld [vmem:[#allocation10 + $0x90] sm:$0xff] }
0x57c8   : > { %33343 = vmatmul.mubr.msk.f32.vlgmr.msra.gmra.mrb[188].mxu0 %vm1728_vm3, %v27133_v0 }
0x57c9   : > { %v34624_v36 = vpop.eup %34623  ;;  %33366 = vmatprep.mubr.msk.f32.mxu0 %vm34958_vm2, %v34957_v29  ;;  %34051 = vmatpush3.bf16.msra.mxu0 %v37940_v24 }
0x57ca   : > { %v27134_v13 = vmul.f32 %v34624_v36, %v34608_v11  ;;  %v26450_v11 = vld [vmem:[#allocation10 + $0x98] sm:$0xff]  ;;  %34052 = vmatprep.subr.bf16.mxu0 %v34959_v62 }
0x57cb   : > { %v37943_v5 = vpack.c.bf16 %v26450_v11, %v26449_v56 }
0x57cc   : > { %33348 = vmatmul.mubr.msk.f32.vlgmr.msra.gmra.mrb[232].mxu1 %vm1728_vm3, %v27134_v13 }
0x57cd   : > { %33371 = vmatprep.mubr.msk.f32.mxu1 %vm34958_vm2, %v34957_v29  ;;  %34054 = vmatpush3.bf16.msra.mxu0 %v37943_v5 }
0x57ce   : > { %34055 = vmatprep.subr.bf16.mxu0 %v34959_v62 }
0x57da   : > { %v28126_v30 = vpop.trf.xlu0 }
0x57de   : > { %v28127_v10 = vpop.trf.xlu0 }
0x57e2   : > { %v28128_v34 = vpop.trf.xlu0 }
0x57e6   : > { %v28129_v49 = vpop.trf.xlu0 }
0x57ea   : > { %v28130_v38 = vpop.trf.xlu0 }
0x57ee   : > { %v28131_v8 = vpop.trf.xlu0 }
0x57f2   : > { %v28132_v22 = vpop.trf.xlu0 }
0x57f6   : > { %v28133_v31 = vpop.trf.xlu0 }
0x5883   : > { %v27207_v26 = vpop.f32.mrb[182].mxu0 }
0x5884   : > { %27743 = vxpose.xlu0.b32.start.end [1/1] (short) (narrow) %v27207_v26, 8  ;;  %v33314_v18 = vpop.f32.mrb[183].mxu0 }
0x5887   : > { %v27283_v61 = vpop.f32.mrb[226].mxu1 }
0x5888   : > { %27775 = vxpose.xlu1.b32.start.end [1/1] (short) (narrow) %v27283_v61, 8  ;;  %v33319_v16 = vpop.f32.mrb[227].mxu1 }
0x588b   : > { %v27359_v60 = vpop.f32.mrb[184].mxu0 }
0x588c   : > { %27807 = vxpose.xlu0.b32.start.end [1/1] (short) (narrow) %v27359_v60, 8  ;;  %v33324_v14 = vpop.f32.mrb[185].mxu0 }
0x588f   : > { %v27435_v21 = vpop.f32.mrb[228].mxu1 }
0x5890   : > { %27839 = vxpose.xlu1.b32.start.end [1/1] (short) (narrow) %v27435_v21, 8  ;;  %v33329_v46 = vpop.f32.mrb[229].mxu1 }
0x5893   : > { %v27511_v12 = vpop.f32.mrb[186].mxu0 }
0x5894   : > { %27871 = vxpose.xlu0.b32.start.end [1/1] (short) (narrow) %v27511_v12, 8  ;;  %v33334_v57 = vpop.f32.mrb[187].mxu0 }
0x5897   : > { %v27587_v52 = vpop.f32.mrb[230].mxu1 }
0x5898   : > { %27903 = vxpose.xlu1.b32.start.end [1/1] (short) (narrow) %v27587_v52, 8  ;;  %v33339_v2 = vpop.f32.mrb[231].mxu1  ;;  %28174 = vxpose.xlu0.b32.start.end [1/1] (short) (narrow) %v28127_v10, 8 }
0x589b   : > { %v27663_v39 = vpop.f32.mrb[188].mxu0 }
0x589c   : > { %v33344_v4 = vpop.f32.mrb[189].mxu0  ;;  %27935 = vxpose.xlu1.b32.start.end [1/1] (short) (narrow) %v27663_v39, 8  ;;  %28206 = vxpose.xlu0.b32.start.end [1/1] (short) (narrow) %v28128_v34, 8 }
0x589f   : > { %v27739_v25 = vpop.f32.mrb[232].mxu1 }
0x58a0   : > { %27967 = vxpose.xlu1.b32.start.end [1/1] (short) (narrow) %v27739_v25, 8  ;;  %v33349_v58 = vpop.f32.mrb[233].mxu1  ;;  %28238 = vxpose.xlu0.b32.start.end [1/1] (short) (narrow) %v28129_v49, 8 }
0x58a4   : > { %28398 = vxpose.xlu1.b32.start.end [1/1] (short) %v37747_v27, 128  ;;  %v37947_v27 = vpack.c.bf16 %v26452_v33, %v26451_v7 }
0x58a6   : > { %34057 = vmatpush3.bf16.msra.mxu0 %v37947_v27 }
0x58a7   : > { %34058 = vmatprep.subr.bf16.mxu0 %v34959_v62 }
0x58aa   : > { %34060 = vmatpush3.bf16.msra.mxu0 %v37951_v37 }
0x58ab   : > { %33389 = vmatprep.subr.mxu0 %v34957_v29 }
0x58e1   : > { %28142 = vxpose.xlu1.b32.start.end [1/1] (short) (narrow) %v28126_v30, 8 }
0x58e5   : > { %28334 = vxpose.xlu1.b32.start.end [1/1] (short) (narrow) %v28132_v22, 8 }
0x5904   : > { %v27759_v45 = vpop.trf.xlu0 }
0x5905   : > { %27999 = vxpose.xlu0.b32.start [1/8] (short) (narrow) %v27759_v45, 8 }
0x5908   : > { %v27791_v51 = vpop.trf.xlu1 }
0x5909   : > { %28000 = vxpose.xlu0.b32.cont [2/8] (short) (narrow) %v27791_v51, 8 }
0x590c   : > { %v27823_v47 = vpop.trf.xlu0 }
0x590d   : > { %28001 = vxpose.xlu0.b32.cont [3/8] (short) (narrow) %v27823_v47, 8 }
0x5910   : > { %v27855_v28 = vpop.trf.xlu1 }
0x5911   : > { %28002 = vxpose.xlu0.b32.cont [4/8] (short) (narrow) %v27855_v28, 8 }
0x5914   : > { %v27887_v15 = vpop.trf.xlu0 }
0x5915   : > { %28003 = vxpose.xlu0.b32.cont [5/8] (short) (narrow) %v27887_v15, 8 }
0x5918   : > { %v27919_v42 = vpop.trf.xlu1  ;;  %v28190_v30 = vpop.trf.xlu0 }
0x5919   : > { %28004 = vxpose.xlu0.b32.cont [6/8] (short) (narrow) %v27919_v42, 8 }
0x591c   : > { %v27951_v41 = vpop.trf.xlu1  ;;  %v28222_v21 = vpop.trf.xlu0 }
0x591d   : > { %28005 = vxpose.xlu0.b32.cont [7/8] (short) (narrow) %v27951_v41, 8 }
0x5920   : > { %v27983_v48 = vpop.trf.xlu1  ;;  %v28254_v46 = vpop.trf.xlu0 }
0x5921   : > { %28006 = vxpose.xlu0.b32.end [8/8] (short) (narrow) %v27983_v48, 8 }
0x5924   : > { %v28414_v54 = vpop.trf.xlu1 }
0x5925   : > { %28270 = vxpose.xlu0.b32.start.end [1/1] (short) (narrow) %v28130_v38, 8  ;;  %33370 = vmatpush3.msra.mxu1 %v28414_v54 }
0x5926   : > { %33374 = vmatprep.subr.mxu1 %v34957_v29 }
0x5928   : > { %v28415_v59 = vpop.trf.xlu1 }
0x5929   : > { %28302 = vxpose.xlu0.b32.start.end [1/1] (short) (narrow) %v28131_v8, 8 }
0x592c   : > { %v28416_v53 = vpop.trf.xlu1 }
0x592d   : > { %28366 = vxpose.xlu0.b32.start.end [1/1] (short) (narrow) %v28133_v31, 8 }
0x5930   : > { %v28417_v44 = vpop.trf.xlu1 }
0x5934   : > { %v28418_v32 = vpop.trf.xlu1 }
0x5938   : > { %v28419_v63 = vpop.trf.xlu1 }
0x593c   : > { %v28420_v55 = vpop.trf.xlu1 }
0x5940   : > { %v28421_v50 = vpop.trf.xlu1 }
0x5944   : > { %v28422_v0 = vpop.trf.xlu1 }
0x5948   : > { %v28423_v36 = vpop.trf.xlu1 }
0x594c   : > { %v37957_v13 = vpop.trf.xlu1 }
0x5950   : > { %v37959_v26 = vpop.trf.xlu1 }
0x5954   : > { %v37961_v18 = vpop.trf.xlu1 }
0x5958   : > { %v37963_v61 = vpop.trf.xlu1 }
0x595c   : > { %v37965_v16 = vpop.trf.xlu1 }
0x5960   : > { %v37967_v60 = vpop.trf.xlu1 }
0x5964   : > { %v28158_v14 = vpop.trf.xlu1 }
0x5965   : > { %33372 = vmatmul.mubr.msk.f32.vlgmr.msra.gmra.mrb[234].mxu1 %vm1728_vm3, %v28158_v14 }
0x5966   : > { %33375 = vmatpush3.msra.mxu1 %v28415_v59  ;;  %33376 = vmatprep.mubr.msk.f32.mxu1 %vm34958_vm2, %v34957_v29 }
0x5967   : > { %33379 = vmatprep.subr.mxu1 %v34957_v29 }
0x5968   : > { %v28350_v57 = vpop.trf.xlu1 }
0x5969   : > { %33377 = vmatmul.mubr.msk.f32.vlgmr.msra.gmra.mrb[236].mxu1 %vm1728_vm3, %v28190_v30 }
0x596a   : > { %33380 = vmatpush3.msra.mxu1 %v28416_v53  ;;  %33381 = vmatprep.mubr.msk.f32.mxu1 %vm34958_vm2, %v34957_v29 }
0x596b   : > { %33384 = vmatprep.subr.mxu1 %v34957_v29 }
0x596d   : > { %33382 = vmatmul.mubr.msk.f32.vlgmr.msra.gmra.mrb[238].mxu1 %vm1728_vm3, %v28222_v21 }
0x596e   : > { %33385 = vmatpush3.msra.mxu1 %v28417_v44  ;;  %33386 = vmatprep.mubr.msk.f32.mxu1 %vm34958_vm2, %v34957_v29 }
0x596f   : > { %33394 = vmatprep.subr.mxu1 %v34957_v29 }
0x5971   : > { %33387 = vmatmul.mubr.msk.f32.vlgmr.msra.gmra.mrb[240].mxu1 %vm1728_vm3, %v28254_v46 }
0x5972   : > { %33395 = vmatpush3.msra.mxu1 %v28419_v63  ;;  %33396 = vmatprep.mubr.msk.f32.mxu1 %vm34958_vm2, %v34957_v29 }
0x5973   : > { %33404 = vmatprep.subr.mxu1 %v34957_v29 }
0x5985   : > { %v28015_v10 = vpop.trf.xlu0 }
0x5986   : > { %33367 = vmatmul.mubr.msk.f32.vlgmr.msra.gmra.mrb[190].mxu0 %vm804_vm1, %v28015_v10 }
0x5987   : > { %33390 = vmatpush3.msra.mxu0 %v28418_v32  ;;  %33391 = vmatprep.mubr.msk.f32.mxu0 %vm34958_vm2, %v34957_v29 }
0x5988   : > { %33399 = vmatprep.subr.mxu0 %v34957_v29 }
0x59a5   : > { %v28286_v12 = vpop.trf.xlu0 }
0x59a6   : > { %33392 = vmatmul.mubr.msk.f32.vlgmr.msra.gmra.mrb[192].mxu0 %vm1728_vm3, %v28286_v12 }
0x59a7   : > { %33400 = vmatpush3.msra.mxu0 %v28420_v55  ;;  %33401 = vmatprep.mubr.msk.f32.mxu0 %vm34958_vm2, %v34957_v29 }
0x59a8   : > { %33409 = vmatprep.subr.mxu0 %v34957_v29 }
0x59a9   : > { %v28318_v52 = vpop.trf.xlu0 }
0x59aa   : > { %33397 = vmatmul.mubr.msk.f32.vlgmr.msra.gmra.mrb[242].mxu1 %vm1728_vm3, %v28318_v52  ;;  %33402 = vmatmul.mubr.msk.f32.vlgmr.msra.gmra.mrb[194].mxu0 %vm1728_vm3, %v28350_v57 }
0x59ab   : > { %33405 = vmatpush3.msra.mxu1 %v28421_v50  ;;  %33406 = vmatprep.mubr.msk.f32.mxu1 %vm34958_vm2, %v34957_v29 }
0x59ac   : > { %33414 = vmatprep.subr.mxu1 %v34957_v29  ;;  %33411 = vmatprep.mubr.msk.f32.mxu0 %vm34958_vm2, %v34957_v29 }
0x59ad   : > { %v28382_v34 = vpop.trf.xlu0 }
0x59ae   : > { %33410 = vmatpush3.xpose.msk.msra.mxu0 %vm1728_vm3, %v28422_v0  ;;  %33407 = vmatmul.mubr.msk.f32.vlgmr.msra.gmra.mrb[244].mxu1 %vm1728_vm3, %v28382_v34 }
0x59af   : > { %33419 = vmatprep.subr.mxu0 %v34957_v29  ;;  %33416 = vmatprep.mubr.msk.f32.mxu1 %vm34958_vm2, %v34957_v29 }
0x59b2   : > { %33415 = vmatpush3.xpose.msk.msra.mxu1 %vm1728_vm3, %v28423_v36 }
0x59b3   : > { %33424 = vmatprep.subr.mxu1 %v34957_v29 }
0x5a38   : > { %v28507_v2 = vpop.f32.mrb[234].mxu1 }
0x5a39   : > { %v29022_v39 = vmul.f32 0.35355338, %v28507_v2  ;;  %v33373_v4 = vpop.f32.mrb[235].mxu1 }
0x5a3b   : > { %v29030_v49 = vsel %vm18090_vm6, %v29022_v39, -inf }
0x5a3c   : > { %29031 = vmax.xlane.f32.xlu1 %v29030_v49  ;;  %v28580_v25 = vpop.f32.mrb[236].mxu1 }
0x5a3d   : > { %v29023_v58 = vmul.f32 0.35355338, %v28580_v25  ;;  %v33378_v38 = vpop.f32.mrb[237].mxu1 }
0x5a3f   : > { %v29033_v8 = vsel %vm18090_vm6, %v29023_v58, -inf }
0x5a40   : > { %29034 = vmax.xlane.f32.xlu0 %v29033_v8  ;;  %v28653_v22 = vpop.f32.mrb[238].mxu1 }
0x5a41   : > { %v29024_v9 = vmul.f32 0.35355338, %v28653_v22  ;;  %v33383_v23 = vpop.f32.mrb[239].mxu1 }
0x5a43   : > { %v29036_v56 = vsel %vm18090_vm6, %v29024_v9, -inf }
0x5a44   : > { %29037 = vmax.xlane.f32.xlu1 %v29036_v56  ;;  %v28726_v11 = vpop.f32.mrb[240].mxu1 }
0x5a45   : > { %v29025_v7 = vmul.f32 0.35355338, %v28726_v11  ;;  %v33388_v33 = vpop.f32.mrb[241].mxu1 }
0x5a47   : > { %v29039_v43 = vsel %vm18090_vm6, %v29025_v7, -inf }
0x5a48   : > { %29040 = vmax.xlane.f32.xlu1 %v29039_v43 }
0x5a59   : > { %v38011_v6 = vpop.f32.mrb[190].mxu0 }
0x5a5a   : > { %v33368_v31 = vpop.f32.mrb[191].mxu0 }
0x5a79   : > { %v28799_v45 = vpop.f32.mrb[192].mxu0 }
0x5a7a   : > { %v29026_v51 = vmul.f32 0.35355338, %v28799_v45  ;;  %v33393_v47 = vpop.f32.mrb[193].mxu0 }
0x5a7c   : > { %v29042_v28 = vsel %vm18090_vm6, %v29026_v51, -inf }
0x5a7d   : > { %v28945_v15 = vpop.f32.mrb[194].mxu0  ;;  %29043 = vmax.xlane.f32.xlu0 %v29042_v28  ;;  %v28872_v42 = vpop.f32.mrb[242].mxu1 }
0x5a7e   : > { %v29028_v41 = vmul.f32 0.35355338, %v28945_v15  ;;  %v29027_v48 = vmul.f32 0.35355338, %v28872_v42  ;;  %v33398_v54 = vpop.f32.mrb[243].mxu1  ;;  %v33403_v59 = vpop.f32.mrb[195].mxu0 }
0x5a80   : > { %v29048_v53 = vsel %vm18090_vm6, %v29028_v41, -inf  ;;  %v29045_v44 = vsel %vm18090_vm6, %v29027_v48, -inf }
0x5a81   : > { %29049 = vmax.xlane.f32.xlu0 %v29048_v53  ;;  %29046 = vmax.xlane.f32.xlu1 %v29045_v44  ;;  %v29018_v32 = vpop.f32.mrb[244].mxu1 }
0x5a82   : > { %v29029_v63 = vmul.f32 0.35355338, %v29018_v32  ;;  %v33408_v55 = vpop.f32.mrb[245].mxu1 }
0x5a84   : > { %v29051_v50 = vsel %vm18090_vm6, %v29029_v63, -inf }
0x5a85   : > { %29052 = vmax.xlane.f32.xlu1 %v29051_v50 }
0x5ac9   : > { %v29032_v0 = vpop.xlane.xlu1 %29031 }
0x5aca   : > { %v29054_v36 = vsub.f32 %v29022_v39, %v29032_v0 }
0x5acc   : > { %v29062_v30 = vmul.f32 1.442695, %v29054_v36 }
0x5acd   : > { %v29035_v14 = vpop.xlane.xlu0 %29034 }
0x5ace   : > { %34625 = vpow2.f32 %v29062_v30  ;;  %v29055_v21 = vsub.f32 %v29023_v58, %v29035_v14 }
0x5ad0   : > { %v29064_v46 = vmul.f32 1.442695, %v29055_v21 }
0x5ad1   : > { %v29038_v10 = vpop.xlane.xlu1 %29037 }
0x5ad2   : > { %34627 = vpow2.f32 %v29064_v46  ;;  %v29056_v12 = vsub.f32 %v29024_v9, %v29038_v10 }
0x5ad4   : > { %v29066_v57 = vmul.f32 1.442695, %v29056_v12 }
0x5ad5   : > { %v29041_v52 = vpop.xlane.xlu1 %29040 }
0x5ad6   : > { %34629 = vpow2.f32 %v29066_v57  ;;  %v29057_v34 = vsub.f32 %v29025_v7, %v29041_v52 }
0x5ad8   : > { %v34626_v2 = vpop.eup %34625  ;;  %v29068_v4 = vmul.f32 1.442695, %v29057_v34 }
0x5ad9   : > { %v29078_v49 = vsel %vm18090_vm6, %v34626_v2, 0.0 }
0x5ada   : > { %34631 = vpow2.f32 %v29068_v4  ;;  %29079 = vadd.xlane.f32.xlu0 %v29078_v49 }
0x5adc   : > { %v34628_v25 = vpop.eup %34627 }
0x5add   : > { %v29081_v39 = vsel %vm18090_vm6, %v34628_v25, 0.0 }
0x5ade   : > { %29082 = vadd.xlane.f32.xlu1 %v29081_v39 }
0x5ae0   : > { %v34630_v38 = vpop.eup %34629 }
0x5ae1   : > { %v29084_v58 = vsel %vm18090_vm6, %v34630_v38, 0.0 }
0x5ae2   : > { %29085 = vadd.xlane.f32.xlu0 %v29084_v58 }
0x5ae4   : > { %v34632_v8 = vpop.eup %34631 }
0x5ae5   : > { %v29087_v22 = vsel %vm18090_vm6, %v34632_v8, 0.0 }
0x5ae6   : > { %29088 = vadd.xlane.f32.xlu1 %v29087_v22 }
0x5b0a   : > { %v29044_v9 = vpop.xlane.xlu0 %29043 }
0x5b0b   : > { %v29058_v23 = vsub.f32 %v29026_v51, %v29044_v9 }
0x5b0d   : > { %v29070_v56 = vmul.f32 1.442695, %v29058_v23 }
0x5b0e   : > { %v29050_v11 = vpop.xlane.xlu0 %29049  ;;  %v29047_v7 = vpop.xlane.xlu1 %29046 }
0x5b0f   : > { %34633 = vpow2.f32 %v29070_v56  ;;  %v29060_v33 = vsub.f32 %v29028_v41, %v29050_v11  ;;  %v29059_v43 = vsub.f32 %v29027_v48, %v29047_v7 }
0x5b11   : > { %v29074_v31 = vmul.f32 1.442695, %v29060_v33  ;;  %v29072_v45 = vmul.f32 1.442695, %v29059_v43 }
0x5b12   : > { %v29053_v47 = vpop.xlane.xlu1 %29052 }
0x5b13   : > { %34635 = vpow2.f32 %v29074_v31  ;;  %v29061_v28 = vsub.f32 %v29029_v63, %v29053_v47 }
0x5b14   : > { %34637 = vpow2.f32 %v29072_v45 }
0x5b15   : > { %v29076_v15 = vmul.f32 1.442695, %v29061_v28 }
0x5b17   : > { %34639 = vpow2.f32 %v29076_v15 }
0x5b19   : > { %v34634_v42 = vpop.eup %34633 }
0x5b1a   : > { %v29090_v54 = vsel %vm18090_vm6, %v34634_v42, 0.0 }
0x5b1b   : > { %29091 = vadd.xlane.f32.xlu0 %v29090_v54 }
0x5b1d   : > { %v34636_v59 = vpop.eup %34635 }
0x5b1e   : > { %v34638_v51 = vpop.eup %34637  ;;  %v29096_v53 = vsel %vm18090_vm6, %v34636_v59, 0.0 }
0x5b1f   : > { %29097 = vadd.xlane.f32.xlu0 %v29096_v53  ;;  %v29093_v41 = vsel %vm18090_vm6, %v34638_v51, 0.0 }
0x5b20   : > { %29094 = vadd.xlane.f32.xlu1 %v29093_v41 }
0x5b21   : > { %v34640_v48 = vpop.eup %34639 }
0x5b22   : > { %v29099_v44 = vsel %vm18090_vm6, %v34640_v48, 0.0 }
0x5b24   : > { %29100 = vadd.xlane.f32.xlu1 %v29099_v44 }
0x5b67   : > { %v29080_v32 = vpop.xlane.xlu0 %29079 }
0x5b68   : > { %34641 = vrcp.f32 %v29080_v32 }
0x5b6b   : > { %v29083_v63 = vpop.xlane.xlu1 %29082 }
0x5b6c   : > { %34643 = vrcp.f32 %v29083_v63 }
0x5b6f   : > { %v29086_v55 = vpop.xlane.xlu0 %29085 }
0x5b70   : > { %34645 = vrcp.f32 %v29086_v55 }
0x5b72   : > { %v34642_v50 = vpop.eup %34641 }
0x5b73   : > { %v29110_v0 = vmul.f32 %v34642_v50, %v34626_v2  ;;  %v29089_v36 = vpop.xlane.xlu1 %29088 }
0x5b74   : > { %34647 = vrcp.f32 %v29089_v36 }
0x5b75   : > { %33412 = vmatmul.mubr.msk.f32.vlgmr.msra.gmra.mrb[196].mxu0 %vm1728_vm3, %v29110_v0 }
0x5b76   : > { %v34644_v30 = vpop.eup %34643  ;;  %33420 = vmatpush3.xpose.msk.msra.mxu0 %vm1728_vm3, %v37957_v13  ;;  %33421 = vmatprep.mubr.msk.f32.mxu0 %vm34958_vm2, %v34957_v29 }
0x5b77   : > { %v29111_v14 = vmul.f32 %v34644_v30, %v34628_v25  ;;  %33429 = vmatprep.subr.mxu0 %v34957_v29 }
0x5b79   : > { %33417 = vmatmul.mubr.msk.f32.vlgmr.msra.gmra.mrb[246].mxu1 %vm1728_vm3, %v29111_v14 }
0x5b7a   : > { %v34646_v21 = vpop.eup %34645  ;;  %33425 = vmatpush3.xpose.msk.msra.mxu1 %vm1728_vm3, %v37959_v26  ;;  %33426 = vmatprep.mubr.msk.f32.mxu1 %vm34958_vm2, %v34957_v29 }
0x5b7b   : > { %v29112_v46 = vmul.f32 %v34646_v21, %v34630_v38  ;;  %33434 = vmatprep.subr.mxu1 %v34957_v29 }
0x5b7d   : > { %33422 = vmatmul.mubr.msk.f32.vlgmr.msra.gmra.mrb[198].mxu0 %vm1728_vm3, %v29112_v46 }
0x5b7e   : > { %v34648_v13 = vpop.eup %34647  ;;  %33430 = vmatpush3.xpose.msk.msra.mxu0 %vm1728_vm3, %v37961_v18  ;;  %33431 = vmatprep.mubr.msk.f32.mxu0 %vm34958_vm2, %v34957_v29 }
0x5b7f   : > { %v29113_v10 = vmul.f32 %v34648_v13, %v34632_v8  ;;  %33439 = vmatprep.subr.mxu0 %v34957_v29  ;;  %v30116_v13 = vld [vmem:[#allocation11 + $0x80] sm:$0xff] }
0x5b81   : > { %33427 = vmatmul.mubr.msk.f32.vlgmr.msra.gmra.mrb[248].mxu1 %vm1728_vm3, %v29113_v10 }
0x5b82   : > { %33435 = vmatpush3.xpose.msk.msra.mxu1 %vm1728_vm3, %v37963_v61  ;;  %33436 = vmatprep.mubr.msk.f32.mxu1 %vm34958_vm2, %v34957_v29 }
0x5b83   : > { %33444 = vmatprep.subr.mxu1 %v34957_v29 }
0x5ba8   : > { %v29092_v26 = vpop.xlane.xlu0 %29091 }
0x5ba9   : > { %34649 = vrcp.f32 %v29092_v26  ;;  %v30119_v26 = vld [vmem:[#allocation11 + $0x98] sm:$0xff] }
0x5bac   : > { %v29098_v12 = vpop.xlane.xlu0 %29097 }
0x5bad   : > { %34651 = vrcp.f32 %v29098_v12  ;;  %v29095_v18 = vpop.xlane.xlu1 %29094 }
0x5bae   : > { %34653 = vrcp.f32 %v29095_v18  ;;  %v30120_v18 = vld [vmem:[#allocation11 + $0xa0] sm:$0xff] }
0x5bb1   : > { %v29101_v57 = vpop.xlane.xlu1 %29100 }
0x5bb2   : > { %34655 = vrcp.f32 %v29101_v57  ;;  %v30121_v57 = vld [vmem:[#allocation11 + $0xa8] sm:$0xff] }
0x5bb3   : > { %v34650_v52 = vpop.eup %34649 }
0x5bb4   : > { %v29114_v34 = vmul.f32 %v34650_v52, %v34634_v42  ;;  %v34080_v52 = vpack.c.bf16 %v30121_v57, %v30120_v18  ;;  %v30321_v57 = vld [vmem:[%s38329_s5 + $0x20] sm:$0xff] }
0x5bb6   : > { %33432 = vmatmul.mubr.msk.f32.vlgmr.msra.gmra.mrb[200].mxu0 %vm1728_vm3, %v29114_v34  ;;  %v30122_v34 = vld [vmem:[#allocation11 + $0xb0] sm:$0xff] }
0x5bb7   : > { %v34652_v2 = vpop.eup %34651  ;;  %33440 = vmatpush3.xpose.msk.msra.mxu0 %vm1728_vm3, %v37965_v16  ;;  %33441 = vmatprep.mubr.msk.f32.mxu0 %vm34958_vm2, %v34957_v29 }
0x5bb8   : > { %v34654_v61 = vpop.eup %34653  ;;  %v29116_v4 = vmul.f32 %v34652_v2, %v34636_v59  ;;  %34061 = vmatprep.subr.bf16.mxu0 %v34959_v62  ;;  %v30123_v2 = vld [vmem:[#allocation11 + $0xb8] sm:$0xff] }
0x5bb9   : > { %v29115_v49 = vmul.f32 %v34654_v61, %v34638_v51  ;;  %v38078_v51 = vld [vmem:[#allocation13 + $0x20] sm:$0xff]  ;;  %v34083_v61 = vpack.c.bf16 %v30123_v2, %v30122_v34  ;;  %v30323_v2 = vld [vmem:[%s38329_s5 + $0x30] sm:$0xff] }
0x5bba   : > { %33442 = vmatmul.mubr.msk.f32.vlgmr.msra.gmra.mrb[202].mxu0 %vm1728_vm3, %v29116_v4  ;;  %v28032_v53 = vrot.slane %v38078_v51, 3  ;;  %v31058_v4 = vld [vmem:[%s38328_s18 + $0x100] sm:$0xff] }
0x5bbb   : > { %33437 = vmatmul.mubr.msk.f32.vlgmr.msra.gmra.mrb[250].mxu1 %vm1728_vm3, %v29115_v49  ;;  %34063 = vmatpush3.bf16.msra.mxu0 %v37940_v24  ;;  %v31059_v49 = vld [vmem:[%s38328_s18 + $0x108] sm:$0xff] }
0x5bbc   : > { %v34656_v25 = vpop.eup %34655  ;;  %33445 = vmatpush3.xpose.msk.msra.mxu1 %vm1728_vm3, %v37967_v60  ;;  %33446 = vmatprep.mubr.msk.f32.mxu1 %vm34958_vm2, %v34957_v29  ;;  %v28104_v32 = vadd.f32 %v38011_v6, %v28032_v53  ;;  %v30117_v6 = vld [vmem:[#allocation11 + $0x88] sm:$0xff] }
0x5bbd   : > { %v29117_v16 = vmul.f32 %v34656_v25, %v34640_v48  ;;  %34064 = vmatprep.subr.bf16.mxu0 %v34959_v62  ;;  %33465 = vmatprep.mubr.msk.f32.mxu0 %vm34958_vm2, %v34957_v29  ;;  %v34074_v10 = vpack.c.bf16 %v30117_v6, %v30116_v13  ;;  %v31060_v25 = vld [vmem:[%s38328_s18 + $0x110] sm:$0xff] }
0x5bbe   : > { %34073 = vmatprep.subr.bf16.mxu1 %v34959_v62 }
0x5bbf   : > { %33447 = vmatmul.mubr.msk.f32.vlgmr.msra.gmra.mrb[252].mxu1 %vm1728_vm3, %v29117_v16  ;;  %34066 = vmatpush3.bf16.msra.mxu0 %v37943_v5  ;;  %v34086_v16 = vpack.c.bf16 %v31059_v49, %v31058_v4 }
0x5bc0   : > { %34067 = vmatprep.subr.bf16.mxu0 %v34959_v62  ;;  %33484 = vmatprep.mubr.msk.f32.mxu1 %vm34958_vm2, %v34957_v29 }
0x5bc1   : > { %34075 = vmatpush3.bf16.msra.mxu1 %v34074_v10 }
0x5bc2   : > { %34076 = vmatprep.subr.bf16.mxu1 %v34959_v62 }
0x5bc3   : > { %34069 = vmatpush3.bf16.msra.mxu0 %v37947_v27 }
0x5bc4   : > { %34070 = vmatprep.subr.bf16.mxu0 %v34959_v62 }
0x5bc7   : > { %34072 = vmatpush3.bf16.msra.mxu0 %v37951_v37 }
0x5bc8   : > { %34085 = vmatprep.subr.bf16.mxu0 %v34959_v62 }
0x5c48   : > { %v29190_v24 = vpop.f32.mrb[196].mxu0 }
0x5c49   : > { %v33413_v60 = vpop.f32.mrb[197].mxu0  ;;  %29726 = vxpose.xlu0.b32.start.end [1/1] (short) (narrow) %v29190_v24, 8  ;;  %v31061_v24 = vld [vmem:[%s38328_s18 + $0x118] sm:$0xff] }
0x5c4a   : > { %v34089_v60 = vpack.c.bf16 %v31061_v24, %v31060_v25 }
0x5c4c   : > { %v29266_v39 = vpop.f32.mrb[246].mxu1 }
0x5c4d   : > { %29758 = vxpose.xlu1.b32.start.end [1/1] (short) (narrow) %v29266_v39, 8  ;;  %v33418_v38 = vpop.f32.mrb[247].mxu1  ;;  %v31062_v39 = vld [vmem:[%s38328_s18 + $0x120] sm:$0xff] }
0x5c4e   : > { %v31063_v38 = vld [vmem:[%s38328_s18 + $0x128] sm:$0xff] }
0x5c50   : > { %v29342_v5 = vpop.f32.mrb[198].mxu0 }
0x5c51   : > { %29790 = vxpose.xlu0.b32.start.end [1/1] (short) (narrow) %v29342_v5, 8  ;;  %v33423_v58 = vpop.f32.mrb[199].mxu0  ;;  %v34092_v5 = vpack.c.bf16 %v31063_v38, %v31062_v39 }
0x5c52   : > { %v31064_v58 = vld [vmem:[%s38328_s18 + $0x130] sm:$0xff] }
0x5c54   : > { %v29418_v8 = vpop.f32.mrb[248].mxu1 }
0x5c55   : > { %29822 = vxpose.xlu0.b32.start.end [1/1] (short) (narrow) %v29418_v8, 8  ;;  %v33428_v22 = vpop.f32.mrb[249].mxu1  ;;  %v31065_v8 = vld [vmem:[%s38328_s18 + $0x138] sm:$0xff] }
0x5c56   : > { %v34095_v22 = vpack.c.bf16 %v31065_v8, %v31064_v58  ;;  %v31074_v58 = vld [vmem:[%s38330_s25] ss:$0 sm:$0xff] }
0x5c89   : > { %v29494_v9 = vpop.f32.mrb[200].mxu0 }
0x5c8a   : > { %v33433_v27 = vpop.f32.mrb[201].mxu0  ;;  %29854 = vxpose.xlu1.b32.start.end [1/1] (short) (narrow) %v29494_v9, 8  ;;  %v31066_v9 = vld [vmem:[%s38328_s18 + $0x140] sm:$0xff] }
0x5c8b   : > { %v31067_v27 = vld [vmem:[%s38328_s18 + $0x148] sm:$0xff] }
0x5c8d   : > { %v29646_v23 = vpop.f32.mrb[202].mxu0 }
0x5c8e   : > { %v29570_v56 = vpop.f32.mrb[250].mxu1  ;;  %v33443_v37 = vpop.f32.mrb[203].mxu0  ;;  %29918 = vxpose.xlu1.b32.start.end [1/1] (short) (narrow) %v29646_v23, 8  ;;  %v34098_v23 = vpack.c.bf16 %v31067_v27, %v31066_v9 }
0x5c8f   : > { %29886 = vxpose.xlu0.b32.start.end [1/1] (short) (narrow) %v29570_v56, 8  ;;  %v33438_v11 = vpop.f32.mrb[251].mxu1  ;;  %v31068_v56 = vld [vmem:[%s38328_s18 + $0x150] sm:$0xff]  ;;  %v31069_v37 = vld [vmem:[%s38328_s18 + $0x158] sm:$0xff] }
0x5c90   : > { %v34101_v11 = vpack.c.bf16 %v31069_v37, %v31068_v56 }
0x5c92   : > { %v29722_v7 = vpop.f32.mrb[252].mxu1 }
0x5c93   : > { %29950 = vxpose.xlu0.b32.start.end [1/1] (short) (narrow) %v29722_v7, 8  ;;  %v33448_v33 = vpop.f32.mrb[253].mxu1  ;;  %v31070_v7 = vld [vmem:[%s38328_s18 + $0x160] sm:$0xff] }
0x5c94   : > { %v31071_v33 = vld [vmem:[%s38328_s18 + $0x168] sm:$0xff] }
0x5cc9   : > { %v29742_v43 = vpop.trf.xlu0 }
0x5cca   : > { %29982 = vxpose.xlu1.b32.start [1/8] (short) (narrow) %v29742_v43, 8  ;;  %v34104_v43 = vpack.c.bf16 %v31071_v33, %v31070_v7 }
0x5ccd   : > { %v29774_v31 = vpop.trf.xlu1 }
0x5cce   : > { %29983 = vxpose.xlu1.b32.cont [2/8] (short) (narrow) %v29774_v31, 8 }
0x5cd1   : > { %v29806_v45 = vpop.trf.xlu0 }
0x5cd2   : > { %29984 = vxpose.xlu1.b32.cont [3/8] (short) (narrow) %v29806_v45, 8 }
0x5cd5   : > { %v29838_v47 = vpop.trf.xlu0 }
0x5cd6   : > { %29985 = vxpose.xlu1.b32.cont [4/8] (short) (narrow) %v29838_v47, 8 }
0x5d0a   : > { %v29870_v28 = vpop.trf.xlu1 }
0x5d0b   : > { %29986 = vxpose.xlu1.b32.cont [5/8] (short) (narrow) %v29870_v28, 8  ;;  %v25840_v28 = vld [vmem:[#allocation13 + $0x28] sm:$0xf] }
0x5d0c   : > { %v30310_v24 = vrot.slane %v25840_v28, %v35856_v20 }
0x5d0e   : > { %v29934_v42 = vpop.trf.xlu1 }
0x5d0f   : > { %v29902_v15 = vpop.trf.xlu0 }
0x5d10   : > { %29987 = vxpose.xlu1.b32.cont [6/8] (short) (narrow) %v29902_v15, 8  ;;  %v30108_v15 = vrot.slane %v25840_v28, %v35427_v40  ;;  %v31073_v40 = vld [vmem:[%s38328_s18 + $0x178] sm:$0xff] }
0x5d13   : > { %v29966_v54 = vpop.trf.xlu0 }
0x5d14   : > { %29988 = vxpose.xlu1.b32.cont [7/8] (short) (narrow) %v29934_v42, 8 }
0x5d18   : > { %29989 = vxpose.xlu1.b32.end [8/8] (short) (narrow) %v29966_v54, 8 }
0x5d7c   : > { %v29998_v59 = vpop.trf.xlu1 }
0x5d7d   : > { %33466 = vmatmul.mubr.msk.f32.vlgmr.msra.gmra.mrb[204].mxu0 %vm804_vm1, %v29998_v59  ;;  %v30113_v59 = vrot.slane %v25840_v28, %v35739_v3  ;;  %v30127_v3 = vrot.slane %v38078_v51, %v35751_v17 }
0x5d7e   : > { %33519 = vmatprep.mubr.msk.f32.mxu0 %vm34958_vm2, %v34957_v29  ;;  %34087 = vmatpush3.bf16.msra.mxu0 %v34086_v16 }
0x5d7f   : > { %34088 = vmatprep.subr.bf16.mxu0 %v34959_v62 }
0x5d82   : > { %34090 = vmatpush3.bf16.msra.mxu0 %v34089_v60 }
0x5d83   : > { %34091 = vmatprep.subr.bf16.mxu0 %v34959_v62 }
0x5d86   : > { %34093 = vmatpush3.bf16.msra.mxu0 %v34092_v5 }
0x5d87   : > { %34094 = vmatprep.subr.bf16.mxu0 %v34959_v62 }
0x5d8a   : > { %34096 = vmatpush3.bf16.msra.mxu0 %v34095_v22 }
0x5d8b   : > { %34097 = vmatprep.subr.bf16.mxu0 %v34959_v62 }
0x5d8e   : > { %34099 = vmatpush3.bf16.msra.mxu0 %v34098_v23 }
0x5d8f   : > { %34100 = vmatprep.subr.bf16.mxu0 %v34959_v62 }
0x5d92   : > { %34102 = vmatpush3.bf16.msra.mxu0 %v34101_v11 }
0x5d93   : > { %34103 = vmatprep.subr.bf16.mxu0 %v34959_v62 }
0x5d96   : > { %34105 = vmatpush3.bf16.msra.mxu0 %v34104_v43 }
0x5d97   : > { %34106 = vmatprep.subr.bf16.mxu0 %v34959_v62 }
0x5e50   : > { %v30083_v41 = vpop.f32.mrb[204].mxu0 }
0x5e51   : > { %v30084_v48 = vadd.f32 %v30083_v41, %v28032_v53  ;;  %v33467_v44 = vpop.f32.mrb[205].mxu0 }
0x5e53   : > { %v30088_v63 = vrot.slane %v30084_v48, 7  ;;  %v31072_v48 = vld [vmem:[%s38328_s18 + $0x170] sm:$0xff] }
0x5e54   : > { %v34107_v44 = vpack.c.bf16 %v31073_v40, %v31072_v48 }
0x5e55   : > { %v30090_v55 = vsel %vm16877_vm4, %v28104_v32, %v30088_v63 }
0x5e56   : > { %v30091_v50 = vadd.f32 %v30090_v55, %v37821_v1  ;;  %v30118_v1 = vld [vmem:[#allocation11 + $0x90] sm:$0xff]  ;;  %34108 = vmatpush3.bf16.msra.mxu0 %v34107_v44 }
0x5e57   : > { %v34077_v12 = vpack.c.bf16 %v30119_v26, %v30118_v1  ;;  %v30317_v1 = vld [vmem:[%s38329_s5] sm:$0xff]  ;;  %v30319_v26 = vld [vmem:[%s38329_s5 + $0x10] sm:$0xff] }
0x5e58   : > { %v30092_v0 = vsel %vm16968_vm5, %v30091_v50, 0.0 }
0x5e59   : > { %30093 = vadd.xlane.f32.xlu0 %v30092_v0  ;;  %34078 = vmatpush3.bf16.msra.mxu1 %v34077_v12  ;;  %v30320_v12 = vld [vmem:[%s38329_s5 + $0x18] sm:$0xff] }
0x5e5a   : > { %34079 = vmatprep.subr.bf16.mxu1 %v34959_v62  ;;  %v34113_v18 = vpack.c.bf16 %v30320_v12, %v30319_v26 }
0x5e5d   : > { %34081 = vmatpush3.bf16.msra.mxu1 %v34080_v52  ;;  %v30322_v52 = vld [vmem:[%s38329_s5 + $0x28] sm:$0xff] }
0x5e5e   : > { %34082 = vmatprep.subr.bf16.mxu1 %v34959_v62  ;;  %v34116_v34 = vpack.c.bf16 %v30322_v52, %v30321_v57 }
0x5e61   : > { %34084 = vmatpush3.bf16.msra.mxu1 %v34083_v61  ;;  %v30324_v61 = vld [vmem:[%s38329_s5 + $0x38] sm:$0xff] }
0x5e62   : > { %34109 = vmatprep.subr.bf16.mxu1 %v34959_v62  ;;  %v34119_v4 = vpack.c.bf16 %v30324_v61, %v30323_v2 }
0x5ee6   : > { %v30094_v36 = vpop.xlane.xlu0 %30093 }
0x5ee7   : > { %v30095_v30 = vmul.f32 0.015625, %v30094_v36 }
0x5ee9   : > { %v38085_v14 = vsub.f32 %v30091_v50, %v30095_v30 }
0x5eeb   : > { %v30097_v21 = vmul.f32 %v38085_v14, %v38085_v14 }
0x5eed   : > { %v30098_v46 = vsel %vm16968_vm5, %v30097_v21, 0.0 }
0x5eee   : > { %30099 = vadd.xlane.f32.xlu1 %v30098_v46 }
0x5f7b   : > { %v30100_v31 = vpop.xlane.xlu1 %30099 }
0x5f7c   : > { %v30101_v45 = vmul.f32 0.015625, %v30100_v31 }
0x5f7e   : > { %v30102_v47 = vadd.f32 1e-05, %v30101_v45 }
0x5f80   : > { %34657 = vrsqrt.f32 %v30102_v47 }
0x5f8a   : > { %v34658_v42 = vpop.eup %34657 }
0x5f8b   : > { %v30104_v54 = vmul.f32 %v34658_v42, %v38085_v14 }
0x5f8d   : > { %v30109_v53 = vmul.f32 %v30108_v15, %v30104_v54 }
0x5f8f   : > { %v30114_v41 = vadd.f32 %v30113_v59, %v30109_v53 }
0x5f91   : > { %33485 = vmatmul.mubr.msk.f32.vlgmr.msra.gmra.mrb[254].mxu1 %vm804_vm1, %v30114_v41 }
0x5f92   : > { %33538 = vmatprep.mubr.msk.f32.mxu1 %vm34958_vm2, %v34957_v29  ;;  %v30222_v29 = vrot.slane %v38078_v51, %v35754_v19  ;;  %v30318_v19 = vld [vmem:[%s38329_s5 + $0x8] sm:$0xff] }
0x5f93   : > { %v34110_v51 = vpack.c.bf16 %v30318_v19, %v30317_v1 }
0x5f95   : > { %34111 = vmatpush3.bf16.msra.mxu1 %v34110_v51 }
0x5f96   : > { %34112 = vmatprep.subr.bf16.mxu1 %v34959_v62 }
0x5f99   : > { %34114 = vmatpush3.bf16.msra.mxu1 %v34113_v18 }
0x5f9a   : > { %34115 = vmatprep.subr.bf16.mxu1 %v34959_v62 }
0x5f9d   : > { %34117 = vmatpush3.bf16.msra.mxu1 %v34116_v34 }
0x5f9e   : > { %34118 = vmatprep.subr.bf16.mxu1 %v34959_v62  ;;  %v30315_v62 = vrot.slane %v25840_v28, %v35863_v35 }
0x5fa1   : > { %34120 = vmatpush3.bf16.msra.mxu1 %v34119_v4 }
0x6064   : > { %v30197_v32 = vpop.f32.mrb[254].mxu1 }
0x6065   : > { %v30198_v63 = vadd.f32 %v30197_v32, %v30127_v3  ;;  %v33486_v55 = vpop.f32.mrb[255].mxu1 }
0x6067   : > { %v30201_v50 = vmax.f32 %v30198_v63, 0.0 }
0x6069   : > { %33520 = vmatmul.mubr.f32.vlgmr.msra.gmra.mrb[206].mxu0 %v30201_v50 }
0x613c   : > { %v30289_v0 = vpop.f32.mrb[206].mxu0 }
0x613d   : > { %v30290_v36 = vadd.f32 %v30289_v0, %v30222_v29  ;;  %v33521_v30 = vpop.f32.mrb[207].mxu0 }
0x613f   : > { %v30293_v14 = vadd.f32 %v30290_v36, %v30114_v41 }
0x6141   : > { %v30294_v21 = vsel %vm16968_vm5, %v30293_v14, 0.0 }
0x6142   : > { %30295 = vadd.xlane.f32.xlu0 %v30294_v21 }
0x61cf   : > { %v30296_v46 = vpop.xlane.xlu0 %30295 }
0x61d0   : > { %v30297_v13 = vmul.f32 0.015625, %v30296_v46 }
0x61d2   : > { %v30298_v6 = vsub.f32 %v30293_v14, %v30297_v13 }
0x61d4   : > { %v30299_v10 = vmul.f32 %v30298_v6, %v30298_v6 }
0x61d6   : > { %v30300_v17 = vsel %vm16968_vm5, %v30299_v10, 0.0 }
0x61d7   : > { %30301 = vadd.xlane.f32.xlu0 %v30300_v17 }
0x6264   : > { %v30302_v49 = vpop.xlane.xlu0 %30301 }
0x6265   : > { %v30303_v25 = vmul.f32 0.015625, %v30302_v49 }
0x6267   : > { %v30304_v16 = vadd.f32 1e-05, %v30303_v25 }
0x6269   : > { %34659 = vrsqrt.f32 %v30304_v16 }
0x6273   : > { %v34660_v60 = vpop.eup %34659 }
0x6274   : > { %v30306_v39 = vmul.f32 %v34660_v60, %v30298_v6 }
0x6276   : > { %v30311_v38 = vmul.f32 %v30310_v24, %v30306_v39 }
0x6278   : > { %v30316_v5 = vadd.f32 %v30315_v62, %v30311_v38 }
0x627a   : > { %33539 = vmatmul.mubr.msk.f32.vlgmr.msra.gmra.mrb[0].mxu1 %vm804_vm1, %v30316_v5 }
0x634d   : > { %v30401_v8 = vpop.f32.mrb[0].mxu1 }
0x634e   : > { %v30402_v20 = vadd.f32 %v31074_v58, %v30401_v8  ;;  %v33540_v22 = vpop.f32.mrb[1].mxu1 }
0x6350   : > { %30405 = vst [vmem:[%s680_s2] sm:$0x3] %v30402_v20 }
0x6351   : > { %34879 = shalt.err (!%p34876_p8)
}
0x6352   : > { %s34880_s19 = scalar_lea.hbm %s38199_s7, 32  ;;  %s34884_s4 = scalar_lea.hbm %s38331_s6, 64 }
0x6353   : > { %p34881_p4 = scmp.ne.s32.totalorder %s38199_s7, %s34880_s19  ;;  %p34885_p3 = scmp.lt.u32.totalorder %s38199_s7, %s38331_s6 }
0x6354   : > { %p34886_p5 = scmp.lt.u32.totalorder %s34884_s4, %s34880_s19  ;;  %p34888_p6 = scmp.lt.u32.totalorder %s34880_s19, %s38199_s7 }
0x6355   : > { %p34882_p10 = pnand %p34881_p4, %p38332_p9 }
0x6356   : > { %p34887_p7 = por %p34886_p5, %p34885_p3 }
0x6357   : > { %p34883_p11 = pneg %p34882_p10 }
0x6358   : > { %p34889_p12 = por %p34888_p6, %p34887_p7 }
0x635a   : > { %p34890_p1 = pnand %p34889_p12, %p34883_p11 }
0x635c   : > { %34893 = shalt.err (!%p34890_p1)
}
0x635d   : > { %34147 = dma.vmem_to_hbm [thread:$0]  (%p38332_p9), %s38201_s10, 32, %s38199_s7, %s30407_s8  }
0x635e PF: > { %s30432_s0 = sand.u32 1, %s34932_s27   ;;  %p38333_p13 = scmp.ne.s32.totalorder %s38310_s9, 0 }
0x635f   : > { %p38334_p0 = scmp.ge.s32.totalorder %s34944_s30, 2  ;;  %s30433_s1 = scalar_lea.sflag [#allocation4], %s30432_s0 }
0x6361   : > { %p34173_p2 = pnand %p38334_p0, %p38333_p13 }
0x6363   : > { %34927 = dma.done.wait (!%p34173_p2), %s30433_s1, 32  }
0x6364   : > { %34929 = vsyncadd (!%p34173_p2), %s30433_s1, 4294967264  ;;  %p34_p8 = scmp.ge.s32.totalorder %s35254_s21, 4   ;;  %s38335_s27 = smov %s34936_s28 }
0x6365   : > { %s38336_s28 = smov %s34940_s29  ;;  %s38337_s29 = smov %s35265_s26 }
0x6366   : > { %s38338_s30 = smov %s35254_s21  ;;  %36 = sbr.rel (!%p34_p8) target bundleno = 25 (0x19), region = 185 }
0x636d   :  { %30438 = vsyncpa [#allocation3], 1 }
0x636e   :  { %30440 = vsyncpa [#allocation3 + $0x1], 1 }
0x636f   :  { %30441 = vsyncpa [#allocation6], 1 }
0x6370   :  { %30442 = vsyncpa [#allocation9], 1 }
0x6371   :  { %30443 = vsyncpa [#allocation12], 1 }
0x6372   :  { %30444 = vsyncpa [#allocation4], 1 }
0x6373   :  { %30446 = vsyncpa [#allocation4 + $0x1], 1 }

</bundles_post_ra>
